<compile_context>
chip_gen: v7x
topology: tpu7x:2x2x1
jax: 0.10.0
libtpu: 0.0.40
codegen_flags: <defaults>
</compile_context>

<pallas_src>
import numpy as np
import jax
import jax.numpy as jnp
from jax.experimental import pallas as pl
from jax.experimental.pallas import tpu as pltpu


# ------------------------------ fused kernel ------------------------------- #

def _rnd_fused_kernel(
    img_ref,                    # (nb*P1, C*64) bf16 conv1 patches (this tile)
    img_m_ref, img_s_ref,       # (P1, C*64) f32 folded RunningMeanStd factors
    vec_ref,                    # (nb, Dv) f32
    vec_m_ref, vec_s_ref,       # (1, Dv) f32
    w1_ref, b1_ref,             # conv1 (pred|targ along N): (C*64, 64), (1, 64)
    t2_ref,                     # conv2 gather: (16, nb*P2, nb*P1) bf16 0/1
    w2_ref, b2_ref,             # conv2 wide-K block-diag:  (16*64, 128), (1, 128)
    t3_ref,                     # conv3 gather (d3==1): (9, nb, nb*P2) bf16 0/1
    w3_ref, b3_ref,             # conv3 wide-K block-diag:  (9*128, 128), (1, 128)
    wm1_ref, bm1_ref,           # mlp1 (pred|targ along N): (Dv, 2*Dh), (1, 2*Dh)
    wm2_ref, bm2_ref,           # mlp2 block-diag:          (2*Dh, 512), (1, 512)
    wfc_ref,                    # fc1 conv part block-diag: (128, 2*Dh)
    wfm_ref, bf1_ref,           # fc1 mlp part block-diag:  (512, 2*Dh), (1, 2*Dh)
    w2p_ref, b2p_ref,           # fc2_predict: (Dh, Dh), (1, Dh)
    w3p_ref, b3p_ref,           # fc3_predict: (Dh, Dh), (1, Dh)
    ri_ref,                     # (1, 1) f32: 1 / (sqrt(var_ri) + 1e-7)
    o_ref):                     # (nb, 1) f32 intrinsic reward
    f32, bf16 = jnp.float32, jnp.bfloat16
    nb = o_ref.shape[0]
    P1, CK = img_m_ref.shape

    # ---- observation normalization (inference RunningMeanStd; the /255 and
    #      1/(sqrt(var)+eps) factors are folded into img_m/img_s host-side) ----
    x = img_ref[...].astype(f32).reshape(nb, P1, CK)
    x = jnp.clip((x - img_m_ref[...]) * img_s_ref[...], -5.0, 5.0)
    x = x.reshape(nb * P1, CK)
    v = jnp.clip((vec_ref[...] - vec_m_ref[...]) * vec_s_ref[...], -5.0, 5.0)

    # ---- conv1: one matmul over im2col patches, predict|target along lanes ----
    y1 = jnp.dot(x.astype(bf16), w1_ref[...], preferred_element_type=f32)
    y1 = jnp.maximum(y1 + b1_ref[...], 0.0).astype(bf16)           # (nb*P1, 64)

    # ---- conv2: gather the 16 taps with tile-sized 0/1 selection matmuls,
    #      concat along lanes, then ONE wide-K (K=1024) MXU dot ----
    taps2 = [jnp.dot(t2_ref[t], y1, preferred_element_type=f32).astype(bf16)
             for t in range(t2_ref.shape[0])]
    g2 = jnp.concatenate(taps2, axis=1)                            # (nb*P2, 1024)
    y2 = jnp.dot(g2, w2_ref[...], preferred_element_type=f32)
    y2 = jnp.maximum(y2 + b2_ref[...], 0.0).astype(bf16)           # (nb*P2, 128)

    # ---- conv3 (d3 == 1): each tap is a whole spatial position; gather the 9
    #      positions (tiny selection matmuls), concat, one K=1152 dot ----
    taps3 = [jnp.dot(t3_ref[t], y2, preferred_element_type=f32).astype(bf16)
             for t in range(t3_ref.shape[0])]
    g3 = jnp.concatenate(taps3, axis=1)                            # (nb, 9*128)
    y3 = jnp.dot(g3, w3_ref[...], preferred_element_type=f32)
    y3 = jnp.maximum(y3 + b3_ref[...], 0.0).astype(bf16)           # (nb, 128)

    # ---- MLP head on the vector obs (predict|target packed) ----
    z = jnp.dot(v.astype(bf16), wm1_ref[...], preferred_element_type=f32)
    z = jnp.maximum(z + bm1_ref[...], 0.0)
    z = jnp.dot(z.astype(bf16), wm2_ref[...], preferred_element_type=f32)
    z = jnp.maximum(z + bm2_ref[...], 0.0).astype(bf16)            # (nb, 512)

    # ---- joint fc1: conv flatten (channel-major, trivial for d3==1) + mlp ----
    u = (jnp.dot(y3, wfc_ref[...], preferred_element_type=f32)
         + jnp.dot(z, wfm_ref[...], preferred_element_type=f32)
         + bf1_ref[...])                                           # (nb, 2*Dh)

    Dh = w2p_ref.shape[0]
    p = jnp.maximum(u[:, :Dh], 0.0)          # relu(fc1_predict(.))
    t = u[:, Dh:]                            # fc1_target(.)  (no relu)

    p = jnp.dot(p.astype(bf16), w2p_ref[...], preferred_element_type=f32)
    p = jnp.maximum(p + b2p_ref[...], 0.0)
    p = jnp.dot(p.astype(bf16), w3p_ref[...], preferred_element_type=f32)
    p = p + b3p_ref[...]

    d = p - t
    o_ref[...] = jnp.mean(d * d, axis=1, keepdims=True) * ri_ref[...]


# ------------------------------- wrapper ----------------------------------- #

def im2col(x, k, s):
    """x: (B, C, H, W) -> (B*OH*OW, C*k*k), column order (C, kh, kw)."""
    B, C, H, W = x.shape
    OH = (H - k) // s + 1
    OW = (W - k) // s + 1
    cols = []
    for di in range(k):
        for dj in range(k):
            cols.append(x[:, :, di:di + s * (OH - 1) + 1:s,
                              dj:dj + s * (OW - 1) + 1:s])
    p = jnp.stack(cols, axis=0).reshape(k, k, B, C, OH, OW)
    p = p.transpose(2, 4, 5, 3, 0, 1)                   # (B, OH, OW, C, k, k)
    return p.reshape(B * OH * OW, C * k * k), OH, OW


def rnd_multi_forward(packed, img, vec, *, nb=8):
    """r_i = RND_Multi.forward((img, vec)), inference-mode BN, one fused kernel."""
    B = img.shape[0]
    n_tiles = pl.cdiv(B, nb)
    Bp = n_tiles * nb

    img_cols, oh1, ow1 = im2col(img.astype(jnp.float32), 8, 4)
    P1 = oh1 * ow1
    CK = img_cols.shape[1]
    # bf16 patches: halves the dominant HBM read; precision is ample for a
    # clipped / normalized observation.
    img_cols = img_cols.astype(jnp.bfloat16)
    vec = vec.astype(jnp.float32)
    if Bp != B:
        img_cols = jnp.pad(img_cols, ((0, (Bp - B) * P1), (0, 0)))
        vec = jnp.pad(vec, ((0, Bp - B), (0, 0)))
    Dv = vec.shape[1]

    wnames = ('w1', 'b1', 't2', 'w2', 'b2', 't3', 'w3', 'b3',
              'wm1', 'bm1', 'wm2', 'bm2', 'wfc', 'wfm', 'bf1',
              'w2p', 'b2p', 'w3p', 'b3p', 'ri_scale')
    args = [img_cols, packed['img_m'], packed['img_s'],
            vec, packed['vec_m'], packed['vec_s']] + [packed[n] for n in wnames]

    def const_spec(x):            # weights/stats: fetched once, VMEM-resident
        nd = x.ndim
        return pl.BlockSpec(x.shape, lambda i: (0,) * nd)

    in_specs = ([pl.BlockSpec((nb * P1, CK), lambda i: (i, 0)),
                 const_spec(packed['img_m']),
                 const_spec(packed['img_s']),
                 pl.BlockSpec((nb, Dv), lambda i: (i, 0)),
                 const_spec(packed['vec_m']),
                 const_spec(packed['vec_s'])]
                + [const_spec(packed[n]) for n in wnames])
    out_spec = pl.BlockSpec((nb, 1), lambda i: (i, 0))

    # advisory cost estimate so XLA can overlap the wrapper-side im2col
    P2 = packed['t2'].shape[1] // nb
    mm = lambda m, k, n: 2 * m * k * n
    flops = Bp * (mm(P1, CK, 64)                                    # conv1
                  + packed['t2'].shape[0] * mm(P2, nb * P1, 64)     # conv2 gather
                  + mm(P2, *packed['w2'].shape)                     # conv2
                  + packed['t3'].shape[0] * mm(1, nb * P2, 128)     # conv3 gather
                  + mm(1, *packed['w3'].shape)                      # conv3
                  + mm(1, Dv, packed['wm1'].shape[1])               # mlp1
                  + mm(1, *packed['wm2'].shape)                     # mlp2
                  + mm(1, *packed['wfc'].shape)                     # fc1 conv part
                  + mm(1, *packed['wfm'].shape)                     # fc1 mlp part
                  + 2 * mm(1, *packed['w2p'].shape))                # fc2 + fc3
    bytes_accessed = int(sum(a.size * a.dtype.itemsize for a in args) + Bp * 4)

    out = pl.pallas_call(
        _rnd_fused_kernel,
        out_shape=jax.ShapeDtypeStruct((Bp, 1), jnp.float32),
        grid_spec=pltpu.PrefetchScalarGridSpec(
            num_scalar_prefetch=0,
            grid=(n_tiles,),
            in_specs=in_specs,
            out_specs=out_spec),
        compiler_params=pltpu.CompilerParams(
            dimension_semantics=("parallel",)),     # megacore split on v7x
        cost_estimate=pl.CostEstimate(flops=int(flops), transcendentals=0,
                                      bytes_accessed=bytes_accessed),
    )(*args)
    return out[:B, 0]


# --------------------------- parameter packing ----------------------------- #

def _fold_bn(wm, b, bn, eps=1e-5):
    """Fold inference-mode BN into a (K_in, OC) weight matrix + bias."""
    gamma, beta, rm, rv = bn
    s = gamma / jnp.sqrt(rv + eps)
    return wm * s[None, :], b * s + (beta - rm * s)


def _block_diag(a, b):
    out = jnp.zeros((a.shape[0] + b.shape[0], a.shape[1] + b.shape[1]), a.dtype)
    return out.at[:a.shape[0], :a.shape[1]].set(a).at[a.shape[0]:, a.shape[1]:].set(b)


def _conv_mat(w):          # (OC, IC, k, k) -> (IC*k*k, OC), rows (ic, kh, kw)
    return w.reshape(w.shape[0], -1).T


def _tap_slices(wm, k):    # (IC*k*k, OC) -> (k*k, IC, OC)
    return jnp.stack([wm[t::k * k] for t in range(k * k)], axis=0)


def _selection(batch, H, W, k, s):
    """0/1 gather matrices (tile-sized): (k*k, batch*OH*OW, batch*H*W) bf16."""
    OH = (H - k) // s + 1
    OW = (W - k) // s + 1
    T = np.zeros((k * k, batch * OH * OW, batch * H * W), np.float32)
    for di in range(k):
        for dj in range(k):
            t = di * k + dj
            for b in range(batch):
                for oh in range(OH):
                    for ow in range(OW):
                        T[t, b * OH * OW + oh * OW + ow,
                          b * H * W + (s * oh + di) * W + (s * ow + dj)] = 1.0
    return jnp.asarray(T, jnp.bfloat16)


def init_raw_params(key, D_img, D_vec, D_hidden):
    C, H, W = D_img
    d1 = (H - 8) // 4 + 1
    d2 = (d1 - 4) // 2 + 1
    d3 = (d2 - 3) // 1 + 1
    feat_img = 64 * d3 * d3
    feat_mlp = 256
    feat = feat_img + feat_mlp

    keys = iter(jax.random.split(key, 128))
    nxt = lambda: next(keys)

    def conv(oc, ic, k):
        return (jax.random.normal(nxt(), (oc, ic, k, k), jnp.float32) * 0.05,
                jax.random.normal(nxt(), (oc,), jnp.float32) * 0.05)

    def lin(o, i):
        return (jax.random.normal(nxt(), (o, i), jnp.float32) / np.sqrt(i),
                jax.random.normal(nxt(), (o,), jnp.float32) * 0.05)

    def bn(n):
        return (1.0 + 0.1 * jax.random.normal(nxt(), (n,), jnp.float32),
                0.1 * jax.random.normal(nxt(), (n,), jnp.float32),
                0.1 * jax.random.normal(nxt(), (n,), jnp.float32),
                jax.random.uniform(nxt(), (n,), jnp.float32, minval=0.5, maxval=1.5))

    raw = {'dims': (d1, d2, d3, feat_img, feat_mlp, feat)}
    for pre in ('p', 't'):
        for i, (oc, ic, k) in enumerate([(32, C, 8), (64, 32, 4), (64, 64, 3)], 1):
            raw[f'{pre}_conv{i}'] = conv(oc, ic, k)
            raw[f'{pre}_bnc{i}'] = bn(oc)
        raw[f'{pre}_mlp1'] = lin(D_hidden, D_vec)
        raw[f'{pre}_bnm1'] = bn(D_hidden)
        raw[f'{pre}_mlp2'] = lin(feat_mlp, D_hidden)
        raw[f'{pre}_bnm2'] = bn(feat_mlp)
    raw['p_fc1'] = lin(D_hidden, feat)
    raw['p_fc2'] = lin(D_hidden, D_hidden)
    raw['p_fc3'] = lin(D_hidden, D_hidden)
    raw['t_fc1'] = lin(D_hidden, feat)
    raw['rms_img'] = (0.1 * jax.random.normal(nxt(), (C, H, W), jnp.float32),
                      jax.random.uniform(nxt(), (C, H, W), jnp.float32, 0.5, 1.5))
    raw['rms_vec'] = (0.1 * jax.random.normal(nxt(), (D_vec,), jnp.float32),
                      jax.random.uniform(nxt(), (D_vec,), jnp.float32, 0.5, 1.5))
    raw['rms_ri_var'] = jnp.array([1.3], jnp.float32)
    return raw


def pack_params(raw, nb):
    """Fold inference BN, pack predict/target weights (concat / block-diag),
    build the tile-sized gather matrices and folded normalization constants."""
    d1, d2, d3, feat_img, feat_mlp, feat = raw['dims']
    # TODO(synk): general d3 > 1 needs conv3/fc1 selection matrices like conv2.
    assert d3 == 1, "pack_params currently specializes the d3 == 1 configuration"
    bf16 = jnp.bfloat16
    packed = {}

    # conv1: shared input -> concatenate predict|target along N
    w1s, b1s = [], []
    for pre in ('p', 't'):
        wm, b = _fold_bn(_conv_mat(raw[f'{pre}_conv1'][0]),
                         raw[f'{pre}_conv1'][1], raw[f'{pre}_bnc1'])
        w1s.append(wm)
        b1s.append(b)
    packed['w1'] = jnp.concatenate(w1s, axis=1).astype(bf16)
    packed['b1'] = jnp.concatenate(b1s)[None, :]

    # conv2 / conv3: per-tap block-diagonal weights, fused along K (wide-K dot)
    for idx, k in ((2, 4), (3, 3)):
        taps, biases = {}, {}
        for pre in ('p', 't'):
            w, b = raw[f'{pre}_conv{idx}']
            wm, b = _fold_bn(_conv_mat(w), b, raw[f'{pre}_bnc{idx}'])
            taps[pre] = _tap_slices(wm, k)
            biases[pre] = b
        packed[f'w{idx}'] = jnp.concatenate(
            [_block_diag(taps['p'][t], taps['t'][t]) for t in range(k * k)],
            axis=0).astype(bf16)
        packed[f'b{idx}'] = jnp.concatenate([biases['p'], biases['t']])[None, :]

    # tile-sized 0/1 gather matrices (block-diagonal over the nb-tile, not B)
    packed['t2'] = _selection(nb, d1, d1, 4, 2)    # (16, nb*9, nb*d1*d1)
    packed['t3'] = _selection(nb, d2, d2, 3, 1)    # (9,  nb,   nb*9)   d3 == 1

    # MLP head: mlp1 shares the input -> concat along N; mlp2 block-diagonal
    wm1, bm1 = [], []
    for pre in ('p', 't'):
        w, b = raw[f'{pre}_mlp1']
        w, b = _fold_bn(w.T, b, raw[f'{pre}_bnm1'])
        wm1.append(w)
        bm1.append(b)
    packed['wm1'] = jnp.concatenate(wm1, axis=1).astype(bf16)
    packed['bm1'] = jnp.concatenate(bm1)[None, :]

    wp, bp = _fold_bn(raw['p_mlp2'][0].T, raw['p_mlp2'][1], raw['p_bnm2'])
    wt, bt = _fold_bn(raw['t_mlp2'][0].T, raw['t_mlp2'][1], raw['t_bnm2'])
    packed['wm2'] = _block_diag(wp, wt).astype(bf16)
    packed['bm2'] = jnp.concatenate([bp, bt])[None, :]

    # joint fc1: conv part (channel-major flatten, trivial for d3 == 1) and
    # mlp part, both block-diagonal over predict|target
    wp_full, wt_full = raw['p_fc1'][0].T, raw['t_fc1'][0].T        # (feat, Dh)
    packed['wfc'] = _block_diag(wp_full[:feat_img], wt_full[:feat_img]).astype(bf16)
    packed['wfm'] = _block_diag(wp_full[feat_img:], wt_full[feat_img:]).astype(bf16)
    packed['bf1'] = jnp.concatenate([raw['p_fc1'][1], raw['t_fc1'][1]])[None, :]

    # fc2 / fc3 (predict branch only)
    packed['w2p'] = raw['p_fc2'][0].T.astype(bf16)
    packed['b2p'] = raw['p_fc2'][1][None, :]
    packed['w3p'] = raw['p_fc3'][0].T.astype(bf16)
    packed['b3p'] = raw['p_fc3'][1][None, :]

    # normalization constants: fold /255 and 1/(sqrt(var)+eps) host-side and
    # im2col them so they apply directly to the conv1 patch matrix.  NOT tiled
    # by batch -- broadcast inside the kernel.
    mean_img, var_img = raw['rms_img']
    inv_std = 1.0 / (jnp.sqrt(var_img) + 1e-7)
    m_cols, _, _ = im2col(mean_img[None], 8, 4)
    s_cols, _, _ = im2col(inv_std[None], 8, 4)
    packed['img_m'] = 255.0 * m_cols                               # (P1, C*64)
    packed['img_s'] = s_cols / 255.0

    mean_vec, var_vec = raw['rms_vec']
    packed['vec_m'] = mean_vec[None, :]
    packed['vec_s'] = (1.0 / (jnp.sqrt(var_vec) + 1e-7))[None, :]
    packed['ri_scale'] = (1.0 / (jnp.sqrt(raw['rms_ri_var']) + 1e-7)).reshape(1, 1)
    return packed


# ------------------------- pure-JAX f32 reference -------------------------- #

def rnd_multi_reference(raw, img, vec):
    """RND_Multi.forward, inference-mode BN, straight f32 (for validation)."""
    def norm(x, m, v):
        return jnp.clip((x - m) / (jnp.sqrt(v) + 1e-7), -5.0, 5.0)

    def bn(x, p, eps=1e-5):
        gamma, beta, rm, rv = p
        shp = (1, -1) + (1,) * (x.ndim - 2)
        return ((x - rm.reshape(shp)) / jnp.sqrt(rv.reshape(shp) + eps)
                * gamma.reshape(shp) + beta.reshape(shp))

    def conv(x, wb, stride):
        w, b = wb
        y = jax.lax.conv_general_dilated(
            x, w, (stride, stride), 'VALID',
            dimension_numbers=('NCHW', 'OIHW', 'NCHW'))
        return y + b[None, :, None, None]

    mi, vi = raw['rms_img']
    mv, vv = raw['rms_vec']
    x = norm(img / 255.0, mi[None], vi[None])
    v = norm(vec, mv[None], vv[None])

    def conv_head(pre):
        h = x
        for i, s in ((1, 4), (2, 2), (3, 1)):
            h = jax.nn.relu(bn(conv(h, raw[f'{pre}_conv{i}'], s),
                               raw[f'{pre}_bnc{i}']))
        return h.reshape(h.shape[0], -1)

    def mlp_head(pre):
        w1, b1 = raw[f'{pre}_mlp1']
        w2, b2 = raw[f'{pre}_mlp2']
        h = jax.nn.relu(bn(v @ w1.T + b1, raw[f'{pre}_bnm1']))
        return jax.nn.relu(bn(h @ w2.T + b2, raw[f'{pre}_bnm2']))

    p = jnp.concatenate([conv_head('p'), mlp_head('p')], axis=-1)
    t = jnp.concatenate([conv_head('t'), mlp_head('t')], axis=-1)

    w, b = raw['p_fc1']; p = jax.nn.relu(p @ w.T + b)
    w, b = raw['p_fc2']; p = jax.nn.relu(p @ w.T + b)
    w, b = raw['p_fc3']; p = p @ w.T + b
    w, b = raw['t_fc1']; t = t @ w.T + b
    r_i = jnp.mean(jnp.square(p - t), axis=1)
    return r_i / (jnp.sqrt(raw['rms_ri_var'][0]) + 1e-7)


# --------------------------------- main ------------------------------------ #

if __name__ == "__main__":
    key = jax.random.PRNGKey(0)
    B, nb = 16, 8            # 2 grid steps of 8 batch elements each
    D_img = (4, 36, 36)      # (C, H, W): 36 -> 8 -> 3 -> 1 spatial, feat_img = 64
    D_vec = 8
    D_hidden = 64

    kp, ki, kv = jax.random.split(key, 3)
    raw = init_raw_params(kp, D_img, D_vec, D_hidden)
    packed = pack_params(raw, nb)

    img = jax.random.uniform(ki, (B,) + D_img, jnp.float32, minval=0.0, maxval=255.0)
    vec = jax.random.normal(kv, (B, D_vec), jnp.float32)

    fwd = jax.jit(lambda p, i, v: rnd_multi_forward(p, i, v, nb=nb))
    r_i = fwd(packed, img, vec)
    jax.block_until_ready(r_i)
    assert r_i.shape == (B,) and r_i.dtype == jnp.float32

    # validate against the pure-JAX f32 reference (kernel matmuls are bf16)
    r_ref = rnd_multi_reference(raw, img, vec)
    rel = float(jnp.max(jnp.abs(r_i - r_ref)) / (jnp.max(jnp.abs(r_ref)) + 1e-9))
    assert rel < 0.15, f"kernel vs f32 reference relative error too large: {rel:.4f}"
    print("KERNEL_OK")
</pallas_src>

<mosaic_0001>
module attributes {stable_mosaic.version = 11 : i64} {
  func.func @_rnd_fused_kernel(%arg0: i32, %arg1: memref<512x256xbf16, #tpu.memory_space<vmem>>, %arg2: memref<64x256xf32, #tpu.memory_space<vmem>>, %arg3: memref<64x256xf32, #tpu.memory_space<vmem>>, %arg4: memref<8x8xf32, #tpu.memory_space<vmem>>, %arg5: memref<1x8xf32, #tpu.memory_space<vmem>>, %arg6: memref<1x8xf32, #tpu.memory_space<vmem>>, %arg7: memref<256x64xbf16, #tpu.memory_space<vmem>>, %arg8: memref<1x64xf32, #tpu.memory_space<vmem>>, %arg9: memref<16x72x512xbf16, #tpu.memory_space<vmem>>, %arg10: memref<1024x128xbf16, #tpu.memory_space<vmem>>, %arg11: memref<1x128xf32, #tpu.memory_space<vmem>>, %arg12: memref<9x8x72xbf16, #tpu.memory_space<vmem>>, %arg13: memref<1152x128xbf16, #tpu.memory_space<vmem>>, %arg14: memref<1x128xf32, #tpu.memory_space<vmem>>, %arg15: memref<8x128xbf16, #tpu.memory_space<vmem>>, %arg16: memref<1x128xf32, #tpu.memory_space<vmem>>, %arg17: memref<128x512xbf16, #tpu.memory_space<vmem>>, %arg18: memref<1x512xf32, #tpu.memory_space<vmem>>, %arg19: memref<128x128xbf16, #tpu.memory_space<vmem>>, %arg20: memref<512x128xbf16, #tpu.memory_space<vmem>>, %arg21: memref<1x128xf32, #tpu.memory_space<vmem>>, %arg22: memref<64x64xbf16, #tpu.memory_space<vmem>>, %arg23: memref<1x64xf32, #tpu.memory_space<vmem>>, %arg24: memref<64x64xbf16, #tpu.memory_space<vmem>>, %arg25: memref<1x64xf32, #tpu.memory_space<vmem>>, %arg26: memref<1x1xf32, #tpu.memory_space<vmem>>, %arg27: memref<8x1xf32, #tpu.memory_space<vmem>>) attributes {dimension_semantics = [#tpu.dimension_semantics<parallel>], iteration_bounds = array<i64: 2>, scalar_prefetch = 0 : i64, scratch_operands = 0 : i64, tpu.core_type = #tpu.core_type<tc>, window_params = [{transform_indices = @transform_0, window_bounds = array<i64: 512, 256>}, {pipeline_mode = #tpu.pipeline_mode<synchronous>, transform_indices = @transform_1, window_bounds = array<i64: 64, 256>}, {pipeline_mode = #tpu.pipeline_mode<synchronous>, transform_indices = @transform_2, window_bounds = array<i64: 64, 256>}, {transform_indices = @transform_3, window_bounds = array<i64: 8, 8>}, {pipeline_mode = #tpu.pipeline_mode<synchronous>, transform_indices = @transform_4, window_bounds = array<i64: 1, 8>}, {pipeline_mode = #tpu.pipeline_mode<synchronous>, transform_indices = @transform_5, window_bounds = array<i64: 1, 8>}, {pipeline_mode = #tpu.pipeline_mode<synchronous>, transform_indices = @transform_6, window_bounds = array<i64: 256, 64>}, {pipeline_mode = #tpu.pipeline_mode<synchronous>, transform_indices = @transform_7, window_bounds = array<i64: 1, 64>}, {pipeline_mode = #tpu.pipeline_mode<synchronous>, transform_indices = @transform_8, window_bounds = array<i64: 16, 72, 512>}, {pipeline_mode = #tpu.pipeline_mode<synchronous>, transform_indices = @transform_9, window_bounds = array<i64: 1024, 128>}, {pipeline_mode = #tpu.pipeline_mode<synchronous>, transform_indices = @transform_10, window_bounds = array<i64: 1, 128>}, {pipeline_mode = #tpu.pipeline_mode<synchronous>, transform_indices = @transform_11, window_bounds = array<i64: 9, 8, 72>}, {pipeline_mode = #tpu.pipeline_mode<synchronous>, transform_indices = @transform_12, window_bounds = array<i64: 1152, 128>}, {pipeline_mode = #tpu.pipeline_mode<synchronous>, transform_indices = @transform_13, window_bounds = array<i64: 1, 128>}, {pipeline_mode = #tpu.pipeline_mode<synchronous>, transform_indices = @transform_14, window_bounds = array<i64: 8, 128>}, {pipeline_mode = #tpu.pipeline_mode<synchronous>, transform_indices = @transform_15, window_bounds = array<i64: 1, 128>}, {pipeline_mode = #tpu.pipeline_mode<synchronous>, transform_indices = @transform_16, window_bounds = array<i64: 128, 512>}, {pipeline_mode = #tpu.pipeline_mode<synchronous>, transform_indices = @transform_17, window_bounds = array<i64: 1, 512>}, {pipeline_mode = #tpu.pipeline_mode<synchronous>, transform_indices = @transform_18, window_bounds = array<i64: 128, 128>}, {pipeline_mode = #tpu.pipeline_mode<synchronous>, transform_indices = @transform_19, window_bounds = array<i64: 512, 128>}, {pipeline_mode = #tpu.pipeline_mode<synchronous>, transform_indices = @transform_20, window_bounds = array<i64: 1, 128>}, {pipeline_mode = #tpu.pipeline_mode<synchronous>, transform_indices = @transform_21, window_bounds = array<i64: 64, 64>}, {pipeline_mode = #tpu.pipeline_mode<synchronous>, transform_indices = @transform_22, window_bounds = array<i64: 1, 64>}, {pipeline_mode = #tpu.pipeline_mode<synchronous>, transform_indices = @transform_23, window_bounds = array<i64: 64, 64>}, {pipeline_mode = #tpu.pipeline_mode<synchronous>, transform_indices = @transform_24, window_bounds = array<i64: 1, 64>}, {pipeline_mode = #tpu.pipeline_mode<synchronous>, transform_indices = @transform_25, window_bounds = array<i64: 1, 1>}, {transform_indices = @transform_26, window_bounds = array<i64: 8, 1>}]} {
    %c0 = arith.constant 0 : index
    %c0_0 = arith.constant 0 : index
    %0 = vector.load %arg1[%c0, %c0_0] : memref<512x256xbf16, #tpu.memory_space<vmem>>, vector<512x256xbf16>
    %1 = arith.extf %0 : vector<512x256xbf16> to vector<512x256xf32>
    %2 = vector.shape_cast %1 : vector<512x256xf32> to vector<8x64x256xf32>
    %c0_1 = arith.constant 0 : index
    %c0_2 = arith.constant 0 : index
    %3 = vector.load %arg2[%c0_1, %c0_2] : memref<64x256xf32, #tpu.memory_space<vmem>>, vector<64x256xf32>
    %4 = vector.shape_cast %3 : vector<64x256xf32> to vector<1x64x256xf32>
    %5 = vector.broadcast %4 : vector<1x64x256xf32> to vector<8x64x256xf32>
    %6 = arith.subf %2, %5 : vector<8x64x256xf32>
    %c0_3 = arith.constant 0 : index
    %c0_4 = arith.constant 0 : index
    %7 = vector.load %arg3[%c0_3, %c0_4] : memref<64x256xf32, #tpu.memory_space<vmem>>, vector<64x256xf32>
    %8 = vector.shape_cast %7 : vector<64x256xf32> to vector<1x64x256xf32>
    %9 = vector.broadcast %8 : vector<1x64x256xf32> to vector<8x64x256xf32>
    %10 = arith.mulf %6, %9 : vector<8x64x256xf32>
    %cst = arith.constant -5.000000e+00 : f32
    %cst_5 = arith.constant 5.000000e+00 : f32
    %11 = vector.broadcast %cst : f32 to vector<8x64x256xf32>
    %12 = arith.maximumf %11, %10 : vector<8x64x256xf32>
    %13 = vector.broadcast %cst_5 : f32 to vector<8x64x256xf32>
    %14 = arith.minimumf %13, %12 : vector<8x64x256xf32>
    %15 = vector.shape_cast %14 : vector<8x64x256xf32> to vector<512x256xf32>
    %c0_6 = arith.constant 0 : index
    %c0_7 = arith.constant 0 : index
    %16 = vector.load %arg4[%c0_6, %c0_7] : memref<8x8xf32, #tpu.memory_space<vmem>>, vector<8x8xf32>
    %c0_8 = arith.constant 0 : index
    %c0_9 = arith.constant 0 : index
    %17 = vector.load %arg5[%c0_8, %c0_9] : memref<1x8xf32, #tpu.memory_space<vmem>>, vector<1x8xf32>
    %18 = vector.broadcast %17 : vector<1x8xf32> to vector<8x8xf32>
    %19 = arith.subf %16, %18 : vector<8x8xf32>
    %c0_10 = arith.constant 0 : index
    %c0_11 = arith.constant 0 : index
    %20 = vector.load %arg6[%c0_10, %c0_11] : memref<1x8xf32, #tpu.memory_space<vmem>>, vector<1x8xf32>
    %21 = vector.broadcast %20 : vector<1x8xf32> to vector<8x8xf32>
    %22 = arith.mulf %19, %21 : vector<8x8xf32>
    %cst_12 = arith.constant -5.000000e+00 : f32
    %cst_13 = arith.constant 5.000000e+00 : f32
    %23 = vector.broadcast %cst_12 : f32 to vector<8x8xf32>
    %24 = arith.maximumf %23, %22 : vector<8x8xf32>
    %25 = vector.broadcast %cst_13 : f32 to vector<8x8xf32>
    %26 = arith.minimumf %25, %24 : vector<8x8xf32>
    %27 = arith.truncf %15 : vector<512x256xf32> to vector<512x256xbf16>
    %c0_14 = arith.constant 0 : index
    %c0_15 = arith.constant 0 : index
    %28 = vector.load %arg7[%c0_14, %c0_15] : memref<256x64xbf16, #tpu.memory_space<vmem>>, vector<256x64xbf16>
    %cst_16 = arith.constant dense<0.000000e+00> : vector<512x64xf32>
    %29 = tpu.matmul %27, %28, %cst_16 {dimension_numbers = #tpu.dot_dimension_numbers<[1], [0], [0], [1], [0, 0, 1, 1], [], []>} : vector<512x256xbf16>, vector<256x64xbf16>, vector<512x64xf32> -> vector<512x64xf32>
    %c0_17 = arith.constant 0 : index
    %c0_18 = arith.constant 0 : index
    %30 = vector.load %arg8[%c0_17, %c0_18] : memref<1x64xf32, #tpu.memory_space<vmem>>, vector<1x64xf32>
    %31 = vector.broadcast %30 : vector<1x64xf32> to vector<512x64xf32>
    %32 = arith.addf %29, %31 : vector<512x64xf32>
    %cst_19 = arith.constant 0.000000e+00 : f32
    %33 = vector.broadcast %cst_19 : f32 to vector<512x64xf32>
    %34 = arith.maximumf %32, %33 : vector<512x64xf32>
    %35 = arith.truncf %34 : vector<512x64xf32> to vector<512x64xbf16>
    %c0_20 = arith.constant 0 : index
    %c0_21 = arith.constant 0 : index
    %c0_22 = arith.constant 0 : index
    %36 = vector.load %arg9[%c0_20, %c0_21, %c0_22] : memref<16x72x512xbf16, #tpu.memory_space<vmem>>, vector<1x72x512xbf16>
    %37 = vector.shape_cast %36 : vector<1x72x512xbf16> to vector<72x512xbf16>
    %cst_23 = arith.constant dense<0.000000e+00> : vector<72x64xf32>
    %38 = tpu.matmul %37, %35, %cst_23 {dimension_numbers = #tpu.dot_dimension_numbers<[1], [0], [0], [1], [0, 0, 1, 1], [], []>} : vector<72x512xbf16>, vector<512x64xbf16>, vector<72x64xf32> -> vector<72x64xf32>
    %39 = arith.truncf %38 : vector<72x64xf32> to vector<72x64xbf16>
    %c1 = arith.constant 1 : index
    %c0_24 = arith.constant 0 : index
    %c0_25 = arith.constant 0 : index
    %40 = vector.load %arg9[%c1, %c0_24, %c0_25] : memref<16x72x512xbf16, #tpu.memory_space<vmem>>, vector<1x72x512xbf16>
    %41 = vector.shape_cast %40 : vector<1x72x512xbf16> to vector<72x512xbf16>
    %cst_26 = arith.constant dense<0.000000e+00> : vector<72x64xf32>
    %42 = tpu.matmul %41, %35, %cst_26 {dimension_numbers = #tpu.dot_dimension_numbers<[1], [0], [0], [1], [0, 0, 1, 1], [], []>} : vector<72x512xbf16>, vector<512x64xbf16>, vector<72x64xf32> -> vector<72x64xf32>
    %43 = arith.truncf %42 : vector<72x64xf32> to vector<72x64xbf16>
    %c2 = arith.constant 2 : index
    %c0_27 = arith.constant 0 : index
    %c0_28 = arith.constant 0 : index
    %44 = vector.load %arg9[%c2, %c0_27, %c0_28] : memref<16x72x512xbf16, #tpu.memory_space<vmem>>, vector<1x72x512xbf16>
    %45 = vector.shape_cast %44 : vector<1x72x512xbf16> to vector<72x512xbf16>
    %cst_29 = arith.constant dense<0.000000e+00> : vector<72x64xf32>
    %46 = tpu.matmul %45, %35, %cst_29 {dimension_numbers = #tpu.dot_dimension_numbers<[1], [0], [0], [1], [0, 0, 1, 1], [], []>} : vector<72x512xbf16>, vector<512x64xbf16>, vector<72x64xf32> -> vector<72x64xf32>
    %47 = arith.truncf %46 : vector<72x64xf32> to vector<72x64xbf16>
    %c3 = arith.constant 3 : index
    %c0_30 = arith.constant 0 : index
    %c0_31 = arith.constant 0 : index
    %48 = vector.load %arg9[%c3, %c0_30, %c0_31] : memref<16x72x512xbf16, #tpu.memory_space<vmem>>, vector<1x72x512xbf16>
    %49 = vector.shape_cast %48 : vector<1x72x512xbf16> to vector<72x512xbf16>
    %cst_32 = arith.constant dense<0.000000e+00> : vector<72x64xf32>
    %50 = tpu.matmul %49, %35, %cst_32 {dimension_numbers = #tpu.dot_dimension_numbers<[1], [0], [0], [1], [0, 0, 1, 1], [], []>} : vector<72x512xbf16>, vector<512x64xbf16>, vector<72x64xf32> -> vector<72x64xf32>
    %51 = arith.truncf %50 : vector<72x64xf32> to vector<72x64xbf16>
    %c4 = arith.constant 4 : index
    %c0_33 = arith.constant 0 : index
    %c0_34 = arith.constant 0 : index
    %52 = vector.load %arg9[%c4, %c0_33, %c0_34] : memref<16x72x512xbf16, #tpu.memory_space<vmem>>, vector<1x72x512xbf16>
    %53 = vector.shape_cast %52 : vector<1x72x512xbf16> to vector<72x512xbf16>
    %cst_35 = arith.constant dense<0.000000e+00> : vector<72x64xf32>
    %54 = tpu.matmul %53, %35, %cst_35 {dimension_numbers = #tpu.dot_dimension_numbers<[1], [0], [0], [1], [0, 0, 1, 1], [], []>} : vector<72x512xbf16>, vector<512x64xbf16>, vector<72x64xf32> -> vector<72x64xf32>
    %55 = arith.truncf %54 : vector<72x64xf32> to vector<72x64xbf16>
    %c5 = arith.constant 5 : index
    %c0_36 = arith.constant 0 : index
    %c0_37 = arith.constant 0 : index
    %56 = vector.load %arg9[%c5, %c0_36, %c0_37] : memref<16x72x512xbf16, #tpu.memory_space<vmem>>, vector<1x72x512xbf16>
    %57 = vector.shape_cast %56 : vector<1x72x512xbf16> to vector<72x512xbf16>
    %cst_38 = arith.constant dense<0.000000e+00> : vector<72x64xf32>
    %58 = tpu.matmul %57, %35, %cst_38 {dimension_numbers = #tpu.dot_dimension_numbers<[1], [0], [0], [1], [0, 0, 1, 1], [], []>} : vector<72x512xbf16>, vector<512x64xbf16>, vector<72x64xf32> -> vector<72x64xf32>
    %59 = arith.truncf %58 : vector<72x64xf32> to vector<72x64xbf16>
    %c6 = arith.constant 6 : index
    %c0_39 = arith.constant 0 : index
    %c0_40 = arith.constant 0 : index
    %60 = vector.load %arg9[%c6, %c0_39, %c0_40] : memref<16x72x512xbf16, #tpu.memory_space<vmem>>, vector<1x72x512xbf16>
    %61 = vector.shape_cast %60 : vector<1x72x512xbf16> to vector<72x512xbf16>
    %cst_41 = arith.constant dense<0.000000e+00> : vector<72x64xf32>
    %62 = tpu.matmul %61, %35, %cst_41 {dimension_numbers = #tpu.dot_dimension_numbers<[1], [0], [0], [1], [0, 0, 1, 1], [], []>} : vector<72x512xbf16>, vector<512x64xbf16>, vector<72x64xf32> -> vector<72x64xf32>
    %63 = arith.truncf %62 : vector<72x64xf32> to vector<72x64xbf16>
    %c7 = arith.constant 7 : index
    %c0_42 = arith.constant 0 : index
    %c0_43 = arith.constant 0 : index
    %64 = vector.load %arg9[%c7, %c0_42, %c0_43] : memref<16x72x512xbf16, #tpu.memory_space<vmem>>, vector<1x72x512xbf16>
    %65 = vector.shape_cast %64 : vector<1x72x512xbf16> to vector<72x512xbf16>
    %cst_44 = arith.constant dense<0.000000e+00> : vector<72x64xf32>
    %66 = tpu.matmul %65, %35, %cst_44 {dimension_numbers = #tpu.dot_dimension_numbers<[1], [0], [0], [1], [0, 0, 1, 1], [], []>} : vector<72x512xbf16>, vector<512x64xbf16>, vector<72x64xf32> -> vector<72x64xf32>
    %67 = arith.truncf %66 : vector<72x64xf32> to vector<72x64xbf16>
    %c8 = arith.constant 8 : index
    %c0_45 = arith.constant 0 : index
    %c0_46 = arith.constant 0 : index
    %68 = vector.load %arg9[%c8, %c0_45, %c0_46] : memref<16x72x512xbf16, #tpu.memory_space<vmem>>, vector<1x72x512xbf16>
    %69 = vector.shape_cast %68 : vector<1x72x512xbf16> to vector<72x512xbf16>
    %cst_47 = arith.constant dense<0.000000e+00> : vector<72x64xf32>
    %70 = tpu.matmul %69, %35, %cst_47 {dimension_numbers = #tpu.dot_dimension_numbers<[1], [0], [0], [1], [0, 0, 1, 1], [], []>} : vector<72x512xbf16>, vector<512x64xbf16>, vector<72x64xf32> -> vector<72x64xf32>
    %71 = arith.truncf %70 : vector<72x64xf32> to vector<72x64xbf16>
    %c9 = arith.constant 9 : index
    %c0_48 = arith.constant 0 : index
    %c0_49 = arith.constant 0 : index
    %72 = vector.load %arg9[%c9, %c0_48, %c0_49] : memref<16x72x512xbf16, #tpu.memory_space<vmem>>, vector<1x72x512xbf16>
    %73 = vector.shape_cast %72 : vector<1x72x512xbf16> to vector<72x512xbf16>
    %cst_50 = arith.constant dense<0.000000e+00> : vector<72x64xf32>
    %74 = tpu.matmul %73, %35, %cst_50 {dimension_numbers = #tpu.dot_dimension_numbers<[1], [0], [0], [1], [0, 0, 1, 1], [], []>} : vector<72x512xbf16>, vector<512x64xbf16>, vector<72x64xf32> -> vector<72x64xf32>
    %75 = arith.truncf %74 : vector<72x64xf32> to vector<72x64xbf16>
    %c10 = arith.constant 10 : index
    %c0_51 = arith.constant 0 : index
    %c0_52 = arith.constant 0 : index
    %76 = vector.load %arg9[%c10, %c0_51, %c0_52] : memref<16x72x512xbf16, #tpu.memory_space<vmem>>, vector<1x72x512xbf16>
    %77 = vector.shape_cast %76 : vector<1x72x512xbf16> to vector<72x512xbf16>
    %cst_53 = arith.constant dense<0.000000e+00> : vector<72x64xf32>
    %78 = tpu.matmul %77, %35, %cst_53 {dimension_numbers = #tpu.dot_dimension_numbers<[1], [0], [0], [1], [0, 0, 1, 1], [], []>} : vector<72x512xbf16>, vector<512x64xbf16>, vector<72x64xf32> -> vector<72x64xf32>
    %79 = arith.truncf %78 : vector<72x64xf32> to vector<72x64xbf16>
    %c11 = arith.constant 11 : index
    %c0_54 = arith.constant 0 : index
    %c0_55 = arith.constant 0 : index
    %80 = vector.load %arg9[%c11, %c0_54, %c0_55] : memref<16x72x512xbf16, #tpu.memory_space<vmem>>, vector<1x72x512xbf16>
    %81 = vector.shape_cast %80 : vector<1x72x512xbf16> to vector<72x512xbf16>
    %cst_56 = arith.constant dense<0.000000e+00> : vector<72x64xf32>
    %82 = tpu.matmul %81, %35, %cst_56 {dimension_numbers = #tpu.dot_dimension_numbers<[1], [0], [0], [1], [0, 0, 1, 1], [], []>} : vector<72x512xbf16>, vector<512x64xbf16>, vector<72x64xf32> -> vector<72x64xf32>
    %83 = arith.truncf %82 : vector<72x64xf32> to vector<72x64xbf16>
    %c12 = arith.constant 12 : index
    %c0_57 = arith.constant 0 : index
    %c0_58 = arith.constant 0 : index
    %84 = vector.load %arg9[%c12, %c0_57, %c0_58] : memref<16x72x512xbf16, #tpu.memory_space<vmem>>, vector<1x72x512xbf16>
    %85 = vector.shape_cast %84 : vector<1x72x512xbf16> to vector<72x512xbf16>
    %cst_59 = arith.constant dense<0.000000e+00> : vector<72x64xf32>
    %86 = tpu.matmul %85, %35, %cst_59 {dimension_numbers = #tpu.dot_dimension_numbers<[1], [0], [0], [1], [0, 0, 1, 1], [], []>} : vector<72x512xbf16>, vector<512x64xbf16>, vector<72x64xf32> -> vector<72x64xf32>
    %87 = arith.truncf %86 : vector<72x64xf32> to vector<72x64xbf16>
    %c13 = arith.constant 13 : index
    %c0_60 = arith.constant 0 : index
    %c0_61 = arith.constant 0 : index
    %88 = vector.load %arg9[%c13, %c0_60, %c0_61] : memref<16x72x512xbf16, #tpu.memory_space<vmem>>, vector<1x72x512xbf16>
    %89 = vector.shape_cast %88 : vector<1x72x512xbf16> to vector<72x512xbf16>
    %cst_62 = arith.constant dense<0.000000e+00> : vector<72x64xf32>
    %90 = tpu.matmul %89, %35, %cst_62 {dimension_numbers = #tpu.dot_dimension_numbers<[1], [0], [0], [1], [0, 0, 1, 1], [], []>} : vector<72x512xbf16>, vector<512x64xbf16>, vector<72x64xf32> -> vector<72x64xf32>
    %91 = arith.truncf %90 : vector<72x64xf32> to vector<72x64xbf16>
    %c14 = arith.constant 14 : index
    %c0_63 = arith.constant 0 : index
    %c0_64 = arith.constant 0 : index
    %92 = vector.load %arg9[%c14, %c0_63, %c0_64] : memref<16x72x512xbf16, #tpu.memory_space<vmem>>, vector<1x72x512xbf16>
    %93 = vector.shape_cast %92 : vector<1x72x512xbf16> to vector<72x512xbf16>
    %cst_65 = arith.constant dense<0.000000e+00> : vector<72x64xf32>
    %94 = tpu.matmul %93, %35, %cst_65 {dimension_numbers = #tpu.dot_dimension_numbers<[1], [0], [0], [1], [0, 0, 1, 1], [], []>} : vector<72x512xbf16>, vector<512x64xbf16>, vector<72x64xf32> -> vector<72x64xf32>
    %95 = arith.truncf %94 : vector<72x64xf32> to vector<72x64xbf16>
    %c15 = arith.constant 15 : index
    %c0_66 = arith.constant 0 : index
    %c0_67 = arith.constant 0 : index
    %96 = vector.load %arg9[%c15, %c0_66, %c0_67] : memref<16x72x512xbf16, #tpu.memory_space<vmem>>, vector<1x72x512xbf16>
    %97 = vector.shape_cast %96 : vector<1x72x512xbf16> to vector<72x512xbf16>
    %cst_68 = arith.constant dense<0.000000e+00> : vector<72x64xf32>
    %98 = tpu.matmul %97, %35, %cst_68 {dimension_numbers = #tpu.dot_dimension_numbers<[1], [0], [0], [1], [0, 0, 1, 1], [], []>} : vector<72x512xbf16>, vector<512x64xbf16>, vector<72x64xf32> -> vector<72x64xf32>
    %99 = arith.truncf %98 : vector<72x64xf32> to vector<72x64xbf16>
    %100 = tpu.concatenate %39, %43, %47, %51, %55, %59, %63, %67, %71, %75, %79, %83, %87, %91, %95, %99 in 1 : vector<72x64xbf16>, vector<72x64xbf16>, vector<72x64xbf16>, vector<72x64xbf16>, vector<72x64xbf16>, vector<72x64xbf16>, vector<72x64xbf16>, vector<72x64xbf16>, vector<72x64xbf16>, vector<72x64xbf16>, vector<72x64xbf16>, vector<72x64xbf16>, vector<72x64xbf16>, vector<72x64xbf16>, vector<72x64xbf16>, vector<72x64xbf16> -> vector<72x1024xbf16>
    %c0_69 = arith.constant 0 : index
    %c0_70 = arith.constant 0 : index
    %101 = vector.load %arg10[%c0_69, %c0_70] : memref<1024x128xbf16, #tpu.memory_space<vmem>>, vector<1024x128xbf16>
    %cst_71 = arith.constant dense<0.000000e+00> : vector<72x128xf32>
    %102 = tpu.matmul %100, %101, %cst_71 {dimension_numbers = #tpu.dot_dimension_numbers<[1], [0], [0], [1], [0, 0, 1, 1], [], []>} : vector<72x1024xbf16>, vector<1024x128xbf16>, vector<72x128xf32> -> vector<72x128xf32>
    %c0_72 = arith.constant 0 : index
    %c0_73 = arith.constant 0 : index
    %103 = vector.load %arg11[%c0_72, %c0_73] : memref<1x128xf32, #tpu.memory_space<vmem>>, vector<1x128xf32>
    %104 = vector.broadcast %103 : vector<1x128xf32> to vector<72x128xf32>
    %105 = arith.addf %102, %104 : vector<72x128xf32>
    %cst_74 = arith.constant 0.000000e+00 : f32
    %106 = vector.broadcast %cst_74 : f32 to vector<72x128xf32>
    %107 = arith.maximumf %105, %106 : vector<72x128xf32>
    %108 = arith.truncf %107 : vector<72x128xf32> to vector<72x128xbf16>
    %c0_75 = arith.constant 0 : index
    %c0_76 = arith.constant 0 : index
    %c0_77 = arith.constant 0 : index
    %109 = vector.load %arg12[%c0_75, %c0_76, %c0_77] : memref<9x8x72xbf16, #tpu.memory_space<vmem>>, vector<1x8x72xbf16>
    %110 = vector.shape_cast %109 : vector<1x8x72xbf16> to vector<8x72xbf16>
    %cst_78 = arith.constant dense<0.000000e+00> : vector<8x128xf32>
    %111 = tpu.matmul %110, %108, %cst_78 {dimension_numbers = #tpu.dot_dimension_numbers<[1], [0], [0], [1], [0, 0, 1, 1], [], []>} : vector<8x72xbf16>, vector<72x128xbf16>, vector<8x128xf32> -> vector<8x128xf32>
    %112 = arith.truncf %111 : vector<8x128xf32> to vector<8x128xbf16>
    %c1_79 = arith.constant 1 : index
    %c0_80 = arith.constant 0 : index
    %c0_81 = arith.constant 0 : index
    %113 = vector.load %arg12[%c1_79, %c0_80, %c0_81] : memref<9x8x72xbf16, #tpu.memory_space<vmem>>, vector<1x8x72xbf16>
    %114 = vector.shape_cast %113 : vector<1x8x72xbf16> to vector<8x72xbf16>
    %cst_82 = arith.constant dense<0.000000e+00> : vector<8x128xf32>
    %115 = tpu.matmul %114, %108, %cst_82 {dimension_numbers = #tpu.dot_dimension_numbers<[1], [0], [0], [1], [0, 0, 1, 1], [], []>} : vector<8x72xbf16>, vector<72x128xbf16>, vector<8x128xf32> -> vector<8x128xf32>
    %116 = arith.truncf %115 : vector<8x128xf32> to vector<8x128xbf16>
    %c2_83 = arith.constant 2 : index
    %c0_84 = arith.constant 0 : index
    %c0_85 = arith.constant 0 : index
    %117 = vector.load %arg12[%c2_83, %c0_84, %c0_85] : memref<9x8x72xbf16, #tpu.memory_space<vmem>>, vector<1x8x72xbf16>
    %118 = vector.shape_cast %117 : vector<1x8x72xbf16> to vector<8x72xbf16>
    %cst_86 = arith.constant dense<0.000000e+00> : vector<8x128xf32>
    %119 = tpu.matmul %118, %108, %cst_86 {dimension_numbers = #tpu.dot_dimension_numbers<[1], [0], [0], [1], [0, 0, 1, 1], [], []>} : vector<8x72xbf16>, vector<72x128xbf16>, vector<8x128xf32> -> vector<8x128xf32>
    %120 = arith.truncf %119 : vector<8x128xf32> to vector<8x128xbf16>
    %c3_87 = arith.constant 3 : index
    %c0_88 = arith.constant 0 : index
    %c0_89 = arith.constant 0 : index
    %121 = vector.load %arg12[%c3_87, %c0_88, %c0_89] : memref<9x8x72xbf16, #tpu.memory_space<vmem>>, vector<1x8x72xbf16>
    %122 = vector.shape_cast %121 : vector<1x8x72xbf16> to vector<8x72xbf16>
    %cst_90 = arith.constant dense<0.000000e+00> : vector<8x128xf32>
    %123 = tpu.matmul %122, %108, %cst_90 {dimension_numbers = #tpu.dot_dimension_numbers<[1], [0], [0], [1], [0, 0, 1, 1], [], []>} : vector<8x72xbf16>, vector<72x128xbf16>, vector<8x128xf32> -> vector<8x128xf32>
    %124 = arith.truncf %123 : vector<8x128xf32> to vector<8x128xbf16>
    %c4_91 = arith.constant 4 : index
    %c0_92 = arith.constant 0 : index
    %c0_93 = arith.constant 0 : index
    %125 = vector.load %arg12[%c4_91, %c0_92, %c0_93] : memref<9x8x72xbf16, #tpu.memory_space<vmem>>, vector<1x8x72xbf16>
    %126 = vector.shape_cast %125 : vector<1x8x72xbf16> to vector<8x72xbf16>
    %cst_94 = arith.constant dense<0.000000e+00> : vector<8x128xf32>
    %127 = tpu.matmul %126, %108, %cst_94 {dimension_numbers = #tpu.dot_dimension_numbers<[1], [0], [0], [1], [0, 0, 1, 1], [], []>} : vector<8x72xbf16>, vector<72x128xbf16>, vector<8x128xf32> -> vector<8x128xf32>
    %128 = arith.truncf %127 : vector<8x128xf32> to vector<8x128xbf16>
    %c5_95 = arith.constant 5 : index
    %c0_96 = arith.constant 0 : index
    %c0_97 = arith.constant 0 : index
    %129 = vector.load %arg12[%c5_95, %c0_96, %c0_97] : memref<9x8x72xbf16, #tpu.memory_space<vmem>>, vector<1x8x72xbf16>
    %130 = vector.shape_cast %129 : vector<1x8x72xbf16> to vector<8x72xbf16>
    %cst_98 = arith.constant dense<0.000000e+00> : vector<8x128xf32>
    %131 = tpu.matmul %130, %108, %cst_98 {dimension_numbers = #tpu.dot_dimension_numbers<[1], [0], [0], [1], [0, 0, 1, 1], [], []>} : vector<8x72xbf16>, vector<72x128xbf16>, vector<8x128xf32> -> vector<8x128xf32>
    %132 = arith.truncf %131 : vector<8x128xf32> to vector<8x128xbf16>
    %c6_99 = arith.constant 6 : index
    %c0_100 = arith.constant 0 : index
    %c0_101 = arith.constant 0 : index
    %133 = vector.load %arg12[%c6_99, %c0_100, %c0_101] : memref<9x8x72xbf16, #tpu.memory_space<vmem>>, vector<1x8x72xbf16>
    %134 = vector.shape_cast %133 : vector<1x8x72xbf16> to vector<8x72xbf16>
    %cst_102 = arith.constant dense<0.000000e+00> : vector<8x128xf32>
    %135 = tpu.matmul %134, %108, %cst_102 {dimension_numbers = #tpu.dot_dimension_numbers<[1], [0], [0], [1], [0, 0, 1, 1], [], []>} : vector<8x72xbf16>, vector<72x128xbf16>, vector<8x128xf32> -> vector<8x128xf32>
    %136 = arith.truncf %135 : vector<8x128xf32> to vector<8x128xbf16>
    %c7_103 = arith.constant 7 : index
    %c0_104 = arith.constant 0 : index
    %c0_105 = arith.constant 0 : index
    %137 = vector.load %arg12[%c7_103, %c0_104, %c0_105] : memref<9x8x72xbf16, #tpu.memory_space<vmem>>, vector<1x8x72xbf16>
    %138 = vector.shape_cast %137 : vector<1x8x72xbf16> to vector<8x72xbf16>
    %cst_106 = arith.constant dense<0.000000e+00> : vector<8x128xf32>
    %139 = tpu.matmul %138, %108, %cst_106 {dimension_numbers = #tpu.dot_dimension_numbers<[1], [0], [0], [1], [0, 0, 1, 1], [], []>} : vector<8x72xbf16>, vector<72x128xbf16>, vector<8x128xf32> -> vector<8x128xf32>
    %140 = arith.truncf %139 : vector<8x128xf32> to vector<8x128xbf16>
    %c8_107 = arith.constant 8 : index
    %c0_108 = arith.constant 0 : index
    %c0_109 = arith.constant 0 : index
    %141 = vector.load %arg12[%c8_107, %c0_108, %c0_109] : memref<9x8x72xbf16, #tpu.memory_space<vmem>>, vector<1x8x72xbf16>
    %142 = vector.shape_cast %141 : vector<1x8x72xbf16> to vector<8x72xbf16>
    %cst_110 = arith.constant dense<0.000000e+00> : vector<8x128xf32>
    %143 = tpu.matmul %142, %108, %cst_110 {dimension_numbers = #tpu.dot_dimension_numbers<[1], [0], [0], [1], [0, 0, 1, 1], [], []>} : vector<8x72xbf16>, vector<72x128xbf16>, vector<8x128xf32> -> vector<8x128xf32>
    %144 = arith.truncf %143 : vector<8x128xf32> to vector<8x128xbf16>
    %145 = tpu.concatenate %112, %116, %120, %124, %128, %132, %136, %140, %144 in 1 : vector<8x128xbf16>, vector<8x128xbf16>, vector<8x128xbf16>, vector<8x128xbf16>, vector<8x128xbf16>, vector<8x128xbf16>, vector<8x128xbf16>, vector<8x128xbf16>, vector<8x128xbf16> -> vector<8x1152xbf16>
    %c0_111 = arith.constant 0 : index
    %c0_112 = arith.constant 0 : index
    %146 = vector.load %arg13[%c0_111, %c0_112] : memref<1152x128xbf16, #tpu.memory_space<vmem>>, vector<1152x128xbf16>
    %cst_113 = arith.constant dense<0.000000e+00> : vector<8x128xf32>
    %147 = tpu.matmul %145, %146, %cst_113 {dimension_numbers = #tpu.dot_dimension_numbers<[1], [0], [0], [1], [0, 0, 1, 1], [], []>} : vector<8x1152xbf16>, vector<1152x128xbf16>, vector<8x128xf32> -> vector<8x128xf32>
    %c0_114 = arith.constant 0 : index
    %c0_115 = arith.constant 0 : index
    %148 = vector.load %arg14[%c0_114, %c0_115] : memref<1x128xf32, #tpu.memory_space<vmem>>, vector<1x128xf32>
    %149 = vector.broadcast %148 : vector<1x128xf32> to vector<8x128xf32>
    %150 = arith.addf %147, %149 : vector<8x128xf32>
    %cst_116 = arith.constant 0.000000e+00 : f32
    %151 = vector.broadcast %cst_116 : f32 to vector<8x128xf32>
    %152 = arith.maximumf %150, %151 : vector<8x128xf32>
    %153 = arith.truncf %152 : vector<8x128xf32> to vector<8x128xbf16>
    %154 = arith.truncf %26 : vector<8x8xf32> to vector<8x8xbf16>
    %c0_117 = arith.constant 0 : index
    %c0_118 = arith.constant 0 : index
    %155 = vector.load %arg15[%c0_117, %c0_118] : memref<8x128xbf16, #tpu.memory_space<vmem>>, vector<8x128xbf16>
    %cst_119 = arith.constant dense<0.000000e+00> : vector<8x128xf32>
    %156 = tpu.matmul %154, %155, %cst_119 {dimension_numbers = #tpu.dot_dimension_numbers<[1], [0], [0], [1], [0, 0, 1, 1], [], []>} : vector<8x8xbf16>, vector<8x128xbf16>, vector<8x128xf32> -> vector<8x128xf32>
    %c0_120 = arith.constant 0 : index
    %c0_121 = arith.constant 0 : index
    %157 = vector.load %arg16[%c0_120, %c0_121] : memref<1x128xf32, #tpu.memory_space<vmem>>, vector<1x128xf32>
    %158 = vector.broadcast %157 : vector<1x128xf32> to vector<8x128xf32>
    %159 = arith.addf %156, %158 : vector<8x128xf32>
    %cst_122 = arith.constant 0.000000e+00 : f32
    %160 = vector.broadcast %cst_122 : f32 to vector<8x128xf32>
    %161 = arith.maximumf %159, %160 : vector<8x128xf32>
    %162 = arith.truncf %161 : vector<8x128xf32> to vector<8x128xbf16>
    %c0_123 = arith.constant 0 : index
    %c0_124 = arith.constant 0 : index
    %163 = vector.load %arg17[%c0_123, %c0_124] : memref<128x512xbf16, #tpu.memory_space<vmem>>, vector<128x512xbf16>
    %cst_125 = arith.constant dense<0.000000e+00> : vector<8x512xf32>
    %164 = tpu.matmul %162, %163, %cst_125 {dimension_numbers = #tpu.dot_dimension_numbers<[1], [0], [0], [1], [0, 0, 1, 1], [], []>} : vector<8x128xbf16>, vector<128x512xbf16>, vector<8x512xf32> -> vector<8x512xf32>
    %c0_126 = arith.constant 0 : index
    %c0_127 = arith.constant 0 : index
    %165 = vector.load %arg18[%c0_126, %c0_127] : memref<1x512xf32, #tpu.memory_space<vmem>>, vector<1x512xf32>
    %166 = vector.broadcast %165 : vector<1x512xf32> to vector<8x512xf32>
    %167 = arith.addf %164, %166 : vector<8x512xf32>
    %cst_128 = arith.constant 0.000000e+00 : f32
    %168 = vector.broadcast %cst_128 : f32 to vector<8x512xf32>
    %169 = arith.maximumf %167, %168 : vector<8x512xf32>
    %170 = arith.truncf %169 : vector<8x512xf32> to vector<8x512xbf16>
    %c0_129 = arith.constant 0 : index
    %c0_130 = arith.constant 0 : index
    %171 = vector.load %arg19[%c0_129, %c0_130] : memref<128x128xbf16, #tpu.memory_space<vmem>>, vector<128x128xbf16>
    %cst_131 = arith.constant dense<0.000000e+00> : vector<8x128xf32>
    %172 = tpu.matmul %153, %171, %cst_131 {dimension_numbers = #tpu.dot_dimension_numbers<[1], [0], [0], [1], [0, 0, 1, 1], [], []>} : vector<8x128xbf16>, vector<128x128xbf16>, vector<8x128xf32> -> vector<8x128xf32>
    %c0_132 = arith.constant 0 : index
    %c0_133 = arith.constant 0 : index
    %173 = vector.load %arg20[%c0_132, %c0_133] : memref<512x128xbf16, #tpu.memory_space<vmem>>, vector<512x128xbf16>
    %cst_134 = arith.constant dense<0.000000e+00> : vector<8x128xf32>
    %174 = tpu.matmul %170, %173, %cst_134 {dimension_numbers = #tpu.dot_dimension_numbers<[1], [0], [0], [1], [0, 0, 1, 1], [], []>} : vector<8x512xbf16>, vector<512x128xbf16>, vector<8x128xf32> -> vector<8x128xf32>
    %175 = arith.addf %172, %174 : vector<8x128xf32>
    %c0_135 = arith.constant 0 : index
    %c0_136 = arith.constant 0 : index
    %176 = vector.load %arg21[%c0_135, %c0_136] : memref<1x128xf32, #tpu.memory_space<vmem>>, vector<1x128xf32>
    %177 = vector.broadcast %176 : vector<1x128xf32> to vector<8x128xf32>
    %178 = arith.addf %175, %177 : vector<8x128xf32>
    %179 = vector.extract_strided_slice %178 {offsets = [0, 0], sizes = [8, 64], strides = [1, 1]} : vector<8x128xf32> to vector<8x64xf32>
    %cst_137 = arith.constant 0.000000e+00 : f32
    %180 = vector.broadcast %cst_137 : f32 to vector<8x64xf32>
    %181 = arith.maximumf %179, %180 : vector<8x64xf32>
    %182 = vector.extract_strided_slice %178 {offsets = [0, 64], sizes = [8, 64], strides = [1, 1]} : vector<8x128xf32> to vector<8x64xf32>
    %183 = arith.truncf %181 : vector<8x64xf32> to vector<8x64xbf16>
    %c0_138 = arith.constant 0 : index
    %c0_139 = arith.constant 0 : index
    %184 = vector.load %arg22[%c0_138, %c0_139] : memref<64x64xbf16, #tpu.memory_space<vmem>>, vector<64x64xbf16>
    %cst_140 = arith.constant dense<0.000000e+00> : vector<8x64xf32>
    %185 = tpu.matmul %183, %184, %cst_140 {dimension_numbers = #tpu.dot_dimension_numbers<[1], [0], [0], [1], [0, 0, 1, 1], [], []>} : vector<8x64xbf16>, vector<64x64xbf16>, vector<8x64xf32> -> vector<8x64xf32>
    %c0_141 = arith.constant 0 : index
    %c0_142 = arith.constant 0 : index
    %186 = vector.load %arg23[%c0_141, %c0_142] : memref<1x64xf32, #tpu.memory_space<vmem>>, vector<1x64xf32>
    %187 = vector.broadcast %186 : vector<1x64xf32> to vector<8x64xf32>
    %188 = arith.addf %185, %187 : vector<8x64xf32>
    %cst_143 = arith.constant 0.000000e+00 : f32
    %189 = vector.broadcast %cst_143 : f32 to vector<8x64xf32>
    %190 = arith.maximumf %188, %189 : vector<8x64xf32>
    %191 = arith.truncf %190 : vector<8x64xf32> to vector<8x64xbf16>
    %c0_144 = arith.constant 0 : index
    %c0_145 = arith.constant 0 : index
    %192 = vector.load %arg24[%c0_144, %c0_145] : memref<64x64xbf16, #tpu.memory_space<vmem>>, vector<64x64xbf16>
    %cst_146 = arith.constant dense<0.000000e+00> : vector<8x64xf32>
    %193 = tpu.matmul %191, %192, %cst_146 {dimension_numbers = #tpu.dot_dimension_numbers<[1], [0], [0], [1], [0, 0, 1, 1], [], []>} : vector<8x64xbf16>, vector<64x64xbf16>, vector<8x64xf32> -> vector<8x64xf32>
    %c0_147 = arith.constant 0 : index
    %c0_148 = arith.constant 0 : index
    %194 = vector.load %arg25[%c0_147, %c0_148] : memref<1x64xf32, #tpu.memory_space<vmem>>, vector<1x64xf32>
    %195 = vector.broadcast %194 : vector<1x64xf32> to vector<8x64xf32>
    %196 = arith.addf %193, %195 : vector<8x64xf32>
    %197 = arith.subf %196, %182 : vector<8x64xf32>
    %198 = arith.mulf %197, %197 : vector<8x64xf32>
    %cst_149 = arith.constant dense<0.000000e+00> : vector<8xf32>
    %199 = vector.multi_reduction <add>, %198, %cst_149 [1] : vector<8x64xf32> to vector<8xf32>
    %200 = vector.shape_cast %199 : vector<8xf32> to vector<8x1xf32>
    %cst_150 = arith.constant 6.400000e+01 : f32
    %201 = vector.broadcast %cst_150 : f32 to vector<8x1xf32>
    %202 = arith.divf %200, %201 : vector<8x1xf32>
    %c0_151 = arith.constant 0 : index
    %c0_152 = arith.constant 0 : index
    %203 = vector.load %arg26[%c0_151, %c0_152] : memref<1x1xf32, #tpu.memory_space<vmem>>, vector<1x1xf32>
    %204 = vector.broadcast %203 : vector<1x1xf32> to vector<8x1xf32>
    %205 = arith.mulf %202, %204 : vector<8x1xf32>
    %c0_153 = arith.constant 0 : index
    %c0_154 = arith.constant 0 : index
    %206 = vector.load %arg27[%c0_153, %c0_154] : memref<8x1xf32, #tpu.memory_space<vmem>>, vector<8x1xf32>
    tpu.vector_store %arg27[%c0_153, %c0_154], %205 {strides = array<i32>} : memref<8x1xf32, #tpu.memory_space<vmem>>, vector<8x1xf32>,
    return
  }
  func.func @transform_0(%arg0: i32) -> (i32, i32) {
    %c0_i32 = arith.constant 0 : i32
    %c0_i32_0 = arith.constant 0 : i32
    return %arg0, %c0_i32 : i32, i32
  }
  func.func @transform_1(%arg0: i32) -> (i32, i32) {
    %c0_i32 = arith.constant 0 : i32
    %c0_i32_0 = arith.constant 0 : i32
    %c0_i32_1 = arith.constant 0 : i32
    return %c0_i32, %c0_i32_0 : i32, i32
  }
  func.func @transform_2(%arg0: i32) -> (i32, i32) {
    %c0_i32 = arith.constant 0 : i32
    %c0_i32_0 = arith.constant 0 : i32
    %c0_i32_1 = arith.constant 0 : i32
    return %c0_i32, %c0_i32_0 : i32, i32
  }
  func.func @transform_3(%arg0: i32) -> (i32, i32) {
    %c0_i32 = arith.constant 0 : i32
    %c0_i32_0 = arith.constant 0 : i32
    return %arg0, %c0_i32 : i32, i32
  }
  func.func @transform_4(%arg0: i32) -> (i32, i32) {
    %c0_i32 = arith.constant 0 : i32
    %c0_i32_0 = arith.constant 0 : i32
    %c0_i32_1 = arith.constant 0 : i32
    return %c0_i32, %c0_i32_0 : i32, i32
  }
  func.func @transform_5(%arg0: i32) -> (i32, i32) {
    %c0_i32 = arith.constant 0 : i32
    %c0_i32_0 = arith.constant 0 : i32
    %c0_i32_1 = arith.constant 0 : i32
    return %c0_i32, %c0_i32_0 : i32, i32
  }
  func.func @transform_6(%arg0: i32) -> (i32, i32) {
    %c0_i32 = arith.constant 0 : i32
    %c0_i32_0 = arith.constant 0 : i32
    %c0_i32_1 = arith.constant 0 : i32
    return %c0_i32, %c0_i32_0 : i32, i32
  }
  func.func @transform_7(%arg0: i32) -> (i32, i32) {
    %c0_i32 = arith.constant 0 : i32
    %c0_i32_0 = arith.constant 0 : i32
    %c0_i32_1 = arith.constant 0 : i32
    return %c0_i32, %c0_i32_0 : i32, i32
  }
  func.func @transform_8(%arg0: i32) -> (i32, i32, i32) {
    %c0_i32 = arith.constant 0 : i32
    %c0_i32_0 = arith.constant 0 : i32
    %c0_i32_1 = arith.constant 0 : i32
    %c0_i32_2 = arith.constant 0 : i32
    return %c0_i32, %c0_i32_0, %c0_i32_1 : i32, i32, i32
  }
  func.func @transform_9(%arg0: i32) -> (i32, i32) {
    %c0_i32 = arith.constant 0 : i32
    %c0_i32_0 = arith.constant 0 : i32
    %c0_i32_1 = arith.constant 0 : i32
    return %c0_i32, %c0_i32_0 : i32, i32
  }
  func.func @transform_10(%arg0: i32) -> (i32, i32) {
    %c0_i32 = arith.constant 0 : i32
    %c0_i32_0 = arith.constant 0 : i32
    %c0_i32_1 = arith.constant 0 : i32
    return %c0_i32, %c0_i32_0 : i32, i32
  }
  func.func @transform_11(%arg0: i32) -> (i32, i32, i32) {
    %c0_i32 = arith.constant 0 : i32
    %c0_i32_0 = arith.constant 0 : i32
    %c0_i32_1 = arith.constant 0 : i32
    %c0_i32_2 = arith.constant 0 : i32
    return %c0_i32, %c0_i32_0, %c0_i32_1 : i32, i32, i32
  }
  func.func @transform_12(%arg0: i32) -> (i32, i32) {
    %c0_i32 = arith.constant 0 : i32
    %c0_i32_0 = arith.constant 0 : i32
    %c0_i32_1 = arith.constant 0 : i32
    return %c0_i32, %c0_i32_0 : i32, i32
  }
  func.func @transform_13(%arg0: i32) -> (i32, i32) {
    %c0_i32 = arith.constant 0 : i32
    %c0_i32_0 = arith.constant 0 : i32
    %c0_i32_1 = arith.constant 0 : i32
    return %c0_i32, %c0_i32_0 : i32, i32
  }
  func.func @transform_14(%arg0: i32) -> (i32, i32) {
    %c0_i32 = arith.constant 0 : i32
    %c0_i32_0 = arith.constant 0 : i32
    %c0_i32_1 = arith.constant 0 : i32
    return %c0_i32, %c0_i32_0 : i32, i32
  }
  func.func @transform_15(%arg0: i32) -> (i32, i32) {
    %c0_i32 = arith.constant 0 : i32
    %c0_i32_0 = arith.constant 0 : i32
    %c0_i32_1 = arith.constant 0 : i32
    return %c0_i32, %c0_i32_0 : i32, i32
  }
  func.func @transform_16(%arg0: i32) -> (i32, i32) {
    %c0_i32 = arith.constant 0 : i32
    %c0_i32_0 = arith.constant 0 : i32
    %c0_i32_1 = arith.constant 0 : i32
    return %c0_i32, %c0_i32_0 : i32, i32
  }
  func.func @transform_17(%arg0: i32) -> (i32, i32) {
    %c0_i32 = arith.constant 0 : i32
    %c0_i32_0 = arith.constant 0 : i32
    %c0_i32_1 = arith.constant 0 : i32
    return %c0_i32, %c0_i32_0 : i32, i32
  }
  func.func @transform_18(%arg0: i32) -> (i32, i32) {
    %c0_i32 = arith.constant 0 : i32
    %c0_i32_0 = arith.constant 0 : i32
    %c0_i32_1 = arith.constant 0 : i32
    return %c0_i32, %c0_i32_0 : i32, i32
  }
  func.func @transform_19(%arg0: i32) -> (i32, i32) {
    %c0_i32 = arith.constant 0 : i32
    %c0_i32_0 = arith.constant 0 : i32
    %c0_i32_1 = arith.constant 0 : i32
    return %c0_i32, %c0_i32_0 : i32, i32
  }
  func.func @transform_20(%arg0: i32) -> (i32, i32) {
    %c0_i32 = arith.constant 0 : i32
    %c0_i32_0 = arith.constant 0 : i32
    %c0_i32_1 = arith.constant 0 : i32
    return %c0_i32, %c0_i32_0 : i32, i32
  }
  func.func @transform_21(%arg0: i32) -> (i32, i32) {
    %c0_i32 = arith.constant 0 : i32
    %c0_i32_0 = arith.constant 0 : i32
    %c0_i32_1 = arith.constant 0 : i32
    return %c0_i32, %c0_i32_0 : i32, i32
  }
  func.func @transform_22(%arg0: i32) -> (i32, i32) {
    %c0_i32 = arith.constant 0 : i32
    %c0_i32_0 = arith.constant 0 : i32
    %c0_i32_1 = arith.constant 0 : i32
    return %c0_i32, %c0_i32_0 : i32, i32
  }
  func.func @transform_23(%arg0: i32) -> (i32, i32) {
    %c0_i32 = arith.constant 0 : i32
    %c0_i32_0 = arith.constant 0 : i32
    %c0_i32_1 = arith.constant 0 : i32
    return %c0_i32, %c0_i32_0 : i32, i32
  }
  func.func @transform_24(%arg0: i32) -> (i32, i32) {
    %c0_i32 = arith.constant 0 : i32
    %c0_i32_0 = arith.constant 0 : i32
    %c0_i32_1 = arith.constant 0 : i32
    return %c0_i32, %c0_i32_0 : i32, i32
  }
  func.func @transform_25(%arg0: i32) -> (i32, i32) {
    %c0_i32 = arith.constant 0 : i32
    %c0_i32_0 = arith.constant 0 : i32
    %c0_i32_1 = arith.constant 0 : i32
    return %c0_i32, %c0_i32_0 : i32, i32
  }
  func.func @transform_26(%arg0: i32) -> (i32, i32) {
    %c0_i32 = arith.constant 0 : i32
    %c0_i32_0 = arith.constant 0 : i32
    return %arg0, %c0_i32 : i32, i32
  }
}

</mosaic_0001>

<bundles_post_ra>
// kernel: _lambda_.1
= control target key start
LH: loop header
LB: loop body
LE: loop exit
PB: predicated region body
PF: predicated region fallthrough
CT: control target
= control target key end

     0   :  { %s18323_s0 = inlined_call_operand.vmem [shape: bf16[1024,256], index: 0, kind: input, shape index: {}]   ;;  %s18324_s1 = inlined_call_operand.vmem [shape: f32[64,256], index: 1, kind: input, shape index: {}]   ;;  %s18325_s2 = inlined_call_operand.vmem [shape: f32[64,256], index: 2, kind: input, shape index: {}]   ;;  %s18326_s3 = inlined_call_operand.vmem [shape: f32[16,8], index: 3, kind: input, shape index: {}]   ;;  %s18327_s4 = inlined_call_operand.vmem [shape: f32[1,8], index: 4, kind: input, shape index: {}]   ;;  %s18328_s5 = inlined_call_operand.vmem [shape: f32[1,8], index: 5, kind: input, shape index: {}]   ;;  %s18329_s6 = inlined_call_operand.vmem [shape: bf16[256,64], index: 6, kind: input, shape index: {}]   ;;  %s18330_s7 = inlined_call_operand.vmem [shape: f32[1,64], index: 7, kind: input, shape index: {}]   ;;  %s18331_s8 = inlined_call_operand.vmem [shape: bf16[16,72,512], index: 8, kind: input, shape index: {}]   ;;  %s18332_s9 = inlined_call_operand.vmem [shape: bf16[1024,128], index: 9, kind: input, shape index: {}]   ;;  %s18333_s10 = inlined_call_operand.vmem [shape: f32[1,128], index: 10, kind: input, shape index: {}]   ;;  %s18334_s11 = inlined_call_operand.vmem [shape: bf16[9,8,72], index: 11, kind: input, shape index: {}]   ;;  %s18335_s12 = inlined_call_operand.vmem [shape: bf16[1152,128], index: 12, kind: input, shape index: {}]   ;;  %s18336_s13 = inlined_call_operand.vmem [shape: f32[1,128], index: 13, kind: input, shape index: {}]   ;;  %s18337_s14 = inlined_call_operand.vmem [shape: bf16[8,128], index: 14, kind: input, shape index: {}]   ;;  %s18338_s15 = inlined_call_operand.vmem [shape: f32[1,128], index: 15, kind: input, shape index: {}]   ;;  %s18339_s16 = inlined_call_operand.vmem [shape: bf16[128,512], index: 16, kind: input, shape index: {}]   ;;  %s18340_s17 = inlined_call_operand.vmem [shape: f32[1,512], index: 17, kind: input, shape index: {}]   ;;  %s18341_s18 = inlined_call_operand.vmem [shape: bf16[128,128], index: 18, kind: input, shape index: {}]   ;;  %s18342_s19 = inlined_call_operand.vmem [shape: bf16[512,128], index: 19, kind: input, shape index: {}]   ;;  %s18343_s20 = inlined_call_operand.vmem [shape: f32[1,128], index: 20, kind: input, shape index: {}]   ;;  %s18344_s21 = inlined_call_operand.vmem [shape: bf16[64,64], index: 21, kind: input, shape index: {}]   ;;  %s18345_s22 = inlined_call_operand.vmem [shape: f32[1,64], index: 22, kind: input, shape index: {}]   ;;  %s18346_s23 = inlined_call_operand.vmem [shape: bf16[64,64], index: 23, kind: input, shape index: {}]   ;;  %s18347_s24 = inlined_call_operand.vmem [shape: f32[1,64], index: 24, kind: input, shape index: {}]   ;;  %s18348_s25 = inlined_call_operand.<no memory space> [shape: f32[1,1], index: 25, kind: input, shape index: {}]   ;;  %s18349_s26 = inlined_call_operand.vmem [shape: f32[16,1], index: 26, kind: output, shape index: {}]  }
   0x1   :  { %18433 = sst [smem:[#allocation82_spill]] %s18323_s0  ;;  %v31_v0 = vstv %s18348_s25 }
   0x2   :  { %18434 = sst [smem:[#allocation83_spill]] %s18324_s1  ;;  %32 = vst [vmem:[#allocation2] sm:$0x1] %v31_v0 }
   0x3   :  { %18435 = sst [smem:[#allocation84_spill]] %s18325_s2 }
   0x4   :  { %18436 = sst [smem:[#allocation85_spill]] %s18326_s3 }
   0x5   :  { %18437 = sst [smem:[#allocation86_spill]] %s18327_s4 }
   0x6   :  { %18438 = sst [smem:[#allocation87_spill]] %s18328_s5 }
   0x7   :  { %18439 = sst [smem:[#allocation88_spill]] %s18329_s6 }
   0x8   :  { %18440 = sst [smem:[#allocation89_spill]] %s18330_s7  ;;  %s13699_s7 = smov 0  }
   0x9   :  { %18441 = sst [smem:[#allocation90_spill]] %s18331_s8 }
   0xa   :  { %18442 = sst [smem:[#allocation91_spill]] %s18332_s9 }
   0xb   :  { %18443 = sst [smem:[#allocation92_spill]] %s18333_s10 }
   0xc   :  { %18444 = sst [smem:[#allocation93_spill]] %s18334_s11 }
   0xd LB: > { %s13705_s28 = sadd.s32 4294967295, %s13555_s7   ;;  %p9718_p0 = scmp.ge.s32.totalorder %s13555_s7, 1  ;;  %s13555_s7 = sphi %s13699_s7, %s38_s7  }
   0xe   : > { %p725_p1 = scmp.lt.s32.totalorder %s13555_s7, 3 }
  0x10   : > { %p726_p2 = pnand %p9718_p0, %p725_p1 }
  0x12   : > { %729 = sbr.rel (%p726_p2) target bundleno = 3459 (0xd83), region = 124 }
  0x19   : > { %s18445_s25 = sld [smem:[#allocation88_spill]]  ;;  %v18356_v2 = vmov 0   ;;  %s9719_s29 = sshll.u32 %s13705_s28, 6  ;;  %vm6465_vm0 = vcmask 523264   ;;  %vm13560_vm1 = vmmov 0   ;;  %vm7452_vm2 = vcmask 1043456  }
  0x1a   : > { %1769 = vmatprep.subr.bf16.mxu0 %v18356_v2  ;;  %p800_p3 = scmp.lt.s32.totalorder %s9719_s29, 127  ;;  %s18446_s3 = sld [smem:[#allocation82_spill]]  ;;  %vm7448_vm3 = vcmask 588800   ;;  %vm8659_vm4 = vcmask 64512   ;;  %vm9647_vm5 = vcmask 7168  }
  0x1b   : > { %s18447_s30 = sld [smem:[#allocation83_spill]]  ;;  %s18548_s1 = sld [smem:[#allocation89_spill]] }
  0x1c   : > { %s18815_s29 = smov (!%p800_p3, %s9719_s29), 127  ;;  %s18549_s9 = sld [smem:[#allocation90_spill]] }
  0x1d   : > { %s10707_s6 = sshll.u32 %s18815_s29, 3  ;;  %s18573_s2 = sld [smem:[#allocation91_spill]] }
  0x1e   : > { %s18809_s11 = sld [smem:[#allocation93_spill]]  ;;  %p806_p4 = scmp.lt.s32.totalorder %s13705_s28, 1 }
  0x1f   : > { %v12788_v1 = vld [vmem:[%s18445_s25] sm:$0xff]   ;;  %v12789_v3 = vld [vmem:[%s18445_s25 + $0x8] sm:$0xff]   ;;  %v12790_v4 = vld [vmem:[%s18445_s25 + $0x10] sm:$0xff]  }
  0x20   : > { %1770 = vmatpush1.bf16.msra.mxu0 %v12788_v1  ;;  %v12791_v5 = vld [vmem:[%s18445_s25 + $0x18] sm:$0xff]   ;;  %s13729_s8 = scalar_lea.vmem %s18446_s3, %s10707_s6  ;;  %v12792_v6 = vld [vmem:[%s18445_s25 + $0x20] sm:$0xff]   ;;  %v12793_v13 = vld [vmem:[%s18445_s25 + $0x28] sm:$0xff]   ;;  %s18448_s3 = sld [smem:[#allocation84_spill]] }
  0x21   : > { %1771 = vmatprep.subr.bf16.mxu0 %v18356_v2  ;;  %v815_v7 = vld [vmem:[%s13729_s8] sm:$0xff]  ;;  %v816_v8 = vld [vmem:[%s13729_s8 + $0x8] sm:$0xff]  ;;  %v13745_v12 = vld [vmem:[%s18447_s30 + $0x18] sm:$0xff]  ;;  %s18415_s6 = smov 64   ;;  %s18817_s28 = smov (!%p806_p4, %s13705_s28), 1 }
  0x22   : > { %v13740_v9 = vld [vmem:[%s18447_s30 + $0x8] sm:$0xff]  ;;  %v880_v10 = vunpack.c.h.bf16 %v815_v7  ;;  %v882_v11 = vunpack.c.h.bf16 %v816_v8  ;;  %v12794_v20 = vld [vmem:[%s18445_s25 + $0x30] sm:$0xff]   ;;  %v12795_v24 = vld [vmem:[%s18445_s25 + $0x38] sm:$0xff]   ;;  %v879_v33 = vunpack.c.l.bf16 %v815_v7  ;;  %v881_v35 = vunpack.c.l.bf16 %v816_v8  ;;  %s9722_s29 = sshll.u32 %s18817_s28, 3 }
  0x23   : > { %v12796_v25 = vld [vmem:[%s18445_s25 + $0x40] sm:$0xff]   ;;  %v12797_v26 = vld [vmem:[%s18445_s25 + $0x48] sm:$0xff]   ;;  %v12798_v27 = vld [vmem:[%s18445_s25 + $0x50] sm:$0xff]   ;;  %s813_s10 = scalar_lea.vmem %s18349_s26, %s9722_s29 }
  0x24   : > { %1772 = vmatpush1.bf16.msra.mxu0 %v12789_v3  ;;  %v1024_v16 = vsub.f32 %v880_v10, %v13740_v9  ;;  %v1026_v17 = vsub.f32 %v882_v11, %v13745_v12  ;;  %v12799_v28 = vld [vmem:[%s18445_s25 + $0x58] sm:$0xff]   ;;  %v817_v29 = vld [vmem:[%s13729_s8 + $0x10] sm:$0xff]  ;;  %v13794_v31 = vld [vmem:[%s18447_s30] sm:$0xff] }
  0x25   : > { %1773 = vmatprep.subr.bf16.mxu0 %v18356_v2  ;;  %v818_v30 = vld [vmem:[%s13729_s8 + $0x18] sm:$0xff]  ;;  %v12800_v32 = vld [vmem:[%s18445_s25 + $0x60] sm:$0xff]   ;;  %v13802_v34 = vld [vmem:[%s18447_s30 + $0x10] sm:$0xff]  ;;  %v884_v36 = vunpack.c.h.bf16 %v817_v29  ;;  %v1023_v42 = vsub.f32 %v879_v33, %v13794_v31  ;;  %v883_v55 = vunpack.c.l.bf16 %v817_v29 }
  0x26   : > { %v13753_v14 = vld [vmem:[%s18448_s3 + $0x8] sm:$0xff]  ;;  %v13758_v15 = vld [vmem:[%s18448_s3 + $0x18] sm:$0xff]  ;;  %v886_v37 = vunpack.c.h.bf16 %v818_v30  ;;  %v13818_v40 = vld [vmem:[%s18448_s3] sm:$0xff]  ;;  %v1025_v46 = vsub.f32 %v881_v35, %v13802_v34  ;;  %v885_v56 = vunpack.c.l.bf16 %v818_v30 }
  0x27   : > { %v1168_v18 = vmul.f32 %v13753_v14, %v1024_v16  ;;  %v1170_v19 = vmul.f32 %v13758_v15, %v1026_v17  ;;  %v13807_v38 = vld [vmem:[%s18447_s30 + $0x28] sm:$0xff]  ;;  %v13812_v39 = vld [vmem:[%s18447_s30 + $0x38] sm:$0xff]  ;;  %v13827_v43 = vld [vmem:[%s18448_s3 + $0x10] sm:$0xff]  ;;  %v1167_v54 = vmul.f32 %v13818_v40, %v1023_v42 }
  0x28   : > { %1774 = vmatpush1.bf16.msra.mxu0 %v12790_v4  ;;  %v12801_v41 = vld [vmem:[%s18445_s25 + $0x68] sm:$0xff]   ;;  %v13837_v45 = vld [vmem:[%s18448_s3 + $0x38] sm:$0xff]  ;;  %v1028_v47 = vsub.f32 %v884_v36, %v13807_v38  ;;  %v1030_v48 = vsub.f32 %v886_v37, %v13812_v39  ;;  %v819_v49 = vld [vmem:[%s13729_s8 + $0x20] sm:$0xff]  ;;  %v1169_v57 = vmul.f32 %v13827_v43, %v1025_v46 }
  0x29   : > { %1775 = vmatprep.subr.bf16.mxu0 %v18356_v2  ;;  %v9725_v21 = vclamps-f32 %v1168_v18, 5.0  ;;  %v9727_v22 = vclamps-f32 %v1170_v19, 5.0  ;;  %v13832_v44 = vld [vmem:[%s18448_s3 + $0x28] sm:$0xff]  ;;  %v13848_v51 = vld [vmem:[%s18447_s30 + $0x20] sm:$0xff]  ;;  %v13853_v52 = vld [vmem:[%s18447_s30 + $0x30] sm:$0xff]  ;;  %v888_v62 = vunpack.c.h.bf16 %v819_v49  ;;  %v9724_v4 = vclamps-f32 %v1167_v54, 5.0 }
  0x2a   : > { %v820_v50 = vld [vmem:[%s13729_s8 + $0x28] sm:$0xff]  ;;  %v12802_v53 = vld [vmem:[%s18445_s25 + $0x70] sm:$0xff]   ;;  %v1172_v58 = vmul.f32 %v13832_v44, %v1028_v47  ;;  %v1174_v59 = vmul.f32 %v13837_v45, %v1030_v48  ;;  %v13870_v61 = vld [vmem:[%s18447_s30 + $0x58] sm:$0xff]  ;;  %v9726_v7 = vclamps-f32 %v1169_v57, 5.0 }
  0x2b   : > { %v1571_v23 = vpack.c.bf16 %v9727_v22, %v9725_v21  ;;  %v13865_v60 = vld [vmem:[%s18447_s30 + $0x48] sm:$0xff]  ;;  %v890_v63 = vunpack.c.h.bf16 %v820_v50  ;;  %v13876_v0 = vld [vmem:[%s18448_s3 + $0x20] sm:$0xff]  ;;  %v13881_v1 = vld [vmem:[%s18448_s3 + $0x30] sm:$0xff] }
  0x2c   : > { %1776 = vmatpush1.bf16.msra.mxu0 %v12791_v5  ;;  %v12803_v3 = vld [vmem:[%s18445_s25 + $0x78] sm:$0xff]   ;;  %v1027_v5 = vsub.f32 %v883_v55, %v13848_v51  ;;  %v9729_v8 = vclamps-f32 %v1172_v58, 5.0  ;;  %v9731_v10 = vclamps-f32 %v1174_v59, 5.0  ;;  %v13891_v11 = vld [vmem:[%s18448_s3 + $0x48] sm:$0xff]  ;;  %v821_v16 = vld [vmem:[%s13729_s8 + $0x30] sm:$0xff]  ;;  %v1032_v18 = vsub.f32 %v888_v62, %v13865_v60 }
  0x2d   : > { %1777 = vmatprep.subr.bf16.mxu0 %v18356_v2  ;;  %1801 = vmatprep.mubr.bf16.mxu0 %v1571_v23  ;;  %v822_v17 = vld [vmem:[%s13729_s8 + $0x38] sm:$0xff]  ;;  %v1034_v19 = vsub.f32 %v890_v63, %v13870_v61  ;;  %v13908_v22 = vld [vmem:[%s18447_s30 + $0x40] sm:$0xff]  ;;  %v13913_v23 = vld [vmem:[%s18447_s30 + $0x50] sm:$0xff]  ;;  %v892_v33 = vunpack.c.h.bf16 %v821_v16  ;;  %v891_v59 = vunpack.c.l.bf16 %v821_v16 }
  0x2e   : > { %v13923_v29 = vld [vmem:[%s18447_s30 + $0x78] sm:$0xff]  ;;  %v1176_v30 = vmul.f32 %v13891_v11, %v1032_v18  ;;  %v894_v35 = vunpack.c.h.bf16 %v822_v17  ;;  %v13935_v42 = vld [vmem:[%s18448_s3 + $0x50] sm:$0xff]  ;;  %v823_v46 = vld [vmem:[%s13729_s8 + $0x40] sm:$0xff] }
  0x2f   : > { %18450 = vst [vmem:[#allocation4_spill] sm:$0xff] %v13935_v42  ;;  %v825_v18 = vld [vmem:[%s13729_s8 + $0x50] sm:$0xff] }
  0x30   : > { %1778 = vmatpush1.bf16.msra.mxu0 %v12792_v6  ;;  %v1029_v6 = vsub.f32 %v885_v56, %v13853_v52  ;;  %v9733_v54 = vclamps-f32 %v1176_v30, 5.0  ;;  %v1038_v57 = vsub.f32 %v894_v35, %v13923_v29  ;;  %v895_v35 = vunpack.c.l.bf16 %v823_v46 }
  0x31   : > { %1779 = vmatprep.subr.bf16.mxu0 %v18356_v2 }
  0x32   : > { %v1173_v21 = vmul.f32 %v13881_v1, %v1029_v6  ;;  %v896_v6 = vunpack.c.h.bf16 %v823_v46 }
  0x34   : > { %1780 = vmatpush1.bf16.msra.mxu0 %v12793_v13  ;;  %v13896_v13 = vld [vmem:[%s18448_s3 + $0x58] sm:$0xff]  ;;  %v9730_v37 = vclamps-f32 %v1173_v21, 5.0  ;;  %v13978_v21 = vld [vmem:[%s18448_s3 + $0x70] sm:$0xff] }
  0x35   : > { %1781 = vmatprep.subr.bf16.mxu0 %v18356_v2 }
  0x38   : > { %1782 = vmatpush1.bf16.msra.mxu0 %v12794_v20  ;;  %v1171_v20 = vmul.f32 %v13876_v0, %v1027_v5  ;;  %v13963_v5 = vld [vmem:[%s18447_s30 + $0x70] sm:$0xff] }
  0x39   : > { %1783 = vmatprep.subr.bf16.mxu0 %v18356_v2 }
  0x3a   : > { %v9728_v36 = vclamps-f32 %v1171_v20, 5.0 }
  0x3c   : > { %1784 = vmatpush1.bf16.msra.mxu0 %v12795_v24  ;;  %v1570_v24 = vpack.c.bf16 %v9726_v7, %v9724_v4  ;;  %v1572_v58 = vpack.c.bf16 %v9730_v37, %v9728_v36  ;;  %v13958_v4 = vld [vmem:[%s18447_s30 + $0x60] sm:$0xff] }
  0x3d   : > { %1785 = vmatprep.subr.bf16.mxu0 %v18356_v2  ;;  %v1035_v20 = vsub.f32 %v891_v59, %v13958_v4 }
  0x40   : > { %1786 = vmatpush1.bf16.msra.mxu0 %v12796_v25  ;;  %v1573_v25 = vpack.c.bf16 %v9731_v10, %v9729_v8 }
  0x41   : > { %1787 = vmatprep.subr.bf16.mxu0 %v18356_v2 }
  0x44   : > { %1788 = vmatpush1.bf16.msra.mxu0 %v12797_v26  ;;  %v887_v26 = vunpack.c.l.bf16 %v819_v49  ;;  %v13943_v49 = vld [vmem:[%s18448_s3 + $0x68] sm:$0xff] }
  0x45   : > { %1789 = vmatprep.subr.bf16.mxu0 %v18356_v2 }
  0x46   : > { %v1031_v47 = vsub.f32 %v887_v26, %v13908_v22 }
  0x48   : > { %1790 = vmatpush1.bf16.msra.mxu0 %v12798_v27  ;;  %v889_v27 = vunpack.c.l.bf16 %v820_v50  ;;  %v13948_v50 = vld [vmem:[%s18448_s3 + $0x78] sm:$0xff] }
  0x49   : > { %1791 = vmatprep.subr.bf16.mxu0 %v18356_v2  ;;  %v1182_v10 = vmul.f32 %v13948_v50, %v1038_v57  ;;  %v827_v57 = vld [vmem:[%s13729_s8 + $0x60] sm:$0xff] }
  0x4a   : > { %v1033_v48 = vsub.f32 %v889_v27, %v13913_v23  ;;  %v1040_v27 = vsub.f32 %v896_v6, %v13740_v9  ;;  %v830_v6 = vld [vmem:[%s13729_s8 + $0x78] sm:$0xff] }
  0x4c   : > { %1792 = vmatpush1.bf16.msra.mxu0 %v12799_v28  ;;  %v13918_v28 = vld [vmem:[%s18447_s30 + $0x68] sm:$0xff]  ;;  %v1177_v63 = vmul.f32 %v13935_v42, %v1033_v48 }
  0x4d   : > { %1793 = vmatprep.subr.bf16.mxu0 %v18356_v2  ;;  %v1036_v56 = vsub.f32 %v892_v33, %v13918_v28 }
  0x4f   : > { %v1180_v8 = vmul.f32 %v13943_v49, %v1036_v56  ;;  %v1184_v56 = vmul.f32 %v13753_v14, %v1040_v27 }
  0x50   : > { %1794 = vmatpush1.bf16.msra.mxu0 %v12800_v32  ;;  %v1178_v32 = vmul.f32 %v13896_v13, %v1034_v19  ;;  %v826_v19 = vld [vmem:[%s13729_s8 + $0x58] sm:$0xff] }
  0x51   : > { %1795 = vmatprep.subr.bf16.mxu0 %v18356_v2  ;;  %v9737_v30 = vclamps-f32 %v1180_v8, 5.0  ;;  %v902_v48 = vunpack.c.h.bf16 %v826_v19 }
  0x52   : > { %v9735_v55 = vclamps-f32 %v1178_v32, 5.0  ;;  %v9739_v32 = vclamps-f32 %v1182_v10, 5.0 }
  0x53   : > { %v1046_v10 = vsub.f32 %v902_v48, %v13812_v39 }
  0x54   : > { %1796 = vmatpush1.bf16.msra.mxu0 %v12801_v41  ;;  %v13930_v41 = vld [vmem:[%s18448_s3 + $0x40] sm:$0xff]  ;;  %v1575_v7 = vpack.c.bf16 %v9735_v55, %v9733_v54  ;;  %v1577_v59 = vpack.c.bf16 %v9739_v32, %v9737_v30  ;;  %v903_v32 = vunpack.c.l.bf16 %v827_v57 }
  0x55   : > { %1797 = vmatprep.subr.bf16.mxu0 %v18356_v2  ;;  %18449 = vst [vmem:[#allocation3_spill] sm:$0xff] %v13930_v41  ;;  %v1175_v62 = vmul.f32 %v13930_v41, %v1031_v47  ;;  %v900_v47 = vunpack.c.h.bf16 %v825_v18 }
  0x57   : > { %v1044_v8 = vsub.f32 %v900_v47, %v13807_v38  ;;  %v1190_v47 = vmul.f32 %v13837_v45, %v1046_v10 }
  0x58   : > { %1798 = vmatpush1.bf16.msra.mxu0 %v12802_v53  ;;  %v824_v53 = vld [vmem:[%s13729_s8 + $0x48] sm:$0xff] }
  0x59   : > { %1799 = vmatprep.subr.bf16.mxu0 %v18356_v2  ;;  %v898_v16 = vunpack.c.h.bf16 %v824_v53  ;;  %v897_v36 = vunpack.c.l.bf16 %v824_v53  ;;  %v899_v53 = vunpack.c.l.bf16 %v825_v18  ;;  %v834_v2 = vld [vmem:[%s13729_s8 + $0x98] sm:$0xff] }
  0x5b   : > { %v1042_v33 = vsub.f32 %v898_v16, %v13745_v12  ;;  %v1041_v46 = vsub.f32 %v897_v36, %v13802_v34  ;;  %v901_v16 = vunpack.c.l.bf16 %v826_v19  ;;  %v1188_v19 = vmul.f32 %v13832_v44, %v1044_v8 }
  0x5c   : > { %1800 = vmatpush1.bf16.msra.mxu0 %v12803_v3  ;;  %v893_v3 = vunpack.c.l.bf16 %v822_v17  ;;  %v13970_v17 = vld [vmem:[%s18448_s3 + $0x60] sm:$0xff] }
  0x5d   : > { %v1179_v37 = vmul.f32 %v13970_v17, %v1035_v20  ;;  %v1185_v18 = vmul.f32 %v13827_v43, %v1041_v46  ;;  %v1045_v48 = vsub.f32 %v901_v16, %v13853_v52  ;;  %v9745_v16 = vclamps-f32 %v1188_v19, 5.0 }
  0x5e   : > { %v1037_v26 = vsub.f32 %v893_v3, %v13963_v5  ;;  %v829_v3 = vld [vmem:[%s13729_s8 + $0x70] sm:$0xff] }
  0x5f   : > { %1802 = vmatmul.mubr.bf16.vlgmr.msra.gmra.mrb[0].mxu0 %v1570_v24  ;;  %v9732_v24 = vclamps-f32 %v1175_v62, 5.0  ;;  %v1186_v62 = vmul.f32 %v13758_v15, %v1042_v33  ;;  %v908_v36 = vunpack.c.h.bf16 %v829_v3 }
  0x60   : > { %1809 = vmatprep.mubr.bf16.mxu0 %v1573_v25  ;;  %v9734_v25 = vclamps-f32 %v1177_v63, 5.0  ;;  %v1181_v55 = vmul.f32 %v13978_v21, %v1037_v26  ;;  %v1039_v63 = vsub.f32 %v895_v35, %v13794_v31  ;;  %v1043_v35 = vsub.f32 %v899_v53, %v13848_v51 }
  0x61   : > { %v9743_v27 = vclamps-f32 %v1186_v62, 5.0  ;;  %v9742_v53 = vclamps-f32 %v1185_v18, 5.0  ;;  %v1052_v10 = vsub.f32 %v908_v36, %v13918_v28  ;;  %v833_v36 = vld [vmem:[%s13729_s8 + $0x90] sm:$0xff] }
  0x62   : > { %v1574_v54 = vpack.c.bf16 %v9734_v25, %v9732_v24  ;;  %v9738_v20 = vclamps-f32 %v1181_v55, 5.0  ;;  %v9741_v24 = vclamps-f32 %v1184_v56, 5.0  ;;  %v904_v25 = vunpack.c.h.bf16 %v827_v57  ;;  %v832_v57 = vld [vmem:[%s13729_s8 + $0x88] sm:$0xff] }
  0x63   : > { %v1183_v30 = vmul.f32 %v13818_v40, %v1039_v63  ;;  %v1047_v63 = vsub.f32 %v903_v32, %v13908_v22  ;;  %v1187_v8 = vmul.f32 %v13876_v0, %v1043_v35  ;;  %v914_v35 = vunpack.c.h.bf16 %v832_v57 }
  0x64   : > { %v1048_v55 = vsub.f32 %v904_v25, %v13865_v60  ;;  %v1189_v25 = vmul.f32 %v13881_v1, %v1045_v48  ;;  %v1196_v19 = vmul.f32 %v13943_v49, %v1052_v10 }
  0x65   : > { %v9740_v62 = vclamps-f32 %v1183_v30, 5.0  ;;  %v909_v30 = vunpack.c.l.bf16 %v830_v6  ;;  %v1058_v10 = vsub.f32 %v914_v35, %v13745_v12  ;;  %v837_v35 = vld [vmem:[%s13729_s8 + $0xb0] sm:$0xff] }
  0x67   : > { %1810 = vmatmul.mubr.bf16.gmra.mrb[4].mxu0 %v1572_v58  ;;  %v828_v58 = vld [vmem:[%s13729_s8 + $0x68] sm:$0xff] }
  0x68   : > { %1817 = vmatprep.mubr.bf16.mxu0 %v1575_v7  ;;  %v9736_v7 = vclamps-f32 %v1179_v37, 5.0  ;;  %v906_v26 = vunpack.c.h.bf16 %v828_v58  ;;  %v905_v33 = vunpack.c.l.bf16 %v828_v58  ;;  %v910_v37 = vunpack.c.h.bf16 %v830_v6 }
  0x69   : > { %v1579_v58 = vpack.c.bf16 %v9743_v27, %v9741_v24  ;;  %v1192_v24 = vmul.f32 %v13891_v11, %v1048_v55  ;;  %v9746_v55 = vclamps-f32 %v1189_v25, 5.0  ;;  %v916_v25 = vunpack.c.h.bf16 %v833_v36 }
  0x6a   : > { %v1050_v56 = vsub.f32 %v906_v26, %v13870_v61  ;;  %v1049_v46 = vsub.f32 %v905_v33, %v13913_v23  ;;  %v907_v26 = vunpack.c.l.bf16 %v829_v3  ;;  %v1191_v33 = vmul.f32 %v13930_v41, %v1047_v63 }
  0x6b   : > { %v1053_v63 = vsub.f32 %v909_v30, %v13963_v5  ;;  %v918_v30 = vunpack.c.h.bf16 %v834_v2 }
  0x6c   : > { %v1194_v27 = vmul.f32 %v13896_v13, %v1050_v56  ;;  %v1193_v18 = vmul.f32 %v13935_v42, %v1049_v46  ;;  %v1051_v6 = vsub.f32 %v907_v26, %v13958_v4  ;;  %v9749_v56 = vclamps-f32 %v1192_v24, 5.0  ;;  %v836_v26 = vld [vmem:[%s13729_s8 + $0xa8] sm:$0xff] }
  0x6f   : > { %1818 = vmatmul.mubr.bf16.gmra.mrb[8].mxu0 %v1574_v54  ;;  %v1576_v54 = vpack.c.bf16 %v9738_v20, %v9736_v7  ;;  %v1054_v7 = vsub.f32 %v910_v37, %v13923_v29  ;;  %v9747_v20 = vclamps-f32 %v1190_v47, 5.0  ;;  %v1578_v37 = vpack.c.bf16 %v9742_v53, %v9740_v62 }
  0x70   : > { %1825 = vmatprep.mubr.bf16.mxu0 %v1577_v59  ;;  %v831_v59 = vld [vmem:[%s13729_s8 + $0x80] sm:$0xff]  ;;  %v9748_v62 = vclamps-f32 %v1191_v33, 5.0  ;;  %v9750_v53 = vclamps-f32 %v1193_v18, 5.0  ;;  %v14030_v33 = vmul.f32 %v13978_v21, %v1053_v63  ;;  %v915_v18 = vunpack.c.l.bf16 %v833_v36 }
  0x71   : > { %v912_v32 = vunpack.c.h.bf16 %v831_v59  ;;  %v1198_v3 = vmul.f32 %v13948_v50, %v1054_v7  ;;  %v911_v47 = vunpack.c.l.bf16 %v831_v59  ;;  %v1581_v48 = vpack.c.bf16 %v9747_v20, %v9745_v16  ;;  %v835_v59 = vld [vmem:[%s13729_s8 + $0xa0] sm:$0xff] }
  0x72   : > { %v913_v7 = vunpack.c.l.bf16 %v832_v57  ;;  %v9753_v16 = vclamps-f32 %v1196_v19, 5.0  ;;  %v14036_v19 = vpack.c.bf16 %v9750_v53, %v9748_v62  ;;  %v920_v36 = vunpack.c.h.bf16 %v835_v59  ;;  %v839_v53 = vld [vmem:[%s13729_s8 + $0xc0] sm:$0xff] }
  0x73   : > { %v1056_v46 = vsub.f32 %v912_v32, %v13740_v9  ;;  %v1055_v20 = vsub.f32 %v911_v47, %v13794_v31  ;;  %v921_v62 = vunpack.c.l.bf16 %v836_v26  ;;  %v928_v63 = vunpack.c.h.bf16 %v839_v53 }
  0x74   : > { %v1057_v47 = vsub.f32 %v913_v7, %v13802_v34 }
  0x75   : > { %v14033_v57 = vmul.f32 %v13753_v14, %v1056_v46  ;;  %v1060_v14 = vsub.f32 %v916_v25, %v13807_v38  ;;  %v923_v46 = vunpack.c.l.bf16 %v837_v35  ;;  %v1065_v25 = vsub.f32 %v921_v62, %v13913_v23 }
  0x77   : > { %1826 = vmatmul.mubr.bf16.gmra.mrb[12].mxu0 %v1576_v54  ;;  %v9744_v54 = vclamps-f32 %v1187_v8, 5.0  ;;  %v9755_v8 = vclamps-f32 %v1198_v3, 5.0  ;;  %v14039_v3 = vmul.f32 %v13758_v15, %v1058_v10  ;;  %v922_v15 = vunpack.c.h.bf16 %v836_v26  ;;  %v840_v10 = vld [vmem:[%s13729_s8 + $0xc8] sm:$0xff] }
  0x78   : > { %1833 = vmatprep.mubr.bf16.mxu0 %v1579_v58  ;;  %v9751_v58 = vclamps-f32 %v1194_v27, 5.0  ;;  %v14027_v27 = vmul.f32 %v13970_v17, %v1051_v6  ;;  %v14046_v6 = vmul.f32 %v13818_v40, %v1055_v20  ;;  %v924_v20 = vunpack.c.h.bf16 %v837_v35 }
  0x79   : > { %v1580_v24 = vpack.c.bf16 %v9746_v55, %v9744_v54  ;;  %v838_v54 = vld [vmem:[%s13729_s8 + $0xb8] sm:$0xff]  ;;  %v14043_v55 = vpack.c.bf16 %v9755_v8, %v9753_v16  ;;  %v14058_v16 = vmul.f32 %v13827_v43, %v1057_v47  ;;  %v1066_v7 = vsub.f32 %v922_v15, %v13870_v61 }
  0x7a   : > { %v1583_v32 = vpack.c.bf16 %v9751_v58, %v9749_v56  ;;  %v1062_v56 = vsub.f32 %v918_v30, %v13812_v39  ;;  %v919_v58 = vunpack.c.l.bf16 %v835_v59  ;;  %v14063_v59 = vmul.f32 %v13832_v44, %v1060_v14 }
  0x7b   : > { %v1064_v30 = vsub.f32 %v920_v36, %v13865_v60  ;;  %v925_v14 = vunpack.c.l.bf16 %v838_v54  ;;  %v930_v15 = vunpack.c.h.bf16 %v840_v10  ;;  %v14088_v62 = vmul.f32 %v13896_v13, %v1066_v7 }
  0x7c   : > { %v14067_v26 = vmul.f32 %v13837_v45, %v1062_v56  ;;  %v1063_v47 = vsub.f32 %v919_v58, %v13908_v22  ;;  %v1068_v56 = vsub.f32 %v924_v20, %v13918_v28  ;;  %v841_v58 = vld [vmem:[%s13729_s8 + $0xd0] sm:$0xff]  ;;  %v1067_v20 = vsub.f32 %v923_v46, %v13958_v4 }
  0x7d   : > { %v14083_v35 = vmul.f32 %v13891_v11, %v1064_v30  ;;  %v1069_v30 = vsub.f32 %v925_v14, %v13963_v5  ;;  %v9767_v14 = vclamps-f32 %v14088_v62, 5.0 }
  0x7e   : > { %v14103_v7 = vmul.f32 %v13943_v49, %v1068_v56  ;;  %v843_v56 = vld [vmem:[%s13729_s8 + $0xe0] sm:$0xff] }
  0x7f   : > { %1834 = vmatmul.mubr.bf16.gmra.mrb[16].mxu0 %v1578_v37  ;;  %v917_v37 = vunpack.c.l.bf16 %v834_v2  ;;  %v1059_v2 = vsub.f32 %v915_v18, %v13848_v51  ;;  %v926_v18 = vunpack.c.h.bf16 %v838_v54  ;;  %v927_v54 = vunpack.c.l.bf16 %v839_v53 }
  0x80   : > { %1841 = vmatprep.mubr.bf16.mxu0 %v1581_v48  ;;  %v1072_v53 = vsub.f32 %v928_v63, %v13740_v9  ;;  %18451 = vst [vmem:[#allocation5_spill] sm:$0xff] %v14103_v7  ;;  %v9765_v46 = vclamps-f32 %v14083_v35, 5.0  ;;  %v931_v35 = vunpack.c.l.bf16 %v841_v58 }
  0x81   : > { %v1061_v8 = vsub.f32 %v917_v37, %v13853_v52  ;;  %v14072_v37 = vmul.f32 %v13876_v0, %v1059_v2  ;;  %v1070_v2 = vsub.f32 %v926_v18, %v13923_v29  ;;  %v842_v18 = vld [vmem:[%s13729_s8 + $0xd8] sm:$0xff] }
  0x82   : > { %v934_v63 = vunpack.c.h.bf16 %v842_v18 }
  0x83   : > { %v14077_v48 = vmul.f32 %v13881_v1, %v1061_v8  ;;  %v14091_v8 = vmul.f32 %v13930_v41, %v1063_v47  ;;  %v1074_v47 = vsub.f32 %v930_v15, %v13745_v12  ;;  %v929_v41 = vunpack.c.l.bf16 %v840_v10 }
  0x84   : > { %v14108_v36 = vmul.f32 %v13948_v50, %v1070_v2  ;;  %v14120_v10 = vmul.f32 %v13978_v21, %v1069_v30  ;;  %v18453_v2 = vclamps-f32 %v14027_v27, 5.0  ;;  %v18454_v12 = vclamps-f32 %v14030_v33, 5.0  ;;  %v14382_v33 = vld [vmem:[%s18447_s30 + $0x40] sm:$0xff] }
  0x85   : > { %v1073_v62 = vsub.f32 %v929_v41, %v13802_v34  ;;  %v1075_v30 = vsub.f32 %v931_v35, %v13848_v51  ;;  %v14388_v41 = vld [vmem:[%s18447_s30 + $0x50] sm:$0xff]  ;;  %v855_v34 = vld [vmem:[%s13729_s8 + $0x140] sm:$0xff] }
  0x86   : > { %18452 = vst [vmem:[#allocation6_spill] sm:$0xff] %v14108_v36  ;;  %v1584_v9 = vpack.c.bf16 %v18454_v12, %v18453_v2  ;;  %v846_v36 = vld [vmem:[%s13729_s8 + $0xf8] sm:$0xff] }
  0x87   : > { %1842 = vmatmul.mubr.bf16.gmra.mrb[20].mxu0 %v1580_v24  ;;  %v14096_v24 = vmul.f32 %v13935_v42, %v1065_v25  ;;  %v1071_v25 = vsub.f32 %v927_v54, %v13794_v31  ;;  %v932_v42 = vunpack.c.h.bf16 %v841_v58  ;;  %v14125_v31 = vld [vmem:[%s18448_s3 + $0x8] sm:$0xff] }
  0x88   : > { %1849 = vmatprep.mubr.bf16.mxu0 %v1583_v32  ;;  %v9762_v32 = vclamps-f32 %v14077_v48, 5.0  ;;  %v14114_v48 = vmul.f32 %v13970_v17, %v1067_v20  ;;  %v14128_v15 = vmul.f32 %v14125_v31, %v1072_v53  ;;  %v844_v20 = vld [vmem:[%s13729_s8 + $0xe8] sm:$0xff]  ;;  %v933_v53 = vunpack.c.l.bf16 %v842_v18 }
  0x89   : > { %v14144_v58 = vmul.f32 %v13818_v40, %v1071_v25  ;;  %v936_v40 = vunpack.c.h.bf16 %v843_v56  ;;  %v845_v25 = vld [vmem:[%s13729_s8 + $0xf0] sm:$0xff]  ;;  %v938_v12 = vunpack.c.h.bf16 %v844_v20 }
  0x8a   : > { %v1077_v51 = vsub.f32 %v933_v53, %v13853_v52  ;;  %v942_v52 = vunpack.c.h.bf16 %v846_v36  ;;  %v847_v53 = vld [vmem:[%s13729_s8 + $0x100] sm:$0xff] }
  0x8f   : > { %1850 = vmatmul.mubr.bf16.gmra.mrb[24].mxu0 %v14036_v19  ;;  %v14135_v19 = vld [vmem:[%s18448_s3 + $0x18] sm:$0xff] }
  0x90   : > { %1857 = vmatprep.mubr.bf16.mxu0 %v14043_v55  ;;  %v14138_v54 = vmul.f32 %v14135_v19, %v1074_v47  ;;  %v1076_v55 = vsub.f32 %v932_v42, %v13807_v38  ;;  %v1078_v47 = vsub.f32 %v934_v63, %v13812_v39  ;;  %v18455_v38 = vclamps-f32 %v14033_v57, 5.0 }
  0x91   : > { %v18456_v42 = vclamps-f32 %v14039_v3, 5.0  ;;  %v14164_v39 = vmul.f32 %v13827_v43, %v1073_v62  ;;  %v18457_v57 = vclamps-f32 %v14046_v6, 5.0  ;;  %v18458_v3 = vclamps-f32 %v14058_v16, 5.0 }
  0x92   : > { %v14168_v63 = vmul.f32 %v13832_v44, %v1076_v55  ;;  %v14176_v2 = vmul.f32 %v13837_v45, %v1078_v47  ;;  %v937_v43 = vunpack.c.l.bf16 %v844_v20  ;;  %v14179_v62 = vmul.f32 %v13876_v0, %v1075_v30  ;;  %v849_v20 = vld [vmem:[%s13729_s8 + $0x110] sm:$0xff] }
  0x93   : > { %v1587_v27 = vpack.c.bf16 %v18456_v42, %v18455_v38  ;;  %v1586_v35 = vpack.c.bf16 %v18458_v3, %v18457_v57  ;;  %v935_v38 = vunpack.c.l.bf16 %v843_v56  ;;  %v1080_v44 = vsub.f32 %v936_v40, %v13865_v60  ;;  %v848_v42 = vld [vmem:[%s13729_s8 + $0x108] sm:$0xff] }
  0x94   : > { %v940_v55 = vunpack.c.h.bf16 %v845_v25  ;;  %v18459_v6 = vclamps-f32 %v14063_v59, 5.0  ;;  %v18460_v16 = vclamps-f32 %v14067_v26, 5.0  ;;  %v18461_v45 = vclamps-f32 %v14072_v37, 5.0 }
  0x95   : > { %v14194_v60 = vpack.c.bf16 %v9767_v14, %v9765_v46  ;;  %v14198_v47 = vmul.f32 %v13881_v1, %v1077_v51  ;;  %v1082_v59 = vsub.f32 %v938_v12, %v13870_v61  ;;  %v1079_v37 = vsub.f32 %v935_v38, %v13908_v22  ;;  %v850_v1 = vld [vmem:[%s13729_s8 + $0x118] sm:$0xff] }
  0x96   : > { %v1589_v57 = vpack.c.bf16 %v18460_v16, %v18459_v6  ;;  %v14190_v56 = vpack.c.bf16 %v9762_v32, %v18461_v45  ;;  %v1081_v32 = vsub.f32 %v937_v43, %v13913_v23  ;;  %v941_v40 = vunpack.c.l.bf16 %v846_v36  ;;  %v18462_v43 = vld [vmem:[#allocation3_spill] sm:$0xff] }
  0x97   : > { %1858 = vmatmul.mubr.bf16.gmra.mrb[28].mxu0 %v1584_v9  ;;  %v939_v9 = vunpack.c.l.bf16 %v845_v25  ;;  %v14206_v25 = vmul.f32 %v13891_v11, %v1080_v44  ;;  %v1084_v46 = vsub.f32 %v940_v55, %v13918_v28  ;;  %v1086_v14 = vsub.f32 %v942_v52, %v13923_v29  ;;  %v18463_v44 = vld [vmem:[#allocation4_spill] sm:$0xff]  ;;  %v851_v16 = vld [vmem:[%s13729_s8 + $0x120] sm:$0xff] }
  0x98   : > { %1865 = vmatprep.mubr.bf16.mxu0 %v1587_v27  ;;  %v944_v61 = vunpack.c.h.bf16 %v847_v53  ;;  %v946_v12 = vunpack.c.h.bf16 %v848_v42  ;;  %v943_v3 = vunpack.c.l.bf16 %v847_v53  ;;  %v14214_v23 = vmul.f32 %v13896_v13, %v1082_v59  ;;  %v14235_v6 = vld [vmem:[%s18447_s30 + $0x8] sm:$0xff] }
  0x99   : > { %v1083_v51 = vsub.f32 %v939_v9, %v13958_v4  ;;  %v945_v36 = vunpack.c.l.bf16 %v848_v42  ;;  %v948_v38 = vunpack.c.h.bf16 %v849_v20  ;;  %v14217_v11 = vmul.f32 %v18462_v43, %v1079_v37  ;;  %v14263_v37 = vld [vmem:[%s18447_s30 + $0x28] sm:$0xff]  ;;  %v14292_v43 = vld [vmem:[%s13729_s8 + $0x130] sm:$0xff]  ;;  %v14332_v9 = vld [vmem:[%s18448_s3 + $0x38] sm:$0xff] }
  0x9a   : > { %v14220_v28 = vmul.f32 %v18463_v44, %v1081_v32  ;;  %v1085_v29 = vsub.f32 %v941_v40, %v13963_v5  ;;  %v950_v4 = vunpack.c.h.bf16 %v850_v1  ;;  %v14224_v55 = vmul.f32 %v13943_v49, %v1084_v46  ;;  %v14241_v49 = vld [vmem:[%s18447_s30 + $0x18] sm:$0xff] }
  0x9b   : > { %v14227_v13 = vmul.f32 %v13948_v50, %v1086_v14  ;;  %v947_v52 = vunpack.c.l.bf16 %v849_v20  ;;  %v949_v53 = vunpack.c.l.bf16 %v850_v1  ;;  %v14230_v42 = vmul.f32 %v13970_v17, %v1083_v51  ;;  %v14257_v20 = vld [vmem:[%s18447_s30 + $0x10] sm:$0xff]  ;;  %v14274_v1 = vld [vmem:[%s18447_s30 + $0x38] sm:$0xff] }
  0x9c   : > { %v1088_v5 = vsub.f32 %v944_v61, %v14235_v6  ;;  %v1090_v50 = vsub.f32 %v946_v12, %v14241_v49  ;;  %v1089_v59 = vsub.f32 %v945_v36, %v14257_v20  ;;  %v1092_v32 = vsub.f32 %v948_v38, %v14263_v37  ;;  %v14295_v44 = vld [vmem:[%s13729_s8 + $0x138] sm:$0xff] }
  0x9d   : > { %18464 = vst [vmem:[#allocation3_spill] sm:$0xff] %v14230_v42  ;;  %v14269_v14 = vmul.f32 %v13978_v21, %v1085_v29  ;;  %v1094_v51 = vsub.f32 %v950_v4, %v14274_v1  ;;  %v14288_v21 = vld [vmem:[%s18447_s30 + $0x30] sm:$0xff]  ;;  %v952_v46 = vunpack.c.h.bf16 %v851_v16  ;;  %v951_v45 = vunpack.c.l.bf16 %v851_v16 }
  0x9e   : > { %v1093_v38 = vsub.f32 %v949_v53, %v14288_v21  ;;  %v14299_v4 = vmul.f32 %v14125_v31, %v1088_v5  ;;  %v14302_v12 = vmul.f32 %v14135_v19, %v1090_v50  ;;  %v14315_v53 = vld [vmem:[%s18448_s3 + $0x10] sm:$0xff]  ;;  %v14323_v5 = vld [vmem:[%s18448_s3 + $0x28] sm:$0xff]  ;;  %v956_v16 = vunpack.c.h.bf16 %v14292_v43 }
  0x9f   : > { %1866 = vmatmul.mubr.bf16.gmra.mrb[32].mxu0 %v1586_v35  ;;  %v14247_v35 = vld [vmem:[%s18447_s30] sm:$0xff]  ;;  %18465 = vst [vmem:[#allocation4_spill] sm:$0xff] %v14269_v14  ;;  %v14318_v29 = vmul.f32 %v14315_v53, %v1089_v59  ;;  %v14326_v50 = vmul.f32 %v14323_v5, %v1092_v32  ;;  %v14335_v59 = vmul.f32 %v14332_v9, %v1094_v51  ;;  %v18474_v30 = vclamps-f32 %v14091_v8, 5.0  ;;  %v857_v14 = vld [vmem:[%s13729_s8 + $0x150] sm:$0xff] }
  0xa0   : > { %1873 = vmatprep.mubr.bf16.mxu0 %v1589_v57  ;;  %v1087_v17 = vsub.f32 %v943_v3, %v14247_v35  ;;  %v852_v57 = vld [vmem:[%s13729_s8 + $0x128] sm:$0xff]  ;;  %v14282_v3 = vld [vmem:[%s18447_s30 + $0x20] sm:$0xff]  ;;  %18466 = vst [vmem:[#allocation7_spill] sm:$0xff] %v14299_v4  ;;  %18467 = vst [vmem:[#allocation8_spill] sm:$0xff] %v14302_v12  ;;  %v18475_v0 = vclamps-f32 %v14096_v24, 5.0  ;;  %v18476_v8 = vclamps-f32 %v14103_v7, 5.0 }
  0xa1   : > { %v1091_v36 = vsub.f32 %v947_v52, %v14282_v3  ;;  %v14307_v52 = vld [vmem:[%s18448_s3] sm:$0xff]  ;;  %18469 = vst [vmem:[#allocation10_spill] sm:$0xff] %v14318_v29  ;;  %18470 = vst [vmem:[#allocation11_spill] sm:$0xff] %v14326_v50  ;;  %v954_v40 = vunpack.c.h.bf16 %v852_v57  ;;  %v953_v22 = vunpack.c.l.bf16 %v852_v57  ;;  %v14422_v50 = vld [vmem:[%s18448_s3 + $0x58] sm:$0xff]  ;;  %v18483_v12 = vclamps-f32 %v14120_v10, 5.0 }
  0xa2   : > { %v14310_v61 = vmul.f32 %v14307_v52, %v1087_v17  ;;  %18471 = vst [vmem:[#allocation12_spill] sm:$0xff] %v14335_v59  ;;  %v14341_v32 = vld [vmem:[%s18448_s3 + $0x20] sm:$0xff]  ;;  %v14349_v17 = vld [vmem:[%s18448_s3 + $0x30] sm:$0xff]  ;;  %v1590_v26 = vpack.c.bf16 %v18475_v0, %v18474_v30  ;;  %v14396_v0 = vld [vmem:[%s18447_s30 + $0x68] sm:$0xff] }
  0xa3   : > { %v14344_v27 = vmul.f32 %v14341_v32, %v1091_v36  ;;  %v14352_v51 = vmul.f32 %v14349_v17, %v1093_v38  ;;  %v14365_v38 = vld [vmem:[%s18447_s30 + $0x48] sm:$0xff]  ;;  %v1100_v30 = vsub.f32 %v956_v16, %v14396_v0  ;;  %v14430_v7 = vld [vmem:[%s18448_s3 + $0x40] sm:$0xff] }
  0xa4   : > { %18468 = vst [vmem:[#allocation9_spill] sm:$0xff] %v14310_v61  ;;  %v1096_v18 = vsub.f32 %v952_v46, %v14365_v38  ;;  %v1095_v46 = vsub.f32 %v951_v45, %v14382_v33  ;;  %v14402_v45 = vld [vmem:[%s18447_s30 + $0x78] sm:$0xff]  ;;  %v14414_v59 = vld [vmem:[%s18448_s3 + $0x48] sm:$0xff] }
  0xa5   : > { %18472 = vst [vmem:[#allocation13_spill] sm:$0xff] %v14344_v27  ;;  %18473 = vst [vmem:[#allocation14_spill] sm:$0xff] %v14352_v51  ;;  %v18477_v27 = vld [vmem:[#allocation6_spill] sm:$0xff]  ;;  %v14448_v29 = vld [vmem:[%s18448_s3 + $0x68] sm:$0xff] }
  0xa6   : > { %v18478_v24 = vclamps-f32 %v18477_v27, 5.0  ;;  %v14417_v16 = vmul.f32 %v14414_v59, %v1096_v18  ;;  %v14433_v27 = vmul.f32 %v14430_v7, %v1095_v46  ;;  %v14438_v18 = vld [vmem:[%s18448_s3 + $0x50] sm:$0xff]  ;;  %18481 = vst [vmem:[#allocation15_spill] sm:$0xff] %v14448_v29  ;;  %v14451_v46 = vmul.f32 %v14448_v29, %v1100_v30  ;;  %v14456_v61 = vld [vmem:[%s18448_s3 + $0x78] sm:$0xff] }
  0xa7   : > { %1874 = vmatmul.mubr.bf16.gmra.mrb[36].mxu0 %v14190_v56  ;;  %v958_v56 = vunpack.c.h.bf16 %v14295_v44  ;;  %v858_v30 = vld [vmem:[%s13729_s8 + $0x158] sm:$0xff] }
  0xa8   : > { %1881 = vmatprep.mubr.bf16.mxu0 %v14194_v60  ;;  %v14371_v60 = vld [vmem:[%s18447_s30 + $0x58] sm:$0xff]  ;;  %v1593_v51 = vpack.c.bf16 %v18478_v24, %v18476_v8  ;;  %18479 = vst [vmem:[#allocation5_spill] sm:$0xff] %v14433_v27  ;;  %v955_v24 = vunpack.c.l.bf16 %v14292_v43  ;;  %v960_v43 = vunpack.c.h.bf16 %v855_v34  ;;  %v14494_v27 = vld [vmem:[%s18448_s3 + $0x60] sm:$0xff] }
  0xa9   : > { %v1098_v36 = vsub.f32 %v954_v40, %v14371_v60  ;;  %v1097_v40 = vsub.f32 %v953_v22, %v14388_v41  ;;  %v1102_v57 = vsub.f32 %v958_v56, %v14402_v45  ;;  %v856_v22 = vld [vmem:[%s13729_s8 + $0x148] sm:$0xff]  ;;  %18487 = vst [vmem:[#allocation17_spill] sm:$0xff] %v14494_v27 }
  0xaa   : > { %v1104_v29 = vsub.f32 %v960_v43, %v14235_v6  ;;  %v14502_v43 = vld [vmem:[%s18448_s3 + $0x70] sm:$0xff] }
  0xab   : > { %v14425_v56 = vmul.f32 %v14422_v50, %v1098_v36  ;;  %v14441_v8 = vmul.f32 %v14438_v18, %v1097_v40  ;;  %v957_v36 = vunpack.c.l.bf16 %v14295_v44  ;;  %v14459_v40 = vmul.f32 %v14456_v61, %v1102_v57  ;;  %v14472_v57 = vld [vmem:[%s18447_s30 + $0x60] sm:$0xff]  ;;  %18488 = vst [vmem:[#allocation18_spill] sm:$0xff] %v14502_v43 }
  0xac   : > { %v962_v44 = vunpack.c.h.bf16 %v856_v22  ;;  %18484 = vst [vmem:[#allocation16_spill] sm:$0xff] %v14472_v57 }
  0xad   : > { %18480 = vst [vmem:[#allocation6_spill] sm:$0xff] %v14441_v8  ;;  %v18485_v8 = vclamps-f32 %v14128_v15, 5.0  ;;  %v959_v15 = vunpack.c.l.bf16 %v855_v34 }
  0xae   : > { %v1106_v42 = vsub.f32 %v962_v44, %v14241_v49 }
  0xaf   : > { %1882 = vmatmul.mubr.bf16.gmra.mrb[40].mxu0 %v1590_v26  ;;  %v18482_v26 = vclamps-f32 %v14114_v48, 5.0  ;;  %v14478_v48 = vld [vmem:[%s18447_s30 + $0x70] sm:$0xff] }
  0xb0   : > { %1889 = vmatprep.mubr.bf16.mxu0 %v1593_v51  ;;  %v1099_v51 = vsub.f32 %v955_v24, %v14472_v57  ;;  %v1101_v10 = vsub.f32 %v957_v36, %v14478_v48  ;;  %v18486_v24 = vclamps-f32 %v14138_v54, 5.0  ;;  %v14508_v54 = vmul.f32 %v14125_v31, %v1104_v29 }
  0xb1   : > { %v1592_v4 = vpack.c.bf16 %v18483_v12, %v18482_v26  ;;  %v961_v26 = vunpack.c.l.bf16 %v856_v22  ;;  %v18489_v12 = vclamps-f32 %v14144_v58, 5.0  ;;  %v859_v58 = vld [vmem:[%s13729_s8 + $0x160] sm:$0xff]  ;;  %v965_v29 = vunpack.c.l.bf16 %v858_v30 }
  0xb2   : > { %v1595_v57 = vpack.c.bf16 %v18486_v24, %v18485_v8  ;;  %v14497_v36 = vmul.f32 %v14494_v27, %v1099_v51  ;;  %v14505_v44 = vmul.f32 %v14502_v43, %v1101_v10  ;;  %v14511_v8 = vmul.f32 %v14135_v19, %v1106_v42  ;;  %v860_v43 = vld [vmem:[%s13729_s8 + $0x168] sm:$0xff] }
  0xb3   : > { %v964_v51 = vunpack.c.h.bf16 %v857_v14  ;;  %v966_v24 = vunpack.c.h.bf16 %v858_v30  ;;  %v18490_v27 = vclamps-f32 %v14164_v39, 5.0  ;;  %v1105_v31 = vsub.f32 %v961_v26, %v14257_v20 }
  0xb4   : > { %v18491_v39 = vclamps-f32 %v14168_v63, 5.0  ;;  %v968_v63 = vunpack.c.h.bf16 %v859_v58 }
  0xb5   : > { %v1594_v10 = vpack.c.bf16 %v18490_v27, %v18489_v12  ;;  %v1108_v42 = vsub.f32 %v964_v51, %v14263_v37  ;;  %v18492_v27 = vclamps-f32 %v14176_v2, 5.0  ;;  %v14535_v26 = vmul.f32 %v14315_v53, %v1105_v31 }
  0xb6   : > { %v970_v2 = vunpack.c.h.bf16 %v860_v43  ;;  %v1112_v19 = vsub.f32 %v968_v63, %v14365_v38 }
  0xb7   : > { %1890 = vmatmul.mubr.bf16.gmra.mrb[44].mxu0 %v1592_v4  ;;  %v1103_v4 = vsub.f32 %v959_v15, %v14247_v35  ;;  %v1597_v12 = vpack.c.bf16 %v18492_v27, %v18491_v39  ;;  %v963_v15 = vunpack.c.l.bf16 %v857_v14  ;;  %v14538_v51 = vmul.f32 %v14323_v5, %v1108_v42 }
  0xb8   : > { %1897 = vmatprep.mubr.bf16.mxu0 %v1595_v57  ;;  %v1110_v57 = vsub.f32 %v966_v24, %v14274_v1  ;;  %v18494_v39 = vclamps-f32 %v14198_v47, 5.0  ;;  %v1109_v42 = vsub.f32 %v965_v29, %v14288_v21  ;;  %v14559_v47 = vld [vmem:[%s13729_s8 + $0x178] sm:$0xff]  ;;  %v969_v27 = vunpack.c.l.bf16 %v860_v43 }
  0xb9   : > { %v14532_v22 = vmul.f32 %v14307_v52, %v1103_v4  ;;  %v18493_v4 = vclamps-f32 %v14179_v62, 5.0  ;;  %v14556_v62 = vld [vmem:[%s13729_s8 + $0x170] sm:$0xff]  ;;  %v14572_v63 = vmul.f32 %v14414_v59, %v1112_v19 }
  0xba   : > { %v14541_v24 = vmul.f32 %v14332_v9, %v1110_v57  ;;  %v14569_v29 = vmul.f32 %v14349_v17, %v1109_v42  ;;  %v967_v57 = vunpack.c.l.bf16 %v859_v58  ;;  %v972_v14 = vunpack.c.h.bf16 %v14556_v62 }
  0xbb   : > { %v1596_v31 = vpack.c.bf16 %v18494_v39, %v18493_v4  ;;  %v18495_v4 = vclamps-f32 %v14206_v25, 5.0  ;;  %v18496_v39 = vclamps-f32 %v14214_v23, 5.0  ;;  %v974_v25 = vunpack.c.h.bf16 %v14559_v47 }
  0xbc   : > { %v18497_v23 = vclamps-f32 %v14217_v11, 5.0  ;;  %v9810_v43 = vclamps-f32 %v14569_v29, 5.0  ;;  %v1111_v58 = vsub.f32 %v967_v57, %v14382_v33  ;;  %v1113_v19 = vsub.f32 %v969_v27, %v14388_v41  ;;  %v18502_v27 = vld [vmem:[#allocation15_spill] sm:$0xff] }
  0xbd   : > { %v1599_v30 = vpack.c.bf16 %v18496_v39, %v18495_v4  ;;  %v1116_v39 = vsub.f32 %v972_v14, %v14396_v0  ;;  %v18499_v11 = vclamps-f32 %v14224_v55, 5.0  ;;  %v18514_v55 = vld [vmem:[#allocation10_spill] sm:$0xff] }
  0xbe   : > { %v14596_v29 = vmul.f32 %v14438_v18, %v1113_v19 }
  0xbf   : > { %1898 = vmatmul.mubr.bf16.gmra.mrb[48].mxu0 %v1594_v10  ;;  %v1107_v10 = vsub.f32 %v963_v15, %v14282_v3  ;;  %v14599_v57 = vmul.f32 %v18502_v27, %v1116_v39 }
  0xc0   : > { %1905 = vmatprep.mubr.bf16.mxu0 %v1597_v12  ;;  %v1114_v12 = vsub.f32 %v970_v2, %v14371_v60  ;;  %18501 = vst [vmem:[#allocation19_spill] sm:$0xff] %v14596_v29  ;;  %v18515_v29 = vclamps-f32 %v18514_v55, 5.0  ;;  %v18525_v55 = vclamps-f32 %v14425_v56, 5.0  ;;  %v18533_v56 = vclamps-f32 %v14505_v44, 5.0  ;;  %v868_v44 = vld [vmem:[%s13729_s8 + $0x1a8] sm:$0xff] }
  0xc1   : > { %v14566_v15 = vmul.f32 %v14341_v32, %v1107_v10  ;;  %v18498_v10 = vclamps-f32 %v14220_v28, 5.0  ;;  %v18500_v28 = vclamps-f32 %v14227_v13, 5.0  ;;  %18503 = vst [vmem:[#allocation15_spill] sm:$0xff] %v14599_v57  ;;  %v18504_v13 = vld [vmem:[#allocation3_spill] sm:$0xff] }
  0xc2   : > { %v1258_v2 = vmul.f32 %v14422_v50, %v1114_v12 }
  0xc3   : > { %v1598_v4 = vpack.c.bf16 %v18498_v10, %v18497_v23  ;;  %v9808_v42 = vclamps-f32 %v14566_v15, 5.0  ;;  %v1601_v23 = vpack.c.bf16 %v18500_v28, %v18499_v11  ;;  %v14593_v15 = vmul.f32 %v14430_v7, %v1111_v58  ;;  %v18508_v11 = vld [vmem:[#allocation7_spill] sm:$0xff]  ;;  %v18510_v28 = vld [vmem:[#allocation8_spill] sm:$0xff] }
  0xc4   : > { %v9815_v12 = vclamps-f32 %v1258_v2, 5.0  ;;  %v18505_v2 = vclamps-f32 %v18504_v13, 5.0  ;;  %v18509_v39 = vclamps-f32 %v18508_v11, 5.0  ;;  %v18511_v34 = vclamps-f32 %v18510_v28, 5.0  ;;  %v18520_v11 = vld [vmem:[#allocation13_spill] sm:$0xff] }
  0xc5   : > { %v18521_v28 = vclamps-f32 %v18520_v11, 5.0 }
  0xc7   : > { %1906 = vmatmul.mubr.bf16.gmra.mrb[52].mxu0 %v1596_v31  ;;  %v9813_v31 = vclamps-f32 %v14572_v63, 5.0 }
  0xc8   : > { %1913 = vmatprep.mubr.bf16.mxu0 %v1599_v30  ;;  %v1118_v30 = vsub.f32 %v974_v25, %v14402_v45  ;;  %v18506_v25 = vld [vmem:[#allocation4_spill] sm:$0xff] }
  0xc9   : > { %v18507_v10 = vclamps-f32 %v18506_v25, 5.0  ;;  %v18516_v25 = vld [vmem:[#allocation11_spill] sm:$0xff] }
  0xca   : > { %v14602_v63 = vmul.f32 %v14456_v61, %v1118_v30  ;;  %v1603_v30 = vpack.c.bf16 %v18511_v34, %v18509_v39  ;;  %v18522_v34 = vld [vmem:[#allocation14_spill] sm:$0xff] }
  0xcb   : > { %v1600_v58 = vpack.c.bf16 %v18507_v10, %v18505_v2  ;;  %v18517_v2 = vclamps-f32 %v18516_v25, 5.0  ;;  %v18518_v10 = vld [vmem:[#allocation12_spill] sm:$0xff]  ;;  %v18530_v25 = vclamps-f32 %v14451_v46, 5.0  ;;  %v971_v46 = vunpack.c.l.bf16 %v14556_v62  ;;  %v14668_v62 = vld [vmem:[%s13729_s8 + $0x1b8] sm:$0xff] }
  0xcc   : > { %v18519_v19 = vclamps-f32 %v18518_v10, 5.0 }
  0xce   : > { %v1605_v57 = vpack.c.bf16 %v18519_v19, %v18517_v2  ;;  %v18528_v19 = vld [vmem:[#allocation6_spill] sm:$0xff]  ;;  %v18531_v2 = vclamps-f32 %v14459_v40, 5.0  ;;  %v865_v40 = vld [vmem:[%s13729_s8 + $0x190] sm:$0xff] }
  0xcf   : > { %1914 = vmatmul.mubr.bf16.gmra.mrb[56].mxu0 %v1598_v4  ;;  %v9819_v4 = vclamps-f32 %v14602_v63, 5.0  ;;  %v989_v63 = vunpack.c.l.bf16 %v14668_v62 }
  0xd0   : > { %1921 = vmatprep.mubr.bf16.mxu0 %v1601_v23  ;;  %v18512_v23 = vld [vmem:[#allocation9_spill] sm:$0xff]  ;;  %v1609_v10 = vpack.c.bf16 %v18531_v2, %v18530_v25  ;;  %v1612_v2 = vpack.c.bf16 %v9810_v43, %v9808_v42 }
  0xd1   : > { %v18513_v14 = vclamps-f32 %v18512_v23, 5.0  ;;  %v14665_v25 = vld [vmem:[%s13729_s8 + $0x1b0] sm:$0xff] }
  0xd3   : > { %v1602_v13 = vpack.c.bf16 %v18515_v29, %v18513_v14  ;;  %v18526_v29 = vld [vmem:[#allocation5_spill] sm:$0xff] }
  0xd4   : > { %v18527_v14 = vclamps-f32 %v18526_v29, 5.0  ;;  %v18536_v29 = vclamps-f32 %v14532_v22, 5.0 }
  0xd7   : > { %1922 = vmatmul.mubr.bf16.gmra.mrb[60].mxu0 %v1600_v58  ;;  %v18523_v58 = vclamps-f32 %v18522_v34, 5.0  ;;  %v18535_v34 = vclamps-f32 %v14511_v8, 5.0  ;;  %v18538_v8 = vclamps-f32 %v14538_v51, 5.0  ;;  %v979_v51 = vunpack.c.l.bf16 %v865_v40 }
  0xd8   : > { %1929 = vmatprep.mubr.bf16.mxu0 %v1603_v30  ;;  %v18524_v30 = vclamps-f32 %v14417_v16, 5.0  ;;  %v18532_v16 = vclamps-f32 %v14497_v36, 5.0  ;;  %v973_v36 = vunpack.c.l.bf16 %v14559_v47 }
  0xd9   : > { %v1604_v39 = vpack.c.bf16 %v18523_v58, %v18521_v28  ;;  %v18534_v28 = vclamps-f32 %v14508_v54, 5.0  ;;  %v18537_v54 = vclamps-f32 %v14535_v26, 5.0 }
  0xda   : > { %v1607_v23 = vpack.c.bf16 %v18525_v55, %v18524_v30  ;;  %v1608_v11 = vpack.c.bf16 %v18533_v56, %v18532_v16  ;;  %v864_v30 = vld [vmem:[%s13729_s8 + $0x188] sm:$0xff]  ;;  %v866_v55 = vld [vmem:[%s13729_s8 + $0x198] sm:$0xff] }
  0xdb   : > { %v1611_v58 = vpack.c.bf16 %v18535_v34, %v18534_v28  ;;  %v978_v47 = vunpack.c.h.bf16 %v864_v30  ;;  %v977_v22 = vunpack.c.l.bf16 %v864_v30  ;;  %v980_v28 = vunpack.c.h.bf16 %v865_v40  ;;  %v18542_v40 = vld [vmem:[#allocation18_spill] sm:$0xff] }
  0xdc   : > { %v982_v26 = vunpack.c.h.bf16 %v866_v55  ;;  %v1117_v34 = vsub.f32 %v973_v36, %v14478_v48  ;;  %v14688_v36 = vld [vmem:[%s18448_s3 + $0x8] sm:$0xff] }
  0xdd   : > { %v1122_v42 = vsub.f32 %v978_v47, %v14241_v49  ;;  %v1121_v30 = vsub.f32 %v977_v22, %v14257_v20 }
  0xdf   : > { %1930 = vmatmul.mubr.bf16.gmra.mrb[64].mxu0 %v1602_v13  ;;  %v18529_v13 = vclamps-f32 %v18528_v19, 5.0  ;;  %v18539_v19 = vclamps-f32 %v14541_v24, 5.0 }
  0xe0   : > { %1937 = vmatprep.mubr.bf16.mxu0 %v1605_v57 }
  0xe1   : > { %v1606_v57 = vpack.c.bf16 %v18529_v13, %v18527_v14  ;;  %v1610_v14 = vpack.c.bf16 %v18537_v54, %v18536_v29  ;;  %v1613_v13 = vpack.c.bf16 %v18539_v19, %v18538_v8  ;;  %v986_v54 = vunpack.c.h.bf16 %v868_v44 }
  0xe2   : > { %v985_v19 = vunpack.c.l.bf16 %v868_v44 }
  0xe3   : > { %v1130_v20 = vsub.f32 %v986_v54, %v14371_v60  ;;  %v1265_v60 = vmul.f32 %v14315_v53, %v1121_v30 }
  0xe7   : > { %1938 = vmatmul.mubr.bf16.gmra.mrb[68].mxu0 %v1604_v39  ;;  %v863_v39 = vld [vmem:[%s13729_s8 + $0x180] sm:$0xff] }
  0xe8   : > { %1945 = vmatprep.mubr.bf16.mxu0 %v1607_v23  ;;  %v867_v23 = vld [vmem:[%s13729_s8 + $0x1a0] sm:$0xff]  ;;  %v975_v56 = vunpack.c.l.bf16 %v863_v39 }
  0xe9   : > { %v984_v24 = vunpack.c.h.bf16 %v867_v23  ;;  %v983_v8 = vunpack.c.l.bf16 %v867_v23  ;;  %v1123_v23 = vsub.f32 %v979_v51, %v14282_v3  ;;  %v14697_v3 = vld [vmem:[%s18448_s3 + $0x18] sm:$0xff] }
  0xea   : > { %v1119_v43 = vsub.f32 %v975_v56, %v14247_v35 }
  0xeb   : > { %v1128_v35 = vsub.f32 %v984_v24, %v14365_v38 }
  0xec   : > { %v1263_v38 = vmul.f32 %v14307_v52, %v1119_v43  ;;  %v1274_v52 = vmul.f32 %v14422_v50, %v1130_v20 }
  0xed   : > { %v1272_v56 = vmul.f32 %v14414_v59, %v1128_v35 }
  0xef   : > { %1946 = vmatmul.mubr.bf16.gmra.mrb[72].mxu0 %v1606_v57  ;;  %v976_v57 = vunpack.c.h.bf16 %v863_v39  ;;  %v18541_v39 = vld [vmem:[#allocation17_spill] sm:$0xff]  ;;  %v9829_v51 = vclamps-f32 %v1272_v56, 5.0 }
  0xf0   : > { %1953 = vmatprep.mubr.bf16.mxu0 %v1609_v10  ;;  %v18540_v10 = vld [vmem:[#allocation16_spill] sm:$0xff] }
  0xf1   : > { %v1115_v16 = vsub.f32 %v971_v46, %v18540_v10  ;;  %v1120_v29 = vsub.f32 %v976_v57, %v14235_v6  ;;  %v1124_v46 = vsub.f32 %v980_v28, %v14263_v37  ;;  %v1126_v6 = vsub.f32 %v982_v26, %v14274_v1 }
  0xf2   : > { %v1127_v37 = vsub.f32 %v983_v8, %v14382_v33  ;;  %v1129_v1 = vsub.f32 %v985_v19, %v14388_v41  ;;  %v9820_v28 = vclamps-f32 %v1263_v38, 5.0  ;;  %v14753_v38 = vld [vmem:[%s18448_s3 + $0x60] sm:$0xff] }
  0xf3   : > { %v1259_v48 = vmul.f32 %v18541_v39, %v1115_v16  ;;  %v1264_v44 = vmul.f32 %v14688_v36, %v1120_v29  ;;  %v1268_v33 = vmul.f32 %v14323_v5, %v1124_v46  ;;  %v1270_v41 = vmul.f32 %v14332_v9, %v1126_v6  ;;  %v14727_v6 = vld [vmem:[%s13729_s8 + $0x1d0] sm:$0xff] }
  0xf4   : > { %v1267_v16 = vmul.f32 %v14341_v32, %v1123_v23  ;;  %v9822_v32 = vclamps-f32 %v1265_v60, 5.0  ;;  %v996_v60 = vunpack.c.h.bf16 %v14727_v6 }
  0xf5   : > { %v9816_v57 = vclamps-f32 %v1259_v48, 5.0  ;;  %v9821_v22 = vclamps-f32 %v1264_v44, 5.0  ;;  %v9825_v26 = vclamps-f32 %v1268_v33, 5.0  ;;  %v987_v48 = vunpack.c.l.bf16 %v14665_v25  ;;  %v13521_v44 = vld [vmem:[%s18447_s30 + $0x18] sm:$0xff] }
  0xf6   : > { %v1618_v43 = vpack.c.bf16 %v9822_v32, %v9820_v28 }
  0xf7   : > { %1954 = vmatmul.mubr.bf16.gmra.mrb[76].mxu0 %v1608_v11  ;;  %v1615_v11 = vpack.c.bf16 %v9815_v12, %v9813_v31  ;;  %v988_v31 = vunpack.c.h.bf16 %v14665_v25  ;;  %v990_v12 = vunpack.c.h.bf16 %v14668_v62  ;;  %v14741_v25 = vld [vmem:[%s18447_s30 + $0x70] sm:$0xff] }
  0xf8   : > { %1961 = vmatprep.mubr.bf16.mxu0 %v1611_v58  ;;  %v981_v58 = vunpack.c.l.bf16 %v866_v55  ;;  %v1261_v55 = vmul.f32 %v18542_v40, %v1117_v34  ;;  %v9824_v34 = vclamps-f32 %v1267_v16, 5.0  ;;  %v14730_v40 = vld [vmem:[%s13729_s8 + $0x1d8] sm:$0xff]  ;;  %v1133_v62 = vsub.f32 %v989_v63, %v14741_v25 }
  0xf9   : > { %v998_v33 = vunpack.c.h.bf16 %v14730_v40 }
  0xfa   : > { %v1125_v49 = vsub.f32 %v981_v58, %v14288_v21  ;;  %v1266_v21 = vmul.f32 %v14697_v3, %v1122_v42  ;;  %v9818_v10 = vclamps-f32 %v1261_v55, 5.0  ;;  %v9831_v58 = vclamps-f32 %v1274_v52, 5.0  ;;  %v14735_v55 = vld [vmem:[%s18447_s30 + $0x60] sm:$0xff] }
  0xfb   : > { %v1131_v23 = vsub.f32 %v987_v48, %v14735_v55  ;;  %v13532_v48 = vld [vmem:[%s18447_s30 + $0x20] sm:$0xff] }
  0xfc   : > { %v1269_v47 = vmul.f32 %v14349_v17, %v1125_v49  ;;  %v9823_v53 = vclamps-f32 %v1266_v21, 5.0  ;;  %v9827_v17 = vclamps-f32 %v1270_v41, 5.0  ;;  %v1616_v19 = vpack.c.bf16 %v9818_v10, %v9816_v57  ;;  %v13520_v49 = vld [vmem:[%s18447_s30 + $0x8] sm:$0xff] }
  0xfe   : > { %v9826_v59 = vclamps-f32 %v1269_v47, 5.0  ;;  %v1619_v42 = vpack.c.bf16 %v9823_v53, %v9821_v22  ;;  %v13524_v47 = vld [vmem:[%s18447_s30] sm:$0xff]  ;;  %v13525_v22 = vld [vmem:[%s18447_s30 + $0x10] sm:$0xff]  ;;  %v13527_v53 = vld [vmem:[%s18447_s30 + $0x38] sm:$0xff] }
  0xff   : > { %1962 = vmatmul.mubr.bf16.gmra.mrb[80].mxu0 %v1610_v14  ;;  %v1132_v14 = vsub.f32 %v988_v31, %v14396_v0  ;;  %v1271_v0 = vmul.f32 %v14430_v7, %v1127_v37  ;;  %v871_v31 = vld [vmem:[%s13729_s8 + $0x1c0] sm:$0xff]  ;;  %v1142_v28 = vsub.f32 %v998_v33, %v13527_v53 }
 0x100   : > { %1969 = vmatprep.mubr.bf16.mxu0 %v1613_v13  ;;  %v1134_v13 = vsub.f32 %v990_v12, %v14402_v45  ;;  %v1273_v45 = vmul.f32 %v14438_v18, %v1129_v1  ;;  %v18543_v18 = vclamps-f32 %v14593_v15, 5.0  ;;  %v1621_v15 = vpack.c.bf16 %v9827_v17, %v9825_v26  ;;  %v872_v12 = vld [vmem:[%s13729_s8 + $0x1c8] sm:$0xff]  ;;  %v14784_v26 = vld [vmem:[%s13729_s8 + $0x1e0] sm:$0xff] }
 0x101   : > { %v1276_v5 = vmul.f32 %v18502_v27, %v1132_v14  ;;  %v9828_v50 = vclamps-f32 %v1271_v0, 5.0  ;;  %v1620_v39 = vpack.c.bf16 %v9826_v59, %v9824_v34  ;;  %v992_v30 = vunpack.c.h.bf16 %v871_v31  ;;  %v14787_v17 = vld [vmem:[%s13729_s8 + $0x1e8] sm:$0xff]  ;;  %v13528_v59 = vld [vmem:[%s18448_s3] sm:$0xff] }
 0x102   : > { %v1278_v9 = vmul.f32 %v14456_v61, %v1134_v13  ;;  %v9830_v7 = vclamps-f32 %v1273_v45, 5.0  ;;  %v18546_v61 = vld [vmem:[#allocation15_spill] sm:$0xff]  ;;  %v994_v46 = vunpack.c.h.bf16 %v872_v12  ;;  %v991_v1 = vunpack.c.l.bf16 %v871_v31  ;;  %v14759_v13 = vld [vmem:[%s18448_s3 + $0x70] sm:$0xff] }
 0x103   : > { %v9833_v27 = vclamps-f32 %v1276_v5, 5.0  ;;  %v1136_v35 = vsub.f32 %v992_v30, %v13520_v49  ;;  %v993_v21 = vunpack.c.l.bf16 %v872_v12  ;;  %v1275_v14 = vmul.f32 %v14753_v38, %v1131_v23  ;;  %v14781_v5 = vld [vmem:[%s18548_s1] ss:$0 sm:$0xff] }
 0x104   : > { %v9835_v54 = vclamps-f32 %v1278_v9, 5.0  ;;  %v1138_v20 = vsub.f32 %v994_v46, %v13521_v44  ;;  %v1622_v37 = vpack.c.bf16 %v9830_v7, %v9828_v50  ;;  %v1277_v57 = vmul.f32 %v14759_v13, %v1133_v62  ;;  %v13534_v62 = vld [vmem:[%s18447_s30 + $0x48] sm:$0xff] }
 0x105   : > { %v1280_v10 = vmul.f32 %v14688_v36, %v1136_v35  ;;  %v1135_v56 = vsub.f32 %v991_v1, %v13524_v47  ;;  %v1137_v52 = vsub.f32 %v993_v21, %v13525_v22  ;;  %v9832_v0 = vclamps-f32 %v1275_v14, 5.0  ;;  %v13526_v36 = vld [vmem:[%s18447_s30 + $0x28] sm:$0xff]  ;;  %v13535_v35 = vld [vmem:[%s18447_s30 + $0x58] sm:$0xff] }
 0x106   : > { %v1625_v41 = vpack.c.bf16 %v9835_v54, %v9833_v27  ;;  %v1282_v16 = vmul.f32 %v14697_v3, %v1138_v20  ;;  %v9834_v45 = vclamps-f32 %v1277_v57, 5.0  ;;  %v1140_v3 = vsub.f32 %v996_v60, %v13526_v36  ;;  %v13530_v27 = vld [vmem:[%s18448_s3 + $0x28] sm:$0xff]  ;;  %v14825_v1 = vld [vmem:[%s13729_s8 + $0x1f8] sm:$0xff] }
 0x107   : > { %1970 = vmatmul.mubr.bf16.gmra.mrb[84].mxu0 %v1612_v2  ;;  %v18544_v2 = vld [vmem:[#allocation19_spill] sm:$0xff]  ;;  %v9837_v9 = vclamps-f32 %v1280_v10, 5.0  ;;  %v995_v7 = vunpack.c.l.bf16 %v14727_v6  ;;  %v999_v57 = vunpack.c.l.bf16 %v14784_v26  ;;  %v1001_v60 = vunpack.c.l.bf16 %v14787_v17  ;;  %v13539_v36 = vld [vmem:[%s18448_s3 + $0x58] sm:$0xff] }
 0x108   : > { %1977 = vmatprep.mubr.bf16.mxu0 %v1615_v11  ;;  %v18545_v24 = vclamps-f32 %v18544_v2, 5.0  ;;  %v18547_v11 = vclamps-f32 %v18546_v61, 5.0  ;;  %v9839_v32 = vclamps-f32 %v1282_v16, 5.0  ;;  %v1284_v54 = vmul.f32 %v13530_v27, %v1140_v3  ;;  %v13531_v61 = vld [vmem:[%s18448_s3 + $0x38] sm:$0xff]  ;;  %v13536_v16 = vld [vmem:[%s18448_s3 + $0x20] sm:$0xff] }
 0x109   : > { %v1139_v63 = vsub.f32 %v995_v7, %v13532_v48  ;;  %v13543_v27 = vld [vmem:[%s18447_s30 + $0x78] sm:$0xff]  ;;  %v1005_v48 = vunpack.c.l.bf16 %v14825_v1 }
 0x10a   : > { %v1614_v29 = vpack.c.bf16 %v18545_v24, %v18543_v18  ;;  %v1617_v8 = vpack.c.bf16 %v9819_v4, %v18547_v11  ;;  %v1623_v4 = vpack.c.bf16 %v9831_v58, %v9829_v51  ;;  %v1279_v51 = vmul.f32 %v13528_v59, %v1135_v56  ;;  %v13529_v58 = vld [vmem:[%s18448_s3 + $0x10] sm:$0xff] }
 0x10b   : > { %v1281_v50 = vmul.f32 %v13529_v58, %v1137_v52  ;;  %v997_v18 = vunpack.c.l.bf16 %v14730_v40  ;;  %v1286_v11 = vmul.f32 %v13531_v61, %v1142_v28  ;;  %v9841_v40 = vclamps-f32 %v1284_v54, 5.0  ;;  %v13537_v56 = vld [vmem:[%s18448_s3 + $0x30] sm:$0xff] }
 0x10c   : > { %v9836_v12 = vclamps-f32 %v1279_v51, 5.0  ;;  %v1283_v47 = vmul.f32 %v13536_v16, %v1139_v63  ;;  %v1006_v28 = vunpack.c.h.bf16 %v14825_v1 }
 0x10d   : > { %v9843_v23 = vclamps-f32 %v1286_v11, 5.0 }
 0x10e   : > { %v1150_v54 = vsub.f32 %v1006_v28, %v13543_v27 }
 0x10f   : > { %1978 = vmatmul.mubr.bf16.gmra.mrb[88].mxu0 %v1614_v29  ;;  %v1624_v29 = vpack.c.bf16 %v9834_v45, %v9832_v0  ;;  %v1629_v10 = vpack.c.bf16 %v9843_v23, %v9841_v40  ;;  %v13538_v0 = vld [vmem:[%s18448_s3 + $0x48] sm:$0xff] }
 0x110   : > { %1985 = vmatprep.mubr.bf16.mxu0 %v1617_v8 }
 0x117   : > { %1986 = vmatmul.mubr.bf16.gmra.mrb[92].mxu0 %v1616_v19  ;;  %v1627_v19 = vpack.c.bf16 %v9839_v32, %v9837_v9 }
 0x118   : > { %1993 = vmatprep.mubr.bf16.mxu0 %v1619_v42  ;;  %v1000_v42 = vunpack.c.h.bf16 %v14784_v26  ;;  %v13540_v26 = vld [vmem:[%s18447_s30 + $0x40] sm:$0xff] }
 0x11a   : > { %v1144_v49 = vsub.f32 %v1000_v42, %v13534_v62  ;;  %v13545_v42 = vld [vmem:[%s18448_s3 + $0x50] sm:$0xff] }
 0x11c   : > { %v1288_v45 = vmul.f32 %v13538_v0, %v1144_v49 }
 0x11f   : > { %1994 = vmatmul.mubr.bf16.gmra.mrb[96].mxu0 %v1618_v43  ;;  %v1002_v43 = vunpack.c.h.bf16 %v14787_v17  ;;  %v1143_v17 = vsub.f32 %v999_v57, %v13540_v26 }
 0x120   : > { %2001 = vmatprep.mubr.bf16.mxu0 %v1621_v15 }
 0x121   : > { %v1146_v44 = vsub.f32 %v1002_v43, %v13535_v35 }
 0x123   : > { %v1290_v3 = vmul.f32 %v13539_v36, %v1146_v44 }
 0x127   : > { %2002 = vmatmul.mubr.bf16.gmra.mrb[100].mxu0 %v1620_v39  ;;  %v9838_v39 = vclamps-f32 %v1281_v50, 5.0  ;;  %v9840_v50 = vclamps-f32 %v1283_v47, 5.0 }
 0x128   : > { %2009 = vmatprep.mubr.bf16.mxu0 %v1623_v4  ;;  %v13533_v4 = vld [vmem:[%s18447_s30 + $0x30] sm:$0xff] }
 0x129   : > { %v1141_v30 = vsub.f32 %v997_v18, %v13533_v4  ;;  %v1626_v14 = vpack.c.bf16 %v9838_v39, %v9836_v12  ;;  %v9845_v18 = vclamps-f32 %v1288_v45, 5.0 }
 0x12b   : > { %v1285_v22 = vmul.f32 %v13537_v56, %v1141_v30  ;;  %v13546_v30 = vld [vmem:[%s18448_s3 + $0x68] sm:$0xff] }
 0x12d   : > { %v9842_v7 = vclamps-f32 %v1285_v22, 5.0 }
 0x12f   : > { %2010 = vmatmul.mubr.bf16.gmra.mrb[104].mxu0 %v1622_v37  ;;  %v14822_v37 = vld [vmem:[%s13729_s8 + $0x1f0] sm:$0xff]  ;;  %v1628_v12 = vpack.c.bf16 %v9842_v7, %v9840_v50 }
 0x130   : > { %2017 = vmatprep.mubr.bf16.mxu0 %v1625_v41  ;;  %v1004_v53 = vunpack.c.h.bf16 %v14822_v37  ;;  %v1003_v39 = vunpack.c.l.bf16 %v14822_v37 }
 0x132   : > { %v1803_v34 = vpop.f32.mrb[0].mxu0  ;;  %v1147_v1 = vsub.f32 %v1003_v39, %v14735_v55 }
 0x133   : > { %v1804_v2 = vadd.f32 %v14781_v5, %v1803_v34  ;;  %v1805_v24 = vpop.f32.mrb[1].mxu0  ;;  %v13541_v34 = vld [vmem:[%s18447_s30 + $0x50] sm:$0xff] }
 0x134   : > { %v1806_v8 = vpop.f32.mrb[2].mxu0  ;;  %v1145_v59 = vsub.f32 %v1001_v60, %v13541_v34  ;;  %v13542_v24 = vld [vmem:[%s18447_s30 + $0x68] sm:$0xff]  ;;  %v1291_v47 = vmul.f32 %v14753_v38, %v1147_v1 }
 0x135   : > { %v1807_v15 = vadd.f32 %v14781_v5, %v1806_v8  ;;  %v1808_v31 = vpop.f32.mrb[3].mxu0  ;;  %v2058_v46 = vmax.f32 %v1804_v2, 0.0  ;;  %v9847_v2 = vclamps-f32 %v1290_v3, 5.0  ;;  %v13544_v8 = vld [vmem:[%s18448_s3 + $0x40] sm:$0xff] }
 0x136   : > { %v1289_v43 = vmul.f32 %v13545_v42, %v1145_v59  ;;  %v9848_v36 = vclamps-f32 %v1291_v47, 5.0 }
 0x137   : > { %v2059_v6 = vmax.f32 %v1807_v15, 0.0  ;;  %2018 = vmatmul.mubr.bf16.gmra.mrb[108].mxu0 %v1624_v29  ;;  %v1148_v29 = vsub.f32 %v1004_v53, %v13542_v24  ;;  %v1631_v4 = vpack.c.bf16 %v9847_v2, %v9845_v18 }
 0x138   : > { %2025 = vmatprep.mubr.bf16.mxu0 %v1627_v19  ;;  %v1287_v19 = vmul.f32 %v13544_v8, %v1143_v17  ;;  %v9846_v35 = vclamps-f32 %v1289_v43, 5.0 }
 0x139   : > { %v14819_v20 = vpack.c.bf16 %v2059_v6, %v2058_v46  ;;  %v1292_v46 = vmul.f32 %v13546_v30, %v1148_v29  ;;  %v13547_v6 = vld [vmem:[%s18448_s3 + $0x78] sm:$0xff]  ;;  %s18810_s3 = sld [smem:[#allocation85_spill]] }
 0x13a   : > { %v1811_v21 = vpop.f32.mrb[4].mxu0  ;;  %v1294_v40 = vmul.f32 %v13547_v6, %v1150_v54  ;;  %v9844_v49 = vclamps-f32 %v1287_v19, 5.0 }
 0x13b   : > { %v1812_v33 = vadd.f32 %v14781_v5, %v1811_v21  ;;  %v1813_v41 = vpop.f32.mrb[5].mxu0  ;;  %v1149_v21 = vsub.f32 %v1005_v48, %v14741_v25 }
 0x13c   : > { %v1814_v52 = vpop.f32.mrb[6].mxu0  ;;  %v9851_v57 = vclamps-f32 %v1294_v40, 5.0  ;;  %v1630_v16 = vpack.c.bf16 %v9846_v35, %v9844_v49 }
 0x13d   : > { %v1815_v9 = vadd.f32 %v14781_v5, %v1814_v52  ;;  %v1816_v32 = vpop.f32.mrb[7].mxu0  ;;  %v2060_v51 = vmax.f32 %v1812_v33, 0.0  ;;  %v1293_v56 = vmul.f32 %v14759_v13, %v1149_v21  ;;  %v12806_v13 = vld [vmem:[%s18549_s9 + $0x244] ss:$16 sps:$4 sm:$0xff]  }
 0x13f   : > { %v2061_v58 = vmax.f32 %v1815_v9, 0.0  ;;  %2026 = vmatmul.mubr.bf16.gmra.mrb[112].mxu0 %v1626_v14  ;;  %v9849_v14 = vclamps-f32 %v1292_v46, 5.0  ;;  %v9850_v3 = vclamps-f32 %v1293_v56, 5.0 }
 0x140   : > { %2033 = vmatprep.mubr.bf16.mxu0 %v1629_v10 }
 0x141   : > { %v14857_v61 = vpack.c.bf16 %v2061_v58, %v2060_v51  ;;  %v1633_v52 = vpack.c.bf16 %v9851_v57, %v9849_v14  ;;  %v1632_v38 = vpack.c.bf16 %v9850_v3, %v9848_v36 }
 0x142   : > { %v1819_v11 = vpop.f32.mrb[8].mxu0 }
 0x143   : > { %v1820_v15 = vadd.f32 %v14781_v5, %v1819_v11  ;;  %v1821_v31 = vpop.f32.mrb[9].mxu0 }
 0x144   : > { %v1822_v63 = vpop.f32.mrb[10].mxu0 }
 0x145   : > { %v1823_v23 = vadd.f32 %v14781_v5, %v1822_v63  ;;  %v1824_v62 = vpop.f32.mrb[11].mxu0  ;;  %v2062_v44 = vmax.f32 %v1820_v15, 0.0 }
 0x147   : > { %v2063_v37 = vmax.f32 %v1823_v23, 0.0  ;;  %2034 = vmatmul.mubr.bf16.gmra.mrb[116].mxu0 %v1628_v12 }
 0x148   : > { %2041 = vmatprep.mubr.bf16.mxu0 %v1631_v4 }
 0x149   : > { %v14877_v60 = vpack.c.bf16 %v2063_v37, %v2062_v44 }
 0x14a   : > { %v1827_v33 = vpop.f32.mrb[12].mxu0 }
 0x14b   : > { %v1828_v41 = vadd.f32 %v14781_v5, %v1827_v33  ;;  %v1829_v10 = vpop.f32.mrb[13].mxu0 }
 0x14c   : > { %v1830_v22 = vpop.f32.mrb[14].mxu0 }
 0x14d   : > { %v1831_v55 = vadd.f32 %v14781_v5, %v1830_v22  ;;  %v1832_v0 = vpop.f32.mrb[15].mxu0  ;;  %v2064_v25 = vmax.f32 %v1828_v41, 0.0 }
 0x14f   : > { %v2065_v45 = vmax.f32 %v1831_v55, 0.0  ;;  %2042 = vmatmul.mubr.bf16.gmra.mrb[120].mxu0 %v1630_v16  ;;  %v12832_v16 = vld [vmem:[%s18549_s9 + $0x4] ss:$16 sps:$4 sm:$0xff]  }
 0x150   : > { %2049 = vmatprep.mubr.bf16.mxu0 %v1633_v52  ;;  %2298 = vmatprep.mubr.bf16.mxu1 %v12832_v16 }
 0x151   : > { %v14883_v53 = vpack.c.bf16 %v2065_v45, %v2064_v25 }
 0x152   : > { %v1835_v28 = vpop.f32.mrb[16].mxu0 }
 0x153   : > { %v1836_v9 = vadd.f32 %v14781_v5, %v1835_v28  ;;  %v1837_v32 = vpop.f32.mrb[17].mxu0 }
 0x154   : > { %v1838_v26 = vpop.f32.mrb[18].mxu0 }
 0x155   : > { %v1839_v17 = vadd.f32 %v14781_v5, %v1838_v26  ;;  %v1840_v34 = vpop.f32.mrb[19].mxu0  ;;  %v2066_v59 = vmax.f32 %v1836_v9, 0.0 }
 0x157   : > { %v2067_v51 = vmax.f32 %v1839_v17, 0.0  ;;  %2050 = vmatmul.mubr.bf16.gmra.mrb[124].mxu0 %v1632_v38 }
 0x158   : > { %3346 = vmatprep.mubr.bf16.mxu0 %v12806_v13 }
 0x159   : > { %v14890_v58 = vpack.c.bf16 %v2067_v51, %v2066_v59 }
 0x15a   : > { %v1843_v50 = vpop.f32.mrb[20].mxu0 }
 0x15b   : > { %v1844_v7 = vadd.f32 %v14781_v5, %v1843_v50  ;;  %v1845_v18 = vpop.f32.mrb[21].mxu0 }
 0x15c   : > { %v1846_v2 = vpop.f32.mrb[22].mxu0 }
 0x15d   : > { %v1847_v24 = vadd.f32 %v14781_v5, %v1846_v2  ;;  %v1848_v29 = vpop.f32.mrb[23].mxu0  ;;  %v2068_v27 = vmax.f32 %v1844_v7, 0.0 }
 0x15f   : > { %v2069_v54 = vmax.f32 %v1847_v24, 0.0 }
 0x161   : > { %v14894_v11 = vpack.c.bf16 %v2069_v54, %v2068_v27 }
 0x162   : > { %v1851_v8 = vpop.f32.mrb[24].mxu0 }
 0x163   : > { %v1852_v19 = vadd.f32 %v14781_v5, %v1851_v8  ;;  %v1853_v42 = vpop.f32.mrb[25].mxu0 }
 0x164   : > { %v1854_v43 = vpop.f32.mrb[26].mxu0 }
 0x165   : > { %v1855_v15 = vadd.f32 %v14781_v5, %v1854_v43  ;;  %v1856_v31 = vpop.f32.mrb[27].mxu0  ;;  %v2070_v12 = vmax.f32 %v1852_v19, 0.0 }
 0x167   : > { %v2071_v39 = vmax.f32 %v1855_v15, 0.0 }
 0x169   : > { %v14898_v48 = vpack.c.bf16 %v2071_v39, %v2070_v12 }
 0x16a   : > { %v1859_v63 = vpop.f32.mrb[28].mxu0 }
 0x16b   : > { %v1860_v4 = vadd.f32 %v14781_v5, %v1859_v63  ;;  %v1861_v30 = vpop.f32.mrb[29].mxu0 }
 0x16c   : > { %v1862_v46 = vpop.f32.mrb[30].mxu0 }
 0x16d   : > { %v1863_v6 = vadd.f32 %v14781_v5, %v1862_v46  ;;  %v1864_v40 = vpop.f32.mrb[31].mxu0  ;;  %v2072_v23 = vmax.f32 %v1860_v4, 0.0 }
 0x16f   : > { %v2073_v62 = vmax.f32 %v1863_v6, 0.0 }
 0x171   : > { %v14902_v49 = vpack.c.bf16 %v2073_v62, %v2072_v23 }
 0x172   : > { %v1867_v35 = vpop.f32.mrb[32].mxu0 }
 0x173   : > { %v1868_v44 = vadd.f32 %v14781_v5, %v1867_v35  ;;  %v1869_v37 = vpop.f32.mrb[33].mxu0 }
 0x174   : > { %v1870_v1 = vpop.f32.mrb[34].mxu0 }
 0x175   : > { %v1871_v21 = vadd.f32 %v14781_v5, %v1870_v1  ;;  %v1872_v14 = vpop.f32.mrb[35].mxu0  ;;  %v2074_v57 = vmax.f32 %v1868_v44, 0.0 }
 0x177   : > { %v2075_v33 = vmax.f32 %v1871_v21, 0.0 }
 0x179   : > { %v14906_v41 = vpack.c.bf16 %v2075_v33, %v2074_v57 }
 0x17a   : > { %v1875_v10 = vpop.f32.mrb[36].mxu0 }
 0x17b   : > { %v1876_v47 = vadd.f32 %v14781_v5, %v1875_v10  ;;  %v1877_v56 = vpop.f32.mrb[37].mxu0  ;;  %10708 = vmatprep.subr.bf16.mxu1 %v14906_v41  ;;  %11076 = vmatprep.subr.bf16.mxu0 %v14906_v41 }
 0x17c   : > { %v1878_v22 = vpop.f32.mrb[38].mxu0  ;;  %10709 = vmatpush3.bf16.msra.mxu1 %v14819_v20  ;;  %11077 = vmatpush3.bf16.msra.mxu0 %v14819_v20 }
 0x17d   : > { %v1879_v52 = vadd.f32 %v14781_v5, %v1878_v22  ;;  %v1880_v55 = vpop.f32.mrb[39].mxu0  ;;  %v2076_v0 = vmax.f32 %v1876_v47, 0.0 }
 0x17f   : > { %v2077_v25 = vmax.f32 %v1879_v52, 0.0 }
 0x181   : > { %v14917_v45 = vpack.c.bf16 %v2077_v25, %v2076_v0 }
 0x182   : > { %v1883_v36 = vpop.f32.mrb[40].mxu0 }
 0x183   : > { %v1884_v3 = vadd.f32 %v14781_v5, %v1883_v36  ;;  %v1885_v28 = vpop.f32.mrb[41].mxu0  ;;  %10710 = vmatprep.subr.bf16.mxu1 %v14917_v45  ;;  %11078 = vmatprep.subr.bf16.mxu0 %v14917_v45 }
 0x184   : > { %v1886_v9 = vpop.f32.mrb[42].mxu0  ;;  %10711 = vmatpush3.bf16.msra.mxu1 %v14857_v61  ;;  %11079 = vmatpush3.bf16.msra.mxu0 %v14857_v61 }
 0x185   : > { %v1887_v32 = vadd.f32 %v14781_v5, %v1886_v9  ;;  %v1888_v38 = vpop.f32.mrb[43].mxu0  ;;  %v2078_v26 = vmax.f32 %v1884_v3, 0.0 }
 0x186   : > { %v12830_v38 = vld [vmem:[%s18549_s9] ss:$16 sps:$4 sm:$0xff]  }
 0x187   : > { %v2079_v13 = vmax.f32 %v1887_v32, 0.0  ;;  %v12804_v32 = vld [vmem:[%s18549_s9 + $0x240] ss:$16 sps:$4 sm:$0xff]  }
 0x189   : > { %v14925_v17 = vpack.c.bf16 %v2079_v13, %v2078_v26  ;;  %v12807_v13 = vld [vmem:[%s18549_s9 + $0x264] ss:$16 sps:$4 sm:$0xff]  }
 0x18a   : > { %v1891_v34 = vpop.f32.mrb[44].mxu0 }
 0x18b   : > { %v1892_v59 = vadd.f32 %v14781_v5, %v1891_v34  ;;  %v1893_v51 = vpop.f32.mrb[45].mxu0  ;;  %10712 = vmatprep.subr.bf16.mxu1 %v14925_v17  ;;  %11080 = vmatprep.subr.bf16.mxu0 %v14925_v17 }
 0x18c   : > { %v1894_v50 = vpop.f32.mrb[46].mxu0  ;;  %10713 = vmatpush3.bf16.msra.mxu1 %v14877_v60  ;;  %11081 = vmatpush3.bf16.msra.mxu0 %v14877_v60  ;;  %v12841_v51 = vld [vmem:[%s18549_s9 + $0x24] ss:$16 sps:$4 sm:$0xff]  }
 0x18d   : > { %v1895_v7 = vadd.f32 %v14781_v5, %v1894_v50  ;;  %v1896_v18 = vpop.f32.mrb[47].mxu0  ;;  %v2080_v2 = vmax.f32 %v1892_v59, 0.0 }
 0x18f   : > { %v2081_v24 = vmax.f32 %v1895_v7, 0.0 }
 0x191   : > { %v14933_v29 = vpack.c.bf16 %v2081_v24, %v2080_v2 }
 0x192   : > { %v1899_v27 = vpop.f32.mrb[48].mxu0 }
 0x193   : > { %v1900_v54 = vadd.f32 %v14781_v5, %v1899_v27  ;;  %v1901_v8 = vpop.f32.mrb[49].mxu0  ;;  %10714 = vmatprep.subr.bf16.mxu1 %v14933_v29  ;;  %11082 = vmatprep.subr.bf16.mxu0 %v14933_v29 }
 0x194   : > { %v1902_v19 = vpop.f32.mrb[50].mxu0  ;;  %10715 = vmatpush3.bf16.msra.mxu1 %v14883_v53  ;;  %11083 = vmatpush3.bf16.msra.mxu0 %v14883_v53  ;;  %v12843_v8 = vld [vmem:[%s18549_s9 + $0x20] ss:$16 sps:$4 sm:$0xff]  }
 0x195   : > { %v1903_v42 = vadd.f32 %v14781_v5, %v1902_v19  ;;  %v1904_v43 = vpop.f32.mrb[51].mxu0  ;;  %v2082_v15 = vmax.f32 %v1900_v54, 0.0  ;;  %v12809_v54 = vld [vmem:[%s18549_s9 + $0x260] ss:$16 sps:$4 sm:$0xff]  }
 0x197   : > { %v2083_v31 = vmax.f32 %v1903_v42, 0.0  ;;  %v12810_v42 = vld [vmem:[%s18549_s9 + $0x284] ss:$16 sps:$4 sm:$0xff]  }
 0x199   : > { %v14941_v12 = vpack.c.bf16 %v2083_v31, %v2082_v15  ;;  %v12847_v31 = vld [vmem:[%s18549_s9 + $0x44] ss:$16 sps:$4 sm:$0xff]  }
 0x19a   : > { %v1907_v39 = vpop.f32.mrb[52].mxu0 }
 0x19b   : > { %v1908_v63 = vadd.f32 %v14781_v5, %v1907_v39  ;;  %v1909_v4 = vpop.f32.mrb[53].mxu0  ;;  %10716 = vmatprep.subr.bf16.mxu1 %v14941_v12  ;;  %11084 = vmatprep.subr.bf16.mxu0 %v14941_v12 }
 0x19c   : > { %v1910_v30 = vpop.f32.mrb[54].mxu0  ;;  %10717 = vmatpush3.bf16.msra.mxu1 %v14890_v58  ;;  %11085 = vmatpush3.bf16.msra.mxu0 %v14890_v58 }
 0x19d   : > { %v1911_v46 = vadd.f32 %v14781_v5, %v1910_v30  ;;  %v1912_v6 = vpop.f32.mrb[55].mxu0  ;;  %v2084_v40 = vmax.f32 %v1908_v63, 0.0 }
 0x19f   : > { %v2085_v23 = vmax.f32 %v1911_v46, 0.0 }
 0x1a1   : > { %v14949_v62 = vpack.c.bf16 %v2085_v23, %v2084_v40  ;;  %v12812_v40 = vld [vmem:[%s18549_s9 + $0x280] ss:$16 sps:$4 sm:$0xff]  }
 0x1a2   : > { %v1915_v35 = vpop.f32.mrb[56].mxu0  ;;  %v12849_v23 = vld [vmem:[%s18549_s9 + $0x40] ss:$16 sps:$4 sm:$0xff]  }
 0x1a3   : > { %v1916_v44 = vadd.f32 %v14781_v5, %v1915_v35  ;;  %v1917_v37 = vpop.f32.mrb[57].mxu0  ;;  %10718 = vmatprep.subr.bf16.mxu1 %v14949_v62  ;;  %11086 = vmatprep.subr.bf16.mxu0 %v14949_v62 }
 0x1a4   : > { %v1918_v1 = vpop.f32.mrb[58].mxu0  ;;  %10719 = vmatpush3.bf16.msra.mxu1 %v14894_v11  ;;  %11087 = vmatpush3.bf16.msra.mxu0 %v14894_v11 }
 0x1a5   : > { %v1919_v21 = vadd.f32 %v14781_v5, %v1918_v1  ;;  %v1920_v14 = vpop.f32.mrb[59].mxu0  ;;  %v2086_v57 = vmax.f32 %v1916_v44, 0.0  ;;  %v12813_v44 = vld [vmem:[%s18549_s9 + $0x2a4] ss:$16 sps:$4 sm:$0xff]  }
 0x1a7   : > { %v2087_v33 = vmax.f32 %v1919_v21, 0.0  ;;  %v12853_v21 = vld [vmem:[%s18549_s9 + $0x64] ss:$16 sps:$4 sm:$0xff]  }
 0x1a9   : > { %v14957_v10 = vpack.c.bf16 %v2087_v33, %v2086_v57 }
 0x1aa   : > { %v1923_v16 = vpop.f32.mrb[60].mxu0 }
 0x1ab   : > { %v1924_v47 = vadd.f32 %v14781_v5, %v1923_v16  ;;  %v1925_v56 = vpop.f32.mrb[61].mxu0  ;;  %10720 = vmatprep.subr.bf16.mxu1 %v14957_v10  ;;  %11088 = vmatprep.subr.bf16.mxu0 %v14957_v10  ;;  %v10022_v16 = vld [vmem:[%s18549_s9 + $0x2c0] sm:$0xff] }
 0x1ac   : > { %v1926_v22 = vpop.f32.mrb[62].mxu0  ;;  %10721 = vmatpush3.bf16.msra.mxu1 %v14898_v48  ;;  %11089 = vmatpush3.bf16.msra.mxu0 %v14898_v48  ;;  %v2170_v56 = vld [vmem:[%s18549_s9 + $0x80] sm:$0xff] }
 0x1ad   : > { %v1927_v52 = vadd.f32 %v14781_v5, %v1926_v22  ;;  %v1928_v55 = vpop.f32.mrb[63].mxu0  ;;  %v2088_v0 = vmax.f32 %v1924_v47, 0.0 }
 0x1ae   : > { %v12815_v55 = vld [vmem:[%s18549_s9 + $0x2a0] ss:$16 sps:$4 sm:$0xff]  }
 0x1af   : > { %v2089_v25 = vmax.f32 %v1927_v52, 0.0 }
 0x1b1   : > { %v14965_v36 = vpack.c.bf16 %v2089_v25, %v2088_v0  ;;  %v12855_v0 = vld [vmem:[%s18549_s9 + $0x60] ss:$16 sps:$4 sm:$0xff]  }
 0x1b2   : > { %v1931_v3 = vpop.f32.mrb[64].mxu0 }
 0x1b3   : > { %v1932_v28 = vadd.f32 %v14781_v5, %v1931_v3  ;;  %v1933_v9 = vpop.f32.mrb[65].mxu0  ;;  %10722 = vmatprep.subr.bf16.mxu1 %v14965_v36  ;;  %11090 = vmatprep.subr.bf16.mxu0 %v14965_v36  ;;  %v10041_v3 = vcombine.high %v10022_v16, %v10022_v16 }
 0x1b4   : > { %v1934_v26 = vpop.f32.mrb[66].mxu0  ;;  %10723 = vmatpush3.bf16.msra.mxu1 %v14902_v49  ;;  %11091 = vmatpush3.bf16.msra.mxu0 %v14902_v49 }
 0x1b5   : > { %v1935_v34 = vadd.f32 %v14781_v5, %v1934_v26  ;;  %v1936_v59 = vpop.f32.mrb[67].mxu0  ;;  %11168 = vmatprep.subr.bf16.mxu0 %v14906_v41  ;;  %v2090_v50 = vmax.f32 %v1932_v28, 0.0 }
 0x1b7   : > { %v2091_v7 = vmax.f32 %v1935_v34, 0.0  ;;  %3347 = vmatmul.mubr.bf16.vlgmr.msra.gmra.mrb[128].mxu0 %v12804_v32  ;;  %2299 = vmatmul.mubr.bf16.vlgmr.msra.gmra.mrb[0].mxu1 %v12830_v38  ;;  %v9889_v32 = vcombine.high %v2170_v56, %v2170_v56 }
 0x1b8   : > { %11169 = vmatpush3.bf16.msra.mxu0 %v14819_v20  ;;  %3354 = vmatprep.mubr.bf16.mxu0 %v12807_v13 }
 0x1b9   : > { %v14987_v18 = vpack.c.bf16 %v2091_v7, %v2090_v50  ;;  %11170 = vmatprep.subr.bf16.mxu0 %v14917_v45  ;;  %2306 = vmatprep.mubr.bf16.mxu1 %v12841_v51  ;;  %v10040_v50 = vcombine.low %v10022_v16, %v10022_v16  ;;  %v9888_v7 = vcombine.low %v2170_v56, %v2170_v56  ;;  %v12824_v16 = vld [vmem:[%s18549_s9 + $0x314] ss:$16 sps:$4 sm:$0xff]  }
 0x1ba   : > { %v1939_v2 = vpop.f32.mrb[68].mxu0 }
 0x1bb   : > { %v1940_v24 = vadd.f32 %v14781_v5, %v1939_v2  ;;  %v1941_v27 = vpop.f32.mrb[69].mxu0 }
 0x1bc   : > { %v1942_v19 = vpop.f32.mrb[70].mxu0  ;;  %11171 = vmatpush3.bf16.msra.mxu0 %v14857_v61  ;;  %v12865_v27 = vld [vmem:[%s18549_s9 + $0xc] ss:$16 sps:$4 sm:$0xff]  }
 0x1bd   : > { %v1943_v43 = vadd.f32 %v14781_v5, %v1942_v19  ;;  %v1944_v15 = vpop.f32.mrb[71].mxu0  ;;  %11172 = vmatprep.subr.bf16.mxu0 %v14925_v17  ;;  %v2092_v39 = vmax.f32 %v1940_v24, 0.0  ;;  %v12820_v24 = vld [vmem:[%s18549_s9 + $0x2d4] ss:$16 sps:$4 sm:$0xff]  }
 0x1bf   : > { %v2093_v63 = vmax.f32 %v1943_v43, 0.0  ;;  %3355 = vmatmul.mubr.bf16.gmra.mrb[132].mxu0 %v12809_v54  ;;  %2307 = vmatmul.mubr.bf16.gmra.mrb[4].mxu1 %v12843_v8 }
 0x1c0   : > { %11173 = vmatpush3.bf16.msra.mxu0 %v14877_v60  ;;  %3362 = vmatprep.mubr.bf16.mxu0 %v12810_v42 }
 0x1c1   : > { %v15007_v4 = vpack.c.bf16 %v2093_v63, %v2092_v39  ;;  %11174 = vmatprep.subr.bf16.mxu0 %v14933_v29  ;;  %2314 = vmatprep.mubr.bf16.mxu1 %v12847_v31  ;;  %v12818_v63 = vld [vmem:[%s18549_s9 + $0x2d0] ss:$16 sps:$4 sm:$0xff]  }
 0x1c2   : > { %v1947_v30 = vpop.f32.mrb[72].mxu0 }
 0x1c3   : > { %v1948_v46 = vadd.f32 %v14781_v5, %v1947_v30  ;;  %v1949_v6 = vpop.f32.mrb[73].mxu0 }
 0x1c4   : > { %v1950_v35 = vpop.f32.mrb[74].mxu0  ;;  %11175 = vmatpush3.bf16.msra.mxu0 %v14883_v53 }
 0x1c5   : > { %v1951_v37 = vadd.f32 %v14781_v5, %v1950_v35  ;;  %v1952_v1 = vpop.f32.mrb[75].mxu0  ;;  %11176 = vmatprep.subr.bf16.mxu0 %v14941_v12  ;;  %v2094_v14 = vmax.f32 %v1948_v46, 0.0  ;;  %v12821_v46 = vld [vmem:[%s18549_s9 + $0x2f4] ss:$16 sps:$4 sm:$0xff]  }
 0x1c7   : > { %v2095_v57 = vmax.f32 %v1951_v37, 0.0  ;;  %3363 = vmatmul.mubr.bf16.gmra.mrb[136].mxu0 %v12812_v40  ;;  %2315 = vmatmul.mubr.bf16.gmra.mrb[8].mxu1 %v12849_v23 }
 0x1c8   : > { %11177 = vmatpush3.bf16.msra.mxu0 %v14890_v58  ;;  %3370 = vmatprep.mubr.bf16.mxu0 %v12813_v44 }
 0x1c9   : > { %v15027_v33 = vpack.c.bf16 %v2095_v57, %v2094_v14  ;;  %11178 = vmatprep.subr.bf16.mxu0 %v14949_v62  ;;  %2322 = vmatprep.mubr.bf16.mxu1 %v12853_v21  ;;  %v12823_v14 = vld [vmem:[%s18549_s9 + $0x2f0] ss:$16 sps:$4 sm:$0xff]  }
 0x1ca   : > { %v1955_v47 = vpop.f32.mrb[76].mxu0 }
 0x1cb   : > { %v1956_v22 = vadd.f32 %v14781_v5, %v1955_v47  ;;  %v1957_v52 = vpop.f32.mrb[77].mxu0 }
 0x1cc   : > { %v1958_v25 = vpop.f32.mrb[78].mxu0  ;;  %11179 = vmatpush3.bf16.msra.mxu0 %v14894_v11 }
 0x1cd   : > { %v1959_v28 = vadd.f32 %v14781_v5, %v1958_v25  ;;  %v1960_v9 = vpop.f32.mrb[79].mxu0  ;;  %11180 = vmatprep.subr.bf16.mxu0 %v14957_v10  ;;  %v2096_v38 = vmax.f32 %v1956_v22, 0.0 }
 0x1cf   : > { %v2097_v26 = vmax.f32 %v1959_v28, 0.0  ;;  %3371 = vmatmul.mubr.bf16.gmra.mrb[140].mxu0 %v12815_v55  ;;  %2323 = vmatmul.mubr.bf16.gmra.mrb[12].mxu1 %v12855_v0  ;;  %v12826_v28 = vld [vmem:[%s18549_s9 + $0x310] ss:$16 sps:$4 sm:$0xff]  }
 0x1d0   : > { %11181 = vmatpush3.bf16.msra.mxu0 %v14898_v48  ;;  %3378 = vmatprep.mubr.bf16.mxu0 %v10041_v3 }
 0x1d1   : > { %v15047_v13 = vpack.c.bf16 %v2097_v26, %v2096_v38  ;;  %11182 = vmatprep.subr.bf16.mxu0 %v14965_v36  ;;  %2330 = vmatprep.mubr.bf16.mxu1 %v9889_v32  ;;  %v12827_v32 = vld [vmem:[%s18549_s9 + $0x334] ss:$16 sps:$4 sm:$0xff]  }
 0x1d2   : > { %v1963_v34 = vpop.f32.mrb[80].mxu0 }
 0x1d3   : > { %v1964_v59 = vadd.f32 %v14781_v5, %v1963_v34  ;;  %v1965_v51 = vpop.f32.mrb[81].mxu0 }
 0x1d4   : > { %v1966_v2 = vpop.f32.mrb[82].mxu0  ;;  %11183 = vmatpush3.bf16.msra.mxu0 %v14902_v49 }
 0x1d5   : > { %v1967_v54 = vadd.f32 %v14781_v5, %v1966_v2  ;;  %v1968_v8 = vpop.f32.mrb[83].mxu0  ;;  %11260 = vmatprep.subr.bf16.mxu0 %v14906_v41  ;;  %v2098_v19 = vmax.f32 %v1964_v59, 0.0 }
 0x1d7   : > { %v2099_v42 = vmax.f32 %v1967_v54, 0.0  ;;  %3379 = vmatmul.mubr.bf16.gmra.mrb[144].mxu0 %v10040_v50  ;;  %2331 = vmatmul.mubr.bf16.gmra.mrb[16].mxu1 %v9888_v7  ;;  %v10060_v50 = vld [vmem:[%s18549_s9 + $0x350] sm:$0xff] }
 0x1d8   : > { %3608 = vmatprep.mubr.bf16.mxu0 %v12820_v24  ;;  %2370 = vmatprep.mubr.bf16.mxu1 %v12865_v27  ;;  %v12829_v27 = vld [vmem:[%s18549_s9 + $0x330] ss:$16 sps:$4 sm:$0xff]   ;;  %v10079_v8 = vcombine.high %v10060_v50, %v10060_v50 }
 0x1d9   : > { %v15060_v43 = vpack.c.bf16 %v2099_v42, %v2098_v19 }
 0x1da   : > { %v1971_v15 = vpop.f32.mrb[84].mxu0 }
 0x1db   : > { %v1972_v31 = vadd.f32 %v14781_v5, %v1971_v15  ;;  %v1973_v39 = vpop.f32.mrb[85].mxu0 }
 0x1dc   : > { %v1974_v30 = vpop.f32.mrb[86].mxu0 }
 0x1dd   : > { %v1975_v6 = vadd.f32 %v14781_v5, %v1974_v30  ;;  %v1976_v40 = vpop.f32.mrb[87].mxu0  ;;  %v2100_v23 = vmax.f32 %v1972_v31, 0.0 }
 0x1df   : > { %v2101_v35 = vmax.f32 %v1975_v6, 0.0  ;;  %3609 = vmatmul.mubr.bf16.vlgmr.msra.gmra.mrb[148].mxu0 %v12818_v63  ;;  %v10078_v6 = vcombine.low %v10060_v50, %v10060_v50  ;;  %v12844_v50 = vld [vmem:[%s18549_s9 + $0x3a4] ss:$16 sps:$4 sm:$0xff]  }
 0x1e0   : > { %11261 = vmatpush3.bf16.msra.mxu0 %v14819_v20  ;;  %3616 = vmatprep.mubr.bf16.mxu0 %v12821_v46 }
 0x1e1   : > { %v15071_v44 = vpack.c.bf16 %v2101_v35, %v2100_v23  ;;  %11262 = vmatprep.subr.bf16.mxu0 %v14917_v45  ;;  %v12837_v23 = vld [vmem:[%s18549_s9 + $0x364] ss:$16 sps:$4 sm:$0xff]  }
 0x1e2   : > { %v1979_v37 = vpop.f32.mrb[88].mxu0 }
 0x1e3   : > { %v1980_v1 = vadd.f32 %v14781_v5, %v1979_v37  ;;  %v1981_v21 = vpop.f32.mrb[89].mxu0 }
 0x1e4   : > { %11263 = vmatpush3.bf16.msra.mxu0 %v14857_v61  ;;  %v1982_v57 = vpop.f32.mrb[90].mxu0 }
 0x1e5   : > { %v1983_v47 = vadd.f32 %v14781_v5, %v1982_v57  ;;  %11264 = vmatprep.subr.bf16.mxu0 %v14925_v17  ;;  %v1984_v56 = vpop.f32.mrb[91].mxu0  ;;  %v2102_v22 = vmax.f32 %v1980_v1, 0.0 }
 0x1e6   : > { %v12835_v56 = vld [vmem:[%s18549_s9 + $0x360] ss:$16 sps:$4 sm:$0xff]  }
 0x1e7   : > { %v2103_v52 = vmax.f32 %v1983_v47, 0.0  ;;  %3617 = vmatmul.mubr.bf16.gmra.mrb[152].mxu0 %v12823_v14 }
 0x1e8   : > { %11265 = vmatpush3.bf16.msra.mxu0 %v14877_v60  ;;  %3624 = vmatprep.mubr.bf16.mxu0 %v12824_v16 }
 0x1e9   : > { %v15085_v55 = vpack.c.bf16 %v2103_v52, %v2102_v22  ;;  %11266 = vmatprep.subr.bf16.mxu0 %v14933_v29  ;;  %v12838_v52 = vld [vmem:[%s18549_s9 + $0x384] ss:$16 sps:$4 sm:$0xff]  }
 0x1ea   : > { %v1987_v0 = vpop.f32.mrb[92].mxu0 }
 0x1eb   : > { %v1988_v25 = vadd.f32 %v14781_v5, %v1987_v0  ;;  %v1989_v3 = vpop.f32.mrb[93].mxu0 }
 0x1ec   : > { %11267 = vmatpush3.bf16.msra.mxu0 %v14883_v53  ;;  %v1990_v9 = vpop.f32.mrb[94].mxu0 }
 0x1ed   : > { %v1991_v38 = vadd.f32 %v14781_v5, %v1990_v9  ;;  %11268 = vmatprep.subr.bf16.mxu0 %v14941_v12  ;;  %v1992_v26 = vpop.f32.mrb[95].mxu0  ;;  %v2104_v34 = vmax.f32 %v1988_v25, 0.0 }
 0x1ef   : > { %v2105_v59 = vmax.f32 %v1991_v38, 0.0  ;;  %3625 = vmatmul.mubr.bf16.gmra.mrb[156].mxu0 %v12826_v28 }
 0x1f0   : > { %11269 = vmatpush3.bf16.msra.mxu0 %v14890_v58  ;;  %3632 = vmatprep.mubr.bf16.mxu0 %v12827_v32 }
 0x1f1   : > { %v15099_v51 = vpack.c.bf16 %v2105_v59, %v2104_v34  ;;  %11270 = vmatprep.subr.bf16.mxu0 %v14949_v62  ;;  %v12840_v34 = vld [vmem:[%s18549_s9 + $0x380] ss:$16 sps:$4 sm:$0xff]  }
 0x1f2   : > { %v1995_v7 = vpop.f32.mrb[96].mxu0 }
 0x1f3   : > { %v1996_v2 = vadd.f32 %v14781_v5, %v1995_v7  ;;  %v1997_v24 = vpop.f32.mrb[97].mxu0 }
 0x1f4   : > { %11271 = vmatpush3.bf16.msra.mxu0 %v14894_v11  ;;  %v1998_v54 = vpop.f32.mrb[98].mxu0 }
 0x1f5   : > { %v1999_v19 = vadd.f32 %v14781_v5, %v1998_v54  ;;  %11272 = vmatprep.subr.bf16.mxu0 %v14957_v10  ;;  %v2000_v42 = vpop.f32.mrb[99].mxu0  ;;  %v2106_v15 = vmax.f32 %v1996_v2, 0.0 }
 0x1f7   : > { %v2107_v31 = vmax.f32 %v1999_v19, 0.0  ;;  %3633 = vmatmul.mubr.bf16.gmra.mrb[160].mxu0 %v12829_v27 }
 0x1f8   : > { %11273 = vmatpush3.bf16.msra.mxu0 %v14898_v48  ;;  %3640 = vmatprep.mubr.bf16.mxu0 %v10079_v8 }
 0x1f9   : > { %v15113_v39 = vpack.c.bf16 %v2107_v31, %v2106_v15  ;;  %11274 = vmatprep.subr.bf16.mxu0 %v14965_v36  ;;  %v12846_v15 = vld [vmem:[%s18549_s9 + $0x3a0] ss:$16 sps:$4 sm:$0xff]  }
 0x1fa   : > { %v2003_v63 = vpop.f32.mrb[100].mxu0 }
 0x1fb   : > { %v2004_v30 = vadd.f32 %v14781_v5, %v2003_v63  ;;  %v2005_v46 = vpop.f32.mrb[101].mxu0  ;;  %10754 = vmatprep.subr.bf16.mxu1 %v15113_v39  ;;  %v12850_v63 = vld [vmem:[%s18549_s9 + $0x3c4] ss:$16 sps:$4 sm:$0xff]  }
 0x1fc   : > { %11275 = vmatpush3.bf16.msra.mxu0 %v14902_v49  ;;  %v2006_v40 = vpop.f32.mrb[102].mxu0  ;;  %10755 = vmatpush3.bf16.msra.mxu1 %v14987_v18 }
 0x1fd   : > { %v2007_v35 = vadd.f32 %v14781_v5, %v2006_v40  ;;  %11352 = vmatprep.subr.bf16.mxu0 %v14906_v41  ;;  %v2008_v37 = vpop.f32.mrb[103].mxu0  ;;  %v2108_v1 = vmax.f32 %v2004_v30, 0.0 }
 0x1ff   : > { %v2109_v21 = vmax.f32 %v2007_v35, 0.0  ;;  %3641 = vmatmul.mubr.bf16.gmra.mrb[164].mxu0 %v10078_v6  ;;  %v10098_v35 = vld [vmem:[%s18549_s9 + $0x3e0] sm:$0xff] }
 0x200   : > { %3870 = vmatprep.mubr.bf16.mxu0 %v12837_v23 }
 0x201   : > { %v15125_v14 = vpack.c.bf16 %v2109_v21, %v2108_v1 }
 0x202   : > { %v2011_v57 = vpop.f32.mrb[104].mxu0 }
 0x203   : > { %v2012_v16 = vadd.f32 %v14781_v5, %v2011_v57  ;;  %v2013_v47 = vpop.f32.mrb[105].mxu0  ;;  %10756 = vmatprep.subr.bf16.mxu1 %v15125_v14  ;;  %v12852_v57 = vld [vmem:[%s18549_s9 + $0x3c0] ss:$16 sps:$4 sm:$0xff]  }
 0x204   : > { %v2014_v22 = vpop.f32.mrb[106].mxu0  ;;  %10757 = vmatpush3.bf16.msra.mxu1 %v15007_v4  ;;  %v10117_v47 = vcombine.high %v10098_v35, %v10098_v35 }
 0x205   : > { %v2015_v0 = vadd.f32 %v14781_v5, %v2014_v22  ;;  %v2016_v25 = vpop.f32.mrb[107].mxu0  ;;  %v2110_v3 = vmax.f32 %v2012_v16, 0.0 }
 0x207   : > { %v2111_v28 = vmax.f32 %v2015_v0, 0.0  ;;  %3871 = vmatmul.mubr.bf16.vlgmr.msra.gmra.mrb[168].mxu0 %v12835_v56 }
 0x208   : > { %11353 = vmatpush3.bf16.msra.mxu0 %v14819_v20  ;;  %3878 = vmatprep.mubr.bf16.mxu0 %v12838_v52 }
 0x209   : > { %v15138_v9 = vpack.c.bf16 %v2111_v28, %v2110_v3  ;;  %11354 = vmatprep.subr.bf16.mxu0 %v14917_v45  ;;  %v13548_v28 = vld [vmem:[%s18548_s1] ss:$0 sm:$0xff]  ;;  %s18784_s1 = sld [smem:[#allocation92_spill]] }
 0x20a   : > { %v2019_v32 = vpop.f32.mrb[108].mxu0 }
 0x20b   : > { %v2020_v38 = vadd.f32 %v14781_v5, %v2019_v32  ;;  %v2021_v26 = vpop.f32.mrb[109].mxu0  ;;  %10758 = vmatprep.subr.bf16.mxu1 %v15138_v9 }
 0x20c   : > { %11355 = vmatpush3.bf16.msra.mxu0 %v14857_v61  ;;  %v2022_v59 = vpop.f32.mrb[110].mxu0  ;;  %10759 = vmatpush3.bf16.msra.mxu1 %v15027_v33 }
 0x20d   : > { %v2023_v7 = vadd.f32 %v14781_v5, %v2022_v59  ;;  %11356 = vmatprep.subr.bf16.mxu0 %v14925_v17  ;;  %v2024_v2 = vpop.f32.mrb[111].mxu0  ;;  %v2112_v24 = vmax.f32 %v2020_v38, 0.0  ;;  %v10116_v38 = vcombine.low %v10098_v35, %v10098_v35  ;;  %v12863_v35 = vld [vmem:[%s18549_s9 + $0x8] ss:$16 sps:$4 sm:$0xff]  }
 0x20f   : > { %v2113_v27 = vmax.f32 %v2023_v7, 0.0  ;;  %3879 = vmatmul.mubr.bf16.gmra.mrb[172].mxu0 %v12840_v34  ;;  %v12862_v34 = vld [vmem:[%s18549_s9 + $0x3f4] ss:$16 sps:$4 sm:$0xff]  }
 0x210   : > { %11357 = vmatpush3.bf16.msra.mxu0 %v14877_v60  ;;  %3886 = vmatprep.mubr.bf16.mxu0 %v12844_v50 }
 0x211   : > { %v15154_v54 = vpack.c.bf16 %v2113_v27, %v2112_v24  ;;  %11358 = vmatprep.subr.bf16.mxu0 %v14933_v29 }
 0x212   : > { %v2027_v8 = vpop.f32.mrb[112].mxu0 }
 0x213   : > { %v2028_v19 = vadd.f32 %v14781_v5, %v2027_v8  ;;  %v2029_v42 = vpop.f32.mrb[113].mxu0  ;;  %10760 = vmatprep.subr.bf16.mxu1 %v15154_v54 }
 0x214   : > { %11359 = vmatpush3.bf16.msra.mxu0 %v14883_v53  ;;  %v2030_v31 = vpop.f32.mrb[114].mxu0  ;;  %10761 = vmatpush3.bf16.msra.mxu1 %v15047_v13  ;;  %v12860_v42 = vld [vmem:[%s18549_s9 + $0x3f0] ss:$16 sps:$4 sm:$0xff]  }
 0x215   : > { %v2031_v30 = vadd.f32 %v14781_v5, %v2030_v31  ;;  %11360 = vmatprep.subr.bf16.mxu0 %v14941_v12  ;;  %v2032_v46 = vpop.f32.mrb[115].mxu0  ;;  %v2114_v6 = vmax.f32 %v2028_v19, 0.0  ;;  %v12866_v31 = vld [vmem:[%s18549_s9 + $0x414] ss:$16 sps:$4 sm:$0xff]  }
 0x217   : > { %v2115_v40 = vmax.f32 %v2031_v30, 0.0  ;;  %3887 = vmatmul.mubr.bf16.gmra.mrb[176].mxu0 %v12846_v15 }
 0x218   : > { %11361 = vmatpush3.bf16.msra.mxu0 %v14890_v58  ;;  %3894 = vmatprep.mubr.bf16.mxu0 %v12850_v63 }
 0x219   : > { %v15170_v23 = vpack.c.bf16 %v2115_v40, %v2114_v6  ;;  %11362 = vmatprep.subr.bf16.mxu0 %v14949_v62 }
 0x21a   : > { %v2035_v37 = vpop.f32.mrb[116].mxu0 }
 0x21b   : > { %v2036_v1 = vadd.f32 %v14781_v5, %v2035_v37  ;;  %v2037_v21 = vpop.f32.mrb[117].mxu0  ;;  %10762 = vmatprep.subr.bf16.mxu1 %v15170_v23  ;;  %v12868_v37 = vld [vmem:[%s18549_s9 + $0x410] ss:$16 sps:$4 sm:$0xff]  }
 0x21c   : > { %11363 = vmatpush3.bf16.msra.mxu0 %v14894_v11  ;;  %v2038_v16 = vpop.f32.mrb[118].mxu0  ;;  %10763 = vmatpush3.bf16.msra.mxu1 %v15060_v43  ;;  %v12871_v21 = vld [vmem:[%s18549_s9 + $0x434] ss:$16 sps:$4 sm:$0xff]  }
 0x21d   : > { %v2039_v56 = vadd.f32 %v14781_v5, %v2038_v16  ;;  %11364 = vmatprep.subr.bf16.mxu0 %v14957_v10  ;;  %v2040_v22 = vpop.f32.mrb[119].mxu0  ;;  %v2116_v52 = vmax.f32 %v2036_v1, 0.0  ;;  %v12869_v1 = vld [vmem:[%s18549_s9 + $0x2c] ss:$16 sps:$4 sm:$0xff]   ;;  %v12874_v16 = vld [vmem:[%s18549_s9 + $0x430] ss:$16 sps:$4 sm:$0xff]  }
 0x21e   : > { %v12879_v22 = vld [vmem:[%s18549_s9 + $0x48] ss:$16 sps:$4 sm:$0xff]  }
 0x21f   : > { %v2117_v0 = vmax.f32 %v2039_v56, 0.0  ;;  %3895 = vmatmul.mubr.bf16.gmra.mrb[180].mxu0 %v12852_v57  ;;  %v12873_v57 = vld [vmem:[%s18549_s9 + $0x28] ss:$16 sps:$4 sm:$0xff]   ;;  %v12877_v56 = vld [vmem:[%s18549_s9 + $0x454] ss:$16 sps:$4 sm:$0xff]  }
 0x220   : > { %11365 = vmatpush3.bf16.msra.mxu0 %v14898_v48  ;;  %3902 = vmatprep.mubr.bf16.mxu0 %v10117_v47  ;;  %v12875_v47 = vld [vmem:[%s18549_s9 + $0x4c] ss:$16 sps:$4 sm:$0xff]  }
 0x221   : > { %v15186_v25 = vpack.c.bf16 %v2117_v0, %v2116_v52  ;;  %11366 = vmatprep.subr.bf16.mxu0 %v14965_v36  ;;  %v12880_v52 = vld [vmem:[%s18549_s9 + $0x450] ss:$16 sps:$4 sm:$0xff]  }
 0x222   : > { %v2043_v3 = vpop.f32.mrb[120].mxu0  ;;  %v10136_v0 = vld [vmem:[%s18549_s9 + $0x470] sm:$0xff] }
 0x223   : > { %v2044_v32 = vadd.f32 %v13548_v28, %v2043_v3  ;;  %v2045_v5 = vpop.f32.mrb[121].mxu0  ;;  %10764 = vmatprep.subr.bf16.mxu1 %v15186_v25  ;;  %v12881_v3 = vld [vmem:[%s18549_s9 + $0x6c] ss:$16 sps:$4 sm:$0xff]  }
 0x224   : > { %11367 = vmatpush3.bf16.msra.mxu0 %v14902_v49  ;;  %v2046_v26 = vpop.f32.mrb[122].mxu0  ;;  %10765 = vmatpush3.bf16.msra.mxu1 %v15071_v44  ;;  %v12884_v5 = vld [vmem:[%s18549_s9 + $0x68] ss:$16 sps:$4 sm:$0xff]  }
 0x225   : > { %v2047_v59 = vadd.f32 %v13548_v28, %v2046_v26  ;;  %11444 = vmatprep.subr.bf16.mxu0 %v14906_v41  ;;  %v2048_v50 = vpop.f32.mrb[123].mxu0  ;;  %v2118_v7 = vmax.f32 %v2044_v32, 0.0  ;;  %v2171_v32 = vld [vmem:[%s18549_s9 + $0x88] sm:$0xff] }
 0x226   : > { %v9891_v26 = vcombine.high %v2171_v32, %v2171_v32  ;;  %v9890_v50 = vcombine.low %v2171_v32, %v2171_v32  ;;  %v12924_v32 = vld [vmem:[%s18549_s9 + $0x530] ss:$16 sps:$4 sm:$0xff]  }
 0x227   : > { %v2119_v2 = vmax.f32 %v2047_v59, 0.0  ;;  %3903 = vmatmul.mubr.bf16.gmra.mrb[184].mxu0 %v10116_v38  ;;  %v10154_v38 = vcombine.low %v10136_v0, %v10136_v0  ;;  %v12887_v59 = vld [vmem:[%s18549_s9 + $0x480] ss:$16 sps:$4 sm:$0xff]  }
 0x228   : > { %4132 = vmatprep.mubr.bf16.mxu0 %v12862_v34  ;;  %v12889_v34 = vld [vmem:[%s18549_s9 + $0x484] ss:$16 sps:$4 sm:$0xff]  }
 0x229   : > { %v15199_v24 = vpack.c.bf16 %v2119_v2, %v2118_v7  ;;  %v12893_v7 = vld [vmem:[%s18549_s9 + $0x94] ss:$16 sps:$4 sm:$0xff]  }
 0x22a   : > { %v2051_v27 = vpop.f32.mrb[124].mxu0  ;;  %v12894_v2 = vld [vmem:[%s18549_s9 + $0x4a4] ss:$16 sps:$4 sm:$0xff]  }
 0x22b   : > { %v2052_v8 = vadd.f32 %v13548_v28, %v2051_v27  ;;  %v2053_v19 = vpop.f32.mrb[125].mxu0  ;;  %10766 = vmatprep.subr.bf16.mxu1 %v15199_v24  ;;  %v12891_v27 = vld [vmem:[%s18549_s9 + $0x90] ss:$16 sps:$4 sm:$0xff]  }
 0x22c   : > { %v2054_v15 = vpop.f32.mrb[126].mxu0  ;;  %10767 = vmatpush3.bf16.msra.mxu1 %v15085_v55  ;;  %v12897_v19 = vld [vmem:[%s18549_s9 + $0xb4] ss:$16 sps:$4 sm:$0xff]  }
 0x22d   : > { %v2055_v63 = vadd.f32 %v13548_v28, %v2054_v15  ;;  %v2056_v30 = vpop.f32.mrb[127].mxu0  ;;  %v2120_v46 = vmax.f32 %v2052_v8, 0.0  ;;  %v10155_v28 = vcombine.high %v10136_v0, %v10136_v0  ;;  %v12896_v8 = vld [vmem:[%s18549_s9 + $0x4a0] ss:$16 sps:$4 sm:$0xff]   ;;  %v12921_v0 = vld [vmem:[%s18549_s9 + $0x9c] ss:$16 sps:$4 sm:$0xff]  }
 0x22e   : > { %v12901_v15 = vld [vmem:[%s18549_s9 + $0xb0] ss:$16 sps:$4 sm:$0xff]   ;;  %v12905_v30 = vld [vmem:[%s18549_s9 + $0x4e4] ss:$16 sps:$4 sm:$0xff]  }
 0x22f   : > { %v2121_v6 = vmax.f32 %v2055_v63, 0.0  ;;  %4133 = vmatmul.mubr.bf16.vlgmr.msra.gmra.mrb[188].mxu0 %v12860_v42  ;;  %v12899_v42 = vld [vmem:[%s18549_s9 + $0x4c4] ss:$16 sps:$4 sm:$0xff]  }
 0x230   : > { %11445 = vmatpush3.bf16.msra.mxu0 %v14819_v20  ;;  %4140 = vmatprep.mubr.bf16.mxu0 %v12866_v31  ;;  %v12902_v31 = vld [vmem:[%s18549_s9 + $0x4c0] ss:$16 sps:$4 sm:$0xff]   ;;  %v12903_v63 = vld [vmem:[%s18549_s9 + $0xd4] ss:$16 sps:$4 sm:$0xff]  }
 0x231   : > { %v15210_v40 = vpack.c.bf16 %v2121_v6, %v2120_v46  ;;  %11446 = vmatprep.subr.bf16.mxu0 %v14917_v45  ;;  %v12907_v46 = vld [vmem:[%s18549_s9 + $0xd0] ss:$16 sps:$4 sm:$0xff]  }
 0x232   : > { %v12908_v6 = vld [vmem:[%s18549_s9 + $0x4e0] ss:$16 sps:$4 sm:$0xff]  }
 0x233   : > { %10768 = vmatprep.subr.bf16.mxu1 %v15210_v40 }
 0x234   : > { %11447 = vmatpush3.bf16.msra.mxu0 %v14857_v61  ;;  %10769 = vmatpush3.bf16.msra.mxu1 %v15099_v51 }
 0x235   : > { %11448 = vmatprep.subr.bf16.mxu0 %v14925_v17  ;;  %10800 = vmatprep.subr.bf16.mxu1 %v14906_v41 }
 0x237   : > { %2371 = vmatmul.mubr.bf16.vlgmr.msra.gmra.mrb[20].mxu1 %v12863_v35  ;;  %4141 = vmatmul.mubr.bf16.gmra.mrb[192].mxu0 %v12868_v37  ;;  %v10174_v35 = vld [vmem:[%s18549_s9 + $0x500] sm:$0xff] }
 0x238   : > { %11449 = vmatpush3.bf16.msra.mxu0 %v14877_v60  ;;  %10801 = vmatpush3.bf16.msra.mxu1 %v14819_v20  ;;  %v12909_v37 = vld [vmem:[%s18549_s9 + $0xf4] ss:$16 sps:$4 sm:$0xff]  }
 0x239   : > { %11450 = vmatprep.subr.bf16.mxu0 %v14933_v29  ;;  %10802 = vmatprep.subr.bf16.mxu1 %v14917_v45 }
 0x23a   : > { %2378 = vmatprep.mubr.bf16.mxu1 %v12869_v1  ;;  %4148 = vmatprep.mubr.bf16.mxu0 %v12871_v21  ;;  %v10193_v1 = vcombine.high %v10174_v35, %v10174_v35  ;;  %v9908_v21 = vld [vmem:[%s18549_s9 + $0x110] sm:$0xff] }
 0x23c   : > { %11451 = vmatpush3.bf16.msra.mxu0 %v14883_v53  ;;  %10803 = vmatpush3.bf16.msra.mxu1 %v14857_v61 }
 0x23d   : > { %11452 = vmatprep.subr.bf16.mxu0 %v14941_v12  ;;  %10804 = vmatprep.subr.bf16.mxu1 %v14925_v17 }
 0x23f   : > { %2379 = vmatmul.mubr.bf16.gmra.mrb[24].mxu1 %v12873_v57  ;;  %4149 = vmatmul.mubr.bf16.gmra.mrb[196].mxu0 %v12874_v16  ;;  %v12912_v57 = vld [vmem:[%s18549_s9 + $0xf0] ss:$16 sps:$4 sm:$0xff]   ;;  %v10192_v16 = vcombine.low %v10174_v35, %v10174_v35 }
 0x240   : > { %11453 = vmatpush3.bf16.msra.mxu0 %v14890_v58  ;;  %10805 = vmatpush3.bf16.msra.mxu1 %v14877_v60 }
 0x241   : > { %11454 = vmatprep.subr.bf16.mxu0 %v14949_v62  ;;  %10806 = vmatprep.subr.bf16.mxu1 %v14933_v29 }
 0x242   : > { %2386 = vmatprep.mubr.bf16.mxu1 %v12875_v47  ;;  %4156 = vmatprep.mubr.bf16.mxu0 %v12877_v56  ;;  %v9927_v47 = vcombine.high %v9908_v21, %v9908_v21  ;;  %v12917_v56 = vld [vmem:[%s18549_s9 + $0x514] ss:$16 sps:$4 sm:$0xff]  }
 0x244   : > { %11455 = vmatpush3.bf16.msra.mxu0 %v14894_v11  ;;  %10807 = vmatpush3.bf16.msra.mxu1 %v14883_v53 }
 0x245   : > { %11456 = vmatprep.subr.bf16.mxu0 %v14957_v10  ;;  %10808 = vmatprep.subr.bf16.mxu1 %v14941_v12 }
 0x247   : > { %2387 = vmatmul.mubr.bf16.gmra.mrb[28].mxu1 %v12879_v22  ;;  %4157 = vmatmul.mubr.bf16.gmra.mrb[200].mxu0 %v12880_v52  ;;  %v12915_v22 = vld [vmem:[%s18549_s9 + $0x510] ss:$16 sps:$4 sm:$0xff]   ;;  %v9926_v52 = vcombine.low %v9908_v21, %v9908_v21 }
 0x248   : > { %11457 = vmatpush3.bf16.msra.mxu0 %v14898_v48  ;;  %10809 = vmatpush3.bf16.msra.mxu1 %v14890_v58 }
 0x249   : > { %11458 = vmatprep.subr.bf16.mxu0 %v14965_v36  ;;  %10810 = vmatprep.subr.bf16.mxu1 %v14949_v62 }
 0x24a   : > { %2394 = vmatprep.mubr.bf16.mxu1 %v12881_v3  ;;  %4164 = vmatprep.mubr.bf16.mxu0 %v10155_v28  ;;  %v12922_v3 = vld [vmem:[%s18549_s9 + $0x534] ss:$16 sps:$4 sm:$0xff]   ;;  %v12919_v28 = vld [vmem:[%s18549_s9 + $0x98] ss:$16 sps:$4 sm:$0xff]  }
 0x24c   : > { %11459 = vmatpush3.bf16.msra.mxu0 %v14902_v49  ;;  %10811 = vmatpush3.bf16.msra.mxu1 %v14894_v11 }
 0x24d   : > { %11536 = vmatprep.subr.bf16.mxu0 %v14906_v41  ;;  %10812 = vmatprep.subr.bf16.mxu1 %v14957_v10 }
 0x24f   : > { %2395 = vmatmul.mubr.bf16.gmra.mrb[32].mxu1 %v12884_v5  ;;  %4165 = vmatmul.mubr.bf16.gmra.mrb[204].mxu0 %v10154_v38  ;;  %v12925_v5 = vld [vmem:[%s18549_s9 + $0xbc] ss:$16 sps:$4 sm:$0xff]   ;;  %v12927_v38 = vld [vmem:[%s18549_s9 + $0x554] ss:$16 sps:$4 sm:$0xff]  }
 0x250   : > { %10813 = vmatpush3.bf16.msra.mxu1 %v14898_v48  ;;  %2402 = vmatprep.mubr.bf16.mxu1 %v9891_v26 }
 0x251   : > { %10814 = vmatprep.subr.bf16.mxu1 %v14965_v36  ;;  %4394 = vmatprep.mubr.bf16.mxu0 %v12889_v34  ;;  %v12929_v34 = vld [vmem:[%s18549_s9 + $0xb8] ss:$16 sps:$4 sm:$0xff]  }
 0x254   : > { %10815 = vmatpush3.bf16.msra.mxu1 %v14902_v49 }
 0x255   : > { %10846 = vmatprep.subr.bf16.mxu1 %v15113_v39 }
 0x257   : > { %2403 = vmatmul.mubr.bf16.gmra.mrb[36].mxu1 %v9890_v50  ;;  %4395 = vmatmul.mubr.bf16.vlgmr.msra.gmra.mrb[208].mxu0 %v12887_v59  ;;  %v12930_v59 = vld [vmem:[%s18549_s9 + $0x550] ss:$16 sps:$4 sm:$0xff]  }
 0x258   : > { %11537 = vmatpush3.bf16.msra.mxu0 %v14819_v20  ;;  %2560 = vmatprep.mubr.bf16.mxu1 %v12893_v7 }
 0x259   : > { %11538 = vmatprep.subr.bf16.mxu0 %v14917_v45  ;;  %4402 = vmatprep.mubr.bf16.mxu0 %v12894_v2 }
 0x25c   : > { %11539 = vmatpush3.bf16.msra.mxu0 %v14857_v61 }
 0x25d   : > { %11540 = vmatprep.subr.bf16.mxu0 %v14925_v17 }
 0x25f   : > { %2561 = vmatmul.mubr.bf16.vlgmr.msra.gmra.mrb[40].mxu1 %v12891_v27  ;;  %4403 = vmatmul.mubr.bf16.gmra.mrb[212].mxu0 %v12896_v8  ;;  %v12931_v8 = vld [vmem:[%s18549_s9 + $0xdc] ss:$16 sps:$4 sm:$0xff]  }
 0x260   : > { %10847 = vmatpush3.bf16.msra.mxu1 %v14987_v18  ;;  %11541 = vmatpush3.bf16.msra.mxu0 %v14877_v60 }
 0x261   : > { %10848 = vmatprep.subr.bf16.mxu1 %v15125_v14  ;;  %11542 = vmatprep.subr.bf16.mxu0 %v14933_v29 }
 0x262   : > { %2568 = vmatprep.mubr.bf16.mxu1 %v12897_v19  ;;  %4410 = vmatprep.mubr.bf16.mxu0 %v12899_v42  ;;  %v12933_v19 = vld [vmem:[%s18549_s9 + $0x574] ss:$16 sps:$4 sm:$0xff]  }
 0x264   : > { %10849 = vmatpush3.bf16.msra.mxu1 %v15007_v4  ;;  %11543 = vmatpush3.bf16.msra.mxu0 %v14883_v53 }
 0x265   : > { %10850 = vmatprep.subr.bf16.mxu1 %v15138_v9  ;;  %11544 = vmatprep.subr.bf16.mxu0 %v14941_v12 }
 0x267   : > { %2569 = vmatmul.mubr.bf16.gmra.mrb[44].mxu1 %v12901_v15  ;;  %4411 = vmatmul.mubr.bf16.gmra.mrb[216].mxu0 %v12902_v31  ;;  %v12935_v31 = vld [vmem:[%s18549_s9 + $0xd8] ss:$16 sps:$4 sm:$0xff]  }
 0x268   : > { %10851 = vmatpush3.bf16.msra.mxu1 %v15027_v33  ;;  %11545 = vmatpush3.bf16.msra.mxu0 %v14890_v58 }
 0x269   : > { %10852 = vmatprep.subr.bf16.mxu1 %v15154_v54  ;;  %11546 = vmatprep.subr.bf16.mxu0 %v14949_v62 }
 0x26a   : > { %2576 = vmatprep.mubr.bf16.mxu1 %v12903_v63  ;;  %4418 = vmatprep.mubr.bf16.mxu0 %v12905_v30  ;;  %v12936_v63 = vld [vmem:[%s18549_s9 + $0x570] ss:$16 sps:$4 sm:$0xff]  }
 0x26b   : > { %v10212_v30 = vld [vmem:[%s18549_s9 + $0x590] sm:$0xff] }
 0x26c   : > { %10853 = vmatpush3.bf16.msra.mxu1 %v15047_v13  ;;  %11547 = vmatpush3.bf16.msra.mxu0 %v14894_v11  ;;  %v10231_v21 = vcombine.high %v10212_v30, %v10212_v30 }
 0x26d   : > { %10854 = vmatprep.subr.bf16.mxu1 %v15170_v23  ;;  %11548 = vmatprep.subr.bf16.mxu0 %v14957_v10 }
 0x26f   : > { %2577 = vmatmul.mubr.bf16.gmra.mrb[48].mxu1 %v12907_v46  ;;  %4419 = vmatmul.mubr.bf16.gmra.mrb[220].mxu0 %v12908_v6 }
 0x270   : > { %10855 = vmatpush3.bf16.msra.mxu1 %v15060_v43  ;;  %11549 = vmatpush3.bf16.msra.mxu0 %v14898_v48 }
 0x271   : > { %10856 = vmatprep.subr.bf16.mxu1 %v15186_v25  ;;  %11550 = vmatprep.subr.bf16.mxu0 %v14965_v36 }
 0x272   : > { %2584 = vmatprep.mubr.bf16.mxu1 %v12909_v37  ;;  %4426 = vmatprep.mubr.bf16.mxu0 %v10193_v1  ;;  %v12937_v1 = vld [vmem:[%s18549_s9 + $0xfc] ss:$16 sps:$4 sm:$0xff]  }
 0x274   : > { %10857 = vmatpush3.bf16.msra.mxu1 %v15071_v44  ;;  %11551 = vmatpush3.bf16.msra.mxu0 %v14902_v49 }
 0x275   : > { %10858 = vmatprep.subr.bf16.mxu1 %v15199_v24  ;;  %11628 = vmatprep.subr.bf16.mxu0 %v14906_v41 }
 0x277   : > { %2585 = vmatmul.mubr.bf16.gmra.mrb[52].mxu1 %v12912_v57  ;;  %4427 = vmatmul.mubr.bf16.gmra.mrb[224].mxu0 %v10192_v16  ;;  %v9909_v16 = vld [vmem:[%s18549_s9 + $0x118] sm:$0xff] }
 0x278   : > { %10859 = vmatpush3.bf16.msra.mxu1 %v15085_v55  ;;  %2592 = vmatprep.mubr.bf16.mxu1 %v9927_v47 }
 0x279   : > { %10860 = vmatprep.subr.bf16.mxu1 %v15210_v40  ;;  %4656 = vmatprep.mubr.bf16.mxu0 %v12917_v56  ;;  %v12940_v56 = vld [vmem:[%s18549_s9 + $0xf8] ss:$16 sps:$4 sm:$0xff]  }
 0x27c   : > { %10861 = vmatpush3.bf16.msra.mxu1 %v15099_v51 }
 0x27d   : > { %10892 = vmatprep.subr.bf16.mxu1 %v14906_v41 }
 0x27f   : > { %2593 = vmatmul.mubr.bf16.gmra.mrb[56].mxu1 %v9926_v52  ;;  %4657 = vmatmul.mubr.bf16.vlgmr.msra.gmra.mrb[228].mxu0 %v12915_v22  ;;  %v10230_v22 = vcombine.low %v10212_v30, %v10212_v30  ;;  %v12947_v30 = vld [vmem:[%s18549_s9 + $0x120] ss:$16 sps:$4 sm:$0xff]  }
 0x280   : > { %11629 = vmatpush3.bf16.msra.mxu0 %v14819_v20  ;;  %2632 = vmatprep.mubr.bf16.mxu1 %v12921_v0  ;;  %v9929_v0 = vcombine.high %v9909_v16, %v9909_v16 }
 0x281   : > { %11630 = vmatprep.subr.bf16.mxu0 %v14917_v45  ;;  %4664 = vmatprep.mubr.bf16.mxu0 %v12922_v3 }
 0x284   : > { %11631 = vmatpush3.bf16.msra.mxu0 %v14857_v61 }
 0x285   : > { %11632 = vmatprep.subr.bf16.mxu0 %v14925_v17 }
 0x287   : > { %2633 = vmatmul.mubr.bf16.vlgmr.msra.gmra.mrb[60].mxu1 %v12919_v28  ;;  %4665 = vmatmul.mubr.bf16.gmra.mrb[232].mxu0 %v12924_v32  ;;  %v12945_v32 = vld [vmem:[%s18549_s9 + $0x5a4] ss:$16 sps:$4 sm:$0xff]  }
 0x288   : > { %10893 = vmatpush3.bf16.msra.mxu1 %v14819_v20  ;;  %11633 = vmatpush3.bf16.msra.mxu0 %v14877_v60 }
 0x289   : > { %10894 = vmatprep.subr.bf16.mxu1 %v14917_v45  ;;  %11634 = vmatprep.subr.bf16.mxu0 %v14933_v29 }
 0x28a   : > { %2640 = vmatprep.mubr.bf16.mxu1 %v12925_v5  ;;  %4672 = vmatprep.mubr.bf16.mxu0 %v12927_v38  ;;  %v10724_v26 = vpop.f32.mrb[0].mxu1 }
 0x28b   : > { %v10725_v50 = vpop.f32.mrb[1].mxu1 }
 0x28c   : > { %10895 = vmatpush3.bf16.msra.mxu1 %v14857_v61  ;;  %11635 = vmatpush3.bf16.msra.mxu0 %v14883_v53  ;;  %v15414_v7 = vadd.f32 %v10725_v50, %v10724_v26  ;;  %v10727_v2 = vpop.f32.mrb[2].mxu1 }
 0x28d   : > { %10896 = vmatprep.subr.bf16.mxu1 %v14925_v17  ;;  %11636 = vmatprep.subr.bf16.mxu0 %v14941_v12  ;;  %v10728_v27 = vpop.f32.mrb[3].mxu1 }
 0x28e   : > { %v15424_v42 = vadd.f32 %v10728_v27, %v10727_v2  ;;  %v12949_v2 = vld [vmem:[%s18549_s9 + $0x124] ss:$16 sps:$4 sm:$0xff]  }
 0x28f   : > { %2641 = vmatmul.mubr.bf16.gmra.mrb[64].mxu1 %v12929_v34  ;;  %4673 = vmatmul.mubr.bf16.gmra.mrb[236].mxu0 %v12930_v59  ;;  %v12943_v34 = vld [vmem:[%s18549_s9 + $0x5a0] ss:$16 sps:$4 sm:$0xff]   ;;  %v9928_v59 = vcombine.low %v9909_v16, %v9909_v16  ;;  %v12953_v16 = vld [vmem:[%s18549_s9 + $0x144] ss:$16 sps:$4 sm:$0xff]  }
 0x290   : > { %10897 = vmatpush3.bf16.msra.mxu1 %v14877_v60  ;;  %11637 = vmatpush3.bf16.msra.mxu0 %v14890_v58 }
 0x291   : > { %10898 = vmatprep.subr.bf16.mxu1 %v14933_v29  ;;  %11638 = vmatprep.subr.bf16.mxu0 %v14949_v62 }
 0x292   : > { %2648 = vmatprep.mubr.bf16.mxu1 %v12931_v8  ;;  %4680 = vmatprep.mubr.bf16.mxu0 %v12933_v19  ;;  %v10730_v15 = vpop.f32.mrb[4].mxu1  ;;  %v12950_v19 = vld [vmem:[%s18549_s9 + $0x5c4] ss:$16 sps:$4 sm:$0xff]  }
 0x293   : > { %v10731_v46 = vpop.f32.mrb[5].mxu1 }
 0x294   : > { %10899 = vmatpush3.bf16.msra.mxu1 %v14883_v53  ;;  %11639 = vmatpush3.bf16.msra.mxu0 %v14894_v11  ;;  %v15441_v6 = vadd.f32 %v10731_v46, %v10730_v15  ;;  %v10733_v35 = vpop.f32.mrb[6].mxu1  ;;  %v12952_v46 = vld [vmem:[%s18549_s9 + $0x5c0] ss:$16 sps:$4 sm:$0xff]  }
 0x295   : > { %10900 = vmatprep.subr.bf16.mxu1 %v14941_v12  ;;  %11640 = vmatprep.subr.bf16.mxu0 %v14957_v10  ;;  %v10734_v37 = vpop.f32.mrb[7].mxu1 }
 0x296   : > { %v15448_v57 = vadd.f32 %v10734_v37, %v10733_v35 }
 0x297   : > { %2649 = vmatmul.mubr.bf16.gmra.mrb[68].mxu1 %v12935_v31  ;;  %4681 = vmatmul.mubr.bf16.gmra.mrb[240].mxu0 %v12936_v63 }
 0x298   : > { %10901 = vmatpush3.bf16.msra.mxu1 %v14890_v58  ;;  %11641 = vmatpush3.bf16.msra.mxu0 %v14898_v48 }
 0x299   : > { %10902 = vmatprep.subr.bf16.mxu1 %v14949_v62  ;;  %11642 = vmatprep.subr.bf16.mxu0 %v14965_v36 }
 0x29a   : > { %2656 = vmatprep.mubr.bf16.mxu1 %v12937_v1  ;;  %4688 = vmatprep.mubr.bf16.mxu0 %v10231_v21  ;;  %v10736_v47 = vpop.f32.mrb[8].mxu1 }
 0x29b   : > { %v10737_v52 = vpop.f32.mrb[9].mxu1 }
 0x29c   : > { %10903 = vmatpush3.bf16.msra.mxu1 %v14894_v11  ;;  %11643 = vmatpush3.bf16.msra.mxu0 %v14902_v49  ;;  %v15462_v3 = vadd.f32 %v10737_v52, %v10736_v47  ;;  %v10739_v28 = vpop.f32.mrb[10].mxu1  ;;  %v12957_v47 = vld [vmem:[%s18549_s9 + $0x5e4] ss:$16 sps:$4 sm:$0xff]  }
 0x29d   : > { %10904 = vmatprep.subr.bf16.mxu1 %v14957_v10  ;;  %11720 = vmatprep.subr.bf16.mxu0 %v14906_v41  ;;  %v10740_v5 = vpop.f32.mrb[11].mxu1  ;;  %v12959_v52 = vld [vmem:[%s18549_s9 + $0x164] ss:$16 sps:$4 sm:$0xff]  }
 0x29e   : > { %v15469_v38 = vadd.f32 %v10740_v5, %v10739_v28  ;;  %v12961_v28 = vld [vmem:[%s18549_s9 + $0x600] ss:$16 sps:$4 sm:$0xff]  }
 0x29f   : > { %2657 = vmatmul.mubr.bf16.gmra.mrb[72].mxu1 %v12940_v56  ;;  %4689 = vmatmul.mubr.bf16.gmra.mrb[244].mxu0 %v10230_v22  ;;  %v12955_v56 = vld [vmem:[%s18549_s9 + $0x5e0] ss:$16 sps:$4 sm:$0xff]  }
 0x2a0   : > { %10905 = vmatpush3.bf16.msra.mxu1 %v14898_v48  ;;  %2664 = vmatprep.mubr.bf16.mxu1 %v9929_v0  ;;  %v12958_v22 = vld [vmem:[%s18549_s9 + $0x140] ss:$16 sps:$4 sm:$0xff]   ;;  %v12963_v0 = vld [vmem:[%s18549_s9 + $0x604] ss:$16 sps:$4 sm:$0xff]  }
 0x2a1   : > { %10906 = vmatprep.subr.bf16.mxu1 %v14965_v36  ;;  %4918 = vmatprep.mubr.bf16.mxu0 %v12945_v32  ;;  %v12964_v32 = vld [vmem:[%s18549_s9 + $0x160] ss:$16 sps:$4 sm:$0xff]  }
 0x2a2   : > { %v10742_v26 = vpop.f32.mrb[12].mxu1  ;;  %v10250_v5 = vld [vmem:[%s18549_s9 + $0x620] sm:$0xff] }
 0x2a3   : > { %v10743_v50 = vpop.f32.mrb[13].mxu1 }
 0x2a4   : > { %10907 = vmatpush3.bf16.msra.mxu1 %v14902_v49  ;;  %v15480_v27 = vadd.f32 %v10743_v50, %v10742_v26  ;;  %v10745_v8 = vpop.f32.mrb[14].mxu1  ;;  %v12965_v26 = vld [vmem:[%s18549_s9 + $0x184] ss:$16 sps:$4 sm:$0xff]   ;;  %v10268_v50 = vcombine.low %v10250_v5, %v10250_v5 }
 0x2a5   : > { %10938 = vmatprep.subr.bf16.mxu1 %v15113_v39  ;;  %v10746_v15 = vpop.f32.mrb[15].mxu1 }
 0x2a6   : > { %v15486_v31 = vadd.f32 %v10746_v15, %v10745_v8  ;;  %v12971_v15 = vld [vmem:[%s18549_s9 + $0x630] ss:$16 sps:$4 sm:$0xff]  }
 0x2a7   : > { %2665 = vmatmul.mubr.bf16.gmra.mrb[76].mxu1 %v9928_v59  ;;  %4919 = vmatmul.mubr.bf16.vlgmr.msra.gmra.mrb[248].mxu0 %v12943_v34  ;;  %v10269_v34 = vcombine.high %v10250_v5, %v10250_v5  ;;  %v9946_v59 = vld [vmem:[%s18549_s9 + $0x1a0] sm:$0xff]  ;;  %v12993_v5 = vld [vmem:[%s18549_s9 + $0x18c] ss:$16 sps:$4 sm:$0xff]  }
 0x2a8   : > { %11721 = vmatpush3.bf16.msra.mxu0 %v14819_v20  ;;  %2822 = vmatprep.mubr.bf16.mxu1 %v12949_v2  ;;  %v12969_v2 = vld [vmem:[%s18549_s9 + $0x180] ss:$16 sps:$4 sm:$0xff]   ;;  %v9965_v8 = vcombine.high %v9946_v59, %v9946_v59 }
 0x2a9   : > { %11722 = vmatprep.subr.bf16.mxu0 %v14917_v45  ;;  %4926 = vmatprep.mubr.bf16.mxu0 %v12950_v19  ;;  %v12973_v19 = vld [vmem:[%s18549_s9 + $0x634] ss:$16 sps:$4 sm:$0xff]  }
 0x2aa   : > { %v10748_v63 = vpop.f32.mrb[16].mxu1 }
 0x2ab   : > { %v10749_v35 = vpop.f32.mrb[17].mxu1 }
 0x2ac   : > { %11723 = vmatpush3.bf16.msra.mxu0 %v14857_v61  ;;  %v15497_v37 = vadd.f32 %v10749_v35, %v10748_v63  ;;  %v10751_v1 = vpop.f32.mrb[18].mxu1  ;;  %v9964_v63 = vcombine.low %v9946_v59, %v9946_v59  ;;  %v12975_v35 = vld [vmem:[%s18549_s9 + $0x128] ss:$16 sps:$4 sm:$0xff]  }
 0x2ad   : > { %11724 = vmatprep.subr.bf16.mxu0 %v14925_v17  ;;  %v10752_v21 = vpop.f32.mrb[19].mxu1  ;;  %v12978_v1 = vld [vmem:[%s18549_s9 + $0x650] ss:$16 sps:$4 sm:$0xff]  }
 0x2ae   : > { %v12981_v21 = vld [vmem:[%s18549_s9 + $0x14c] ss:$16 sps:$4 sm:$0xff]  }
 0x2af   : > { %2823 = vmatmul.mubr.bf16.vlgmr.msra.gmra.mrb[80].mxu1 %v12947_v30  ;;  %4927 = vmatmul.mubr.bf16.gmra.mrb[252].mxu0 %v12952_v46  ;;  %v12977_v30 = vld [vmem:[%s18549_s9 + $0x12c] ss:$16 sps:$4 sm:$0xff]   ;;  %v12980_v46 = vld [vmem:[%s18549_s9 + $0x654] ss:$16 sps:$4 sm:$0xff]  }
 0x2b0   : > { %10939 = vmatpush3.bf16.msra.mxu1 %v14987_v18  ;;  %11725 = vmatpush3.bf16.msra.mxu0 %v14877_v60 }
 0x2b1   : > { %10940 = vmatprep.subr.bf16.mxu1 %v15125_v14  ;;  %11726 = vmatprep.subr.bf16.mxu0 %v14933_v29 }
 0x2b2   : > { %2830 = vmatprep.mubr.bf16.mxu1 %v12953_v16  ;;  %4934 = vmatprep.mubr.bf16.mxu0 %v12957_v47  ;;  %v12985_v16 = vld [vmem:[%s18549_s9 + $0x674] ss:$16 sps:$4 sm:$0xff]   ;;  %v12983_v47 = vld [vmem:[%s18549_s9 + $0x670] ss:$16 sps:$4 sm:$0xff]  }
 0x2b4   : > { %10941 = vmatpush3.bf16.msra.mxu1 %v15007_v4  ;;  %11727 = vmatpush3.bf16.msra.mxu0 %v14883_v53 }
 0x2b5   : > { %10942 = vmatprep.subr.bf16.mxu1 %v15138_v9  ;;  %11728 = vmatprep.subr.bf16.mxu0 %v14941_v12 }
 0x2b7   : > { %2831 = vmatmul.mubr.bf16.gmra.mrb[84].mxu1 %v12958_v22  ;;  %4935 = vmatmul.mubr.bf16.gmra.mrb[0].mxu0 %v12955_v56  ;;  %v12986_v56 = vld [vmem:[%s18549_s9 + $0x148] ss:$16 sps:$4 sm:$0xff]   ;;  %v12987_v22 = vld [vmem:[%s18549_s9 + $0x16c] ss:$16 sps:$4 sm:$0xff]  }
 0x2b8   : > { %10943 = vmatpush3.bf16.msra.mxu1 %v15027_v33  ;;  %11729 = vmatpush3.bf16.msra.mxu0 %v14890_v58 }
 0x2b9   : > { %10944 = vmatprep.subr.bf16.mxu1 %v15154_v54  ;;  %11730 = vmatprep.subr.bf16.mxu0 %v14949_v62 }
 0x2ba   : > { %2838 = vmatprep.mubr.bf16.mxu1 %v12959_v52  ;;  %4942 = vmatprep.mubr.bf16.mxu0 %v12963_v0  ;;  %v12991_v52 = vld [vmem:[%s18549_s9 + $0x694] ss:$16 sps:$4 sm:$0xff]   ;;  %v12989_v0 = vld [vmem:[%s18549_s9 + $0x690] ss:$16 sps:$4 sm:$0xff]  }
 0x2bc   : > { %10945 = vmatpush3.bf16.msra.mxu1 %v15047_v13  ;;  %11731 = vmatpush3.bf16.msra.mxu0 %v14894_v11 }
 0x2bd   : > { %10946 = vmatprep.subr.bf16.mxu1 %v15170_v23  ;;  %11732 = vmatprep.subr.bf16.mxu0 %v14957_v10 }
 0x2bf   : > { %2839 = vmatmul.mubr.bf16.gmra.mrb[88].mxu1 %v12964_v32  ;;  %4943 = vmatmul.mubr.bf16.gmra.mrb[4].mxu0 %v12961_v28  ;;  %v12992_v28 = vld [vmem:[%s18549_s9 + $0x168] ss:$16 sps:$4 sm:$0xff]   ;;  %v10288_v32 = vld [vmem:[%s18549_s9 + $0x6b0] sm:$0xff] }
 0x2c0   : > { %10947 = vmatpush3.bf16.msra.mxu1 %v15060_v43  ;;  %11733 = vmatpush3.bf16.msra.mxu0 %v14898_v48  ;;  %v10306_v59 = vcombine.low %v10288_v32, %v10288_v32 }
 0x2c1   : > { %10948 = vmatprep.subr.bf16.mxu1 %v15186_v25  ;;  %11734 = vmatprep.subr.bf16.mxu0 %v14965_v36 }
 0x2c2   : > { %2846 = vmatprep.mubr.bf16.mxu1 %v12965_v26  ;;  %4950 = vmatprep.mubr.bf16.mxu0 %v10269_v34  ;;  %v10307_v26 = vcombine.high %v10288_v32, %v10288_v32  ;;  %v9947_v34 = vld [vmem:[%s18549_s9 + $0x1a8] sm:$0xff]  ;;  %v13020_v32 = vld [vmem:[%s18549_s9 + $0x1f0] ss:$16 sps:$4 sm:$0xff]  }
 0x2c4   : > { %10949 = vmatpush3.bf16.msra.mxu1 %v15071_v44  ;;  %11735 = vmatpush3.bf16.msra.mxu0 %v14902_v49 }
 0x2c5   : > { %10950 = vmatprep.subr.bf16.mxu1 %v15199_v24  ;;  %11812 = vmatprep.subr.bf16.mxu0 %v14906_v41 }
 0x2c7   : > { %2847 = vmatmul.mubr.bf16.gmra.mrb[92].mxu1 %v12969_v2  ;;  %4951 = vmatmul.mubr.bf16.gmra.mrb[8].mxu0 %v10268_v50  ;;  %v12997_v50 = vld [vmem:[%s18549_s9 + $0x188] ss:$16 sps:$4 sm:$0xff]   ;;  %v9967_v2 = vcombine.high %v9947_v34, %v9947_v34 }
 0x2c8   : > { %10951 = vmatpush3.bf16.msra.mxu1 %v15085_v55  ;;  %2854 = vmatprep.mubr.bf16.mxu1 %v9965_v8  ;;  %v13001_v8 = vld [vmem:[%s18549_s9 + $0x6c4] ss:$16 sps:$4 sm:$0xff]  }
 0x2c9   : > { %10952 = vmatprep.subr.bf16.mxu1 %v15210_v40  ;;  %5180 = vmatprep.mubr.bf16.mxu0 %v12973_v19  ;;  %v12999_v19 = vld [vmem:[%s18549_s9 + $0x6c0] ss:$16 sps:$4 sm:$0xff]  }
 0x2cc   : > { %10953 = vmatpush3.bf16.msra.mxu1 %v15099_v51 }
 0x2cd   : > { %10984 = vmatprep.subr.bf16.mxu1 %v14906_v41 }
 0x2cf   : > { %2855 = vmatmul.mubr.bf16.gmra.mrb[96].mxu1 %v9964_v63  ;;  %5181 = vmatmul.mubr.bf16.vlgmr.msra.gmra.mrb[12].mxu0 %v12971_v15  ;;  %v9966_v15 = vcombine.low %v9947_v34, %v9947_v34  ;;  %v13005_v63 = vld [vmem:[%s18549_s9 + $0x1b4] ss:$16 sps:$4 sm:$0xff]  }
 0x2d0   : > { %11813 = vmatpush3.bf16.msra.mxu0 %v14819_v20  ;;  %2894 = vmatprep.mubr.bf16.mxu1 %v12977_v30  ;;  %v13008_v30 = vld [vmem:[%s18549_s9 + $0x6e4] ss:$16 sps:$4 sm:$0xff]  }
 0x2d1   : > { %11814 = vmatprep.subr.bf16.mxu0 %v14917_v45  ;;  %5188 = vmatprep.mubr.bf16.mxu0 %v12980_v46  ;;  %v13003_v46 = vld [vmem:[%s18549_s9 + $0x1b0] ss:$16 sps:$4 sm:$0xff]  }
 0x2d4   : > { %11815 = vmatpush3.bf16.msra.mxu0 %v14857_v61 }
 0x2d5   : > { %11816 = vmatprep.subr.bf16.mxu0 %v14925_v17 }
 0x2d7   : > { %2895 = vmatmul.mubr.bf16.vlgmr.msra.gmra.mrb[100].mxu1 %v12975_v35  ;;  %5189 = vmatmul.mubr.bf16.gmra.mrb[16].mxu0 %v12978_v1  ;;  %v13006_v35 = vld [vmem:[%s18549_s9 + $0x6e0] ss:$16 sps:$4 sm:$0xff]   ;;  %v13009_v1 = vld [vmem:[%s18549_s9 + $0x1d4] ss:$16 sps:$4 sm:$0xff]  }
 0x2d8   : > { %10985 = vmatpush3.bf16.msra.mxu1 %v14819_v20  ;;  %11817 = vmatpush3.bf16.msra.mxu0 %v14877_v60 }
 0x2d9   : > { %10986 = vmatprep.subr.bf16.mxu1 %v14917_v45  ;;  %11818 = vmatprep.subr.bf16.mxu0 %v14933_v29 }
 0x2da   : > { %2902 = vmatprep.mubr.bf16.mxu1 %v12981_v21  ;;  %5196 = vmatprep.mubr.bf16.mxu0 %v12985_v16  ;;  %v13013_v21 = vld [vmem:[%s18549_s9 + $0x704] ss:$16 sps:$4 sm:$0xff]   ;;  %v13011_v16 = vld [vmem:[%s18549_s9 + $0x700] ss:$16 sps:$4 sm:$0xff]  }
 0x2dc   : > { %10987 = vmatpush3.bf16.msra.mxu1 %v14857_v61  ;;  %11819 = vmatpush3.bf16.msra.mxu0 %v14883_v53 }
 0x2dd   : > { %10988 = vmatprep.subr.bf16.mxu1 %v14925_v17  ;;  %11820 = vmatprep.subr.bf16.mxu0 %v14941_v12 }
 0x2df   : > { %2903 = vmatmul.mubr.bf16.gmra.mrb[104].mxu1 %v12986_v56  ;;  %5197 = vmatmul.mubr.bf16.gmra.mrb[20].mxu0 %v12983_v47  ;;  %v13014_v47 = vld [vmem:[%s18549_s9 + $0x1d0] ss:$16 sps:$4 sm:$0xff]   ;;  %v13015_v56 = vld [vmem:[%s18549_s9 + $0x1f4] ss:$16 sps:$4 sm:$0xff]  }
 0x2e0   : > { %10989 = vmatpush3.bf16.msra.mxu1 %v14877_v60  ;;  %11821 = vmatpush3.bf16.msra.mxu0 %v14890_v58 }
 0x2e1   : > { %10990 = vmatprep.subr.bf16.mxu1 %v14933_v29  ;;  %11822 = vmatprep.subr.bf16.mxu0 %v14949_v62 }
 0x2e2   : > { %2910 = vmatprep.mubr.bf16.mxu1 %v12987_v22  ;;  %5204 = vmatprep.mubr.bf16.mxu0 %v12991_v52  ;;  %v13019_v22 = vld [vmem:[%s18549_s9 + $0x724] ss:$16 sps:$4 sm:$0xff]  }
 0x2e4   : > { %10991 = vmatpush3.bf16.msra.mxu1 %v14883_v53  ;;  %11823 = vmatpush3.bf16.msra.mxu0 %v14894_v11 }
 0x2e5   : > { %10992 = vmatprep.subr.bf16.mxu1 %v14941_v12  ;;  %11824 = vmatprep.subr.bf16.mxu0 %v14957_v10 }
 0x2e7   : > { %2911 = vmatmul.mubr.bf16.gmra.mrb[108].mxu1 %v12992_v28  ;;  %5205 = vmatmul.mubr.bf16.gmra.mrb[24].mxu0 %v12989_v0  ;;  %v13017_v28 = vld [vmem:[%s18549_s9 + $0x720] ss:$16 sps:$4 sm:$0xff]  }
 0x2e8   : > { %10993 = vmatpush3.bf16.msra.mxu1 %v14890_v58  ;;  %11825 = vmatpush3.bf16.msra.mxu0 %v14898_v48 }
 0x2e9   : > { %10994 = vmatprep.subr.bf16.mxu1 %v14949_v62  ;;  %11826 = vmatprep.subr.bf16.mxu0 %v14965_v36 }
 0x2ea   : > { %2918 = vmatprep.mubr.bf16.mxu1 %v12993_v5  ;;  %5212 = vmatprep.mubr.bf16.mxu0 %v10307_v26  ;;  %v10326_v5 = vld [vmem:[%s18549_s9 + $0x740] sm:$0xff] }
 0x2ec   : > { %10995 = vmatpush3.bf16.msra.mxu1 %v14894_v11  ;;  %11827 = vmatpush3.bf16.msra.mxu0 %v14902_v49 }
 0x2ed   : > { %10996 = vmatprep.subr.bf16.mxu1 %v14957_v10  ;;  %11904 = vmatprep.subr.bf16.mxu0 %v14906_v41 }
 0x2ef   : > { %2919 = vmatmul.mubr.bf16.gmra.mrb[112].mxu1 %v12997_v50  ;;  %5213 = vmatmul.mubr.bf16.gmra.mrb[28].mxu0 %v10306_v59 }
 0x2f0   : > { %10997 = vmatpush3.bf16.msra.mxu1 %v14898_v48  ;;  %2926 = vmatprep.mubr.bf16.mxu1 %v9967_v2 }
 0x2f1   : > { %10998 = vmatprep.subr.bf16.mxu1 %v14965_v36  ;;  %5442 = vmatprep.mubr.bf16.mxu0 %v13001_v8  ;;  %v13021_v8 = vld [vmem:[%s18549_s9 + $0x214] ss:$16 sps:$4 sm:$0xff]  }
 0x2f4   : > { %10999 = vmatpush3.bf16.msra.mxu1 %v14902_v49 }
 0x2f5   : > { %11030 = vmatprep.subr.bf16.mxu1 %v15113_v39 }
 0x2f7   : > { %2927 = vmatmul.mubr.bf16.gmra.mrb[116].mxu1 %v9966_v15  ;;  %5443 = vmatmul.mubr.bf16.vlgmr.msra.gmra.mrb[32].mxu0 %v12999_v19  ;;  %v10345_v19 = vcombine.high %v10326_v5, %v10326_v5 }
 0x2f8   : > { %11905 = vmatpush3.bf16.msra.mxu0 %v14819_v20  ;;  %3084 = vmatprep.mubr.bf16.mxu1 %v13005_v63 }
 0x2f9   : > { %11906 = vmatprep.subr.bf16.mxu0 %v14917_v45  ;;  %5450 = vmatprep.mubr.bf16.mxu0 %v13008_v30 }
 0x2fc   : > { %11907 = vmatpush3.bf16.msra.mxu0 %v14857_v61 }
 0x2fd   : > { %11908 = vmatprep.subr.bf16.mxu0 %v14925_v17 }
 0x2ff   : > { %3085 = vmatmul.mubr.bf16.vlgmr.msra.gmra.mrb[120].mxu1 %v13003_v46  ;;  %5451 = vmatmul.mubr.bf16.gmra.mrb[36].mxu0 %v13006_v35  ;;  %v10344_v46 = vcombine.low %v10326_v5, %v10326_v5  ;;  %v13025_v35 = vld [vmem:[%s18549_s9 + $0x210] ss:$16 sps:$4 sm:$0xff]  }
 0x300   : > { %11031 = vmatpush3.bf16.msra.mxu1 %v14987_v18  ;;  %11909 = vmatpush3.bf16.msra.mxu0 %v14877_v60 }
 0x301   : > { %11032 = vmatprep.subr.bf16.mxu1 %v15125_v14  ;;  %11910 = vmatprep.subr.bf16.mxu0 %v14933_v29 }
 0x302   : > { %3092 = vmatprep.mubr.bf16.mxu1 %v13009_v1  ;;  %5458 = vmatprep.mubr.bf16.mxu0 %v13013_v21 }
 0x304   : > { %11033 = vmatpush3.bf16.msra.mxu1 %v15007_v4  ;;  %11911 = vmatpush3.bf16.msra.mxu0 %v14883_v53 }
 0x305   : > { %11034 = vmatprep.subr.bf16.mxu1 %v15138_v9  ;;  %11912 = vmatprep.subr.bf16.mxu0 %v14941_v12 }
 0x307   : > { %3093 = vmatmul.mubr.bf16.gmra.mrb[124].mxu1 %v13014_v47  ;;  %5459 = vmatmul.mubr.bf16.gmra.mrb[40].mxu0 %v13011_v16 }
 0x308   : > { %11035 = vmatpush3.bf16.msra.mxu1 %v15027_v33  ;;  %11913 = vmatpush3.bf16.msra.mxu0 %v14890_v58 }
 0x309   : > { %11036 = vmatprep.subr.bf16.mxu1 %v15154_v54  ;;  %11914 = vmatprep.subr.bf16.mxu0 %v14949_v62 }
 0x30a   : > { %v10770_v52 = vpop.f32.mrb[20].mxu1  ;;  %3100 = vmatprep.mubr.bf16.mxu1 %v13015_v56  ;;  %5466 = vmatprep.mubr.bf16.mxu0 %v13019_v22  ;;  %v13029_v56 = vld [vmem:[%s18549_s9 + $0x754] ss:$16 sps:$4 sm:$0xff]  }
 0x30b   : > { %v10771_v0 = vpop.f32.mrb[21].mxu1 }
 0x30c   : > { %v10772_v26 = vadd.f32 %v10771_v0, %v10770_v52  ;;  %11037 = vmatpush3.bf16.msra.mxu1 %v15047_v13  ;;  %11915 = vmatpush3.bf16.msra.mxu0 %v14894_v11  ;;  %v10773_v34 = vpop.f32.mrb[22].mxu1 }
 0x30d   : > { %11038 = vmatprep.subr.bf16.mxu1 %v15170_v23  ;;  %11916 = vmatprep.subr.bf16.mxu0 %v14957_v10  ;;  %v10774_v59 = vpop.f32.mrb[23].mxu1 }
 0x30e   : > { %v15716_v50 = vadd.f32 %v10772_v26, %v15414_v7  ;;  %v10775_v2 = vadd.f32 %v10774_v59, %v10773_v34  ;;  %v9984_v7 = vld [vmem:[%s18549_s9 + $0x230] sm:$0xff]  ;;  %v13033_v59 = vld [vmem:[%s18549_s9 + $0x1bc] ss:$16 sps:$4 sm:$0xff]  }
 0x30f   : > { %3101 = vmatmul.mubr.bf16.gmra.mrb[128].mxu1 %v13020_v32  ;;  %5467 = vmatmul.mubr.bf16.gmra.mrb[44].mxu0 %v13017_v28  ;;  %v10003_v16 = vcombine.high %v9984_v7, %v9984_v7  ;;  %v10002_v26 = vcombine.low %v9984_v7, %v9984_v7 }
 0x310   : > { %18550 = vst [vmem:[#allocation3_spill] sm:$0xff] %v15716_v50  ;;  %v15722_v15 = vadd.f32 %v10775_v2, %v15424_v42  ;;  %11039 = vmatpush3.bf16.msra.mxu1 %v15060_v43  ;;  %11917 = vmatpush3.bf16.msra.mxu0 %v14898_v48 }
 0x311   : > { %11040 = vmatprep.subr.bf16.mxu1 %v15186_v25  ;;  %11918 = vmatprep.subr.bf16.mxu0 %v14965_v36 }
 0x312   : > { %18551 = vst [vmem:[#allocation4_spill] sm:$0xff] %v15722_v15  ;;  %v10776_v63 = vpop.f32.mrb[24].mxu1  ;;  %3108 = vmatprep.mubr.bf16.mxu1 %v13021_v8  ;;  %5474 = vmatprep.mubr.bf16.mxu0 %v10345_v19  ;;  %v13036_v8 = vld [vmem:[%s18549_s9 + $0x774] ss:$16 sps:$4 sm:$0xff]  }
 0x313   : > { %v10777_v42 = vpop.f32.mrb[25].mxu1 }
 0x314   : > { %v10778_v1 = vadd.f32 %v10777_v42, %v10776_v63  ;;  %11041 = vmatpush3.bf16.msra.mxu1 %v15071_v44  ;;  %11919 = vmatpush3.bf16.msra.mxu0 %v14902_v49  ;;  %v10779_v21 = vpop.f32.mrb[26].mxu1 }
 0x315   : > { %11042 = vmatprep.subr.bf16.mxu1 %v15199_v24  ;;  %11996 = vmatprep.subr.bf16.mxu0 %v14906_v41  ;;  %v10780_v47 = vpop.f32.mrb[27].mxu1 }
 0x316   : > { %v15744_v22 = vadd.f32 %v10778_v1, %v15441_v6  ;;  %v10781_v52 = vadd.f32 %v10780_v47, %v10779_v21  ;;  %v13027_v6 = vld [vmem:[%s18549_s9 + $0x750] ss:$16 sps:$4 sm:$0xff]  }
 0x317   : > { %3109 = vmatmul.mubr.bf16.gmra.mrb[132].mxu1 %v13025_v35  ;;  %5475 = vmatmul.mubr.bf16.gmra.mrb[48].mxu0 %v10344_v46 }
 0x318   : > { %18552 = vst [vmem:[#allocation7_spill] sm:$0xff] %v15744_v22  ;;  %v15747_v0 = vadd.f32 %v10781_v52, %v15448_v57  ;;  %11043 = vmatpush3.bf16.msra.mxu1 %v15085_v55  ;;  %3116 = vmatprep.mubr.bf16.mxu1 %v10003_v16  ;;  %v13037_v52 = vld [vmem:[%s18549_s9 + $0x1dc] ss:$16 sps:$4 sm:$0xff]  }
 0x319   : > { %11044 = vmatprep.subr.bf16.mxu1 %v15210_v40  ;;  %5704 = vmatprep.mubr.bf16.mxu0 %v13029_v56 }
 0x31a   : > { %18553 = vst [vmem:[#allocation8_spill] sm:$0xff] %v15747_v0  ;;  %v10782_v28 = vpop.f32.mrb[28].mxu1 }
 0x31b   : > { %v10783_v5 = vpop.f32.mrb[29].mxu1 }
 0x31c   : > { %v10784_v34 = vadd.f32 %v10783_v5, %v10782_v28  ;;  %11045 = vmatpush3.bf16.msra.mxu1 %v15099_v51  ;;  %v10785_v57 = vpop.f32.mrb[30].mxu1  ;;  %v13041_v28 = vld [vmem:[%s18549_s9 + $0x794] ss:$16 sps:$4 sm:$0xff]  }
 0x31d   : > { %11122 = vmatprep.subr.bf16.mxu1 %v15113_v39  ;;  %v10786_v2 = vpop.f32.mrb[31].mxu1 }
 0x31e   : > { %v15765_v19 = vadd.f32 %v10784_v34, %v15462_v3  ;;  %v10787_v63 = vadd.f32 %v10786_v2, %v10785_v57  ;;  %v13031_v3 = vld [vmem:[%s18549_s9 + $0x1b8] ss:$16 sps:$4 sm:$0xff]  }
 0x31f   : > { %3117 = vmatmul.mubr.bf16.gmra.mrb[136].mxu1 %v10002_v26  ;;  %5705 = vmatmul.mubr.bf16.vlgmr.msra.gmra.mrb[52].mxu0 %v13027_v6  ;;  %v13042_v34 = vld [vmem:[%s18549_s9 + $0x1d8] ss:$16 sps:$4 sm:$0xff]  }
 0x320   : > { %18554 = vst [vmem:[#allocation9_spill] sm:$0xff] %v15765_v19  ;;  %v15768_v7 = vadd.f32 %v10787_v63, %v15469_v38  ;;  %11997 = vmatpush3.bf16.msra.mxu0 %v14819_v20  ;;  %3156 = vmatprep.mubr.bf16.mxu1 %v13033_v59  ;;  %v13034_v38 = vld [vmem:[%s18549_s9 + $0x770] ss:$16 sps:$4 sm:$0xff]   ;;  %v13043_v63 = vld [vmem:[%s18549_s9 + $0x1fc] ss:$16 sps:$4 sm:$0xff]  }
 0x321   : > { %11998 = vmatprep.subr.bf16.mxu0 %v14917_v45  ;;  %5712 = vmatprep.mubr.bf16.mxu0 %v13036_v8 }
 0x322   : > { %18555 = vst [vmem:[#allocation10_spill] sm:$0xff] %v15768_v7  ;;  %v10788_v42 = vpop.f32.mrb[32].mxu1 }
 0x323   : > { %v10789_v35 = vpop.f32.mrb[33].mxu1 }
 0x324   : > { %v10790_v1 = vadd.f32 %v10789_v35, %v10788_v42  ;;  %11999 = vmatpush3.bf16.msra.mxu0 %v14857_v61  ;;  %v10791_v21 = vpop.f32.mrb[34].mxu1  ;;  %v13047_v42 = vld [vmem:[%s18549_s9 + $0x7b4] ss:$16 sps:$4 sm:$0xff]  }
 0x325   : > { %12000 = vmatprep.subr.bf16.mxu0 %v14925_v17  ;;  %v10792_v16 = vpop.f32.mrb[35].mxu1 }
 0x326   : > { %v15783_v47 = vadd.f32 %v10790_v1, %v15480_v27  ;;  %v10793_v56 = vadd.f32 %v10792_v16, %v10791_v21  ;;  %v10364_v1 = vld [vmem:[%s18549_s9 + $0x7d0] sm:$0xff] }
 0x327   : > { %3157 = vmatmul.mubr.bf16.vlgmr.msra.gmra.mrb[140].mxu1 %v13031_v3  ;;  %5713 = vmatmul.mubr.bf16.gmra.mrb[56].mxu0 %v13034_v38  ;;  %v13045_v3 = vld [vmem:[%s18549_s9 + $0x7b0] ss:$16 sps:$4 sm:$0xff]   ;;  %v13048_v38 = vld [vmem:[%s18549_s9 + $0x1f8] ss:$16 sps:$4 sm:$0xff]  }
 0x328   : > { %18556 = vst [vmem:[#allocation11_spill] sm:$0xff] %v15783_v47  ;;  %v15792_v5 = vadd.f32 %v10793_v56, %v15486_v31  ;;  %11123 = vmatpush3.bf16.msra.mxu1 %v14987_v18  ;;  %12001 = vmatpush3.bf16.msra.mxu0 %v14877_v60  ;;  %v13039_v31 = vld [vmem:[%s18549_s9 + $0x790] ss:$16 sps:$4 sm:$0xff]  }
 0x329   : > { %11124 = vmatprep.subr.bf16.mxu1 %v15125_v14  ;;  %12002 = vmatprep.subr.bf16.mxu0 %v14933_v29 }
 0x32a   : > { %18557 = vst [vmem:[#allocation12_spill] sm:$0xff] %v15792_v5  ;;  %v10794_v27 = vpop.f32.mrb[36].mxu1  ;;  %3164 = vmatprep.mubr.bf16.mxu1 %v13037_v52  ;;  %5720 = vmatprep.mubr.bf16.mxu0 %v13041_v28  ;;  %v13049_v28 = vld [vmem:[%s18549_s9 + $0x21c] ss:$16 sps:$4 sm:$0xff]  }
 0x32b   : > { %v10795_v26 = vpop.f32.mrb[37].mxu1 }
 0x32c   : > { %v10796_v57 = vadd.f32 %v10795_v26, %v10794_v27  ;;  %11125 = vmatpush3.bf16.msra.mxu1 %v15007_v4  ;;  %12003 = vmatpush3.bf16.msra.mxu0 %v14883_v53  ;;  %v10797_v59 = vpop.f32.mrb[38].mxu1  ;;  %v10383_v27 = vcombine.high %v10364_v1, %v10364_v1  ;;  %v9985_v26 = vld [vmem:[%s18549_s9 + $0x238] sm:$0xff] }
 0x32d   : > { %11126 = vmatprep.subr.bf16.mxu1 %v15138_v9  ;;  %12004 = vmatprep.subr.bf16.mxu0 %v14941_v12  ;;  %v10798_v2 = vpop.f32.mrb[39].mxu1  ;;  %v13053_v59 = vld [vmem:[%s18549_s9 + $0x218] ss:$16 sps:$4 sm:$0xff]  }
 0x32e   : > { %v15811_v8 = vadd.f32 %v10796_v57, %v15497_v37  ;;  %v10382_v57 = vcombine.low %v10364_v1, %v10364_v1 }
 0x32f   : > { %3165 = vmatmul.mubr.bf16.gmra.mrb[144].mxu1 %v13042_v34  ;;  %5721 = vmatmul.mubr.bf16.gmra.mrb[60].mxu0 %v13039_v31 }
 0x330   : > { %18558 = vst [vmem:[#allocation13_spill] sm:$0xff] %v15811_v8  ;;  %11127 = vmatpush3.bf16.msra.mxu1 %v15027_v33  ;;  %12005 = vmatpush3.bf16.msra.mxu0 %v14890_v58 }
 0x331   : > { %11128 = vmatprep.subr.bf16.mxu1 %v15154_v54  ;;  %12006 = vmatprep.subr.bf16.mxu0 %v14949_v62 }
 0x332   : > { %v10816_v37 = vpop.f32.mrb[40].mxu1  ;;  %3172 = vmatprep.mubr.bf16.mxu1 %v13043_v63  ;;  %5728 = vmatprep.mubr.bf16.mxu0 %v13047_v42  ;;  %v10005_v42 = vcombine.high %v9985_v26, %v9985_v26 }
 0x333   : > { %v10817_v35 = vpop.f32.mrb[41].mxu1 }
 0x334   : > { %v15832_v21 = vadd.f32 %v10817_v35, %v10816_v37  ;;  %11129 = vmatpush3.bf16.msra.mxu1 %v15047_v13  ;;  %12007 = vmatpush3.bf16.msra.mxu0 %v14894_v11  ;;  %v10819_v16 = vpop.f32.mrb[42].mxu1  ;;  %v13057_v35 = vld [vmem:[%s18549_s9 + $0x7e4] ss:$16 sps:$4 sm:$0xff]  }
 0x335   : > { %11130 = vmatprep.subr.bf16.mxu1 %v15170_v23  ;;  %12008 = vmatprep.subr.bf16.mxu0 %v14957_v10  ;;  %v10820_v56 = vpop.f32.mrb[43].mxu1 }
 0x336   : > { %v15838_v52 = vadd.f32 %v10820_v56, %v10819_v16  ;;  %v10004_v16 = vcombine.low %v9985_v26, %v9985_v26 }
 0x337   : > { %3173 = vmatmul.mubr.bf16.gmra.mrb[148].mxu1 %v13048_v38  ;;  %5729 = vmatmul.mubr.bf16.gmra.mrb[64].mxu0 %v13045_v3 }
 0x338   : > { %11131 = vmatpush3.bf16.msra.mxu1 %v15060_v43  ;;  %12009 = vmatpush3.bf16.msra.mxu0 %v14898_v48 }
 0x339   : > { %11132 = vmatprep.subr.bf16.mxu1 %v15186_v25  ;;  %12010 = vmatprep.subr.bf16.mxu0 %v14965_v36 }
 0x33a   : > { %v10822_v31 = vpop.f32.mrb[44].mxu1  ;;  %3180 = vmatprep.mubr.bf16.mxu1 %v13049_v28  ;;  %5736 = vmatprep.mubr.bf16.mxu0 %v10383_v27  ;;  %v13061_v27 = vld [vmem:[%s18549_s9 + $0x24c] ss:$16 sps:$4 sm:$0xff]  }
 0x33b   : > { %v10823_v34 = vpop.f32.mrb[45].mxu1 }
 0x33c   : > { %v15853_v2 = vadd.f32 %v10823_v34, %v10822_v31  ;;  %11133 = vmatpush3.bf16.msra.mxu1 %v15071_v44  ;;  %12011 = vmatpush3.bf16.msra.mxu0 %v14902_v49  ;;  %v10825_v63 = vpop.f32.mrb[46].mxu1 }
 0x33d   : > { %11134 = vmatprep.subr.bf16.mxu1 %v15199_v24  ;;  %12088 = vmatprep.subr.bf16.mxu0 %v14906_v41  ;;  %v10826_v37 = vpop.f32.mrb[47].mxu1  ;;  %v13055_v41 = vld [vmem:[%s18549_s9 + $0x7e0] ss:$16 sps:$4 sm:$0xff]  }
 0x33e   : > { %v15862_v3 = vadd.f32 %v10826_v37, %v10825_v63 }
 0x33f   : > { %3181 = vmatmul.mubr.bf16.gmra.mrb[152].mxu1 %v13053_v59  ;;  %5737 = vmatmul.mubr.bf16.gmra.mrb[68].mxu0 %v10382_v57  ;;  %v13059_v59 = vld [vmem:[%s18549_s9 + $0x248] ss:$16 sps:$4 sm:$0xff]  }
 0x340   : > { %11135 = vmatpush3.bf16.msra.mxu1 %v15085_v55  ;;  %3188 = vmatprep.mubr.bf16.mxu1 %v10005_v42 }
 0x341   : > { %11136 = vmatprep.subr.bf16.mxu1 %v15210_v40  ;;  %5966 = vmatprep.mubr.bf16.mxu0 %v13057_v35 }
 0x342   : > { %v10828_v38 = vpop.f32.mrb[48].mxu1 }
 0x343   : > { %v10829_v1 = vpop.f32.mrb[49].mxu1 }
 0x344   : > { %v15869_v56 = vadd.f32 %v10829_v1, %v10828_v38  ;;  %11137 = vmatpush3.bf16.msra.mxu1 %v15099_v51  ;;  %v10831_v28 = vpop.f32.mrb[50].mxu1 }
 0x345   : > { %11214 = vmatprep.subr.bf16.mxu1 %v15113_v39  ;;  %v10832_v31 = vpop.f32.mrb[51].mxu1 }
 0x346   : > { %v15876_v34 = vadd.f32 %v10832_v31, %v10831_v28  ;;  %v13068_v31 = vld [vmem:[%s18549_s9 + $0x2ac] ss:$16 sps:$4 sm:$0xff]  }
 0x347   : > { %3189 = vmatmul.mubr.bf16.gmra.mrb[156].mxu1 %v10004_v16  ;;  %5967 = vmatmul.mubr.bf16.vlgmr.msra.gmra.mrb[72].mxu0 %v13055_v41 }
 0x348   : > { %12089 = vmatpush3.bf16.msra.mxu0 %v14819_v20  ;;  %3418 = vmatprep.mubr.bf16.mxu1 %v13061_v27  ;;  %v13062_v20 = vld [vmem:[%s18549_s9 + $0x26c] ss:$16 sps:$4 sm:$0xff]  }
 0x349   : > { %12090 = vmatprep.subr.bf16.mxu0 %v14917_v45 }
 0x34a   : > { %v10834_v26 = vpop.f32.mrb[52].mxu1 }
 0x34b   : > { %v10835_v57 = vpop.f32.mrb[53].mxu1 }
 0x34c   : > { %v15883_v63 = vadd.f32 %v10835_v57, %v10834_v26  ;;  %12091 = vmatpush3.bf16.msra.mxu0 %v14857_v61  ;;  %v10837_v42 = vpop.f32.mrb[54].mxu1 }
 0x34d   : > { %12092 = vmatprep.subr.bf16.mxu0 %v14925_v17  ;;  %v10838_v37 = vpop.f32.mrb[55].mxu1  ;;  %v13064_v17 = vld [vmem:[%s18549_s9 + $0x268] ss:$16 sps:$4 sm:$0xff]  }
 0x34e   : > { %v15887_v35 = vadd.f32 %v10838_v37, %v10837_v42 }
 0x34f   : > { %3419 = vmatmul.mubr.bf16.vlgmr.msra.gmra.mrb[160].mxu1 %v13059_v59 }
 0x350   : > { %11215 = vmatpush3.bf16.msra.mxu1 %v14987_v18  ;;  %12093 = vmatpush3.bf16.msra.mxu0 %v14877_v60 }
 0x351   : > { %11216 = vmatprep.subr.bf16.mxu1 %v15125_v14  ;;  %12094 = vmatprep.subr.bf16.mxu0 %v14933_v29  ;;  %v13065_v29 = vld [vmem:[%s18549_s9 + $0x28c] ss:$16 sps:$4 sm:$0xff]  }
 0x352   : > { %v10840_v61 = vpop.f32.mrb[56].mxu1  ;;  %3426 = vmatprep.mubr.bf16.mxu1 %v13062_v20 }
 0x353   : > { %v10841_v45 = vpop.f32.mrb[57].mxu1 }
 0x354   : > { %v15899_v38 = vadd.f32 %v10841_v45, %v10840_v61  ;;  %11217 = vmatpush3.bf16.msra.mxu1 %v15007_v4  ;;  %12095 = vmatpush3.bf16.msra.mxu0 %v14883_v53  ;;  %v10843_v1 = vpop.f32.mrb[58].mxu1 }
 0x355   : > { %11218 = vmatprep.subr.bf16.mxu1 %v15138_v9  ;;  %12096 = vmatprep.subr.bf16.mxu0 %v14941_v12  ;;  %v10844_v60 = vpop.f32.mrb[59].mxu1  ;;  %v13067_v12 = vld [vmem:[%s18549_s9 + $0x288] ss:$16 sps:$4 sm:$0xff]  }
 0x357   : > { %3427 = vmatmul.mubr.bf16.gmra.mrb[164].mxu1 %v13064_v17 }
 0x358   : > { %11219 = vmatpush3.bf16.msra.mxu1 %v15027_v33  ;;  %12097 = vmatpush3.bf16.msra.mxu0 %v14890_v58 }
 0x359   : > { %11220 = vmatprep.subr.bf16.mxu1 %v15154_v54  ;;  %12098 = vmatprep.subr.bf16.mxu0 %v14949_v62 }
 0x35a   : > { %v10862_v53 = vpop.f32.mrb[60].mxu1  ;;  %3434 = vmatprep.mubr.bf16.mxu1 %v13065_v29 }
 0x35b   : > { %v10863_v41 = vpop.f32.mrb[61].mxu1 }
 0x35c   : > { %v10864_v16 = vadd.f32 %v10863_v41, %v10862_v53  ;;  %11221 = vmatpush3.bf16.msra.mxu1 %v15047_v13  ;;  %12099 = vmatpush3.bf16.msra.mxu0 %v14894_v11  ;;  %v10865_v28 = vpop.f32.mrb[62].mxu1  ;;  %v10023_v11 = vld [vmem:[%s18549_s9 + $0x2c8] sm:$0xff] }
 0x35d   : > { %11222 = vmatprep.subr.bf16.mxu1 %v15170_v23  ;;  %12100 = vmatprep.subr.bf16.mxu0 %v14957_v10  ;;  %v10866_v58 = vpop.f32.mrb[63].mxu1  ;;  %v10042_v1 = vcombine.low %v10023_v11, %v10023_v11 }
 0x35e   : > { %v15920_v62 = vadd.f32 %v10864_v16, %v15832_v21  ;;  %v10867_v27 = vadd.f32 %v10866_v58, %v10865_v28 }
 0x35f   : > { %3435 = vmatmul.mubr.bf16.gmra.mrb[168].mxu1 %v13067_v12 }
 0x360   : > { %v15926_v26 = vadd.f32 %v10867_v27, %v15838_v52  ;;  %11223 = vmatpush3.bf16.msra.mxu1 %v15060_v43  ;;  %12101 = vmatpush3.bf16.msra.mxu0 %v14898_v48  ;;  %v13070_v52 = vld [vmem:[%s18549_s9 + $0x2a8] ss:$16 sps:$4 sm:$0xff]  }
 0x361   : > { %11224 = vmatprep.subr.bf16.mxu1 %v15186_v25  ;;  %12102 = vmatprep.subr.bf16.mxu0 %v14965_v36  ;;  %v10043_v36 = vcombine.high %v10023_v11, %v10023_v11  ;;  %v13073_v27 = vld [vmem:[%s18549_s9 + $0x2d8] ss:$16 sps:$4 sm:$0xff]  }
 0x362   : > { %v10868_v10 = vpop.f32.mrb[64].mxu1  ;;  %3442 = vmatprep.mubr.bf16.mxu1 %v13068_v31 }
 0x363   : > { %v10869_v57 = vpop.f32.mrb[65].mxu1 }
 0x364   : > { %v10870_v59 = vadd.f32 %v10869_v57, %v10868_v10  ;;  %11225 = vmatpush3.bf16.msra.mxu1 %v15071_v44  ;;  %12103 = vmatpush3.bf16.msra.mxu0 %v14902_v49  ;;  %v10871_v48 = vpop.f32.mrb[66].mxu1 }
 0x365   : > { %11226 = vmatprep.subr.bf16.mxu1 %v15199_v24  ;;  %v10872_v42 = vpop.f32.mrb[67].mxu1 }
 0x366   : > { %v15944_v37 = vadd.f32 %v10870_v59, %v15853_v2  ;;  %v10873_v20 = vadd.f32 %v10872_v42, %v10871_v48 }
 0x367   : > { %3443 = vmatmul.mubr.bf16.gmra.mrb[172].mxu1 %v13070_v52 }
 0x368   : > { %18559 = vst [vmem:[#allocation14_spill] sm:$0xff] %v15944_v37  ;;  %v15947_v61 = vadd.f32 %v10873_v20, %v15862_v3  ;;  %11227 = vmatpush3.bf16.msra.mxu1 %v15085_v55  ;;  %3450 = vmatprep.mubr.bf16.mxu1 %v10043_v36  ;;  %v13075_v3 = vld [vmem:[%s18549_s9 + $0x2dc] ss:$16 sps:$4 sm:$0xff]  }
 0x369   : > { %11228 = vmatprep.subr.bf16.mxu1 %v15210_v40 }
 0x36a   : > { %18560 = vst [vmem:[#allocation5_spill] sm:$0xff] %v15947_v61  ;;  %v10874_v45 = vpop.f32.mrb[68].mxu1 }
 0x36b   : > { %v10875_v17 = vpop.f32.mrb[69].mxu1 }
 0x36c   : > { %v10876_v60 = vadd.f32 %v10875_v17, %v10874_v45  ;;  %11229 = vmatpush3.bf16.msra.mxu1 %v15099_v51  ;;  %v10877_v2 = vpop.f32.mrb[70].mxu1 }
 0x36d   : > { %11306 = vmatprep.subr.bf16.mxu1 %v15113_v39  ;;  %v10878_v29 = vpop.f32.mrb[71].mxu1 }
 0x36e   : > { %v15959_v53 = vadd.f32 %v10876_v60, %v15869_v56  ;;  %v10879_v41 = vadd.f32 %v10878_v29, %v10877_v2  ;;  %v13076_v56 = vld [vmem:[%s18549_s9 + $0x2fc] ss:$16 sps:$4 sm:$0xff]   ;;  %v13081_v2 = vld [vmem:[%s18549_s9 + $0x318] ss:$16 sps:$4 sm:$0xff]  }
 0x36f   : > { %3451 = vmatmul.mubr.bf16.gmra.mrb[176].mxu1 %v10042_v1 }
 0x370   : > { %18561 = vst [vmem:[#allocation6_spill] sm:$0xff] %v15959_v53  ;;  %v15962_v12 = vadd.f32 %v10879_v41, %v15876_v34  ;;  %3680 = vmatprep.mubr.bf16.mxu1 %v13075_v3 }
 0x372   : > { %18562 = vst [vmem:[#allocation16_spill] sm:$0xff] %v15962_v12  ;;  %v10880_v16 = vpop.f32.mrb[72].mxu1 }
 0x373   : > { %v10881_v58 = vpop.f32.mrb[73].mxu1 }
 0x374   : > { %v10882_v31 = vadd.f32 %v10881_v58, %v10880_v16  ;;  %v10883_v11 = vpop.f32.mrb[74].mxu1  ;;  %v10061_v58 = vld [vmem:[%s18549_s9 + $0x358] sm:$0xff] }
 0x375   : > { %v10884_v10 = vpop.f32.mrb[75].mxu1 }
 0x376   : > { %v15973_v34 = vadd.f32 %v10882_v31, %v15883_v63  ;;  %v10885_v57 = vadd.f32 %v10884_v10, %v10883_v11  ;;  %v13078_v63 = vld [vmem:[%s18549_s9 + $0x2f8] ss:$16 sps:$4 sm:$0xff]  }
 0x377   : > { %3681 = vmatmul.mubr.bf16.vlgmr.msra.gmra.mrb[180].mxu1 %v13073_v27  ;;  %v13084_v11 = vld [vmem:[%s18549_s9 + $0x338] ss:$16 sps:$4 sm:$0xff]  }
 0x378   : > { %18563 = vst [vmem:[#allocation17_spill] sm:$0xff] %v15973_v34  ;;  %v15976_v52 = vadd.f32 %v10885_v57, %v15887_v35  ;;  %11307 = vmatpush3.bf16.msra.mxu1 %v14987_v18  ;;  %3688 = vmatprep.mubr.bf16.mxu1 %v13076_v56  ;;  %v13079_v35 = vld [vmem:[%s18549_s9 + $0x31c] ss:$16 sps:$4 sm:$0xff]   ;;  %v10081_v57 = vcombine.high %v10061_v58, %v10061_v58 }
 0x379   : > { %11308 = vmatprep.subr.bf16.mxu1 %v15125_v14 }
 0x37a   : > { %18564 = vst [vmem:[#allocation18_spill] sm:$0xff] %v15976_v52  ;;  %v10886_v59 = vpop.f32.mrb[76].mxu1 }
 0x37b   : > { %v10887_v36 = vpop.f32.mrb[77].mxu1 }
 0x37c   : > { %v10888_v42 = vadd.f32 %v10887_v36, %v10886_v59  ;;  %11309 = vmatpush3.bf16.msra.mxu1 %v15007_v4  ;;  %v10889_v20 = vpop.f32.mrb[78].mxu1 }
 0x37d   : > { %11310 = vmatprep.subr.bf16.mxu1 %v15138_v9  ;;  %v10890_v45 = vpop.f32.mrb[79].mxu1  ;;  %v10080_v20 = vcombine.low %v10061_v58, %v10061_v58 }
 0x37e   : > { %v15991_v17 = vadd.f32 %v10888_v42, %v15899_v38  ;;  %v13082_v38 = vld [vmem:[%s18549_s9 + $0x33c] ss:$16 sps:$4 sm:$0xff]  }
 0x37f   : > { %3689 = vmatmul.mubr.bf16.gmra.mrb[184].mxu1 %v13078_v63 }
 0x380   : > { %18565 = vst [vmem:[#allocation19_spill] sm:$0xff] %v15991_v17  ;;  %11311 = vmatpush3.bf16.msra.mxu1 %v15027_v33  ;;  %3696 = vmatprep.mubr.bf16.mxu1 %v13079_v35 }
 0x381   : > { %11312 = vmatprep.subr.bf16.mxu1 %v15154_v54 }
 0x382   : > { %v10908_v1 = vpop.f32.mrb[80].mxu1 }
 0x383   : > { %v10909_v60 = vpop.f32.mrb[81].mxu1 }
 0x384   : > { %v15998_v3 = vadd.f32 %v10909_v60, %v10908_v1  ;;  %11313 = vmatpush3.bf16.msra.mxu1 %v15047_v13  ;;  %v10911_v29 = vpop.f32.mrb[82].mxu1  ;;  %v13089_v1 = vld [vmem:[%s18549_s9 + $0x36c] ss:$16 sps:$4 sm:$0xff]  }
 0x385   : > { %11314 = vmatprep.subr.bf16.mxu1 %v15170_v23  ;;  %v10912_v41 = vpop.f32.mrb[83].mxu1 }
 0x386   : > { %v16005_v16 = vadd.f32 %v10912_v41, %v10911_v29  ;;  %v13087_v41 = vld [vmem:[%s18549_s9 + $0x368] ss:$16 sps:$4 sm:$0xff]  }
 0x387   : > { %3697 = vmatmul.mubr.bf16.gmra.mrb[188].mxu1 %v13081_v2 }
 0x388   : > { %11315 = vmatpush3.bf16.msra.mxu1 %v15060_v43  ;;  %3704 = vmatprep.mubr.bf16.mxu1 %v13082_v38 }
 0x389   : > { %11316 = vmatprep.subr.bf16.mxu1 %v15186_v25 }
 0x38a   : > { %v10914_v27 = vpop.f32.mrb[84].mxu1 }
 0x38b   : > { %v10915_v31 = vpop.f32.mrb[85].mxu1 }
 0x38c   : > { %v16015_v56 = vadd.f32 %v10915_v31, %v10914_v27  ;;  %11317 = vmatpush3.bf16.msra.mxu1 %v15071_v44  ;;  %v10917_v10 = vpop.f32.mrb[86].mxu1  ;;  %v13090_v31 = vld [vmem:[%s18549_s9 + $0x38c] ss:$16 sps:$4 sm:$0xff]  }
 0x38d   : > { %11318 = vmatprep.subr.bf16.mxu1 %v15199_v24  ;;  %v10918_v59 = vpop.f32.mrb[87].mxu1 }
 0x38e   : > { %v16019_v36 = vadd.f32 %v10918_v59, %v10917_v10  ;;  %v11092_v10 = vpop.f32.mrb[128].mxu0 }
 0x38f   : > { %3705 = vmatmul.mubr.bf16.gmra.mrb[192].mxu1 %v13084_v11  ;;  %v11093_v59 = vpop.f32.mrb[129].mxu0 }
 0x390   : > { %11319 = vmatpush3.bf16.msra.mxu1 %v15085_v55  ;;  %3712 = vmatprep.mubr.bf16.mxu1 %v10081_v57 }
 0x391   : > { %11320 = vmatprep.subr.bf16.mxu1 %v15210_v40 }
 0x392   : > { %v10920_v63 = vpop.f32.mrb[88].mxu1 }
 0x393   : > { %v10921_v42 = vpop.f32.mrb[89].mxu1 }
 0x394   : > { %v16023_v35 = vadd.f32 %v10921_v42, %v10920_v63  ;;  %11321 = vmatpush3.bf16.msra.mxu1 %v15099_v51  ;;  %v10923_v45 = vpop.f32.mrb[90].mxu1  ;;  %v16044_v63 = vadd.f32 %v11093_v59, %v11092_v10  ;;  %v11095_v42 = vpop.f32.mrb[130].mxu0 }
 0x395   : > { %11398 = vmatprep.subr.bf16.mxu1 %v15113_v39  ;;  %v10924_v60 = vpop.f32.mrb[91].mxu1 }
 0x396   : > { %v16030_v2 = vadd.f32 %v10924_v60, %v10923_v45  ;;  %v11096_v45 = vpop.f32.mrb[131].mxu0  ;;  %v13092_v60 = vld [vmem:[%s18549_s9 + $0x388] ss:$16 sps:$4 sm:$0xff]  }
 0x397   : > { %3713 = vmatmul.mubr.bf16.gmra.mrb[196].mxu1 %v10080_v20 }
 0x398   : > { %3942 = vmatprep.mubr.bf16.mxu1 %v13089_v1 }
 0x39a   : > { %v10926_v29 = vpop.f32.mrb[92].mxu1 }
 0x39b   : > { %v10927_v38 = vpop.f32.mrb[93].mxu1 }
 0x39c   : > { %v16035_v58 = vadd.f32 %v10927_v38, %v10926_v29  ;;  %v10929_v27 = vpop.f32.mrb[94].mxu1  ;;  %v16049_v29 = vadd.f32 %v11096_v45, %v11095_v42 }
 0x39d   : > { %v10930_v11 = vpop.f32.mrb[95].mxu1 }
 0x39e   : > { %v16040_v57 = vadd.f32 %v10930_v11, %v10929_v27  ;;  %v13093_v27 = vld [vmem:[%s18549_s9 + $0x3ac] ss:$16 sps:$4 sm:$0xff]   ;;  %v11098_v11 = vpop.f32.mrb[132].mxu0 }
 0x39f   : > { %3943 = vmatmul.mubr.bf16.vlgmr.msra.gmra.mrb[200].mxu1 %v13087_v41  ;;  %v11099_v10 = vpop.f32.mrb[133].mxu0 }
 0x3a0   : > { %11399 = vmatpush3.bf16.msra.mxu1 %v14987_v18  ;;  %3950 = vmatprep.mubr.bf16.mxu1 %v13090_v31  ;;  %v16060_v42 = vadd.f32 %v11099_v10, %v11098_v11 }
 0x3a1   : > { %11400 = vmatprep.subr.bf16.mxu1 %v15125_v14 }
 0x3a2   : > { %v10932_v20 = vpop.f32.mrb[96].mxu1 }
 0x3a3   : > { %v10933_v1 = vpop.f32.mrb[97].mxu1 }
 0x3a4   : > { %v16051_v38 = vadd.f32 %v10933_v1, %v10932_v20  ;;  %11401 = vmatpush3.bf16.msra.mxu1 %v15007_v4  ;;  %v10935_v41 = vpop.f32.mrb[98].mxu1  ;;  %v11101_v20 = vpop.f32.mrb[134].mxu0  ;;  %v13095_v1 = vld [vmem:[%s18549_s9 + $0x3a8] ss:$16 sps:$4 sm:$0xff]  }
 0x3a5   : > { %11402 = vmatprep.subr.bf16.mxu1 %v15138_v9  ;;  %v10936_v31 = vpop.f32.mrb[99].mxu1  ;;  %v11102_v41 = vpop.f32.mrb[135].mxu0 }
 0x3a6   : > { %v16069_v31 = vadd.f32 %v11102_v41, %v11101_v20  ;;  %v10099_v20 = vld [vmem:[%s18549_s9 + $0x3e8] sm:$0xff] }
 0x3a7   : > { %3951 = vmatmul.mubr.bf16.gmra.mrb[204].mxu1 %v13092_v60 }
 0x3a8   : > { %11403 = vmatpush3.bf16.msra.mxu1 %v15027_v33  ;;  %3958 = vmatprep.mubr.bf16.mxu1 %v13093_v27  ;;  %v13096_v27 = vld [vmem:[%s18549_s9 + $0x3cc] ss:$16 sps:$4 sm:$0xff]  }
 0x3a9   : > { %11404 = vmatprep.subr.bf16.mxu1 %v15154_v54 }
 0x3aa   : > { %v10954_v59 = vpop.f32.mrb[100].mxu1 }
 0x3ab   : > { %v10955_v45 = vpop.f32.mrb[101].mxu1 }
 0x3ac   : > { %v10956_v6 = vadd.f32 %v10955_v45, %v10954_v59  ;;  %11405 = vmatpush3.bf16.msra.mxu1 %v15047_v13  ;;  %v10957_v60 = vpop.f32.mrb[102].mxu1  ;;  %v11104_v59 = vpop.f32.mrb[136].mxu0 }
 0x3ad   : > { %11406 = vmatprep.subr.bf16.mxu1 %v15170_v23  ;;  %v10958_v11 = vpop.f32.mrb[103].mxu1  ;;  %v11105_v45 = vpop.f32.mrb[137].mxu0 }
 0x3ae   : > { %v16073_v10 = vadd.f32 %v10956_v6, %v15998_v3  ;;  %v10959_v46 = vadd.f32 %v10958_v11, %v10957_v60  ;;  %v16083_v48 = vadd.f32 %v11105_v45, %v11104_v59  ;;  %v11107_v6 = vpop.f32.mrb[138].mxu0  ;;  %v10119_v45 = vcombine.high %v10099_v20, %v10099_v20 }
 0x3af   : > { %3959 = vmatmul.mubr.bf16.gmra.mrb[208].mxu1 %v13095_v1  ;;  %v13098_v1 = vld [vmem:[%s18549_s9 + $0x3c8] ss:$16 sps:$4 sm:$0xff]   ;;  %v11108_v60 = vpop.f32.mrb[139].mxu0 }
 0x3b0   : > { %v16076_v32 = vadd.f32 %v10959_v46, %v16005_v16  ;;  %11407 = vmatpush3.bf16.msra.mxu1 %v15060_v43  ;;  %3966 = vmatprep.mubr.bf16.mxu1 %v13096_v27  ;;  %v13143_v46 = vld [vmem:[%s18549_s9 + $0x804] ss:$16 sps:$4 sm:$0xff]   ;;  %v13141_v27 = vld [vmem:[%s18549_s9 + $0x800] ss:$16 sps:$4 sm:$0xff]   ;;  %v16097_v28 = vadd.f32 %v11108_v60, %v11107_v6 }
 0x3b1   : > { %11408 = vmatprep.subr.bf16.mxu1 %v15186_v25  ;;  %5974 = vmatprep.mubr.bf16.mxu0 %v13143_v46 }
 0x3b2   : > { %v10960_v41 = vpop.f32.mrb[104].mxu1  ;;  %5975 = vmatmul.mubr.bf16.gmra.mrb[76].mxu0 %v13141_v27  ;;  %v13146_v27 = vld [vmem:[%s18549_s9 + $0x820] ss:$16 sps:$4 sm:$0xff]  }
 0x3b3   : > { %v10961_v16 = vpop.f32.mrb[105].mxu1 }
 0x3b4   : > { %v10962_v11 = vadd.f32 %v10961_v16, %v10960_v41  ;;  %11409 = vmatpush3.bf16.msra.mxu1 %v15071_v44  ;;  %v10963_v59 = vpop.f32.mrb[106].mxu1  ;;  %v11110_v41 = vpop.f32.mrb[140].mxu0 }
 0x3b5   : > { %11410 = vmatprep.subr.bf16.mxu1 %v15199_v24  ;;  %v10964_v49 = vpop.f32.mrb[107].mxu1  ;;  %v11111_v6 = vpop.f32.mrb[141].mxu0 }
 0x3b6   : > { %v16101_v30 = vadd.f32 %v10962_v11, %v16015_v56  ;;  %v10965_v3 = vadd.f32 %v10964_v49, %v10963_v59  ;;  %v16108_v16 = vadd.f32 %v11111_v6, %v11110_v41  ;;  %v11113_v60 = vpop.f32.mrb[142].mxu0  ;;  %v13148_v56 = vld [vmem:[%s18549_s9 + $0x824] ss:$16 sps:$4 sm:$0xff]  }
 0x3b7   : > { %3967 = vmatmul.mubr.bf16.gmra.mrb[212].mxu1 %v13098_v1  ;;  %v11114_v1 = vpop.f32.mrb[143].mxu0  ;;  %5982 = vmatprep.mubr.bf16.mxu0 %v13148_v56  ;;  %v13154_v56 = vld [vmem:[%s18549_s9 + $0x844] ss:$16 sps:$4 sm:$0xff]  }
 0x3b8   : > { %18566 = vst [vmem:[#allocation15_spill] sm:$0xff] %v16101_v30  ;;  %v16104_v21 = vadd.f32 %v10965_v3, %v16019_v36  ;;  %11411 = vmatpush3.bf16.msra.mxu1 %v15085_v55  ;;  %3974 = vmatprep.mubr.bf16.mxu1 %v10119_v45  ;;  %v10118_v3 = vcombine.low %v10099_v20, %v10099_v20  ;;  %v13103_v45 = vld [vmem:[%s18549_s9 + $0x3fc] ss:$16 sps:$4 sm:$0xff]  }
 0x3b9   : > { %11412 = vmatprep.subr.bf16.mxu1 %v15210_v40  ;;  %v16122_v41 = vadd.f32 %v11114_v1, %v11113_v60  ;;  %v13121_v30 = vld [vmem:[%s18549_s9 + $0x4cc] ss:$16 sps:$4 sm:$0xff]  }
 0x3ba   : > { %18567 = vst [vmem:[#allocation20_spill] sm:$0xff] %v16104_v21  ;;  %v10966_v46 = vpop.f32.mrb[108].mxu1  ;;  %5983 = vmatmul.mubr.bf16.gmra.mrb[80].mxu0 %v13146_v27  ;;  %v13124_v21 = vld [vmem:[%s18549_s9 + $0x4ec] ss:$16 sps:$4 sm:$0xff]  }
 0x3bb   : > { %v10967_v36 = vpop.f32.mrb[109].mxu1  ;;  %5990 = vmatprep.mubr.bf16.mxu0 %v13154_v56  ;;  %v10402_v56 = vld [vmem:[%s18549_s9 + $0x860] sm:$0xff] }
 0x3bc   : > { %v10968_v11 = vadd.f32 %v10967_v36, %v10966_v46  ;;  %11413 = vmatpush3.bf16.msra.mxu1 %v15099_v51  ;;  %v10969_v59 = vpop.f32.mrb[110].mxu1  ;;  %v11116_v36 = vpop.f32.mrb[144].mxu0 }
 0x3bd   : > { %11490 = vmatprep.subr.bf16.mxu1 %v15113_v39  ;;  %v10970_v6 = vpop.f32.mrb[111].mxu1  ;;  %v11117_v8 = vpop.f32.mrb[145].mxu0 }
 0x3be   : > { %v16126_v20 = vadd.f32 %v10968_v11, %v16023_v35  ;;  %v10971_v49 = vadd.f32 %v10970_v6, %v10969_v59  ;;  %v16131_v5 = vadd.f32 %v11117_v8, %v11116_v36  ;;  %v11119_v60 = vpop.f32.mrb[146].mxu0  ;;  %v13104_v11 = vld [vmem:[%s18549_s9 + $0x41c] ss:$16 sps:$4 sm:$0xff]  }
 0x3bf   : > { %3975 = vmatmul.mubr.bf16.gmra.mrb[216].mxu1 %v10118_v3  ;;  %v13152_v3 = vld [vmem:[%s18549_s9 + $0x840] ss:$16 sps:$4 sm:$0xff]  }
 0x3c0   : > { %18568 = vst [vmem:[#allocation21_spill] sm:$0xff] %v16126_v20  ;;  %v16129_v46 = vadd.f32 %v10971_v49, %v16030_v2  ;;  %4204 = vmatprep.mubr.bf16.mxu1 %v13103_v45  ;;  %v13101_v2 = vld [vmem:[%s18549_s9 + $0x3f8] ss:$16 sps:$4 sm:$0xff]   ;;  %v11120_v49 = vpop.f32.mrb[147].mxu0  ;;  %v13173_v20 = vld [vmem:[%s18573_s2] sm:$0xff]  }
 0x3c2   : > { %18569 = vst [vmem:[#allocation22_spill] sm:$0xff] %v16129_v46  ;;  %v10972_v47 = vpop.f32.mrb[112].mxu1  ;;  %5991 = vmatmul.mubr.bf16.gmra.mrb[84].mxu0 %v13152_v3  ;;  %v10421_v3 = vcombine.high %v10402_v56, %v10402_v56 }
 0x3c3   : > { %v10973_v1 = vpop.f32.mrb[113].mxu1 }
 0x3c4   : > { %v10974_v8 = vadd.f32 %v10973_v1, %v10972_v47  ;;  %v10975_v27 = vpop.f32.mrb[114].mxu1  ;;  %v11184_v47 = vpop.f32.mrb[148].mxu0  ;;  %5998 = vmatprep.mubr.bf16.mxu0 %v10421_v3  ;;  %v13165_v3 = vld [vmem:[%s18549_s9 + $0x874] ss:$16 sps:$4 sm:$0xff]  }
 0x3c5   : > { %v10976_v59 = vpop.f32.mrb[115].mxu1  ;;  %v11185_v60 = vpop.f32.mrb[149].mxu0 }
 0x3c6   : > { %v16148_v45 = vadd.f32 %v10974_v8, %v16035_v58  ;;  %v10977_v6 = vadd.f32 %v10976_v59, %v10975_v27  ;;  %v16158_v49 = vadd.f32 %v11185_v60, %v11184_v47  ;;  %v11187_v58 = vpop.f32.mrb[150].mxu0  ;;  %v13106_v8 = vld [vmem:[%s18549_s9 + $0x418] ss:$16 sps:$4 sm:$0xff]   ;;  %v13107_v47 = vld [vmem:[%s18549_s9 + $0x43c] ss:$16 sps:$4 sm:$0xff]  }
 0x3c7   : > { %4205 = vmatmul.mubr.bf16.vlgmr.msra.gmra.mrb[220].mxu1 %v13101_v2  ;;  %v11188_v27 = vpop.f32.mrb[151].mxu0 }
 0x3c8   : > { %18570 = vst [vmem:[#allocation23_spill] sm:$0xff] %v16148_v45  ;;  %v16151_v36 = vadd.f32 %v10977_v6, %v16040_v57  ;;  %11491 = vmatpush3.bf16.msra.mxu1 %v14987_v18  ;;  %4212 = vmatprep.mubr.bf16.mxu1 %v13104_v11  ;;  %v10420_v11 = vcombine.low %v10402_v56, %v10402_v56  ;;  %v11190_v56 = vpop.f32.mrb[152].mxu0  ;;  %v13169_v45 = vld [vmem:[%s18549_s9 + $0x890] ss:$16 sps:$4 sm:$0xff]  }
 0x3c9   : > { %11492 = vmatprep.subr.bf16.mxu1 %v15125_v14  ;;  %v16169_v60 = vadd.f32 %v11188_v27, %v11187_v58  ;;  %v13163_v27 = vld [vmem:[%s18549_s9 + $0x870] ss:$16 sps:$4 sm:$0xff]  }
 0x3ca   : > { %18571 = vst [vmem:[#allocation24_spill] sm:$0xff] %v16151_v36  ;;  %v10978_v1 = vpop.f32.mrb[116].mxu1  ;;  %5999 = vmatmul.mubr.bf16.gmra.mrb[88].mxu0 %v10420_v11  ;;  %v13172_v36 = vld [vmem:[%s18573_s2 + $0x40] sm:$0xff]  }
 0x3cb   : > { %v10979_v2 = vpop.f32.mrb[117].mxu1  ;;  %6228 = vmatprep.mubr.bf16.mxu0 %v13165_v3  ;;  %v13112_v3 = vld [vmem:[%s18549_s9 + $0x458] ss:$16 sps:$4 sm:$0xff]   ;;  %12180 = vmatprep.subr.bf16.mxu0 %v13172_v36 }
 0x3cc   : > { %v10980_v59 = vadd.f32 %v10979_v2, %v10978_v1  ;;  %11493 = vmatpush3.bf16.msra.mxu1 %v15007_v4  ;;  %v10981_v6 = vpop.f32.mrb[118].mxu1  ;;  %v11191_v1 = vpop.f32.mrb[153].mxu0 }
 0x3cd   : > { %11494 = vmatprep.subr.bf16.mxu1 %v15138_v9  ;;  %v10982_v57 = vpop.f32.mrb[119].mxu1  ;;  %v16177_v6 = vadd.f32 %v11191_v1, %v11190_v56  ;;  %v11193_v58 = vpop.f32.mrb[154].mxu0 }
 0x3ce   : > { %v16173_v35 = vadd.f32 %v10980_v59, %v16051_v38  ;;  %v13109_v38 = vld [vmem:[%s18549_s9 + $0x438] ss:$16 sps:$4 sm:$0xff]  }
 0x3cf   : > { %4213 = vmatmul.mubr.bf16.gmra.mrb[224].mxu1 %v13106_v8  ;;  %v11194_v8 = vpop.f32.mrb[155].mxu0 }
 0x3d0   : > { %18572 = vst [vmem:[#allocation25_spill] sm:$0xff] %v16173_v35  ;;  %11495 = vmatpush3.bf16.msra.mxu1 %v15027_v33  ;;  %4220 = vmatprep.mubr.bf16.mxu1 %v13107_v47  ;;  %v13110_v47 = vld [vmem:[%s18549_s9 + $0x45c] ss:$16 sps:$4 sm:$0xff]   ;;  %v16194_v56 = vadd.f32 %v11194_v8, %v11193_v58 }
 0x3d1   : > { %11496 = vmatprep.subr.bf16.mxu1 %v15154_v54 }
 0x3d2   : > { %v11000_v2 = vpop.f32.mrb[120].mxu1  ;;  %6229 = vmatmul.mubr.bf16.vlgmr.msra.gmra.mrb[92].mxu0 %v13163_v27 }
 0x3d3   : > { %v11001_v57 = vpop.f32.mrb[121].mxu1  ;;  %12181 = vmatpush3.bf16.msra.mxu0 %v13173_v20 }
 0x3d4   : > { %v16188_v11 = vadd.f32 %v11001_v57, %v11000_v2  ;;  %11497 = vmatpush3.bf16.msra.mxu1 %v15047_v13  ;;  %v11003_v59 = vpop.f32.mrb[122].mxu1  ;;  %v11196_v2 = vpop.f32.mrb[156].mxu0  ;;  %v10137_v57 = vld [vmem:[%s18549_s9 + $0x478] sm:$0xff] }
 0x3d5   : > { %11498 = vmatprep.subr.bf16.mxu1 %v15170_v23  ;;  %v11004_v1 = vpop.f32.mrb[123].mxu1  ;;  %v11197_v58 = vpop.f32.mrb[157].mxu0 }
 0x3d6   : > { %v16197_v35 = vadd.f32 %v11004_v1, %v11003_v59  ;;  %v16207_v27 = vadd.f32 %v11197_v58, %v11196_v2  ;;  %v11199_v59 = vpop.f32.mrb[158].mxu0  ;;  %v10157_v58 = vcombine.high %v10137_v57, %v10137_v57 }
 0x3d7   : > { %4221 = vmatmul.mubr.bf16.gmra.mrb[228].mxu1 %v13109_v38  ;;  %v13171_v38 = vld [vmem:[%s18549_s9 + $0x894] ss:$16 sps:$4 sm:$0xff]   ;;  %v11200_v1 = vpop.f32.mrb[159].mxu0 }
 0x3d8   : > { %11499 = vmatpush3.bf16.msra.mxu1 %v15060_v43  ;;  %4228 = vmatprep.mubr.bf16.mxu1 %v13110_v47  ;;  %v16221_v7 = vadd.f32 %v11200_v1, %v11199_v59  ;;  %v11202_v59 = vpop.f32.mrb[160].mxu0  ;;  %v10156_v1 = vcombine.low %v10137_v57, %v10137_v57 }
 0x3d9   : > { %11500 = vmatprep.subr.bf16.mxu1 %v15186_v25  ;;  %6236 = vmatprep.mubr.bf16.mxu0 %v13171_v38  ;;  %v13177_v38 = vld [vmem:[%s18573_s2 + $0x8] sm:$0xff]  }
 0x3da   : > { %v11006_v8 = vpop.f32.mrb[124].mxu1  ;;  %6237 = vmatmul.mubr.bf16.gmra.mrb[96].mxu0 %v13169_v45  ;;  %v11203_v45 = vpop.f32.mrb[161].mxu0 }
 0x3db   : > { %v11007_v47 = vpop.f32.mrb[125].mxu1  ;;  %v16237_v36 = vadd.f32 %v11203_v45, %v11202_v59  ;;  %v11205_v20 = vpop.f32.mrb[162].mxu0  ;;  %v13117_v45 = vld [vmem:[%s18549_s9 + $0x48c] ss:$16 sps:$4 sm:$0xff]  }
 0x3dc   : > { %v16218_v19 = vadd.f32 %v11007_v47, %v11006_v8  ;;  %11501 = vmatpush3.bf16.msra.mxu1 %v15071_v44  ;;  %v11009_v2 = vpop.f32.mrb[126].mxu1  ;;  %v13176_v8 = vld [vmem:[%s18573_s2 + $0x48] sm:$0xff]  }
 0x3dd   : > { %11502 = vmatprep.subr.bf16.mxu1 %v15199_v24  ;;  %v11010_v46 = vpop.f32.mrb[127].mxu1  ;;  %12182 = vmatprep.subr.bf16.mxu0 %v13176_v8  ;;  %v13181_v8 = vld [vmem:[%s18573_s2 + $0x50] sm:$0xff]  }
 0x3de   : > { %v16227_v22 = vadd.f32 %v11010_v46, %v11009_v2  ;;  %12183 = vmatpush3.bf16.msra.mxu0 %v13177_v38  ;;  %v11206_v2 = vpop.f32.mrb[163].mxu0  ;;  %v13182_v38 = vld [vmem:[%s18573_s2 + $0x10] sm:$0xff]  }
 0x3df   : > { %4229 = vmatmul.mubr.bf16.gmra.mrb[232].mxu1 %v13112_v3  ;;  %v13180_v3 = vld [vmem:[%s18549_s9 + $0x8b4] ss:$16 sps:$4 sm:$0xff]   ;;  %v16254_v57 = vadd.f32 %v11206_v2, %v11205_v20  ;;  %12184 = vmatprep.subr.bf16.mxu0 %v13181_v8  ;;  %v11208_v20 = vpop.f32.mrb[164].mxu0 }
 0x3e0   : > { %11503 = vmatpush3.bf16.msra.mxu1 %v15085_v55  ;;  %4236 = vmatprep.mubr.bf16.mxu1 %v10157_v58  ;;  %v13178_v58 = vld [vmem:[%s18549_s9 + $0x8b0] ss:$16 sps:$4 sm:$0xff]   ;;  %v11209_v2 = vpop.f32.mrb[165].mxu0  ;;  %v13190_v8 = vld [vmem:[%s18549_s9 + $0x8d4] ss:$16 sps:$4 sm:$0xff]  }
 0x3e1   : > { %11504 = vmatprep.subr.bf16.mxu1 %v15210_v40  ;;  %6244 = vmatprep.mubr.bf16.mxu0 %v13180_v3  ;;  %v13187_v3 = vld [vmem:[%s18573_s2 + $0x18] sm:$0xff]  }
 0x3e2   : > { %v11012_v46 = vpop.f32.mrb[128].mxu1  ;;  %6245 = vmatmul.mubr.bf16.gmra.mrb[100].mxu0 %v13178_v58  ;;  %v16271_v58 = vadd.f32 %v11209_v2, %v11208_v20  ;;  %v13118_v2 = vld [vmem:[%s18549_s9 + $0x4ac] ss:$16 sps:$4 sm:$0xff]  }
 0x3e3   : > { %v11013_v47 = vpop.f32.mrb[129].mxu1  ;;  %12185 = vmatpush3.bf16.msra.mxu0 %v13182_v38  ;;  %v13188_v38 = vld [vmem:[%s18549_s9 + $0x8d0] ss:$16 sps:$4 sm:$0xff]   ;;  %6252 = vmatprep.mubr.bf16.mxu0 %v13190_v8 }
 0x3e4   : > { %v16248_v0 = vadd.f32 %v11013_v47, %v11012_v46  ;;  %11505 = vmatpush3.bf16.msra.mxu1 %v15099_v51  ;;  %v11015_v59 = vpop.f32.mrb[130].mxu1  ;;  %v13186_v47 = vld [vmem:[%s18573_s2 + $0x58] sm:$0xff]  }
 0x3e5   : > { %11582 = vmatprep.subr.bf16.mxu1 %v15113_v39  ;;  %v11016_v17 = vpop.f32.mrb[131].mxu1  ;;  %12186 = vmatprep.subr.bf16.mxu0 %v13186_v47  ;;  %v13191_v47 = vld [vmem:[%s18573_s2 + $0x60] sm:$0xff]  }
 0x3e6   : > { %v16260_v46 = vadd.f32 %v11016_v17, %v11015_v59  ;;  %v13115_v17 = vld [vmem:[%s18549_s9 + $0x488] ss:$16 sps:$4 sm:$0xff]  }
 0x3e7   : > { %4237 = vmatmul.mubr.bf16.gmra.mrb[236].mxu1 %v10156_v1  ;;  %v11211_v1 = vpop.f32.mrb[166].mxu0  ;;  %12187 = vmatpush3.bf16.msra.mxu0 %v13187_v3  ;;  %v13192_v3 = vld [vmem:[%s18573_s2 + $0x20] sm:$0xff]  }
 0x3e8   : > { %4466 = vmatprep.mubr.bf16.mxu1 %v13117_v45  ;;  %v11212_v45 = vpop.f32.mrb[167].mxu0  ;;  %12188 = vmatprep.subr.bf16.mxu0 %v13191_v47 }
 0x3e9   : > { %v11276_v45 = vpop.f32.mrb[168].mxu0 }
 0x3ea   : > { %v11018_v34 = vpop.f32.mrb[132].mxu1  ;;  %6253 = vmatmul.mubr.bf16.gmra.mrb[104].mxu0 %v13188_v38  ;;  %v11277_v8 = vpop.f32.mrb[169].mxu0 }
 0x3eb   : > { %v11019_v59 = vpop.f32.mrb[133].mxu1  ;;  %12189 = vmatpush3.bf16.msra.mxu0 %v13192_v3  ;;  %v16300_v38 = vadd.f32 %v11277_v8, %v11276_v45  ;;  %v11279_v47 = vpop.f32.mrb[170].mxu0  ;;  %v13200_v45 = vld [vmem:[%s18573_s2 + $0x70] sm:$0xff]  }
 0x3ec   : > { %v16282_v52 = vadd.f32 %v11019_v59, %v11018_v34  ;;  %v11021_v20 = vpop.f32.mrb[134].mxu1  ;;  %v13196_v34 = vld [vmem:[%s18573_s2 + $0x68] sm:$0xff]   ;;  %v11280_v3 = vpop.f32.mrb[171].mxu0 }
 0x3ed   : > { %v11022_v1 = vpop.f32.mrb[135].mxu1  ;;  %v13197_v59 = vld [vmem:[%s18573_s2 + $0x28] sm:$0xff]   ;;  %12190 = vmatprep.subr.bf16.mxu0 %v13196_v34  ;;  %v16308_v37 = vadd.f32 %v11280_v3, %v11279_v47 }
 0x3ee   : > { %v16290_v53 = vadd.f32 %v11022_v1, %v11021_v20 }
 0x3ef   : > { %4467 = vmatmul.mubr.bf16.vlgmr.msra.gmra.mrb[240].mxu1 %v13115_v17  ;;  %v10440_v17 = vld [vmem:[%s18549_s9 + $0x8f0] sm:$0xff]  ;;  %12191 = vmatpush3.bf16.msra.mxu0 %v13197_v59 }
 0x3f0   : > { %11583 = vmatpush3.bf16.msra.mxu1 %v14987_v18  ;;  %4474 = vmatprep.mubr.bf16.mxu1 %v13118_v2  ;;  %v10459_v1 = vcombine.high %v10440_v17, %v10440_v17  ;;  %v13120_v2 = vld [vmem:[%s18549_s9 + $0x4a8] ss:$16 sps:$4 sm:$0xff]   ;;  %v10458_v61 = vcombine.low %v10440_v17, %v10440_v17  ;;  %v13201_v59 = vld [vmem:[%s18573_s2 + $0x30] sm:$0xff]   ;;  %v11282_v17 = vpop.f32.mrb[172].mxu0 }
 0x3f1   : > { %11584 = vmatprep.subr.bf16.mxu1 %v15125_v14  ;;  %12192 = vmatprep.subr.bf16.mxu0 %v13200_v45  ;;  %v11283_v3 = vpop.f32.mrb[173].mxu0 }
 0x3f2   : > { %v11024_v20 = vpop.f32.mrb[136].mxu1  ;;  %6260 = vmatprep.mubr.bf16.mxu0 %v10459_v1  ;;  %v16331_v1 = vadd.f32 %v11283_v3, %v11282_v17 }
 0x3f3   : > { %v11025_v12 = vpop.f32.mrb[137].mxu1  ;;  %6261 = vmatmul.mubr.bf16.gmra.mrb[108].mxu0 %v10458_v61 }
 0x3f4   : > { %v16313_v34 = vadd.f32 %v11025_v12, %v11024_v20  ;;  %11585 = vmatpush3.bf16.msra.mxu1 %v15007_v4  ;;  %v11027_v8 = vpop.f32.mrb[138].mxu1  ;;  %12193 = vmatpush3.bf16.msra.mxu0 %v13201_v59  ;;  %v13205_v12 = vld [vmem:[%s18573_s2 + $0x78] sm:$0xff]   ;;  %18574 = vst [vmem:[#allocation26_spill] sm:$0xff] %v16331_v1 }
 0x3f5   : > { %11586 = vmatprep.subr.bf16.mxu1 %v15138_v9  ;;  %v11028_v47 = vpop.f32.mrb[139].mxu1  ;;  %v13206_v20 = vld [vmem:[%s18573_s2 + $0x38] sm:$0xff]   ;;  %12194 = vmatprep.subr.bf16.mxu0 %v13205_v12 }
 0x3f6   : > { %v13123_v8 = vld [vmem:[%s18549_s9 + $0x4c8] ss:$16 sps:$4 sm:$0xff]  }
 0x3f7   : > { %4475 = vmatmul.mubr.bf16.gmra.mrb[244].mxu1 %v13120_v2  ;;  %v11285_v2 = vpop.f32.mrb[174].mxu0 }
 0x3f8   : > { %11587 = vmatpush3.bf16.msra.mxu1 %v15027_v33  ;;  %4482 = vmatprep.mubr.bf16.mxu1 %v13121_v30  ;;  %v11286_v30 = vpop.f32.mrb[175].mxu0 }
 0x3f9   : > { %11588 = vmatprep.subr.bf16.mxu1 %v15154_v54  ;;  %12195 = vmatpush3.bf16.msra.mxu0 %v13206_v20  ;;  %v16340_v12 = vadd.f32 %v11286_v30, %v11285_v2  ;;  %v10175_v2 = vld [vmem:[%s18549_s9 + $0x508] sm:$0xff] }
 0x3fa   : > { %v11046_v61 = vpop.f32.mrb[140].mxu1 }
 0x3fb   : > { %v11047_v45 = vpop.f32.mrb[141].mxu1 }
 0x3fc   : > { %v11048_v59 = vadd.f32 %v11047_v45, %v11046_v61  ;;  %11589 = vmatpush3.bf16.msra.mxu1 %v15047_v13  ;;  %v11049_v47 = vpop.f32.mrb[142].mxu1  ;;  %v11288_v61 = vpop.f32.mrb[176].mxu0 }
 0x3fd   : > { %11590 = vmatprep.subr.bf16.mxu1 %v15170_v23  ;;  %v11050_v17 = vpop.f32.mrb[143].mxu1  ;;  %v11289_v45 = vpop.f32.mrb[177].mxu0 }
 0x3fe   : > { %v11051_v3 = vadd.f32 %v11050_v17, %v11049_v47  ;;  %v3159_v1 = vadd.f32 %v11048_v59, %v16188_v11  ;;  %v16350_v30 = vadd.f32 %v11289_v45, %v11288_v61  ;;  %v11291_v47 = vpop.f32.mrb[178].mxu0 }
 0x3ff   : > { %4483 = vmatmul.mubr.bf16.gmra.mrb[248].mxu1 %v13123_v8  ;;  %v13126_v8 = vld [vmem:[%s18549_s9 + $0x4e8] ss:$16 sps:$4 sm:$0xff]  }
 0x400   : > { %11591 = vmatpush3.bf16.msra.mxu1 %v15060_v43  ;;  %v3162_v20 = vadd.f32 %v11051_v3, %v16197_v35  ;;  %4490 = vmatprep.mubr.bf16.mxu1 %v13124_v21  ;;  %v11292_v35 = vpop.f32.mrb[179].mxu0  ;;  %v10195_v3 = vcombine.high %v10175_v2, %v10175_v2 }
 0x401   : > { %11592 = vmatprep.subr.bf16.mxu1 %v15186_v25 }
 0x402   : > { %v11052_v50 = vpop.f32.mrb[144].mxu1  ;;  %v3196_v15 = vpack.c.bf16 %v3162_v20, %v3159_v1  ;;  %v16357_v1 = vadd.f32 %v11292_v35, %v11291_v47 }
 0x403   : > { %v11053_v11 = vpop.f32.mrb[145].mxu1 }
 0x404   : > { %v11054_v21 = vadd.f32 %v11053_v11, %v11052_v50  ;;  %11593 = vmatpush3.bf16.msra.mxu1 %v15071_v44  ;;  %v11055_v59 = vpop.f32.mrb[146].mxu1  ;;  %6365 = vrot.lane.b32.xlu0 %v3196_v15, %s18415_s6  ;;  %18575 = vst [vmem:[#allocation27_spill] sm:$0xff] %v16357_v1  ;;  %v18576_v50 = vpack.c.bf16 %v15926_v26, %v15920_v62  ;;  %v11294_v15 = vpop.f32.mrb[180].mxu0  ;;  %v13131_v62 = vld [vmem:[%s18549_s9 + $0x51c] ss:$16 sps:$4 sm:$0xff]  }
 0x405   : > { %11594 = vmatprep.subr.bf16.mxu1 %v15199_v24  ;;  %v11056_v17 = vpop.f32.mrb[147].mxu1  ;;  %v11295_v47 = vpop.f32.mrb[181].mxu0 }
 0x406   : > { %v3167_v20 = vadd.f32 %v11054_v21, %v16218_v19  ;;  %v11057_v61 = vadd.f32 %v11056_v17, %v11055_v59  ;;  %v16368_v1 = vadd.f32 %v11295_v47, %v11294_v15  ;;  %v11297_v19 = vpop.f32.mrb[182].mxu0  ;;  %v10194_v21 = vcombine.low %v10175_v2, %v10175_v2 }
 0x407   : > { %4491 = vmatmul.mubr.bf16.gmra.mrb[252].mxu1 %v13126_v8 }
 0x408   : > { %v3170_v45 = vadd.f32 %v11057_v61, %v16227_v22  ;;  %11595 = vmatpush3.bf16.msra.mxu1 %v15085_v55  ;;  %6350 = vrot.lane.b32.xlu0 %v18576_v50, %s18415_s6  ;;  %v11298_v22 = vpop.f32.mrb[183].mxu0 }
 0x409   : > { %11596 = vmatprep.subr.bf16.mxu1 %v15210_v40  ;;  %4498 = vmatprep.mubr.bf16.mxu1 %v10195_v3  ;;  %v16375_v26 = vadd.f32 %v11298_v22, %v11297_v19 }
 0x40a   : > { %v11058_v11 = vpop.f32.mrb[148].mxu1  ;;  %v3197_v35 = vpack.c.bf16 %v3170_v45, %v3167_v20  ;;  %v11300_v45 = vpop.f32.mrb[184].mxu0 }
 0x40b   : > { %v11059_v8 = vpop.f32.mrb[149].mxu1  ;;  %v11301_v50 = vpop.f32.mrb[185].mxu0 }
 0x40c   : > { %v11060_v59 = vadd.f32 %v11059_v8, %v11058_v11  ;;  %11597 = vmatpush3.bf16.msra.mxu1 %v15099_v51  ;;  %v11061_v17 = vpop.f32.mrb[150].mxu1  ;;  %6367 = vrot.lane.b32.xlu0 %v3197_v35, %s18415_s6  ;;  %v16384_v47 = vadd.f32 %v11301_v50, %v11300_v45  ;;  %v11303_v11 = vpop.f32.mrb[186].mxu0 }
 0x40d   : > { %11674 = vmatprep.subr.bf16.mxu1 %v15113_v39  ;;  %v11062_v3 = vpop.f32.mrb[151].mxu1  ;;  %v11304_v8 = vpop.f32.mrb[187].mxu0 }
 0x40e   : > { %v16379_v20 = vadd.f32 %v11060_v59, %v16248_v0  ;;  %v11063_v2 = vadd.f32 %v11062_v3, %v11061_v17  ;;  %v13129_v0 = vld [vmem:[%s18549_s9 + $0x518] ss:$16 sps:$4 sm:$0xff]  }
 0x40f   : > { %4499 = vmatmul.mubr.bf16.gmra.mrb[0].mxu1 %v10194_v21 }
 0x410   : > { %18577 = vst [vmem:[#allocation28_spill] sm:$0xff] %v16379_v20  ;;  %v16382_v61 = vadd.f32 %v11063_v2, %v16260_v46  ;;  %4728 = vmatprep.mubr.bf16.mxu1 %v13131_v62  ;;  %v13134_v46 = vld [vmem:[%s18549_s9 + $0x53c] ss:$16 sps:$4 sm:$0xff]   ;;  %v11368_v2 = vpop.f32.mrb[188].mxu0 }
 0x411   : > { %v11369_v45 = vpop.f32.mrb[189].mxu0 }
 0x412   : > { %18578 = vst [vmem:[#allocation29_spill] sm:$0xff] %v16382_v61  ;;  %v11064_v15 = vpop.f32.mrb[152].mxu1  ;;  %v11371_v11 = vpop.f32.mrb[190].mxu0 }
 0x413   : > { %v11065_v19 = vpop.f32.mrb[153].mxu1 }
 0x414   : > { %v11066_v21 = vadd.f32 %v11065_v19, %v11064_v15  ;;  %v11067_v22 = vpop.f32.mrb[154].mxu1  ;;  %v16402_v15 = vadd.f32 %v11369_v45, %v11368_v2 }
 0x415   : > { %v11068_v59 = vpop.f32.mrb[155].mxu1 }
 0x416   : > { %v16395_v17 = vadd.f32 %v11066_v21, %v16282_v52  ;;  %v11069_v62 = vadd.f32 %v11068_v59, %v11067_v22  ;;  %v13137_v22 = vld [vmem:[%s18549_s9 + $0x55c] ss:$16 sps:$4 sm:$0xff]  }
 0x417   : > { %4729 = vmatmul.mubr.bf16.vlgmr.msra.gmra.mrb[4].mxu1 %v13129_v0  ;;  %v11372_v0 = vpop.f32.mrb[191].mxu0 }
 0x418   : > { %18579 = vst [vmem:[#allocation30_spill] sm:$0xff] %v16395_v17  ;;  %v16398_v3 = vadd.f32 %v11069_v62, %v16290_v53  ;;  %11675 = vmatpush3.bf16.msra.mxu1 %v14987_v18  ;;  %4736 = vmatprep.mubr.bf16.mxu1 %v13134_v46  ;;  %v13132_v53 = vld [vmem:[%s18549_s9 + $0x538] ss:$16 sps:$4 sm:$0xff]   ;;  %v16413_v46 = vadd.f32 %v11372_v0, %v11371_v11  ;;  %v11374_v62 = vpop.f32.mrb[192].mxu0 }
 0x419   : > { %11676 = vmatprep.subr.bf16.mxu1 %v15125_v14  ;;  %v11375_v45 = vpop.f32.mrb[193].mxu0 }
 0x41a   : > { %18580 = vst [vmem:[#allocation31_spill] sm:$0xff] %v16398_v3  ;;  %v11070_v50 = vpop.f32.mrb[156].mxu1 }
 0x41b   : > { %v11071_v19 = vpop.f32.mrb[157].mxu1 }
 0x41c   : > { %v11072_v8 = vadd.f32 %v11071_v19, %v11070_v50  ;;  %11677 = vmatpush3.bf16.msra.mxu1 %v15007_v4  ;;  %v11073_v21 = vpop.f32.mrb[158].mxu1  ;;  %v16421_v50 = vadd.f32 %v11375_v45, %v11374_v62  ;;  %v11377_v19 = vpop.f32.mrb[194].mxu0 }
 0x41d   : > { %11678 = vmatprep.subr.bf16.mxu1 %v15138_v9  ;;  %v11074_v59 = vpop.f32.mrb[159].mxu1  ;;  %v11378_v11 = vpop.f32.mrb[195].mxu0 }
 0x41e   : > { %v16417_v2 = vadd.f32 %v11072_v8, %v16313_v34  ;;  %v13135_v59 = vld [vmem:[%s18549_s9 + $0x558] ss:$16 sps:$4 sm:$0xff]   ;;  %v16426_v52 = vadd.f32 %v11378_v11, %v11377_v19  ;;  %v11380_v34 = vpop.f32.mrb[196].mxu0 }
 0x41f   : > { %4737 = vmatmul.mubr.bf16.gmra.mrb[8].mxu1 %v13132_v53  ;;  %v11381_v45 = vpop.f32.mrb[197].mxu0 }
 0x420   : > { %18581 = vst [vmem:[#allocation32_spill] sm:$0xff] %v16417_v2  ;;  %11679 = vmatpush3.bf16.msra.mxu1 %v15027_v33  ;;  %4744 = vmatprep.mubr.bf16.mxu1 %v13137_v22  ;;  %v13140_v22 = vld [vmem:[%s18549_s9 + $0x57c] ss:$16 sps:$4 sm:$0xff]   ;;  %v16436_v17 = vadd.f32 %v11381_v45, %v11380_v34  ;;  %v11383_v19 = vpop.f32.mrb[198].mxu0 }
 0x421   : > { %11680 = vmatprep.subr.bf16.mxu1 %v15154_v54 }
 0x422   : > { %v11138_v21 = vpop.f32.mrb[160].mxu1 }
 0x423   : > { %v11139_v0 = vpop.f32.mrb[161].mxu1 }
 0x424   : > { %v11140_v53 = vadd.f32 %v11139_v0, %v11138_v21  ;;  %11681 = vmatpush3.bf16.msra.mxu1 %v15047_v13  ;;  %v11141_v8 = vpop.f32.mrb[162].mxu1  ;;  %v11384_v21 = vpop.f32.mrb[199].mxu0 }
 0x425   : > { %11682 = vmatprep.subr.bf16.mxu1 %v15170_v23  ;;  %v11142_v62 = vpop.f32.mrb[163].mxu1  ;;  %v16442_v0 = vadd.f32 %v11384_v21, %v11383_v19  ;;  %v11386_v3 = vpop.f32.mrb[200].mxu0 }
 0x426   : > { %v16434_v35 = vadd.f32 %v11140_v53, %v16044_v63  ;;  %v11143_v2 = vadd.f32 %v11142_v62, %v11141_v8  ;;  %v10213_v63 = vld [vmem:[%s18549_s9 + $0x598] sm:$0xff]  ;;  %v11387_v34 = vpop.f32.mrb[201].mxu0 }
 0x427   : > { %4745 = vmatmul.mubr.bf16.gmra.mrb[12].mxu1 %v13135_v59  ;;  %18584 = vst [vmem:[#allocation35_spill] sm:$0xff] %v16442_v0  ;;  %v16448_v8 = vadd.f32 %v11387_v34, %v11386_v3  ;;  %v11389_v59 = vpop.f32.mrb[202].mxu0  ;;  %v10233_v21 = vcombine.high %v10213_v63, %v10213_v63 }
 0x428   : > { %18582 = vst [vmem:[#allocation33_spill] sm:$0xff] %v16434_v35  ;;  %v16439_v11 = vadd.f32 %v11143_v2, %v16049_v29  ;;  %11683 = vmatpush3.bf16.msra.mxu1 %v15060_v43  ;;  %4752 = vmatprep.mubr.bf16.mxu1 %v13140_v22  ;;  %v13138_v22 = vld [vmem:[%s18549_s9 + $0x578] ss:$16 sps:$4 sm:$0xff]   ;;  %v11390_v62 = vpop.f32.mrb[203].mxu0 }
 0x429   : > { %11684 = vmatprep.subr.bf16.mxu1 %v15186_v25  ;;  %18585 = vst [vmem:[#allocation36_spill] sm:$0xff] %v16448_v8  ;;  %v16456_v20 = vadd.f32 %v11390_v62, %v11389_v59  ;;  %v11392_v61 = vpop.f32.mrb[204].mxu0 }
 0x42a   : > { %18583 = vst [vmem:[#allocation34_spill] sm:$0xff] %v16439_v11  ;;  %v11144_v53 = vpop.f32.mrb[164].mxu1  ;;  %v11393_v34 = vpop.f32.mrb[205].mxu0 }
 0x42b   : > { %v11145_v2 = vpop.f32.mrb[165].mxu1  ;;  %18586 = vst [vmem:[#allocation37_spill] sm:$0xff] %v16456_v20  ;;  %v16462_v11 = vadd.f32 %v11393_v34, %v11392_v61  ;;  %v11395_v8 = vpop.f32.mrb[206].mxu0 }
 0x42c   : > { %v11146_v45 = vadd.f32 %v11145_v2, %v11144_v53  ;;  %11685 = vmatpush3.bf16.msra.mxu1 %v15071_v44  ;;  %v11147_v19 = vpop.f32.mrb[166].mxu1  ;;  %v11396_v53 = vpop.f32.mrb[207].mxu0 }
 0x42d   : > { %11686 = vmatprep.subr.bf16.mxu1 %v15199_v24  ;;  %v11148_v3 = vpop.f32.mrb[167].mxu1  ;;  %v11460_v59 = vpop.f32.mrb[208].mxu0 }
 0x42e   : > { %v16460_v29 = vadd.f32 %v11146_v45, %v16060_v42  ;;  %v11149_v35 = vadd.f32 %v11148_v3, %v11147_v19  ;;  %v11461_v62 = vpop.f32.mrb[209].mxu0 }
 0x42f   : > { %4753 = vmatmul.mubr.bf16.gmra.mrb[16].mxu1 %v13138_v22  ;;  %v16469_v0 = vadd.f32 %v11461_v62, %v11460_v59  ;;  %v11463_v42 = vpop.f32.mrb[210].mxu0  ;;  %v10232_v22 = vcombine.low %v10213_v63, %v10213_v63 }
 0x430   : > { %18587 = vst [vmem:[#allocation38_spill] sm:$0xff] %v16460_v29  ;;  %v16465_v2 = vadd.f32 %v11149_v35, %v16069_v31  ;;  %11687 = vmatpush3.bf16.msra.mxu1 %v15085_v55  ;;  %4760 = vmatprep.mubr.bf16.mxu1 %v10233_v21  ;;  %v11464_v45 = vpop.f32.mrb[211].mxu0  ;;  %v13151_v35 = vld [vmem:[%s18549_s9 + $0x5ac] ss:$16 sps:$4 sm:$0xff]  }
 0x431   : > { %11688 = vmatprep.subr.bf16.mxu1 %v15210_v40  ;;  %18589 = vst [vmem:[#allocation40_spill] sm:$0xff] %v16469_v0  ;;  %v16477_v21 = vadd.f32 %v11464_v45, %v11463_v42  ;;  %v11466_v3 = vpop.f32.mrb[212].mxu0 }
 0x432   : > { %18588 = vst [vmem:[#allocation39_spill] sm:$0xff] %v16465_v2  ;;  %v11150_v20 = vpop.f32.mrb[168].mxu1  ;;  %v11467_v53 = vpop.f32.mrb[213].mxu0 }
 0x433   : > { %v11151_v8 = vpop.f32.mrb[169].mxu1  ;;  %18590 = vst [vmem:[#allocation41_spill] sm:$0xff] %v16477_v21  ;;  %v16483_v62 = vadd.f32 %v11467_v53, %v11466_v3 }
 0x434   : > { %v11152_v19 = vadd.f32 %v11151_v8, %v11150_v20  ;;  %11689 = vmatpush3.bf16.msra.mxu1 %v15099_v51  ;;  %v11153_v31 = vpop.f32.mrb[170].mxu1  ;;  %v11469_v20 = vpop.f32.mrb[214].mxu0 }
 0x435   : > { %11766 = vmatprep.subr.bf16.mxu1 %v15113_v39  ;;  %v11154_v34 = vpop.f32.mrb[171].mxu1  ;;  %v11470_v8 = vpop.f32.mrb[215].mxu0 }
 0x436   : > { %v16481_v59 = vadd.f32 %v11152_v19, %v16083_v48  ;;  %v11155_v63 = vadd.f32 %v11154_v34, %v11153_v31  ;;  %v16488_v42 = vadd.f32 %v11470_v8, %v11469_v20  ;;  %v11472_v45 = vpop.f32.mrb[216].mxu0 }
 0x437   : > { %4761 = vmatmul.mubr.bf16.gmra.mrb[20].mxu1 %v10232_v22  ;;  %v11473_v29 = vpop.f32.mrb[217].mxu0  ;;  %v13149_v22 = vld [vmem:[%s18549_s9 + $0x5a8] ss:$16 sps:$4 sm:$0xff]  }
 0x438   : > { %18591 = vst [vmem:[#allocation42_spill] sm:$0xff] %v16481_v59  ;;  %v16486_v61 = vadd.f32 %v11155_v63, %v16097_v28  ;;  %4990 = vmatprep.mubr.bf16.mxu1 %v13151_v35  ;;  %v16490_v21 = vadd.f32 %v11473_v29, %v11472_v45  ;;  %v11475_v0 = vpop.f32.mrb[218].mxu0  ;;  %v13157_v35 = vld [vmem:[%s18549_s9 + $0x5cc] ss:$16 sps:$4 sm:$0xff]  }
 0x439   : > { %v11476_v31 = vpop.f32.mrb[219].mxu0 }
 0x43a   : > { %18592 = vst [vmem:[#allocation43_spill] sm:$0xff] %v16486_v61  ;;  %v11156_v2 = vpop.f32.mrb[172].mxu1  ;;  %v16500_v34 = vadd.f32 %v11476_v31, %v11475_v0  ;;  %v11478_v29 = vpop.f32.mrb[220].mxu0 }
 0x43b   : > { %v11157_v19 = vpop.f32.mrb[173].mxu1  ;;  %v11479_v63 = vpop.f32.mrb[221].mxu0 }
 0x43c   : > { %v11158_v28 = vadd.f32 %v11157_v19, %v11156_v2  ;;  %v11159_v3 = vpop.f32.mrb[174].mxu1  ;;  %v11481_v45 = vpop.f32.mrb[222].mxu0  ;;  %v16509_v2 = vadd.f32 %v11479_v63, %v11478_v29  ;;  %v13162_v63 = vld [vmem:[%s18549_s9 + $0x5ec] ss:$16 sps:$4 sm:$0xff]  }
 0x43d   : > { %v11160_v53 = vpop.f32.mrb[175].mxu1  ;;  %v11482_v48 = vpop.f32.mrb[223].mxu0 }
 0x43e   : > { %v16503_v20 = vadd.f32 %v11158_v28, %v16108_v16  ;;  %v11161_v8 = vadd.f32 %v11160_v53, %v11159_v3  ;;  %v16511_v0 = vadd.f32 %v11482_v48, %v11481_v45  ;;  %v11484_v19 = vpop.f32.mrb[224].mxu0 }
 0x43f   : > { %4991 = vmatmul.mubr.bf16.vlgmr.msra.gmra.mrb[24].mxu1 %v13149_v22  ;;  %v11485_v31 = vpop.f32.mrb[225].mxu0 }
 0x440   : > { %18593 = vst [vmem:[#allocation44_spill] sm:$0xff] %v16503_v20  ;;  %v16506_v59 = vadd.f32 %v11161_v8, %v16122_v41  ;;  %11767 = vmatpush3.bf16.msra.mxu1 %v14987_v18  ;;  %4998 = vmatprep.mubr.bf16.mxu1 %v13157_v35  ;;  %v16514_v28 = vadd.f32 %v11485_v31, %v11484_v19  ;;  %v11487_v3 = vpop.f32.mrb[226].mxu0  ;;  %v13155_v35 = vld [vmem:[%s18549_s9 + $0x5c8] ss:$16 sps:$4 sm:$0xff]  }
 0x441   : > { %11768 = vmatprep.subr.bf16.mxu1 %v15125_v14  ;;  %v11488_v29 = vpop.f32.mrb[227].mxu0 }
 0x442   : > { %18594 = vst [vmem:[#allocation45_spill] sm:$0xff] %v16506_v59  ;;  %v11162_v16 = vpop.f32.mrb[176].mxu1  ;;  %18595 = vst [vmem:[#allocation46_spill] sm:$0xff] %v16514_v28  ;;  %v11552_v8 = vpop.f32.mrb[228].mxu0 }
 0x443   : > { %v11163_v41 = vpop.f32.mrb[177].mxu1  ;;  %v11553_v19 = vpop.f32.mrb[229].mxu0 }
 0x444   : > { %v11164_v53 = vadd.f32 %v11163_v41, %v11162_v16  ;;  %11769 = vmatpush3.bf16.msra.mxu1 %v15007_v4  ;;  %v11165_v48 = vpop.f32.mrb[178].mxu1  ;;  %v16529_v3 = vadd.f32 %v11553_v19, %v11552_v8  ;;  %v11555_v22 = vpop.f32.mrb[230].mxu0  ;;  %v13168_v19 = vld [vmem:[%s18549_s9 + $0x60c] ss:$16 sps:$4 sm:$0xff]  }
 0x445   : > { %11770 = vmatprep.subr.bf16.mxu1 %v15138_v9  ;;  %v11166_v45 = vpop.f32.mrb[179].mxu1  ;;  %v11556_v16 = vpop.f32.mrb[231].mxu0 }
 0x446   : > { %v16527_v31 = vadd.f32 %v11164_v53, %v16131_v5  ;;  %18597 = vst [vmem:[#allocation48_spill] sm:$0xff] %v16529_v3  ;;  %v11558_v41 = vpop.f32.mrb[232].mxu0  ;;  %v16533_v20 = vadd.f32 %v11556_v16, %v11555_v22  ;;  %v13160_v53 = vld [vmem:[%s18549_s9 + $0x5e8] ss:$16 sps:$4 sm:$0xff]  }
 0x447   : > { %4999 = vmatmul.mubr.bf16.gmra.mrb[28].mxu1 %v13155_v35  ;;  %v11559_v29 = vpop.f32.mrb[233].mxu0 }
 0x448   : > { %18596 = vst [vmem:[#allocation47_spill] sm:$0xff] %v16527_v31  ;;  %11771 = vmatpush3.bf16.msra.mxu1 %v15027_v33  ;;  %5006 = vmatprep.mubr.bf16.mxu1 %v13162_v63  ;;  %18598 = vst [vmem:[#allocation49_spill] sm:$0xff] %v16533_v20  ;;  %v16535_v45 = vadd.f32 %v11559_v29, %v11558_v41  ;;  %v11561_v59 = vpop.f32.mrb[234].mxu0 }
 0x449   : > { %11772 = vmatprep.subr.bf16.mxu1 %v15154_v54  ;;  %v11562_v35 = vpop.f32.mrb[235].mxu0 }
 0x44a   : > { %v11230_v48 = vpop.f32.mrb[180].mxu1  ;;  %18599 = vst [vmem:[#allocation50_spill] sm:$0xff] %v16535_v45  ;;  %v16544_v31 = vadd.f32 %v11562_v35, %v11561_v59  ;;  %v11564_v22 = vpop.f32.mrb[236].mxu0 }
 0x44b   : > { %v11231_v5 = vpop.f32.mrb[181].mxu1  ;;  %v11565_v41 = vpop.f32.mrb[237].mxu0 }
 0x44c   : > { %v11232_v8 = vadd.f32 %v11231_v5, %v11230_v48  ;;  %11773 = vmatpush3.bf16.msra.mxu1 %v15047_v13  ;;  %v11233_v63 = vpop.f32.mrb[182].mxu1  ;;  %18600 = vst [vmem:[#allocation51_spill] sm:$0xff] %v16544_v31  ;;  %v16550_v45 = vadd.f32 %v11565_v41, %v11564_v22  ;;  %v11567_v48 = vpop.f32.mrb[238].mxu0 }
 0x44d   : > { %11774 = vmatprep.subr.bf16.mxu1 %v15170_v23  ;;  %v11234_v16 = vpop.f32.mrb[183].mxu1  ;;  %v11568_v5 = vpop.f32.mrb[239].mxu0 }
 0x44e   : > { %v16548_v29 = vadd.f32 %v11232_v8, %v16158_v49  ;;  %v11235_v61 = vadd.f32 %v11234_v16, %v11233_v63  ;;  %18601 = vst [vmem:[#allocation52_spill] sm:$0xff] %v16550_v45  ;;  %v11570_v59 = vpop.f32.mrb[240].mxu0  ;;  %v10251_v49 = vld [vmem:[%s18549_s9 + $0x628] sm:$0xff] }
 0x44f   : > { %5007 = vmatmul.mubr.bf16.gmra.mrb[32].mxu1 %v13160_v53  ;;  %v11571_v35 = vpop.f32.mrb[241].mxu0  ;;  %v16562_v53 = vadd.f32 %v11568_v5, %v11567_v48  ;;  %v10271_v31 = vcombine.high %v10251_v49, %v10251_v49 }
 0x450   : > { %v16553_v20 = vadd.f32 %v11235_v61, %v16169_v60  ;;  %11775 = vmatpush3.bf16.msra.mxu1 %v15060_v43  ;;  %5014 = vmatprep.mubr.bf16.mxu1 %v13168_v19  ;;  %v16564_v22 = vadd.f32 %v11571_v35, %v11570_v59  ;;  %v11573_v60 = vpop.f32.mrb[242].mxu0  ;;  %v13166_v19 = vld [vmem:[%s18549_s9 + $0x608] ss:$16 sps:$4 sm:$0xff]  }
 0x451   : > { %11776 = vmatprep.subr.bf16.mxu1 %v15186_v25  ;;  %18602 = vst [vmem:[#allocation53_spill] sm:$0xff] %v16562_v53  ;;  %v11574_v16 = vpop.f32.mrb[243].mxu0 }
 0x452   : > { %v11236_v8 = vpop.f32.mrb[184].mxu1  ;;  %18603 = vst [vmem:[#allocation54_spill] sm:$0xff] %v16564_v22  ;;  %v16570_v3 = vadd.f32 %v11574_v16, %v11573_v60  ;;  %v11576_v28 = vpop.f32.mrb[244].mxu0 }
 0x453   : > { %v11237_v61 = vpop.f32.mrb[185].mxu1  ;;  %v11577_v5 = vpop.f32.mrb[245].mxu0 }
 0x454   : > { %v11238_v41 = vadd.f32 %v11237_v61, %v11236_v8  ;;  %11777 = vmatpush3.bf16.msra.mxu1 %v15071_v44  ;;  %v11239_v45 = vpop.f32.mrb[186].mxu1  ;;  %18604 = vst [vmem:[#allocation55_spill] sm:$0xff] %v16570_v3  ;;  %v16576_v63 = vadd.f32 %v11577_v5, %v11576_v28  ;;  %v11579_v22 = vpop.f32.mrb[246].mxu0 }
 0x455   : > { %11778 = vmatprep.subr.bf16.mxu1 %v15199_v24  ;;  %v11240_v48 = vpop.f32.mrb[187].mxu1  ;;  %v11580_v8 = vpop.f32.mrb[247].mxu0 }
 0x456   : > { %v16574_v59 = vadd.f32 %v11238_v41, %v16177_v6  ;;  %v11241_v35 = vadd.f32 %v11240_v48, %v11239_v45  ;;  %18605 = vst [vmem:[#allocation56_spill] sm:$0xff] %v16576_v63  ;;  %v11644_v60 = vpop.f32.mrb[248].mxu0 }
 0x457   : > { %5015 = vmatmul.mubr.bf16.gmra.mrb[36].mxu1 %v13166_v19  ;;  %v11645_v16 = vpop.f32.mrb[249].mxu0  ;;  %v10270_v19 = vcombine.low %v10251_v49, %v10251_v49 }
 0x458   : > { %v16579_v61 = vadd.f32 %v11241_v35, %v16194_v56  ;;  %11779 = vmatpush3.bf16.msra.mxu1 %v15085_v55  ;;  %5022 = vmatprep.mubr.bf16.mxu1 %v10271_v31  ;;  %v16585_v45 = vadd.f32 %v11645_v16, %v11644_v60  ;;  %v11647_v28 = vpop.f32.mrb[250].mxu0  ;;  %v13185_v31 = vld [vmem:[%s18549_s9 + $0x63c] ss:$16 sps:$4 sm:$0xff]  }
 0x459   : > { %11780 = vmatprep.subr.bf16.mxu1 %v15210_v40  ;;  %v11648_v41 = vpop.f32.mrb[251].mxu0 }
 0x45a   : > { %v11242_v3 = vpop.f32.mrb[188].mxu1  ;;  %18606 = vst [vmem:[#allocation57_spill] sm:$0xff] %v16585_v45  ;;  %v16591_v5 = vadd.f32 %v11648_v41, %v11647_v28  ;;  %v11650_v35 = vpop.f32.mrb[252].mxu0 }
 0x45b   : > { %v11243_v22 = vpop.f32.mrb[189].mxu1  ;;  %v11651_v60 = vpop.f32.mrb[253].mxu0 }
 0x45c   : > { %v11244_v48 = vadd.f32 %v11243_v22, %v11242_v3  ;;  %11781 = vmatpush3.bf16.msra.mxu1 %v15099_v51  ;;  %v11245_v56 = vpop.f32.mrb[190].mxu1  ;;  %18607 = vst [vmem:[#allocation58_spill] sm:$0xff] %v16591_v5  ;;  %v16597_v6 = vadd.f32 %v11651_v60, %v11650_v35  ;;  %v11653_v3 = vpop.f32.mrb[254].mxu0 }
 0x45d   : > { %11858 = vmatprep.subr.bf16.mxu1 %v15113_v39  ;;  %v11246_v8 = vpop.f32.mrb[191].mxu1  ;;  %v11654_v22 = vpop.f32.mrb[255].mxu0 }
 0x45e   : > { %v16595_v16 = vadd.f32 %v11244_v48, %v16207_v27  ;;  %v11247_v49 = vadd.f32 %v11246_v8, %v11245_v56  ;;  %18608 = vst [vmem:[#allocation59_spill] sm:$0xff] %v16597_v6  ;;  %v11656_v28 = vpop.f32.mrb[0].mxu0  ;;  %v16604_v53 = vadd.f32 %v11654_v22, %v11653_v3 }
 0x45f   : > { %5023 = vmatmul.mubr.bf16.gmra.mrb[40].mxu1 %v10270_v19  ;;  %v11657_v41 = vpop.f32.mrb[1].mxu0  ;;  %v13183_v19 = vld [vmem:[%s18549_s9 + $0x638] ss:$16 sps:$4 sm:$0xff]  }
 0x460   : > { %v16600_v45 = vadd.f32 %v11247_v49, %v16221_v7  ;;  %5252 = vmatprep.mubr.bf16.mxu1 %v13185_v31  ;;  %18609 = vst [vmem:[#allocation60_spill] sm:$0xff] %v16604_v53  ;;  %v16606_v27 = vadd.f32 %v11657_v41, %v11656_v28  ;;  %v11659_v48 = vpop.f32.mrb[2].mxu0  ;;  %v13195_v31 = vld [vmem:[%s18549_s9 + $0x65c] ss:$16 sps:$4 sm:$0xff]  }
 0x461   : > { %v11660_v35 = vpop.f32.mrb[3].mxu0 }
 0x462   : > { %v11248_v5 = vpop.f32.mrb[192].mxu1  ;;  %18610 = vst [vmem:[#allocation61_spill] sm:$0xff] %v16606_v27  ;;  %v16614_v60 = vadd.f32 %v11660_v35, %v11659_v48  ;;  %v11662_v49 = vpop.f32.mrb[4].mxu0 }
 0x463   : > { %v11249_v56 = vpop.f32.mrb[193].mxu1  ;;  %v11663_v22 = vpop.f32.mrb[5].mxu0 }
 0x464   : > { %v11250_v7 = vadd.f32 %v11249_v56, %v11248_v5  ;;  %v11251_v8 = vpop.f32.mrb[194].mxu1  ;;  %18611 = vst [vmem:[#allocation62_spill] sm:$0xff] %v16614_v60  ;;  %v11665_v63 = vpop.f32.mrb[6].mxu0  ;;  %v16623_v5 = vadd.f32 %v11663_v22, %v11662_v49 }
 0x465   : > { %v11252_v3 = vpop.f32.mrb[195].mxu1  ;;  %v11666_v27 = vpop.f32.mrb[7].mxu0 }
 0x466   : > { %v16617_v28 = vadd.f32 %v11250_v7, %v16237_v36  ;;  %v11253_v41 = vadd.f32 %v11252_v3, %v11251_v8  ;;  %18612 = vst [vmem:[#allocation63_spill] sm:$0xff] %v16623_v5  ;;  %v16625_v48 = vadd.f32 %v11666_v27, %v11665_v63  ;;  %v11668_v56 = vpop.f32.mrb[8].mxu0  ;;  %v13204_v27 = vld [vmem:[%s18549_s9 + $0x67c] ss:$16 sps:$4 sm:$0xff]  }
 0x467   : > { %5253 = vmatmul.mubr.bf16.vlgmr.msra.gmra.mrb[44].mxu1 %v13183_v19  ;;  %v11669_v35 = vpop.f32.mrb[9].mxu0 }
 0x468   : > { %v16620_v53 = vadd.f32 %v11253_v41, %v16254_v57  ;;  %11859 = vmatpush3.bf16.msra.mxu1 %v14987_v18  ;;  %5260 = vmatprep.mubr.bf16.mxu1 %v13195_v31  ;;  %18613 = vst [vmem:[#allocation64_spill] sm:$0xff] %v16625_v48  ;;  %v16630_v19 = vadd.f32 %v11669_v35, %v11668_v56  ;;  %v11671_v8 = vpop.f32.mrb[10].mxu0  ;;  %v13193_v31 = vld [vmem:[%s18549_s9 + $0x658] ss:$16 sps:$4 sm:$0xff]  }
 0x469   : > { %11860 = vmatprep.subr.bf16.mxu1 %v15125_v14  ;;  %v11672_v49 = vpop.f32.mrb[11].mxu0 }
 0x46a   : > { %v11254_v36 = vpop.f32.mrb[196].mxu1  ;;  %18614 = vst [vmem:[#allocation65_spill] sm:$0xff] %v16630_v19  ;;  %v11736_v22 = vpop.f32.mrb[12].mxu0 }
 0x46b   : > { %v11255_v57 = vpop.f32.mrb[197].mxu1  ;;  %v11737_v56 = vpop.f32.mrb[13].mxu0 }
 0x46c   : > { %v11256_v3 = vadd.f32 %v11255_v57, %v11254_v36  ;;  %11861 = vmatpush3.bf16.msra.mxu1 %v15007_v4  ;;  %v11257_v63 = vpop.f32.mrb[198].mxu1  ;;  %v16643_v8 = vadd.f32 %v11737_v56, %v11736_v22  ;;  %v11739_v7 = vpop.f32.mrb[14].mxu0 }
 0x46d   : > { %11862 = vmatprep.subr.bf16.mxu1 %v15138_v9  ;;  %v11258_v41 = vpop.f32.mrb[199].mxu1  ;;  %v11740_v36 = vpop.f32.mrb[15].mxu0 }
 0x46e   : > { %v16641_v35 = vadd.f32 %v11256_v3, %v16271_v58  ;;  %18615 = vst [vmem:[#allocation66_spill] sm:$0xff] %v16643_v8  ;;  %v16646_v57 = vadd.f32 %v11740_v36, %v11739_v7  ;;  %v11742_v49 = vpop.f32.mrb[16].mxu0  ;;  %v13202_v3 = vld [vmem:[%s18549_s9 + $0x678] ss:$16 sps:$4 sm:$0xff]  }
 0x46f   : > { %5261 = vmatmul.mubr.bf16.gmra.mrb[48].mxu1 %v13193_v31  ;;  %v11743_v63 = vpop.f32.mrb[17].mxu0 }
 0x470   : > { %11863 = vmatpush3.bf16.msra.mxu1 %v15027_v33  ;;  %5268 = vmatprep.mubr.bf16.mxu1 %v13204_v27  ;;  %18616 = vst [vmem:[#allocation67_spill] sm:$0xff] %v16646_v57  ;;  %v16649_v41 = vadd.f32 %v11743_v63, %v11742_v49  ;;  %v11745_v48 = vpop.f32.mrb[18].mxu0  ;;  %v13209_v49 = vld [vmem:[%s18549_s9 + $0x69c] ss:$16 sps:$4 sm:$0xff]  }
 0x471   : > { %11864 = vmatprep.subr.bf16.mxu1 %v15154_v54  ;;  %v11746_v31 = vpop.f32.mrb[19].mxu0 }
 0x472   : > { %v11322_v19 = vpop.f32.mrb[200].mxu1  ;;  %18617 = vst [vmem:[#allocation68_spill] sm:$0xff] %v16649_v41  ;;  %v16655_v7 = vadd.f32 %v11746_v31, %v11745_v48  ;;  %v11748_v56 = vpop.f32.mrb[20].mxu0  ;;  %v18621_v48 = vpack.c.bf16 %v16076_v32, %v16073_v10  ;;  %v10289_v32 = vld [vmem:[%s18549_s9 + $0x6b8] sm:$0xff] }
 0x473   : > { %v11323_v58 = vpop.f32.mrb[201].mxu1  ;;  %v11749_v63 = vpop.f32.mrb[21].mxu0 }
 0x474   : > { %v11324_v22 = vadd.f32 %v11323_v58, %v11322_v19  ;;  %11865 = vmatpush3.bf16.msra.mxu1 %v15047_v13  ;;  %v11325_v27 = vpop.f32.mrb[202].mxu1  ;;  %18618 = vst [vmem:[#allocation69_spill] sm:$0xff] %v16655_v7  ;;  %v16664_v58 = vadd.f32 %v11749_v63, %v11748_v56  ;;  %v11751_v8 = vpop.f32.mrb[22].mxu0 }
 0x475   : > { %11866 = vmatprep.subr.bf16.mxu1 %v15170_v23  ;;  %v11326_v36 = vpop.f32.mrb[203].mxu1  ;;  %v11752_v7 = vpop.f32.mrb[23].mxu0 }
 0x476   : > { %v16662_v41 = vadd.f32 %v11324_v22, %v16300_v38  ;;  %v11327_v57 = vadd.f32 %v11326_v36, %v11325_v27  ;;  %v6366_v19 = vpop.permute.xlu0 %6365  ;;  %18620 = vst [vmem:[#allocation71_spill] sm:$0xff] %v16664_v58  ;;  %v16674_v38 = vadd.f32 %v11752_v7, %v11751_v8  ;;  %v11754_v22 = vpop.f32.mrb[24].mxu0  ;;  %v18626_v36 = vld [vmem:[#allocation3_spill] sm:$0xff] }
 0x477   : > { %5269 = vmatmul.mubr.bf16.gmra.mrb[52].mxu1 %v13202_v3  ;;  %v6488_v31 = vsel %vm6465_vm0, %v18621_v48, %v6366_v19  ;;  %v11755_v27 = vpop.f32.mrb[25].mxu0 }
 0x478   : > { %18619 = vst [vmem:[#allocation70_spill] sm:$0xff] %v16662_v41  ;;  %v16671_v5 = vadd.f32 %v11327_v57, %v16308_v37  ;;  %11867 = vmatpush3.bf16.msra.mxu1 %v15060_v43  ;;  %7177 = vmatprep.mubr.bf16.mxu0 %v6488_v31  ;;  %18623 = vst [vmem:[#allocation73_spill] sm:$0xff] %v16674_v38  ;;  %v16680_v10 = vadd.f32 %v11755_v27, %v11754_v22  ;;  %v18625_v57 = vld [vmem:[#allocation4_spill] sm:$0xff]  ;;  %v11757_v19 = vpop.f32.mrb[26].mxu0 }
 0x479   : > { %11868 = vmatprep.subr.bf16.mxu1 %v15186_v25  ;;  %5276 = vmatprep.mubr.bf16.mxu1 %v13209_v49  ;;  %v18627_v8 = vpack.c.bf16 %v18625_v57, %v18626_v36  ;;  %v13207_v49 = vld [vmem:[%s18549_s9 + $0x698] ss:$16 sps:$4 sm:$0xff]   ;;  %v11758_v22 = vpop.f32.mrb[27].mxu0  ;;  %v10309_v37 = vcombine.high %v10289_v32, %v10289_v32 }
 0x47a   : > { %18622 = vst [vmem:[#allocation72_spill] sm:$0xff] %v16671_v5  ;;  %v11328_v3 = vpop.f32.mrb[204].mxu1  ;;  %v6351_v56 = vpop.permute.xlu0 %6350  ;;  %18624 = vst [vmem:[#allocation74_spill] sm:$0xff] %v16680_v10  ;;  %v16693_v10 = vadd.f32 %v11758_v22, %v11757_v19 }
 0x47b   : > { %v6468_v7 = vsel %vm6465_vm0, %v18627_v8, %v6351_v56  ;;  %v11329_v63 = vpop.f32.mrb[205].mxu1  ;;  %v11760_v57 = vpop.f32.mrb[28].mxu0  ;;  %v18628_v56 = vld [vmem:[#allocation26_spill] sm:$0xff] }
 0x47c   : > { %v11330_v48 = vadd.f32 %v11329_v63, %v11328_v3  ;;  %11869 = vmatpush3.bf16.msra.mxu1 %v15071_v44  ;;  %v11331_v31 = vpop.f32.mrb[206].mxu1  ;;  %7178 = vmatmul.mubr.bf16.vlgmr.msra.gmra.mrb[112].mxu0 %v6468_v7  ;;  %v11761_v58 = vpop.f32.mrb[29].mxu0  ;;  %v18629_v3 = vld [vmem:[#allocation20_spill] sm:$0xff]  ;;  %v18630_v63 = vld [vmem:[#allocation15_spill] sm:$0xff] }
 0x47d   : > { %11870 = vmatprep.subr.bf16.mxu1 %v15199_v24  ;;  %v11332_v27 = vpop.f32.mrb[207].mxu1  ;;  %v18631_v60 = vpack.c.bf16 %v18629_v3, %v18630_v63  ;;  %v16702_v41 = vadd.f32 %v11761_v58, %v11760_v57  ;;  %v11763_v5 = vpop.f32.mrb[30].mxu0  ;;  %v10308_v58 = vcombine.low %v10289_v32, %v10289_v32  ;;  %v13214_v57 = vld [vmem:[%s18549_s9 + $0x6cc] ss:$16 sps:$4 sm:$0xff]  }
 0x47e   : > { %v16696_v36 = vadd.f32 %v11330_v48, %v18628_v56  ;;  %v11333_v8 = vadd.f32 %v11332_v27, %v11331_v31  ;;  %v6368_v38 = vpop.permute.xlu0 %6367  ;;  %v11764_v19 = vpop.f32.mrb[31].mxu0 }
 0x47f   : > { %5277 = vmatmul.mubr.bf16.gmra.mrb[56].mxu1 %v13207_v49  ;;  %v6492_v7 = vsel %vm6465_vm0, %v18631_v60, %v6368_v38  ;;  %v11828_v48 = vpop.f32.mrb[32].mxu0 }
 0x480   : > { %v16705_v6 = vadd.f32 %v11333_v8, %v16340_v12  ;;  %11871 = vmatpush3.bf16.msra.mxu1 %v15085_v55  ;;  %7185 = vmatprep.mubr.bf16.mxu0 %v6492_v7  ;;  %v11829_v31 = vpop.f32.mrb[33].mxu0 }
 0x481   : > { %11872 = vmatprep.subr.bf16.mxu1 %v15210_v40  ;;  %5284 = vmatprep.mubr.bf16.mxu1 %v10309_v37  ;;  %v16711_v38 = vadd.f32 %v11829_v31, %v11828_v48  ;;  %v11831_v5 = vpop.f32.mrb[34].mxu0 }
 0x482   : > { %v11334_v49 = vpop.f32.mrb[208].mxu1  ;;  %v11832_v37 = vpop.f32.mrb[35].mxu0 }
 0x483   : > { %v11335_v60 = vpop.f32.mrb[209].mxu1  ;;  %18632 = vst [vmem:[#allocation4_spill] sm:$0xff] %v16711_v38  ;;  %v16718_v8 = vadd.f32 %v11832_v37, %v11831_v5  ;;  %v11834_v3 = vpop.f32.mrb[36].mxu0 }
 0x484   : > { %v11336_v12 = vadd.f32 %v11335_v60, %v11334_v49  ;;  %11873 = vmatpush3.bf16.msra.mxu1 %v15099_v51  ;;  %v11337_v27 = vpop.f32.mrb[210].mxu1  ;;  %v11835_v7 = vpop.f32.mrb[37].mxu0  ;;  %v18634_v49 = vld [vmem:[#allocation27_spill] sm:$0xff] }
 0x485   : > { %11950 = vmatprep.subr.bf16.mxu1 %v15113_v39  ;;  %v11338_v56 = vpop.f32.mrb[211].mxu1  ;;  %v16723_v19 = vadd.f32 %v11835_v7, %v11834_v3  ;;  %v11837_v48 = vpop.f32.mrb[38].mxu0 }
 0x486   : > { %v16721_v32 = vadd.f32 %v11336_v12, %v16350_v30  ;;  %v11339_v63 = vadd.f32 %v11338_v56, %v11337_v27  ;;  %v11838_v60 = vpop.f32.mrb[39].mxu0 }
 0x487   : > { %5285 = vmatmul.mubr.bf16.gmra.mrb[60].mxu1 %v10308_v58  ;;  %18633 = vst [vmem:[#allocation3_spill] sm:$0xff] %v16723_v19  ;;  %v16728_v22 = vadd.f32 %v11838_v60, %v11837_v48  ;;  %v11840_v38 = vpop.f32.mrb[40].mxu0  ;;  %v13212_v58 = vld [vmem:[%s18549_s9 + $0x6c8] ss:$16 sps:$4 sm:$0xff]  }
 0x488   : > { %v16726_v31 = vadd.f32 %v11339_v63, %v18634_v49  ;;  %5514 = vmatprep.mubr.bf16.mxu1 %v13214_v57  ;;  %v11841_v37 = vpop.f32.mrb[41].mxu0  ;;  %v13217_v57 = vld [vmem:[%s18549_s9 + $0x6ec] ss:$16 sps:$4 sm:$0xff]  }
 0x489   : > { %18635 = vst [vmem:[#allocation26_spill] sm:$0xff] %v16728_v22  ;;  %v16735_v27 = vadd.f32 %v11841_v37, %v11840_v38  ;;  %v11843_v56 = vpop.f32.mrb[42].mxu0 }
 0x48a   : > { %v11340_v5 = vpop.f32.mrb[212].mxu1  ;;  %v11844_v7 = vpop.f32.mrb[43].mxu0 }
 0x48b   : > { %v11341_v12 = vpop.f32.mrb[213].mxu1  ;;  %18636 = vst [vmem:[#allocation20_spill] sm:$0xff] %v16735_v27  ;;  %v16740_v49 = vadd.f32 %v11844_v7, %v11843_v56  ;;  %v11846_v60 = vpop.f32.mrb[44].mxu0 }
 0x48c   : > { %v11342_v3 = vadd.f32 %v11341_v12, %v11340_v5  ;;  %v11343_v63 = vpop.f32.mrb[214].mxu1  ;;  %v11847_v19 = vpop.f32.mrb[45].mxu0 }
 0x48d   : > { %v11344_v48 = vpop.f32.mrb[215].mxu1  ;;  %18637 = vst [vmem:[#allocation15_spill] sm:$0xff] %v16740_v49  ;;  %v11849_v38 = vpop.f32.mrb[46].mxu0  ;;  %v16749_v5 = vadd.f32 %v11847_v19, %v11846_v60  ;;  %v13220_v60 = vld [vmem:[%s18549_s9 + $0x70c] ss:$16 sps:$4 sm:$0xff]  }
 0x48e   : > { %v16743_v30 = vadd.f32 %v11342_v3, %v16368_v1  ;;  %v11345_v22 = vadd.f32 %v11344_v48, %v11343_v63  ;;  %v11850_v12 = vpop.f32.mrb[47].mxu0 }
 0x48f   : > { %5515 = vmatmul.mubr.bf16.vlgmr.msra.gmra.mrb[64].mxu1 %v13212_v58  ;;  %18638 = vst [vmem:[#allocation27_spill] sm:$0xff] %v16749_v5  ;;  %v16752_v56 = vadd.f32 %v11850_v12, %v11849_v38  ;;  %v11852_v7 = vpop.f32.mrb[48].mxu0 }
 0x490   : > { %v16746_v37 = vadd.f32 %v11345_v22, %v16375_v26  ;;  %11951 = vmatpush3.bf16.msra.mxu1 %v14987_v18  ;;  %5522 = vmatprep.mubr.bf16.mxu1 %v13217_v57  ;;  %v11853_v3 = vpop.f32.mrb[49].mxu0  ;;  %v13215_v26 = vld [vmem:[%s18549_s9 + $0x6e8] ss:$16 sps:$4 sm:$0xff]  }
 0x491   : > { %11952 = vmatprep.subr.bf16.mxu1 %v15125_v14  ;;  %18639 = vst [vmem:[#allocation75_spill] sm:$0xff] %v16752_v56  ;;  %v16759_v22 = vadd.f32 %v11853_v3, %v11852_v7  ;;  %v11855_v19 = vpop.f32.mrb[50].mxu0 }
 0x492   : > { %v11346_v1 = vpop.f32.mrb[216].mxu1  ;;  %v11856_v38 = vpop.f32.mrb[51].mxu0 }
 0x493   : > { %v11347_v63 = vpop.f32.mrb[217].mxu1  ;;  %18640 = vst [vmem:[#allocation76_spill] sm:$0xff] %v16759_v22  ;;  %v11920_v58 = vpop.f32.mrb[52].mxu0 }
 0x494   : > { %v11348_v57 = vadd.f32 %v11347_v63, %v11346_v1  ;;  %11953 = vmatpush3.bf16.msra.mxu1 %v15007_v4  ;;  %v11349_v48 = vpop.f32.mrb[218].mxu1  ;;  %v11921_v5 = vpop.f32.mrb[53].mxu0 }
 0x495   : > { %11954 = vmatprep.subr.bf16.mxu1 %v15138_v9  ;;  %v11350_v12 = vpop.f32.mrb[219].mxu1  ;;  %v16769_v7 = vadd.f32 %v11921_v5, %v11920_v58  ;;  %v11923_v1 = vpop.f32.mrb[54].mxu0 }
 0x496   : > { %v16767_v56 = vadd.f32 %v11348_v57, %v16384_v47  ;;  %v11924_v3 = vpop.f32.mrb[55].mxu0  ;;  %v13218_v47 = vld [vmem:[%s18549_s9 + $0x708] ss:$16 sps:$4 sm:$0xff]  }
 0x497   : > { %5523 = vmatmul.mubr.bf16.gmra.mrb[68].mxu1 %v13215_v26  ;;  %18641 = vst [vmem:[#allocation77_spill] sm:$0xff] %v16769_v7  ;;  %v11926_v63 = vpop.f32.mrb[56].mxu0  ;;  %v16773_v48 = vadd.f32 %v11924_v3, %v11923_v1 }
 0x498   : > { %11955 = vmatpush3.bf16.msra.mxu1 %v15027_v33  ;;  %5530 = vmatprep.mubr.bf16.mxu1 %v13220_v60  ;;  %v11927_v38 = vpop.f32.mrb[57].mxu0  ;;  %v13223_v60 = vld [vmem:[%s18549_s9 + $0x72c] ss:$16 sps:$4 sm:$0xff]  }
 0x499   : > { %11956 = vmatprep.subr.bf16.mxu1 %v15154_v54  ;;  %18642 = vst [vmem:[#allocation78_spill] sm:$0xff] %v16773_v48  ;;  %v16778_v26 = vadd.f32 %v11927_v38, %v11926_v63  ;;  %v11929_v5 = vpop.f32.mrb[58].mxu0 }
 0x49a   : > { %v11414_v19 = vpop.f32.mrb[220].mxu1  ;;  %v11930_v7 = vpop.f32.mrb[59].mxu0 }
 0x49b   : > { %v11415_v12 = vpop.f32.mrb[221].mxu1  ;;  %18643 = vst [vmem:[#allocation79_spill] sm:$0xff] %v16778_v26  ;;  %v16785_v3 = vadd.f32 %v11930_v7, %v11929_v5  ;;  %v11932_v48 = vpop.f32.mrb[60].mxu0 }
 0x49c   : > { %v11416_v58 = vadd.f32 %v11415_v12, %v11414_v19  ;;  %11957 = vmatpush3.bf16.msra.mxu1 %v15047_v13  ;;  %v11417_v57 = vpop.f32.mrb[222].mxu1  ;;  %v11933_v38 = vpop.f32.mrb[61].mxu0 }
 0x49d   : > { %11958 = vmatprep.subr.bf16.mxu1 %v15170_v23  ;;  %v11418_v1 = vpop.f32.mrb[223].mxu1  ;;  %v16788_v19 = vadd.f32 %v11933_v38, %v11932_v48  ;;  %v11935_v12 = vpop.f32.mrb[62].mxu0 }
 0x49e   : > { %v11419_v22 = vadd.f32 %v11418_v1, %v11417_v57  ;;  %v4207_v63 = vadd.f32 %v11416_v58, %v16402_v15  ;;  %v11936_v49 = vpop.f32.mrb[63].mxu0  ;;  %v10327_v15 = vld [vmem:[%s18549_s9 + $0x748] sm:$0xff] }
 0x49f   : > { %5531 = vmatmul.mubr.bf16.gmra.mrb[72].mxu1 %v13218_v47  ;;  %18644 = vst [vmem:[#allocation80_spill] sm:$0xff] %v16788_v19  ;;  %v11938_v27 = vpop.f32.mrb[64].mxu0  ;;  %v16796_v58 = vadd.f32 %v11936_v49, %v11935_v12  ;;  %v13221_v57 = vld [vmem:[%s18549_s9 + $0x728] ss:$16 sps:$4 sm:$0xff]  }
 0x4a0   : > { %11959 = vmatpush3.bf16.msra.mxu1 %v15060_v43  ;;  %v4210_v26 = vadd.f32 %v11419_v22, %v16413_v46  ;;  %5538 = vmatprep.mubr.bf16.mxu1 %v13223_v60  ;;  %v11939_v48 = vpop.f32.mrb[65].mxu0 }
 0x4a1   : > { %11960 = vmatprep.subr.bf16.mxu1 %v15186_v25  ;;  %18645 = vst [vmem:[#allocation81_spill] sm:$0xff] %v16796_v58  ;;  %v16801_v46 = vadd.f32 %v11939_v48, %v11938_v27  ;;  %v11941_v22 = vpop.f32.mrb[66].mxu0 }
 0x4a2   : > { %v11420_v7 = vpop.f32.mrb[224].mxu1  ;;  %v4244_v5 = vpack.c.bf16 %v4210_v26, %v4207_v63  ;;  %v11942_v26 = vpop.f32.mrb[67].mxu0  ;;  %v10347_v63 = vcombine.high %v10327_v15, %v10327_v15 }
 0x4a3   : > { %v11421_v47 = vpop.f32.mrb[225].mxu1  ;;  %v16806_v38 = vadd.f32 %v11942_v26, %v11941_v22  ;;  %v11944_v12 = vpop.f32.mrb[68].mxu0 }
 0x4a4   : > { %v11422_v60 = vadd.f32 %v11421_v47, %v11420_v7  ;;  %11961 = vmatpush3.bf16.msra.mxu1 %v15071_v44  ;;  %v11423_v1 = vpop.f32.mrb[226].mxu1  ;;  %6395 = vrot.lane.b32.xlu1 %v4244_v5, %s18415_s6  ;;  %v11945_v27 = vpop.f32.mrb[69].mxu0  ;;  %v18646_v5 = vpack.c.bf16 %v16553_v20, %v16548_v29  ;;  %v18647_v20 = vld [vmem:[#allocation5_spill] sm:$0xff]  ;;  %v18648_v29 = vld [vmem:[#allocation14_spill] sm:$0xff] }
 0x4a5   : > { %11962 = vmatprep.subr.bf16.mxu1 %v15199_v24  ;;  %v11424_v49 = vpop.f32.mrb[227].mxu1  ;;  %v16809_v48 = vadd.f32 %v11945_v27, %v11944_v12  ;;  %v11947_v7 = vpop.f32.mrb[70].mxu0 }
 0x4a6   : > { %v4215_v58 = vadd.f32 %v11422_v60, %v16421_v50  ;;  %v11425_v19 = vadd.f32 %v11424_v49, %v11423_v1  ;;  %v11948_v22 = vpop.f32.mrb[71].mxu0  ;;  %v10346_v49 = vcombine.low %v10327_v15, %v10327_v15  ;;  %v18649_v7 = vpack.c.bf16 %v18647_v20, %v18648_v29  ;;  %v18651_v20 = vld [vmem:[#allocation35_spill] sm:$0xff] }
 0x4a7   : > { %5539 = vmatmul.mubr.bf16.gmra.mrb[76].mxu1 %v13221_v57  ;;  %v12012_v50 = vpop.f32.mrb[72].mxu0 }
 0x4a8   : > { %v4218_v47 = vadd.f32 %v11425_v19, %v16426_v52  ;;  %11963 = vmatpush3.bf16.msra.mxu1 %v15085_v55  ;;  %6380 = vrot.lane.b32.xlu1 %v18646_v5, %s18415_s6  ;;  %v12013_v57 = vpop.f32.mrb[73].mxu0 }
 0x4a9   : > { %11964 = vmatprep.subr.bf16.mxu1 %v15210_v40  ;;  %5546 = vmatprep.mubr.bf16.mxu1 %v10347_v63  ;;  %v16818_v12 = vadd.f32 %v12013_v57, %v12012_v50  ;;  %v12015_v52 = vpop.f32.mrb[74].mxu0  ;;  %v13228_v63 = vld [vmem:[%s18549_s9 + $0x75c] ss:$16 sps:$4 sm:$0xff]  }
 0x4aa   : > { %v11426_v60 = vpop.f32.mrb[228].mxu1  ;;  %v4245_v1 = vpack.c.bf16 %v4218_v47, %v4215_v58  ;;  %v12016_v58 = vpop.f32.mrb[75].mxu0 }
 0x4ab   : > { %v11427_v26 = vpop.f32.mrb[229].mxu1  ;;  %v16830_v47 = vadd.f32 %v12016_v58, %v12015_v52  ;;  %v12018_v5 = vpop.f32.mrb[76].mxu0  ;;  %v18653_v52 = vld [vmem:[#allocation29_spill] sm:$0xff]  ;;  %v18654_v58 = vld [vmem:[#allocation28_spill] sm:$0xff] }
 0x4ac   : > { %v11428_v19 = vadd.f32 %v11427_v26, %v11426_v60  ;;  %11965 = vmatpush3.bf16.msra.mxu1 %v15099_v51  ;;  %v11429_v27 = vpop.f32.mrb[230].mxu1  ;;  %6352 = vrot.lane.b32.xlu1 %v18649_v7, %s18415_s6  ;;  %v12019_v60 = vpop.f32.mrb[77].mxu0  ;;  %v18652_v7 = vpack.c.bf16 %v16579_v61, %v16574_v59 }
 0x4ad   : > { %12042 = vmatprep.subr.bf16.mxu1 %v15113_v39  ;;  %6397 = vrot.lane.b32.xlu0 %v4245_v1, %s18415_s6  ;;  %v11430_v15 = vpop.f32.mrb[231].mxu1  ;;  %18650 = vst [vmem:[#allocation5_spill] sm:$0xff] %v16830_v47  ;;  %v16833_v57 = vadd.f32 %v12019_v60, %v12018_v5  ;;  %v12021_v26 = vpop.f32.mrb[78].mxu0  ;;  %v18655_v47 = vpack.c.bf16 %v18653_v52, %v18654_v58 }
 0x4ae   : > { %v4223_v22 = vadd.f32 %v11428_v19, %v16436_v17  ;;  %v11431_v50 = vadd.f32 %v11430_v15, %v11429_v27  ;;  %v12022_v1 = vpop.f32.mrb[79].mxu0 }
 0x4af   : > { %5547 = vmatmul.mubr.bf16.gmra.mrb[80].mxu1 %v10346_v49  ;;  %v12024_v17 = vpop.f32.mrb[80].mxu0  ;;  %v16844_v27 = vadd.f32 %v12022_v1, %v12021_v26  ;;  %v18660_v1 = vld [vmem:[#allocation36_spill] sm:$0xff] }
 0x4b0   : > { %v4226_v29 = vadd.f32 %v11431_v50, %v18651_v20  ;;  %6382 = vrot.lane.b32.xlu1 %v18652_v7, %s18415_s6  ;;  %5776 = vmatprep.mubr.bf16.mxu1 %v13228_v63  ;;  %v12025_v15 = vpop.f32.mrb[81].mxu0  ;;  %v13226_v50 = vld [vmem:[%s18549_s9 + $0x758] ss:$16 sps:$4 sm:$0xff]  }
 0x4b1   : > { %6369 = vrot.lane.b32.xlu0 %v18655_v47, %s18415_s6  ;;  %18656 = vst [vmem:[#allocation14_spill] sm:$0xff] %v16844_v27  ;;  %v16849_v59 = vadd.f32 %v12025_v15, %v12024_v17  ;;  %v12027_v61 = vpop.f32.mrb[82].mxu0  ;;  %v18657_v20 = vld [vmem:[#allocation16_spill] sm:$0xff]  ;;  %v18658_v7 = vld [vmem:[#allocation6_spill] sm:$0xff] }
 0x4b2   : > { %v11432_v19 = vpop.f32.mrb[232].mxu1  ;;  %v4246_v49 = vpack.c.bf16 %v4226_v29, %v4223_v22  ;;  %v18659_v47 = vpack.c.bf16 %v18657_v20, %v18658_v7  ;;  %v12028_v52 = vpop.f32.mrb[83].mxu0  ;;  %v13231_v17 = vld [vmem:[%s18549_s9 + $0x77c] ss:$16 sps:$4 sm:$0xff]  }
 0x4b3   : > { %v11433_v5 = vpop.f32.mrb[233].mxu1  ;;  %v16856_v26 = vadd.f32 %v12028_v52, %v12027_v61  ;;  %v12030_v29 = vpop.f32.mrb[84].mxu0  ;;  %v18664_v7 = vld [vmem:[#allocation30_spill] sm:$0xff] }
 0x4b4   : > { %v11434_v63 = vadd.f32 %v11433_v5, %v11432_v19  ;;  %v11435_v60 = vpop.f32.mrb[234].mxu1  ;;  %6354 = vrot.lane.b32.xlu1 %v18659_v47, %s18415_s6  ;;  %v12031_v19 = vpop.f32.mrb[85].mxu0  ;;  %v18661_v5 = vld [vmem:[#allocation37_spill] sm:$0xff] }
 0x4b5   : > { %6399 = vrot.lane.b32.xlu0 %v4246_v49, %s18415_s6  ;;  %v11436_v22 = vpop.f32.mrb[235].mxu1  ;;  %v12033_v15 = vpop.f32.mrb[86].mxu0  ;;  %v18662_v49 = vpack.c.bf16 %v16600_v45, %v16595_v16  ;;  %v16868_v61 = vadd.f32 %v12031_v19, %v12030_v29  ;;  %v13229_v45 = vld [vmem:[%s18549_s9 + $0x778] ss:$16 sps:$4 sm:$0xff]  }
 0x4b6   : > { %v4231_v58 = vadd.f32 %v11434_v63, %v18660_v1  ;;  %v11437_v27 = vadd.f32 %v11436_v22, %v11435_v60  ;;  %v12034_v63 = vpop.f32.mrb[87].mxu0  ;;  %v18663_v60 = vld [vmem:[#allocation31_spill] sm:$0xff] }
 0x4b7   : > { %5777 = vmatmul.mubr.bf16.vlgmr.msra.gmra.mrb[84].mxu1 %v13226_v50  ;;  %v18665_v47 = vpack.c.bf16 %v18663_v60, %v18664_v7  ;;  %v16875_v50 = vadd.f32 %v12034_v63, %v12033_v15  ;;  %v18666_v15 = vld [vmem:[#allocation18_spill] sm:$0xff]  ;;  %v18667_v63 = vld [vmem:[#allocation17_spill] sm:$0xff] }
 0x4b8   : > { %v4234_v20 = vadd.f32 %v11437_v27, %v18661_v5  ;;  %12043 = vmatpush3.bf16.msra.mxu1 %v14987_v18  ;;  %6384 = vrot.lane.b32.xlu1 %v18662_v49, %s18415_s6  ;;  %v12036_v27 = vpop.f32.mrb[88].mxu0  ;;  %v18668_v60 = vpack.c.bf16 %v18666_v15, %v18667_v63  ;;  %v18672_v15 = vld [vmem:[#allocation19_spill] sm:$0xff] }
 0x4b9   : > { %12044 = vmatprep.subr.bf16.mxu1 %v15125_v14  ;;  %6371 = vrot.lane.b32.xlu0 %v18665_v47, %s18415_s6  ;;  %v12037_v1 = vpop.f32.mrb[89].mxu0  ;;  %v13234_v47 = vld [vmem:[%s18549_s9 + $0x79c] ss:$16 sps:$4 sm:$0xff]   ;;  %v2676_v63 = vpack.c.bf16 %v18672_v15, %v18672_v15  ;;  %v3724_v15 = vpack.c.bf16 %v16641_v35, %v16641_v35 }
 0x4ba   : > { %v11438_v52 = vpop.f32.mrb[236].mxu1  ;;  %v4247_v22 = vpack.c.bf16 %v4234_v20, %v4231_v58  ;;  %5784 = vmatprep.mubr.bf16.mxu1 %v13231_v17  ;;  %v16880_v16 = vadd.f32 %v12037_v1, %v12036_v27  ;;  %v12039_v29 = vpop.f32.mrb[90].mxu0  ;;  %v10365_v35 = vld [vmem:[%s18549_s9 + $0x7d8] sm:$0xff] }
 0x4bb   : > { %v11439_v5 = vpop.f32.mrb[237].mxu1  ;;  %v12040_v58 = vpop.f32.mrb[91].mxu0 }
 0x4bc   : > { %v11440_v19 = vadd.f32 %v11439_v5, %v11438_v52  ;;  %12045 = vmatpush3.bf16.msra.mxu1 %v15007_v4  ;;  %v11441_v49 = vpop.f32.mrb[238].mxu1  ;;  %6356 = vrot.lane.b32.xlu1 %v18668_v60, %s18415_s6  ;;  %v12104_v20 = vpop.f32.mrb[92].mxu0  ;;  %v18669_v52 = vld [vmem:[#allocation32_spill] sm:$0xff] }
 0x4bd   : > { %12046 = vmatprep.subr.bf16.mxu1 %v15138_v9  ;;  %6401 = vrot.lane.b32.xlu0 %v4247_v22, %s18415_s6  ;;  %v11442_v17 = vpop.f32.mrb[239].mxu1  ;;  %v12105_v27 = vpop.f32.mrb[93].mxu0  ;;  %v3200_v1 = vpack.c.bf16 %v18669_v52, %v18669_v52  ;;  %v18670_v22 = vpack.c.bf16 %v16620_v53, %v16617_v28  ;;  %v13232_v53 = vld [vmem:[%s18549_s9 + $0x798] ss:$16 sps:$4 sm:$0xff]  }
 0x4be   : > { %v4239_v7 = vadd.f32 %v11440_v19, %v16462_v11  ;;  %v16895_v5 = vadd.f32 %v12105_v27, %v12104_v20  ;;  %v12107_v29 = vpop.f32.mrb[94].mxu0 }
 0x4bf   : > { %5785 = vmatmul.mubr.bf16.gmra.mrb[88].mxu1 %v13229_v45  ;;  %v12108_v11 = vpop.f32.mrb[95].mxu0 }
 0x4c0   : > { %12047 = vmatpush3.bf16.msra.mxu1 %v15027_v33  ;;  %6386 = vrot.lane.b32.xlu1 %v18670_v22, %s18415_s6  ;;  %v16904_v19 = vadd.f32 %v12108_v11, %v12107_v29  ;;  %v12110_v45 = vpop.f32.mrb[96].mxu0  ;;  %v4248_v58 = vpack.c.bf16 %v4239_v7, %v4239_v7  ;;  %v18675_v11 = vld [vmem:[#allocation40_spill] sm:$0xff] }
 0x4c1   : > { %12048 = vmatprep.subr.bf16.mxu1 %v15154_v54  ;;  %6373 = vrot.lane.b32.xlu0 %v3200_v1, %s18415_s6  ;;  %v12111_v60 = vpop.f32.mrb[97].mxu0 }
 0x4c2   : > { %18671 = vst [vmem:[#allocation35_spill] sm:$0xff] %v16904_v19  ;;  %v11506_v49 = vpop.f32.mrb[240].mxu1  ;;  %5792 = vmatprep.mubr.bf16.mxu1 %v13234_v47  ;;  %v16911_v28 = vadd.f32 %v12111_v60, %v12110_v45  ;;  %v12113_v20 = vpop.f32.mrb[98].mxu0  ;;  %v13237_v47 = vld [vmem:[%s18549_s9 + $0x7bc] ss:$16 sps:$4 sm:$0xff]  }
 0x4c3   : > { %v11507_v17 = vpop.f32.mrb[241].mxu1  ;;  %v12114_v1 = vpop.f32.mrb[99].mxu0 }
 0x4c4   : > { %18673 = vst [vmem:[#allocation29_spill] sm:$0xff] %v16911_v28  ;;  %v11508_v27 = vadd.f32 %v11507_v17, %v11506_v49  ;;  %12049 = vmatpush3.bf16.msra.mxu1 %v15047_v13  ;;  %v11509_v52 = vpop.f32.mrb[242].mxu1  ;;  %6358 = vrot.lane.b32.xlu1 %v2676_v63, %s18415_s6  ;;  %v16920_v29 = vadd.f32 %v12114_v1, %v12113_v20  ;;  %v12116_v22 = vpop.f32.mrb[100].mxu0  ;;  %v18677_v17 = vld [vmem:[#allocation41_spill] sm:$0xff] }
 0x4c5   : > { %12050 = vmatprep.subr.bf16.mxu1 %v15170_v23  ;;  %6403 = vrot.lane.b32.xlu0 %v4248_v58, %s18415_s6  ;;  %v11510_v7 = vpop.f32.mrb[243].mxu1  ;;  %v12117_v63 = vpop.f32.mrb[101].mxu0 }
 0x4c6   : > { %18674 = vst [vmem:[#allocation28_spill] sm:$0xff] %v16920_v29  ;;  %v16923_v45 = vadd.f32 %v11508_v27, %v18675_v11  ;;  %v11511_v49 = vadd.f32 %v11510_v7, %v11509_v52  ;;  %v16927_v60 = vadd.f32 %v12117_v63, %v12116_v22  ;;  %v12119_v58 = vpop.f32.mrb[102].mxu0  ;;  %v13235_v11 = vld [vmem:[%s18549_s9 + $0x7b8] ss:$16 sps:$4 sm:$0xff]  }
 0x4c7   : > { %5793 = vmatmul.mubr.bf16.gmra.mrb[92].mxu1 %v13232_v53  ;;  %v12120_v20 = vpop.f32.mrb[103].mxu0 }
 0x4c8   : > { %18676 = vst [vmem:[#allocation16_spill] sm:$0xff] %v16927_v60  ;;  %v16930_v28 = vadd.f32 %v11511_v49, %v18677_v17  ;;  %12051 = vmatpush3.bf16.msra.mxu1 %v15060_v43  ;;  %6388 = vrot.lane.b32.xlu1 %v3724_v15, %s18415_s6  ;;  %v16938_v27 = vadd.f32 %v12120_v20, %v12119_v58  ;;  %v12122_v53 = vpop.f32.mrb[104].mxu0 }
 0x4c9   : > { %12052 = vmatprep.subr.bf16.mxu1 %v15186_v25  ;;  %5800 = vmatprep.mubr.bf16.mxu1 %v13237_v47  ;;  %v12123_v7 = vpop.f32.mrb[105].mxu0  ;;  %v10385_v58 = vcombine.high %v10365_v35, %v10365_v35 }
 0x4ca   : > { %18678 = vst [vmem:[#allocation6_spill] sm:$0xff] %v16938_v27  ;;  %v11512_v1 = vpop.f32.mrb[244].mxu1  ;;  %v16945_v49 = vadd.f32 %v12123_v7, %v12122_v53  ;;  %v12125_v47 = vpop.f32.mrb[106].mxu0 }
 0x4cb   : > { %v11513_v22 = vpop.f32.mrb[245].mxu1  ;;  %v12126_v17 = vpop.f32.mrb[107].mxu0 }
 0x4cc   : > { %v11514_v15 = vadd.f32 %v11513_v22, %v11512_v1  ;;  %12053 = vmatpush3.bf16.msra.mxu1 %v15071_v44  ;;  %v11515_v63 = vpop.f32.mrb[246].mxu1  ;;  %v16949_v52 = vadd.f32 %v12126_v17, %v12125_v47  ;;  %v12128_v27 = vpop.f32.mrb[108].mxu0  ;;  %v18696_v47 = vld [vmem:[#allocation59_spill] sm:$0xff] }
 0x4cd   : > { %12054 = vmatprep.subr.bf16.mxu1 %v15199_v24  ;;  %v11516_v20 = vpop.f32.mrb[247].mxu1  ;;  %v12129_v19 = vpop.f32.mrb[109].mxu0 }
 0x4ce   : > { %v16952_v60 = vadd.f32 %v11514_v15, %v16483_v62  ;;  %v11517_v29 = vadd.f32 %v11516_v20, %v11515_v63  ;;  %v16954_v53 = vadd.f32 %v12129_v19, %v12128_v27  ;;  %v12131_v1 = vpop.f32.mrb[110].mxu0  ;;  %v10384_v63 = vcombine.low %v10365_v35, %v10365_v35  ;;  %v13287_v35 = vld [vmem:[%s18573_s2 + $0x108] sm:$0xff]  }
 0x4cf   : > { %5801 = vmatmul.mubr.bf16.gmra.mrb[96].mxu1 %v13235_v11  ;;  %v12132_v22 = vpop.f32.mrb[111].mxu0 }
 0x4d0   : > { %v16957_v7 = vadd.f32 %v11517_v29, %v16488_v42  ;;  %12055 = vmatpush3.bf16.msra.mxu1 %v15085_v55  ;;  %5808 = vmatprep.mubr.bf16.mxu1 %v10385_v58  ;;  %v13242_v42 = vld [vmem:[%s18549_s9 + $0x7ec] ss:$16 sps:$4 sm:$0xff]   ;;  %v13240_v22 = vld [vmem:[%s18549_s9 + $0x7e8] ss:$16 sps:$4 sm:$0xff]  }
 0x4d1   : > { %12056 = vmatprep.subr.bf16.mxu1 %v15210_v40 }
 0x4d2   : > { %v11518_v62 = vpop.f32.mrb[248].mxu1 }
 0x4d3   : > { %v11519_v15 = vpop.f32.mrb[249].mxu1 }
 0x4d4   : > { %v11520_v17 = vadd.f32 %v11519_v15, %v11518_v62  ;;  %12057 = vmatpush3.bf16.msra.mxu1 %v15099_v51  ;;  %v11521_v19 = vpop.f32.mrb[250].mxu1 }
 0x4d5   : > { %12134 = vmatprep.subr.bf16.mxu1 %v15113_v39  ;;  %v11522_v29 = vpop.f32.mrb[251].mxu1 }
 0x4d6   : > { %v16969_v27 = vadd.f32 %v11520_v17, %v16490_v21  ;;  %v11523_v11 = vadd.f32 %v11522_v29, %v11521_v19  ;;  %v13245_v21 = vld [vmem:[%s18549_s9 + $0x80c] ss:$16 sps:$4 sm:$0xff]  }
 0x4d7   : > { %5809 = vmatmul.mubr.bf16.gmra.mrb[100].mxu1 %v10384_v63 }
 0x4d8   : > { %18679 = vst [vmem:[#allocation36_spill] sm:$0xff] %v16969_v27  ;;  %v16972_v58 = vadd.f32 %v11523_v11, %v16500_v34  ;;  %6038 = vmatprep.mubr.bf16.mxu1 %v13242_v42 }
 0x4da   : > { %18680 = vst [vmem:[#allocation37_spill] sm:$0xff] %v16972_v58  ;;  %v11524_v20 = vpop.f32.mrb[252].mxu1  ;;  %v18712_v58 = vld [vmem:[#allocation62_spill] sm:$0xff] }
 0x4db   : > { %v11525_v1 = vpop.f32.mrb[253].mxu1 }
 0x4dc   : > { %v11526_v39 = vadd.f32 %v11525_v1, %v11524_v20  ;;  %v11527_v62 = vpop.f32.mrb[254].mxu1 }
 0x4dd   : > { %v11528_v15 = vpop.f32.mrb[255].mxu1 }
 0x4de   : > { %v16983_v34 = vadd.f32 %v11526_v39, %v16509_v2  ;;  %v11529_v63 = vadd.f32 %v11528_v15, %v11527_v62  ;;  %v13243_v2 = vld [vmem:[%s18549_s9 + $0x808] ss:$16 sps:$4 sm:$0xff]  }
 0x4df   : > { %6039 = vmatmul.mubr.bf16.vlgmr.msra.gmra.mrb[104].mxu1 %v13240_v22  ;;  %v18685_v15 = vld [vmem:[#allocation48_spill] sm:$0xff] }
 0x4e0   : > { %18681 = vst [vmem:[#allocation31_spill] sm:$0xff] %v16983_v34  ;;  %v16986_v17 = vadd.f32 %v11529_v63, %v16511_v0  ;;  %12135 = vmatpush3.bf16.msra.mxu1 %v14987_v18  ;;  %6046 = vmatprep.mubr.bf16.mxu1 %v13245_v21  ;;  %v13248_v18 = vld [vmem:[%s18549_s9 + $0x82c] ss:$16 sps:$4 sm:$0xff]  }
 0x4e1   : > { %12136 = vmatprep.subr.bf16.mxu1 %v15125_v14  ;;  %v18683_v0 = vld [vmem:[#allocation46_spill] sm:$0xff] }
 0x4e2   : > { %18682 = vst [vmem:[#allocation30_spill] sm:$0xff] %v16986_v17  ;;  %v11530_v42 = vpop.f32.mrb[0].mxu1  ;;  %v13251_v21 = vld [vmem:[%s18549_s9 + $0x84c] ss:$16 sps:$4 sm:$0xff]  }
 0x4e3   : > { %v11531_v29 = vpop.f32.mrb[1].mxu1 }
 0x4e4   : > { %v11532_v11 = vadd.f32 %v11531_v29, %v11530_v42  ;;  %12137 = vmatpush3.bf16.msra.mxu1 %v15007_v4  ;;  %v11533_v20 = vpop.f32.mrb[2].mxu1  ;;  %v13246_v4 = vld [vmem:[%s18549_s9 + $0x828] ss:$16 sps:$4 sm:$0xff]  }
 0x4e5   : > { %12138 = vmatprep.subr.bf16.mxu1 %v15138_v9  ;;  %v11534_v14 = vpop.f32.mrb[3].mxu1  ;;  %v18686_v42 = vld [vmem:[#allocation49_spill] sm:$0xff] }
 0x4e6   : > { %v17001_v1 = vadd.f32 %v11532_v11, %v18683_v0  ;;  %v18687_v0 = vld [vmem:[#allocation50_spill] sm:$0xff] }
 0x4e7   : > { %6047 = vmatmul.mubr.bf16.gmra.mrb[108].mxu1 %v13243_v2 }
 0x4e8   : > { %18684 = vst [vmem:[#allocation18_spill] sm:$0xff] %v17001_v1  ;;  %12139 = vmatpush3.bf16.msra.mxu1 %v15027_v33  ;;  %6054 = vmatprep.mubr.bf16.mxu1 %v13248_v18  ;;  %v18700_v1 = vld [vmem:[#allocation60_spill] sm:$0xff] }
 0x4e9   : > { %12140 = vmatprep.subr.bf16.mxu1 %v15154_v54 }
 0x4ea   : > { %v11598_v22 = vpop.f32.mrb[4].mxu1 }
 0x4eb   : > { %v11599_v39 = vpop.f32.mrb[5].mxu1 }
 0x4ec   : > { %v11600_v62 = vadd.f32 %v11599_v39, %v11598_v22  ;;  %12141 = vmatpush3.bf16.msra.mxu1 %v15047_v13  ;;  %v11601_v9 = vpop.f32.mrb[6].mxu1  ;;  %v10403_v13 = vld [vmem:[%s18549_s9 + $0x868] sm:$0xff] }
 0x4ed   : > { %12142 = vmatprep.subr.bf16.mxu1 %v15170_v23  ;;  %v11602_v33 = vpop.f32.mrb[7].mxu1  ;;  %v13249_v23 = vld [vmem:[%s18549_s9 + $0x848] ss:$16 sps:$4 sm:$0xff]  }
 0x4ee   : > { %v4731_v63 = vadd.f32 %v11600_v62, %v18685_v15  ;;  %v11603_v54 = vadd.f32 %v11602_v33, %v11601_v9  ;;  %v10422_v33 = vcombine.low %v10403_v13, %v10403_v13 }
 0x4ef   : > { %6055 = vmatmul.mubr.bf16.gmra.mrb[112].mxu1 %v13246_v4  ;;  %v18688_v4 = vld [vmem:[#allocation51_spill] sm:$0xff] }
 0x4f0   : > { %v4734_v29 = vadd.f32 %v11603_v54, %v18686_v42  ;;  %12143 = vmatpush3.bf16.msra.mxu1 %v15060_v43  ;;  %6062 = vmatprep.mubr.bf16.mxu1 %v13251_v21  ;;  %v10423_v43 = vcombine.high %v10403_v13, %v10403_v13 }
 0x4f1   : > { %12144 = vmatprep.subr.bf16.mxu1 %v15186_v25 }
 0x4f2   : > { %v11604_v2 = vpop.f32.mrb[8].mxu1  ;;  %v4768_v11 = vpack.c.bf16 %v4734_v29, %v4731_v63 }
 0x4f3   : > { %v11605_v20 = vpop.f32.mrb[9].mxu1 }
 0x4f4   : > { %v11606_v18 = vadd.f32 %v11605_v20, %v11604_v2  ;;  %12145 = vmatpush3.bf16.msra.mxu1 %v15071_v44  ;;  %v11607_v14 = vpop.f32.mrb[10].mxu1  ;;  %6410 = vrot.lane.b32.xlu1 %v4768_v11, %s18415_s6  ;;  %v13260_v44 = vld [vmem:[%s18573_s2 + $0xc0] sm:$0xff]   ;;  %v18690_v2 = vld [vmem:[#allocation53_spill] sm:$0xff]  ;;  %s18742_s6 = smov 64  }
 0x4f5   : > { %12146 = vmatprep.subr.bf16.mxu1 %v15199_v24  ;;  %v11608_v25 = vpop.f32.mrb[11].mxu1 }
 0x4f6   : > { %v17027_v22 = vadd.f32 %v11606_v18, %v18687_v0  ;;  %v11609_v39 = vadd.f32 %v11608_v25, %v11607_v14  ;;  %v13261_v25 = vld [vmem:[%s18573_s2 + $0x80] sm:$0xff]  }
 0x4f7   : > { %6063 = vmatmul.mubr.bf16.gmra.mrb[116].mxu1 %v13249_v23  ;;  %v13254_v23 = vld [vmem:[%s18549_s9 + $0x878] ss:$16 sps:$4 sm:$0xff]  }
 0x4f8   : > { %v17030_v62 = vadd.f32 %v11609_v39, %v18688_v4  ;;  %12147 = vmatpush3.bf16.msra.mxu1 %v15085_v55  ;;  %6070 = vmatprep.mubr.bf16.mxu1 %v10423_v43  ;;  %v13256_v55 = vld [vmem:[%s18549_s9 + $0x87c] ss:$16 sps:$4 sm:$0xff]  }
 0x4f9   : > { %12148 = vmatprep.subr.bf16.mxu1 %v15210_v40  ;;  %v18689_v40 = vld [vmem:[#allocation52_spill] sm:$0xff]  ;;  %v18691_v4 = vld [vmem:[#allocation54_spill] sm:$0xff] }
 0x4fa   : > { %v11610_v9 = vpop.f32.mrb[12].mxu1  ;;  %v13259_v43 = vld [vmem:[%s18549_s9 + $0x89c] ss:$16 sps:$4 sm:$0xff]  }
 0x4fb   : > { %v11611_v21 = vpop.f32.mrb[13].mxu1  ;;  %v13262_v39 = vld [vmem:[%s18573_s2 + $0xc8] sm:$0xff]  }
 0x4fc   : > { %v11612_v15 = vadd.f32 %v11611_v21, %v11610_v9  ;;  %12149 = vmatpush3.bf16.msra.mxu1 %v15099_v51  ;;  %v11613_v63 = vpop.f32.mrb[14].mxu1  ;;  %v18692_v21 = vld [vmem:[#allocation55_spill] sm:$0xff] }
 0x4fd   : > { %v11614_v54 = vpop.f32.mrb[15].mxu1  ;;  %12226 = vmatprep.subr.bf16.mxu1 %v13260_v44 }
 0x4fe   : > { %v17044_v42 = vadd.f32 %v11612_v15, %v18689_v40  ;;  %v11615_v29 = vadd.f32 %v11614_v54, %v11613_v63  ;;  %v13263_v15 = vld [vmem:[%s18573_s2 + $0x88] sm:$0xff]   ;;  %v13267_v63 = vld [vmem:[%s18573_s2 + $0xd0] sm:$0xff]  }
 0x4ff   : > { %6071 = vmatmul.mubr.bf16.gmra.mrb[120].mxu1 %v10422_v33 }
 0x500   : > { %v17047_v11 = vadd.f32 %v11615_v29, %v18690_v2  ;;  %6300 = vmatprep.mubr.bf16.mxu1 %v13256_v55  ;;  %v13257_v29 = vld [vmem:[%s18549_s9 + $0x898] ss:$16 sps:$4 sm:$0xff]  }
 0x502   : > { %v11616_v13 = vpop.f32.mrb[16].mxu1 }
 0x503   : > { %v11617_v20 = vpop.f32.mrb[17].mxu1 }
 0x504   : > { %v11618_v18 = vadd.f32 %v11617_v20, %v11616_v13  ;;  %v11619_v14 = vpop.f32.mrb[18].mxu1  ;;  %v13266_v20 = vld [vmem:[%s18549_s9 + $0x8bc] ss:$16 sps:$4 sm:$0xff]  }
 0x505   : > { %v11620_v0 = vpop.f32.mrb[19].mxu1 }
 0x506   : > { %v17064_v44 = vadd.f32 %v11618_v18, %v18691_v4  ;;  %v11621_v9 = vadd.f32 %v11620_v0, %v11619_v14  ;;  %v13269_v14 = vld [vmem:[%s18573_s2 + $0xd8] sm:$0xff]  }
 0x507   : > { %6301 = vmatmul.mubr.bf16.vlgmr.msra.gmra.mrb[124].mxu1 %v13254_v23  ;;  %v13268_v23 = vld [vmem:[%s18573_s2 + $0x90] sm:$0xff]   ;;  %v13270_v0 = vld [vmem:[%s18573_s2 + $0x98] sm:$0xff]  }
 0x508   : > { %v17067_v33 = vadd.f32 %v11621_v9, %v18692_v21  ;;  %6308 = vmatprep.mubr.bf16.mxu1 %v13259_v43  ;;  %12227 = vmatpush3.bf16.msra.mxu1 %v13261_v25  ;;  %v18693_v43 = vld [vmem:[#allocation56_spill] sm:$0xff] }
 0x509   : > { %12228 = vmatprep.subr.bf16.mxu1 %v13262_v39  ;;  %v13274_v39 = vld [vmem:[%s18573_s2 + $0xe0] sm:$0xff]   ;;  %v13264_v21 = vld [vmem:[%s18549_s9 + $0x8b8] ss:$16 sps:$4 sm:$0xff]  }
 0x50a   : > { %v11622_v55 = vpop.f32.mrb[20].mxu1 }
 0x50b   : > { %v11623_v40 = vpop.f32.mrb[21].mxu1 }
 0x50c   : > { %v11624_v2 = vadd.f32 %v11623_v40, %v11622_v55  ;;  %v11625_v13 = vpop.f32.mrb[22].mxu1  ;;  %12229 = vmatpush3.bf16.msra.mxu1 %v13263_v15  ;;  %v13273_v55 = vld [vmem:[%s18549_s9 + $0x8dc] ss:$16 sps:$4 sm:$0xff]   ;;  %v13275_v40 = vld [vmem:[%s18573_s2 + $0xa0] sm:$0xff]  }
 0x50d   : > { %v11626_v18 = vpop.f32.mrb[23].mxu1  ;;  %12230 = vmatprep.subr.bf16.mxu1 %v13267_v63  ;;  %v18694_v13 = vld [vmem:[#allocation57_spill] sm:$0xff] }
 0x50e   : > { %v17090_v25 = vadd.f32 %v11624_v2, %v18693_v43  ;;  %v13276_v2 = vld [vmem:[%s18573_s2 + $0xe8] sm:$0xff]  }
 0x50f   : > { %6309 = vmatmul.mubr.bf16.gmra.mrb[128].mxu1 %v13257_v29 }
 0x510   : > { %6316 = vmatprep.mubr.bf16.mxu1 %v13266_v20  ;;  %12231 = vmatpush3.bf16.msra.mxu1 %v13268_v23 }
 0x511   : > { %12232 = vmatprep.subr.bf16.mxu1 %v13269_v14  ;;  %v18695_v14 = vld [vmem:[#allocation58_spill] sm:$0xff] }
 0x512   : > { %v11690_v4 = vpop.f32.mrb[24].mxu1 }
 0x513   : > { %v11691_v9 = vpop.f32.mrb[25].mxu1 }
 0x514   : > { %v11692_v15 = vadd.f32 %v11691_v9, %v11690_v4  ;;  %v11693_v63 = vpop.f32.mrb[26].mxu1  ;;  %12233 = vmatpush3.bf16.msra.mxu1 %v13270_v0  ;;  %v13277_v0 = vld [vmem:[%s18573_s2 + $0xa8] sm:$0xff]   ;;  %v10441_v4 = vld [vmem:[%s18549_s9 + $0x8f8] sm:$0xff]  ;;  %v13280_v9 = vld [vmem:[%s18573_s2 + $0xf0] sm:$0xff]  }
 0x515   : > { %v11694_v29 = vpop.f32.mrb[27].mxu1  ;;  %12234 = vmatprep.subr.bf16.mxu1 %v13274_v39  ;;  %v13284_v39 = vld [vmem:[%s18573_s2 + $0x140] sm:$0xff]  }
 0x516   : > { %v17111_v20 = vadd.f32 %v11692_v15, %v18694_v13  ;;  %v11695_v23 = vadd.f32 %v11694_v29, %v11693_v63  ;;  %v17113_v18 = vpop.permute.xlu1 %6395  ;;  %12272 = vmatprep.subr.bf16.mxu0 %v13284_v39  ;;  %v13271_v29 = vld [vmem:[%s18549_s9 + $0x8d8] ss:$16 sps:$4 sm:$0xff]   ;;  %v13281_v39 = vld [vmem:[%s18573_s2 + $0xb0] sm:$0xff]   ;;  %s18812_s9 = sld [smem:[#allocation87_spill]] }
 0x517   : > { %6317 = vmatmul.mubr.bf16.gmra.mrb[132].mxu1 %v13264_v21  ;;  %v13285_v21 = vld [vmem:[%s18573_s2 + $0x100] sm:$0xff]   ;;  %v18697_v15 = vld [vmem:[#allocation8_spill] sm:$0xff] }
 0x518   : > { %v17116_v43 = vadd.f32 %v11695_v23, %v18695_v14  ;;  %6324 = vmatprep.mubr.bf16.mxu1 %v13273_v55  ;;  %12235 = vmatpush3.bf16.msra.mxu1 %v13275_v40  ;;  %v10461_v23 = vcombine.high %v10441_v4, %v10441_v4  ;;  %v13286_v14 = vld [vmem:[%s18573_s2 + $0x148] sm:$0xff]  }
 0x519   : > { %12236 = vmatprep.subr.bf16.mxu1 %v13276_v2  ;;  %12273 = vmatpush3.bf16.msra.mxu0 %v13285_v21 }
 0x51a   : > { %v11696_v63 = vpop.f32.mrb[28].mxu1  ;;  %v17135_v55 = vpop.permute.xlu1 %6380  ;;  %12274 = vmatprep.subr.bf16.mxu0 %v13286_v14  ;;  %v18701_v14 = vld [vmem:[#allocation22_spill] sm:$0xff] }
 0x51b   : > { %v11697_v40 = vpop.f32.mrb[29].mxu1 }
 0x51c   : > { %v11698_v2 = vadd.f32 %v11697_v40, %v11696_v63  ;;  %v11699_v13 = vpop.f32.mrb[30].mxu1  ;;  %12237 = vmatpush3.bf16.msra.mxu1 %v13277_v0  ;;  %v13282_v40 = vld [vmem:[%s18573_s2 + $0xf8] sm:$0xff]  }
 0x51d   : > { %v11700_v19 = vpop.f32.mrb[31].mxu1  ;;  %12238 = vmatprep.subr.bf16.mxu1 %v13280_v9  ;;  %v18698_v9 = vld [vmem:[#allocation7_spill] sm:$0xff]  ;;  %12275 = vmatpush3.bf16.msra.mxu0 %v13287_v35 }
 0x51e   : > { %v17150_v21 = vadd.f32 %v11698_v2, %v18696_v47  ;;  %v11701_v63 = vadd.f32 %v11700_v19, %v11699_v13  ;;  %v6353_v0 = vpop.permute.xlu1 %6352  ;;  %v18699_v54 = vpack.c.bf16 %v18697_v15, %v18698_v9  ;;  %v13288_v47 = vld [vmem:[%s18573_s2 + $0x150] sm:$0xff]   ;;  %v13283_v19 = vld [vmem:[%s18573_s2 + $0xb8] sm:$0xff]   ;;  %v10460_v2 = vcombine.low %v10441_v4, %v10441_v4 }
 0x51f   : > { %v17159_v24 = vpop.permute.xlu0 %6397  ;;  %6325 = vmatmul.mubr.bf16.gmra.mrb[136].mxu1 %v13271_v29  ;;  %12276 = vmatprep.subr.bf16.mxu0 %v13288_v47  ;;  %v13290_v9 = vld [vmem:[%s18573_s2 + $0x158] sm:$0xff]  }
 0x520   : > { %v6472_v51 = vsel %vm6465_vm0, %v18699_v54, %v6353_v0  ;;  %v17162_v34 = vadd.f32 %v11701_v63, %v18700_v1  ;;  %6332 = vmatprep.mubr.bf16.mxu1 %v10461_v23  ;;  %12239 = vmatpush3.bf16.msra.mxu1 %v13281_v39  ;;  %v13289_v54 = vld [vmem:[%s18573_s2 + $0x110] sm:$0xff]  }
 0x521   : > { %7186 = vmatmul.mubr.bf16.gmra.mrb[116].mxu0 %v6472_v51  ;;  %12240 = vmatprep.subr.bf16.mxu1 %v13282_v40  ;;  %v18702_v39 = vld [vmem:[#allocation21_spill] sm:$0xff] }
 0x522   : > { %v11702_v1 = vpop.f32.mrb[32].mxu1  ;;  %v17175_v15 = vpop.permute.xlu1 %6382  ;;  %12277 = vmatpush3.bf16.msra.mxu0 %v13289_v54  ;;  %v18703_v63 = vpack.c.bf16 %v18701_v14, %v18702_v39  ;;  %v13291_v40 = vld [vmem:[%s18573_s2 + $0x118] sm:$0xff]  }
 0x523   : > { %v6370_v51 = vpop.permute.xlu0 %6369  ;;  %v11703_v29 = vpop.f32.mrb[33].mxu1  ;;  %v18704_v4 = vld [vmem:[#allocation61_spill] sm:$0xff]  ;;  %12278 = vmatprep.subr.bf16.mxu0 %v13290_v9 }
 0x524   : > { %v11704_v13 = vadd.f32 %v11703_v29, %v11702_v1  ;;  %v11705_v23 = vpop.f32.mrb[34].mxu1  ;;  %v6496_v0 = vsel %vm6465_vm0, %v18703_v63, %v6370_v51  ;;  %12241 = vmatpush3.bf16.msra.mxu1 %v13283_v19  ;;  %v18706_v29 = vld [vmem:[#allocation10_spill] sm:$0xff]  ;;  %v18707_v14 = vld [vmem:[#allocation9_spill] sm:$0xff] }
 0x525   : > { %7193 = vmatprep.mubr.bf16.mxu0 %v6496_v0  ;;  %v11706_v35 = vpop.f32.mrb[35].mxu1  ;;  %v18708_v51 = vpack.c.bf16 %v18706_v29, %v18707_v14  ;;  %v18709_v0 = vld [vmem:[#allocation72_spill] sm:$0xff]  ;;  %v18710_v19 = vld [vmem:[#allocation70_spill] sm:$0xff] }
 0x526   : > { %v17188_v47 = vadd.f32 %v11704_v13, %v18704_v4  ;;  %v11707_v54 = vadd.f32 %v11706_v35, %v11705_v23  ;;  %v6355_v1 = vpop.permute.xlu1 %6354  ;;  %v18711_v17 = vpack.c.bf16 %v18709_v0, %v18710_v19  ;;  %12279 = vmatpush3.bf16.msra.mxu0 %v13291_v40  ;;  %v13292_v35 = vld [vmem:[%s18573_s2 + $0x160] sm:$0xff]   ;;  %v13294_v14 = vld [vmem:[%s18573_s2 + $0x168] sm:$0xff]   ;;  %v18718_v19 = vld [vmem:[#allocation33_spill] sm:$0xff] }
 0x527   : > { %v6476_v39 = vsel %vm6465_vm0, %v18708_v51, %v6355_v1  ;;  %v6400_v63 = vpop.permute.xlu0 %6399  ;;  %6333 = vmatmul.mubr.bf16.gmra.mrb[140].mxu1 %v10460_v2  ;;  %v13293_v2 = vld [vmem:[%s18573_s2 + $0x120] sm:$0xff]   ;;  %12280 = vmatprep.subr.bf16.mxu0 %v13292_v35 }
 0x528   : > { %18705 = vst [vmem:[#allocation17_spill] sm:$0xff] %v17188_v47  ;;  %v6528_v27 = vsel %vm6465_vm0, %v18711_v17, %v17113_v18  ;;  %v17200_v13 = vadd.f32 %v11707_v54, %v18712_v58  ;;  %v18715_v54 = vld [vmem:[#allocation23_spill] sm:$0xff]  ;;  %v18717_v0 = vld [vmem:[#allocation34_spill] sm:$0xff] }
 0x529   : > { %7194 = vmatmul.mubr.bf16.gmra.mrb[120].mxu0 %v6476_v39  ;;  %7249 = vmatprep.mubr.bf16.mxu1 %v6528_v27  ;;  %v18714_v27 = vld [vmem:[#allocation24_spill] sm:$0xff]  ;;  %v18719_v35 = vpack.c.bf16 %v18717_v0, %v18718_v19 }
 0x52a   : > { %18713 = vst [vmem:[#allocation32_spill] sm:$0xff] %v17200_v13  ;;  %v11708_v9 = vpop.f32.mrb[36].mxu1  ;;  %v6385_v4 = vpop.permute.xlu1 %6384  ;;  %12281 = vmatpush3.bf16.msra.mxu0 %v13293_v2  ;;  %v18716_v1 = vpack.c.bf16 %v18714_v27, %v18715_v54  ;;  %v13295_v39 = vld [vmem:[%s18573_s2 + $0x128] sm:$0xff]   ;;  %v18725_v13 = vpack.c.bf16 %v16705_v6, %v16696_v36 }
 0x52b   : > { %v6372_v17 = vpop.permute.xlu0 %6371  ;;  %v11709_v18 = vpop.f32.mrb[37].mxu1  ;;  %v6508_v2 = vsel %vm6465_vm0, %v18719_v35, %v17135_v55  ;;  %12282 = vmatprep.subr.bf16.mxu0 %v13294_v14  ;;  %v18722_v54 = vld [vmem:[#allocation12_spill] sm:$0xff] }
 0x52c   : > { %v11710_v58 = vadd.f32 %v11709_v18, %v11708_v9  ;;  %v11711_v40 = vpop.f32.mrb[38].mxu1  ;;  %v6500_v29 = vsel %vm6465_vm0, %v18716_v1, %v6372_v17  ;;  %v18720_v9 = vld [vmem:[#allocation63_spill] sm:$0xff]  ;;  %v6532_v0 = vsel %vm6465_vm0, %v18725_v13, %v17159_v24  ;;  %v18726_v55 = vld [vmem:[#allocation64_spill] sm:$0xff] }
 0x52d   : > { %7201 = vmatprep.mubr.bf16.mxu0 %v6500_v29  ;;  %v11712_v51 = vpop.f32.mrb[39].mxu1  ;;  %v18723_v1 = vld [vmem:[#allocation11_spill] sm:$0xff]  ;;  %v13297_v14 = vld [vmem:[%s18573_s2 + $0x130] sm:$0xff]  }
 0x52e   : > { %v17226_v18 = vadd.f32 %v11710_v58, %v18720_v9  ;;  %v11713_v17 = vadd.f32 %v11712_v51, %v11711_v40  ;;  %v6357_v27 = vpop.permute.xlu1 %6356  ;;  %v18724_v29 = vpack.c.bf16 %v18722_v54, %v18723_v1  ;;  %12283 = vmatpush3.bf16.msra.mxu0 %v13295_v39  ;;  %v13296_v40 = vld [vmem:[%s18573_s2 + $0x170] sm:$0xff]   ;;  %v13298_v9 = vld [vmem:[%s18573_s2 + $0x178] sm:$0xff]  }
 0x52f   : > { %v6402_v47 = vpop.permute.xlu0 %6401  ;;  %7250 = vmatmul.mubr.bf16.vlgmr.msra.gmra.mrb[144].mxu1 %v6508_v2  ;;  %v18728_v51 = vld [vmem:[#allocation25_spill] sm:$0xff]  ;;  %12284 = vmatprep.subr.bf16.mxu0 %v13296_v40 }
 0x530   : > { %18721 = vst [vmem:[#allocation19_spill] sm:$0xff] %v17226_v18  ;;  %v6480_v23 = vsel %vm6465_vm0, %v18724_v29, %v6357_v27  ;;  %v17238_v58 = vadd.f32 %v11713_v17, %v18726_v55  ;;  %7257 = vmatprep.mubr.bf16.mxu1 %v6532_v0  ;;  %v2938_v19 = vpack.c.bf16 %v18728_v51, %v18728_v51  ;;  %v18729_v17 = vld [vmem:[#allocation13_spill] sm:$0xff]  ;;  %v18730_v29 = vld [vmem:[#allocation39_spill] sm:$0xff]  ;;  %v18731_v0 = vld [vmem:[#allocation38_spill] sm:$0xff] }
 0x531   : > { %7202 = vmatmul.mubr.bf16.gmra.mrb[124].mxu0 %v6480_v23  ;;  %v2414_v27 = vpack.c.bf16 %v18729_v17, %v18729_v17  ;;  %v13299_v1 = vld [vmem:[%s18573_s2 + $0x138] sm:$0xff]   ;;  %v18732_v55 = vpack.c.bf16 %v18730_v29, %v18731_v0 }
 0x532   : > { %18727 = vst [vmem:[#allocation40_spill] sm:$0xff] %v17238_v58  ;;  %v11714_v36 = vpop.f32.mrb[40].mxu1  ;;  %v6387_v24 = vpop.permute.xlu1 %6386  ;;  %12285 = vmatpush3.bf16.msra.mxu0 %v13297_v14  ;;  %v18733_v14 = vld [vmem:[#allocation65_spill] sm:$0xff]  ;;  %v18737_v29 = vld [vmem:[#allocation42_spill] sm:$0xff] }
 0x533   : > { %v6374_v13 = vpop.permute.xlu0 %6373  ;;  %v11715_v23 = vpop.f32.mrb[41].mxu1  ;;  %v6512_v40 = vsel %vm6465_vm0, %v18732_v55, %v17175_v15  ;;  %12286 = vmatprep.subr.bf16.mxu0 %v13298_v9 }
 0x534   : > { %v11716_v39 = vadd.f32 %v11715_v23, %v11714_v36  ;;  %v11717_v35 = vpop.f32.mrb[42].mxu1  ;;  %v6504_v2 = vsel %vm6465_vm0, %v2938_v19, %v6374_v13  ;;  %v18735_v13 = vpack.c.bf16 %v16726_v31, %v16721_v32  ;;  %v18740_v32 = vpack.c.bf16 %v16746_v37, %v16743_v30 }
 0x535   : > { %7209 = vmatprep.mubr.bf16.mxu0 %v6504_v2  ;;  %v11718_v54 = vpop.f32.mrb[43].mxu1 }
 0x536   : > { %v17265_v51 = vadd.f32 %v11716_v39, %v18733_v14  ;;  %v6359_v19 = vpop.permute.xlu1 %6358  ;;  %v6536_v23 = vsel %vm6465_vm0, %v18735_v13, %v6400_v63  ;;  %12287 = vmatpush3.bf16.msra.mxu0 %v13299_v1  ;;  %v18736_v39 = vld [vmem:[#allocation43_spill] sm:$0xff]  ;;  %v6540_v31 = vsel %vm6465_vm0, %v18740_v32, %v6402_v47  ;;  %v18746_v47 = vld [vmem:[#allocation68_spill] sm:$0xff] }
 0x537   : > { %v6484_v36 = vsel %vm6465_vm0, %v2414_v27, %v6359_v19  ;;  %7258 = vmatmul.mubr.bf16.gmra.mrb[148].mxu1 %v6512_v40  ;;  %v18738_v0 = vpack.c.bf16 %v18736_v39, %v18737_v29  ;;  %v18739_v27 = vld [vmem:[#allocation66_spill] sm:$0xff]  ;;  %v18741_v63 = vld [vmem:[#allocation67_spill] sm:$0xff]  ;;  %v6404_v13 = vpop.permute.xlu0 %6403 }
 0x538   : > { %18734 = vst [vmem:[#allocation41_spill] sm:$0xff] %v17265_v51  ;;  %7265 = vmatprep.mubr.bf16.mxu1 %v6536_v23  ;;  %v18748_v32 = vld [vmem:[#allocation47_spill] sm:$0xff] }
 0x539   : > { %7210 = vmatmul.mubr.bf16.gmra.mrb[128].mxu0 %v6484_v36  ;;  %v6516_v9 = vsel %vm6465_vm0, %v18738_v0, %v6385_v4  ;;  %v3986_v4 = vpack.c.bf16 %v16767_v56, %v16767_v56  ;;  %v18747_v0 = vld [vmem:[#allocation69_spill] sm:$0xff] }
 0x53a   : > { %v11782_v35 = vpop.f32.mrb[44].mxu1 }
 0x53b   : > { %v11783_v2 = vpop.f32.mrb[45].mxu1  ;;  %v6544_v29 = vsel %vm6465_vm0, %v3986_v4, %v6404_v13 }
 0x53c   : > { %v11784_v17 = vadd.f32 %v11783_v2, %v11782_v35  ;;  %v11785_v15 = vpop.f32.mrb[46].mxu1 }
 0x53d   : > { %v11786_v54 = vpop.f32.mrb[47].mxu1 }
 0x53e   : > { %v5255_v55 = vadd.f32 %v11784_v17, %v18739_v27  ;;  %v11787_v40 = vadd.f32 %v11786_v54, %v11785_v15  ;;  %v18743_v17 = vld [vmem:[#allocation45_spill] sm:$0xff]  ;;  %v18744_v15 = vld [vmem:[#allocation44_spill] sm:$0xff] }
 0x53f   : > { %7266 = vmatmul.mubr.bf16.gmra.mrb[152].mxu1 %v6516_v9  ;;  %v18745_v30 = vpack.c.bf16 %v18743_v17, %v18744_v15 }
 0x540   : > { %v5258_v1 = vadd.f32 %v11787_v40, %v18741_v63  ;;  %7273 = vmatprep.mubr.bf16.mxu1 %v6540_v31 }
 0x541   : > { %v6520_v37 = vsel %vm6465_vm0, %v18745_v30, %v6387_v24  ;;  %v3462_v24 = vpack.c.bf16 %v18748_v32, %v18748_v32 }
 0x542   : > { %v11788_v14 = vpop.f32.mrb[48].mxu1  ;;  %v5292_v19 = vpack.c.bf16 %v5258_v1, %v5255_v55  ;;  %v6389_v55 = vpop.permute.xlu1 %6388 }
 0x543   : > { %v11789_v36 = vpop.f32.mrb[49].mxu1 }
 0x544   : > { %v11790_v23 = vadd.f32 %v11789_v36, %v11788_v14  ;;  %v11791_v35 = vpop.f32.mrb[50].mxu1  ;;  %6425 = vrot.lane.b32.xlu0 %v5292_v19, %s18742_s6  ;;  %v6524_v14 = vsel %vm6465_vm0, %v3462_v24, %v6389_v55  ;;  %v18749_v19 = vld [vmem:[#allocation71_spill] sm:$0xff] }
 0x545   : > { %v11792_v2 = vpop.f32.mrb[51].mxu1 }
 0x546   : > { %v17290_v54 = vadd.f32 %v11790_v23, %v18746_v47  ;;  %v11793_v39 = vadd.f32 %v11792_v2, %v11791_v35  ;;  %v18750_v35 = vld [vmem:[#allocation73_spill] sm:$0xff] }
 0x547   : > { %7274 = vmatmul.mubr.bf16.gmra.mrb[156].mxu1 %v6520_v37 }
 0x548   : > { %v17294_v9 = vadd.f32 %v11793_v39, %v18747_v0  ;;  %7281 = vmatprep.mubr.bf16.mxu1 %v6544_v29 }
 0x54a   : > { %v11794_v27 = vpop.f32.mrb[52].mxu1 }
 0x54b   : > { %v11795_v40 = vpop.f32.mrb[53].mxu1 }
 0x54c   : > { %v11796_v31 = vadd.f32 %v11795_v40, %v11794_v27  ;;  %v11797_v63 = vpop.f32.mrb[54].mxu1  ;;  %v18751_v40 = vld [vmem:[#allocation74_spill] sm:$0xff] }
 0x54d   : > { %v11798_v1 = vpop.f32.mrb[55].mxu1 }
 0x54e   : > { %v17302_v36 = vadd.f32 %v11796_v31, %v18749_v19  ;;  %v11799_v13 = vadd.f32 %v11798_v1, %v11797_v63 }
 0x54f   : > { %v12196_v23 = vpop.f32.mrb[112].mxu0  ;;  %7282 = vmatmul.mubr.bf16.gmra.mrb[160].mxu1 %v6524_v14 }
 0x550   : > { %v17305_v4 = vadd.f32 %v11799_v13, %v18750_v35  ;;  %v12197_v2 = vpop.f32.mrb[113].mxu0 }
 0x551   : > { %v17307_v17 = vadd.f32 %v12197_v2, %v12196_v23  ;;  %v12199_v15 = vpop.f32.mrb[114].mxu0 }
 0x552   : > { %v11800_v30 = vpop.f32.mrb[56].mxu1  ;;  %v12200_v37 = vpop.f32.mrb[115].mxu0 }
 0x553   : > { %v17311_v39 = vadd.f32 %v12200_v37, %v12199_v15  ;;  %v11801_v29 = vpop.f32.mrb[57].mxu1 }
 0x554   : > { %v11802_v0 = vadd.f32 %v11801_v29, %v11800_v30  ;;  %v11803_v27 = vpop.f32.mrb[58].mxu1 }
 0x555   : > { %v11804_v55 = vpop.f32.mrb[59].mxu1 }
 0x556   : > { %v17314_v32 = vadd.f32 %v11802_v0, %v18751_v40  ;;  %v11805_v24 = vadd.f32 %v11804_v55, %v11803_v27  ;;  %v18752_v0 = vld [vmem:[#allocation4_spill] sm:$0xff] }
 0x557   : > { %v18755_v40 = vld [vmem:[#allocation20_spill] sm:$0xff] }
 0x558   : > { %v17317_v31 = vadd.f32 %v11805_v24, %v16693_v10 }
 0x55a   : > { %v11806_v63 = vpop.f32.mrb[60].mxu1 }
 0x55b   : > { %v11807_v14 = vpop.f32.mrb[61].mxu1 }
 0x55c   : > { %v11808_v19 = vadd.f32 %v11807_v14, %v11806_v63  ;;  %v11809_v13 = vpop.f32.mrb[62].mxu1 }
 0x55d   : > { %v11810_v23 = vpop.f32.mrb[63].mxu1  ;;  %v18753_v13 = vld [vmem:[#allocation3_spill] sm:$0xff] }
 0x55e   : > { %v17322_v35 = vadd.f32 %v11808_v19, %v16702_v41 }
 0x562   : > { %v11874_v2 = vpop.f32.mrb[64].mxu1 }
 0x563   : > { %v11875_v15 = vpop.f32.mrb[65].mxu1 }
 0x564   : > { %v11876_v30 = vadd.f32 %v11875_v15, %v11874_v2  ;;  %v11877_v37 = vpop.f32.mrb[66].mxu1  ;;  %v18754_v15 = vld [vmem:[#allocation26_spill] sm:$0xff] }
 0x565   : > { %v11878_v29 = vpop.f32.mrb[67].mxu1 }
 0x566   : > { %v17325_v27 = vadd.f32 %v11876_v30, %v18752_v0  ;;  %v11879_v10 = vadd.f32 %v11878_v29, %v11877_v37  ;;  %v18759_v30 = vld [vmem:[#allocation27_spill] sm:$0xff] }
 0x568   : > { %v17328_v55 = vadd.f32 %v11879_v10, %v16718_v8 }
 0x56a   : > { %v11880_v24 = vpop.f32.mrb[68].mxu1 }
 0x56b   : > { %v11881_v63 = vpop.f32.mrb[69].mxu1 }
 0x56c   : > { %v11882_v14 = vadd.f32 %v11881_v63, %v11880_v24  ;;  %v11883_v41 = vpop.f32.mrb[70].mxu1  ;;  %v18757_v63 = vld [vmem:[#allocation15_spill] sm:$0xff] }
 0x56d   : > { %v11884_v19 = vpop.f32.mrb[71].mxu1 }
 0x56e   : > { %v17333_v23 = vadd.f32 %v11882_v14, %v18753_v13  ;;  %v11885_v2 = vadd.f32 %v11884_v19, %v11883_v41  ;;  %v18763_v14 = vld [vmem:[#allocation76_spill] sm:$0xff] }
 0x570   : > { %v17336_v6 = vadd.f32 %v11885_v2, %v18754_v15 }
 0x572   : > { %v11886_v8 = vpop.f32.mrb[72].mxu1 }
 0x573   : > { %v11887_v37 = vpop.f32.mrb[73].mxu1 }
 0x574   : > { %v11888_v29 = vadd.f32 %v11887_v37, %v11886_v8  ;;  %v11889_v0 = vpop.f32.mrb[74].mxu1  ;;  %v18761_v37 = vld [vmem:[#allocation75_spill] sm:$0xff] }
 0x575   : > { %v11890_v10 = vpop.f32.mrb[75].mxu1 }
 0x576   : > { %v17341_v1 = vadd.f32 %v11888_v29, %v18755_v40  ;;  %v11891_v24 = vadd.f32 %v11890_v10, %v11889_v0 }
 0x578   : > { %18756 = vst [vmem:[#allocation46_spill] sm:$0xff] %v17341_v1  ;;  %v17344_v47 = vadd.f32 %v11891_v24, %v18757_v63 }
 0x57a   : > { %18758 = vst [vmem:[#allocation48_spill] sm:$0xff] %v17344_v47  ;;  %v11892_v41 = vpop.f32.mrb[76].mxu1 }
 0x57b   : > { %v11893_v19 = vpop.f32.mrb[77].mxu1 }
 0x57c   : > { %v11894_v13 = vadd.f32 %v11893_v19, %v11892_v41  ;;  %v11895_v2 = vpop.f32.mrb[78].mxu1 }
 0x57d   : > { %v11896_v15 = vpop.f32.mrb[79].mxu1 }
 0x57e   : > { %v17349_v56 = vadd.f32 %v11894_v13, %v18759_v30  ;;  %v11897_v8 = vadd.f32 %v11896_v15, %v11895_v2  ;;  %v18764_v2 = vld [vmem:[#allocation77_spill] sm:$0xff] }
 0x580   : > { %18760 = vst [vmem:[#allocation49_spill] sm:$0xff] %v17349_v56  ;;  %v17352_v51 = vadd.f32 %v11897_v8, %v18761_v37  ;;  %v18765_v37 = vld [vmem:[#allocation78_spill] sm:$0xff] }
 0x582   : > { %18762 = vst [vmem:[#allocation50_spill] sm:$0xff] %v17352_v51  ;;  %v11898_v29 = vpop.f32.mrb[80].mxu1 }
 0x583   : > { %v11899_v0 = vpop.f32.mrb[81].mxu1 }
 0x584   : > { %v11900_v10 = vadd.f32 %v11899_v0, %v11898_v29  ;;  %v11901_v24 = vpop.f32.mrb[82].mxu1 }
 0x585   : > { %v11902_v63 = vpop.f32.mrb[83].mxu1 }
 0x586   : > { %v17357_v18 = vadd.f32 %v11900_v10, %v18763_v14  ;;  %v18766_v14 = vld [vmem:[#allocation79_spill] sm:$0xff] }
 0x58a   : > { %v11966_v41 = vpop.f32.mrb[84].mxu1 }
 0x58b   : > { %v11967_v19 = vpop.f32.mrb[85].mxu1 }
 0x58c   : > { %v11968_v58 = vadd.f32 %v11967_v19, %v11966_v41  ;;  %v11969_v30 = vpop.f32.mrb[86].mxu1 }
 0x58d   : > { %v11970_v13 = vpop.f32.mrb[87].mxu1 }
 0x58e   : > { %v5779_v15 = vadd.f32 %v11968_v58, %v18764_v2  ;;  %v11971_v8 = vadd.f32 %v11970_v13, %v11969_v30  ;;  %v18767_v58 = vpack.c.bf16 %v17030_v62, %v17027_v22 }
 0x590   : > { %v5782_v1 = vadd.f32 %v11971_v8, %v18765_v37 }
 0x592   : > { %v11972_v47 = vpop.f32.mrb[88].mxu1  ;;  %v5816_v40 = vpack.c.bf16 %v5782_v1, %v5779_v15 }
 0x593   : > { %v11973_v56 = vpop.f32.mrb[89].mxu1 }
 0x594   : > { %v11974_v51 = vadd.f32 %v11973_v56, %v11972_v47  ;;  %v11975_v29 = vpop.f32.mrb[90].mxu1  ;;  %6440 = vrot.lane.b32.xlu1 %v5816_v40, %s18742_s6  ;;  %v18768_v47 = vld [vmem:[#allocation80_spill] sm:$0xff] }
 0x595   : > { %v11976_v0 = vpop.f32.mrb[91].mxu1 }
 0x596   : > { %v5787_v10 = vadd.f32 %v11974_v51, %v18766_v14  ;;  %v11977_v24 = vadd.f32 %v11976_v0, %v11975_v29  ;;  %v18769_v51 = vld [vmem:[#allocation81_spill] sm:$0xff] }
 0x598   : > { %v5790_v63 = vadd.f32 %v11977_v24, %v16785_v3  ;;  %6412 = vrot.lane.b32.xlu1 %v18767_v58, %s18742_s6  ;;  %v18770_v3 = vpack.c.bf16 %v17047_v11, %v17044_v42  ;;  %v13300_v24 = vld [vmem:[%s18573_s2 + $0x1c0] sm:$0xff]   ;;  %v13302_v11 = vld [vmem:[%s18573_s2 + $0x1c8] sm:$0xff]   ;;  %v18771_v58 = vpack.c.bf16 %v17067_v33, %v17064_v44  ;;  %v4772_v33 = vpack.c.bf16 %v17090_v25, %v17090_v25  ;;  %v13307_v25 = vld [vmem:[%s18573_s2 + $0x198] sm:$0xff]  }
 0x599   : > { %v13301_v42 = vld [vmem:[%s18573_s2 + $0x180] sm:$0xff]   ;;  %12318 = vmatprep.subr.bf16.mxu1 %v13300_v24 }
 0x59a   : > { %v11978_v41 = vpop.f32.mrb[92].mxu1  ;;  %v5817_v19 = vpack.c.bf16 %v5790_v63, %v5787_v10  ;;  %12319 = vmatpush3.bf16.msra.mxu1 %v13301_v42  ;;  %v13310_v42 = vld [vmem:[%s18573_s2 + $0x1e8] sm:$0xff]  }
 0x59b   : > { %v11979_v30 = vpop.f32.mrb[93].mxu1  ;;  %12320 = vmatprep.subr.bf16.mxu1 %v13302_v11 }
 0x59c   : > { %v11980_v1 = vadd.f32 %v11979_v30, %v11978_v41  ;;  %v11981_v13 = vpop.f32.mrb[94].mxu1  ;;  %6442 = vrot.lane.b32.xlu1 %v5817_v19, %s18742_s6  ;;  %v13303_v19 = vld [vmem:[%s18573_s2 + $0x188] sm:$0xff]  }
 0x59d   : > { %v11982_v56 = vpop.f32.mrb[95].mxu1 }
 0x59e   : > { %v5795_v40 = vadd.f32 %v11980_v1, %v18768_v47  ;;  %v11983_v2 = vadd.f32 %v11982_v56, %v11981_v13  ;;  %v13304_v1 = vld [vmem:[%s18573_s2 + $0x1d0] sm:$0xff]   ;;  %12321 = vmatpush3.bf16.msra.mxu1 %v13303_v19 }
 0x59f   : > { %v13305_v47 = vld [vmem:[%s18573_s2 + $0x190] sm:$0xff]   ;;  %12322 = vmatprep.subr.bf16.mxu1 %v13304_v1 }
 0x5a0   : > { %v5798_v15 = vadd.f32 %v11983_v2, %v18769_v51  ;;  %6414 = vrot.lane.b32.xlu1 %v18770_v3, %s18742_s6 }
 0x5a2   : > { %v11984_v22 = vpop.f32.mrb[96].mxu1  ;;  %v5818_v62 = vpack.c.bf16 %v5798_v15, %v5795_v40  ;;  %v13306_v40 = vld [vmem:[%s18573_s2 + $0x1d8] sm:$0xff]   ;;  %12323 = vmatpush3.bf16.msra.mxu1 %v13305_v47  ;;  %v13308_v15 = vld [vmem:[%s18573_s2 + $0x1e0] sm:$0xff]  }
 0x5a3   : > { %v11985_v8 = vpop.f32.mrb[97].mxu1  ;;  %12324 = vmatprep.subr.bf16.mxu1 %v13306_v40 }
 0x5a4   : > { %v11986_v37 = vadd.f32 %v11985_v8, %v11984_v22  ;;  %v11987_v29 = vpop.f32.mrb[98].mxu1  ;;  %6444 = vrot.lane.b32.xlu1 %v5818_v62, %s18742_s6  ;;  %v6411_v62 = vpop.permute.xlu1 %6410 }
 0x5a5   : > { %v11988_v0 = vpop.f32.mrb[99].mxu1 }
 0x5a6   : > { %v5803_v14 = vadd.f32 %v11986_v37, %v16801_v46  ;;  %v11989_v10 = vadd.f32 %v11988_v0, %v11987_v29  ;;  %12325 = vmatpush3.bf16.msra.mxu1 %v13307_v25 }
 0x5a7   : > { %12326 = vmatprep.subr.bf16.mxu1 %v13308_v15 }
 0x5a8   : > { %v5806_v63 = vadd.f32 %v11989_v10, %v16806_v38  ;;  %6416 = vrot.lane.b32.xlu1 %v18771_v58, %s18742_s6  ;;  %v18772_v10 = vpack.c.bf16 %v17116_v43, %v17111_v20 }
 0x5aa   : > { %v11990_v46 = vpop.f32.mrb[100].mxu1  ;;  %v5819_v41 = vpack.c.bf16 %v5806_v63, %v5803_v14  ;;  %v13309_v14 = vld [vmem:[%s18573_s2 + $0x1a0] sm:$0xff]   ;;  %v18774_v63 = vld [vmem:[#allocation5_spill] sm:$0xff] }
 0x5ab   : > { %v11991_v30 = vpop.f32.mrb[101].mxu1  ;;  %12327 = vmatpush3.bf16.msra.mxu1 %v13309_v14 }
 0x5ac   : > { %v11992_v38 = vadd.f32 %v11991_v30, %v11990_v46  ;;  %v11993_v13 = vpop.f32.mrb[102].mxu1  ;;  %6446 = vrot.lane.b32.xlu1 %v5819_v41, %s18742_s6  ;;  %v13311_v46 = vld [vmem:[%s18573_s2 + $0x1a8] sm:$0xff]   ;;  %12328 = vmatprep.subr.bf16.mxu1 %v13310_v42 }
 0x5ad   : > { %v11994_v44 = vpop.f32.mrb[103].mxu1  ;;  %v13313_v13 = vld [vmem:[%s18573_s2 + $0x1b0] sm:$0xff]  }
 0x5ae   : > { %v5811_v56 = vadd.f32 %v11992_v38, %v16809_v48  ;;  %v13314_v44 = vld [vmem:[%s18573_s2 + $0x1f8] sm:$0xff]  }
 0x5af   : > { %12329 = vmatpush3.bf16.msra.mxu1 %v13311_v46 }
 0x5b0   : > { %6418 = vrot.lane.b32.xlu1 %v4772_v33, %s18742_s6  ;;  %v5820_v2 = vpack.c.bf16 %v5811_v56, %v5811_v56  ;;  %v18775_v33 = vld [vmem:[#allocation14_spill] sm:$0xff] }
 0x5b2   : > { %v12058_v51 = vpop.f32.mrb[104].mxu1 }
 0x5b3   : > { %v12059_v48 = vpop.f32.mrb[105].mxu1 }
 0x5b4   : > { %v12060_v3 = vadd.f32 %v12059_v48, %v12058_v51  ;;  %v12061_v22 = vpop.f32.mrb[106].mxu1  ;;  %6448 = vrot.lane.b32.xlu1 %v5820_v2, %s18742_s6 }
 0x5b5   : > { %v12062_v8 = vpop.f32.mrb[107].mxu1 }
 0x5b6   : > { %v17416_v37 = vadd.f32 %v12060_v3, %v16818_v12  ;;  %v12063_v29 = vadd.f32 %v12062_v8, %v12061_v22  ;;  %v6426_v0 = vpop.permute.xlu0 %6425  ;;  %v18773_v12 = vpack.c.bf16 %v16930_v28, %v16923_v45  ;;  %v13312_v28 = vld [vmem:[%s18573_s2 + $0x1f0] sm:$0xff]  }
 0x5b7   : > { %v6568_v24 = vsel %vm6465_vm0, %v18772_v10, %v6426_v0  ;;  %12330 = vmatprep.subr.bf16.mxu1 %v13312_v28 }
 0x5b8   : > { %v6548_v11 = vsel %vm6465_vm0, %v18773_v12, %v6411_v62  ;;  %v17433_v58 = vadd.f32 %v12063_v29, %v18774_v63  ;;  %7321 = vmatprep.mubr.bf16.mxu0 %v6568_v24  ;;  %12331 = vmatpush3.bf16.msra.mxu1 %v13313_v13  ;;  %v18776_v13 = vld [vmem:[#allocation35_spill] sm:$0xff] }
 0x5b9   : > { %7322 = vmatmul.mubr.bf16.vlgmr.msra.gmra.mrb[132].mxu0 %v6548_v11  ;;  %12332 = vmatprep.subr.bf16.mxu1 %v13314_v44 }
 0x5ba   : > { %v6078_v20 = vpack.c.bf16 %v17433_v58, %v17416_v37  ;;  %v12064_v43 = vpop.f32.mrb[108].mxu1 }
 0x5bb   : > { %v12065_v41 = vpop.f32.mrb[109].mxu1 }
 0x5bc   : > { %v12066_v45 = vadd.f32 %v12065_v41, %v12064_v43  ;;  %v12067_v19 = vpop.f32.mrb[110].mxu1 }
 0x5bd   : > { %v12068_v30 = vpop.f32.mrb[111].mxu1 }
 0x5be   : > { %v17444_v1 = vadd.f32 %v12066_v45, %v16833_v57  ;;  %v12069_v38 = vadd.f32 %v12068_v30, %v12067_v19  ;;  %v13315_v57 = vld [vmem:[%s18573_s2 + $0x1b8] sm:$0xff]  }
 0x5bf   : > { %12333 = vmatpush3.bf16.msra.mxu1 %v13315_v57 }
 0x5c0   : > { %v17453_v56 = vadd.f32 %v12069_v38, %v18775_v33 }
 0x5c2   : > { %v6079_v47 = vpack.c.bf16 %v17453_v56, %v17444_v1  ;;  %v12070_v40 = vpop.f32.mrb[112].mxu1 }
 0x5c3   : > { %v12071_v2 = vpop.f32.mrb[113].mxu1 }
 0x5c4   : > { %v12072_v51 = vadd.f32 %v12071_v2, %v12070_v40  ;;  %v12073_v25 = vpop.f32.mrb[114].mxu1 }
 0x5c5   : > { %v12074_v48 = vpop.f32.mrb[115].mxu1 }
 0x5c6   : > { %v17461_v15 = vadd.f32 %v12072_v51, %v16849_v59  ;;  %v12075_v3 = vadd.f32 %v12074_v48, %v12073_v25 }
 0x5c8   : > { %v17464_v22 = vadd.f32 %v12075_v3, %v16856_v26 }
 0x5ca   : > { %v6080_v62 = vpack.c.bf16 %v17464_v22, %v17461_v15  ;;  %v12076_v8 = vpop.f32.mrb[116].mxu1 }
 0x5cb   : > { %v12077_v29 = vpop.f32.mrb[117].mxu1 }
 0x5cc   : > { %v12078_v0 = vadd.f32 %v12077_v29, %v12076_v8  ;;  %v12079_v14 = vpop.f32.mrb[118].mxu1  ;;  %v18778_v8 = vld [vmem:[#allocation28_spill] sm:$0xff] }
 0x5cd   : > { %v12080_v10 = vpop.f32.mrb[119].mxu1 }
 0x5ce   : > { %v17469_v24 = vadd.f32 %v12078_v0, %v16868_v61  ;;  %v12081_v42 = vadd.f32 %v12080_v10, %v12079_v14 }
 0x5d0   : > { %v17472_v59 = vadd.f32 %v12081_v42, %v16875_v50 }
 0x5d2   : > { %v6081_v12 = vpack.c.bf16 %v17472_v59, %v17469_v24  ;;  %v12082_v26 = vpop.f32.mrb[120].mxu1 }
 0x5d3   : > { %v12083_v11 = vpop.f32.mrb[121].mxu1 }
 0x5d4   : > { %v12084_v63 = vadd.f32 %v12083_v11, %v12082_v26  ;;  %v12085_v43 = vpop.f32.mrb[122].mxu1 }
 0x5d5   : > { %v12086_v46 = vpop.f32.mrb[123].mxu1 }
 0x5d6   : > { %v17477_v41 = vadd.f32 %v12084_v63, %v16880_v16  ;;  %v18777_v16 = vld [vmem:[#allocation29_spill] sm:$0xff]  ;;  %v18780_v63 = vld [vmem:[#allocation16_spill] sm:$0xff] }
 0x5d8   : > { %v6082_v59 = vpack.c.bf16 %v17477_v41, %v17477_v41 }
 0x5da   : > { %v12150_v28 = vpop.f32.mrb[124].mxu1 }
 0x5db   : > { %v12151_v45 = vpop.f32.mrb[125].mxu1 }
 0x5dc   : > { %v12152_v19 = vadd.f32 %v12151_v45, %v12150_v28  ;;  %v12153_v61 = vpop.f32.mrb[126].mxu1  ;;  %v18781_v28 = vld [vmem:[#allocation6_spill] sm:$0xff] }
 0x5dd   : > { %v12154_v30 = vpop.f32.mrb[127].mxu1 }
 0x5de   : > { %v6303_v38 = vadd.f32 %v12152_v19, %v16895_v5  ;;  %v12155_v50 = vadd.f32 %v12154_v30, %v12153_v61  ;;  %v18779_v5 = vpack.c.bf16 %v17294_v9, %v17290_v54  ;;  %v18782_v19 = vpack.c.bf16 %v17305_v4, %v17302_v36 }
 0x5df   : > { %v18783_v4 = vpack.c.bf16 %v17317_v31, %v17314_v32 }
 0x5e0   : > { %v6306_v44 = vadd.f32 %v12155_v50, %v18776_v13 }
 0x5e2   : > { %v12156_v33 = vpop.f32.mrb[128].mxu1  ;;  %v6340_v40 = vpack.c.bf16 %v6306_v44, %v6303_v38 }
 0x5e3   : > { %v12157_v57 = vpop.f32.mrb[129].mxu1 }
 0x5e4   : > { %v12158_v2 = vadd.f32 %v12157_v57, %v12156_v33  ;;  %v12159_v51 = vpop.f32.mrb[130].mxu1  ;;  %6455 = vrot.lane.b32.xlu0 %v6340_v40, %s18742_s6 }
 0x5e5   : > { %v12160_v25 = vpop.f32.mrb[131].mxu1 }
 0x5e6   : > { %v6311_v48 = vadd.f32 %v12158_v2, %v18777_v16  ;;  %v12161_v3 = vadd.f32 %v12160_v25, %v12159_v51 }
 0x5e8   : > { %v6314_v29 = vadd.f32 %v12161_v3, %v18778_v8  ;;  %6427 = vrot.lane.b32.xlu0 %v18779_v5, %s18742_s6 }
 0x5ea   : > { %v12162_v0 = vpop.f32.mrb[132].mxu1  ;;  %v6341_v14 = vpack.c.bf16 %v6314_v29, %v6311_v48 }
 0x5eb   : > { %v12163_v10 = vpop.f32.mrb[133].mxu1 }
 0x5ec   : > { %v12164_v42 = vadd.f32 %v12163_v10, %v12162_v0  ;;  %v12165_v26 = vpop.f32.mrb[134].mxu1  ;;  %6457 = vrot.lane.b32.xlu0 %v6341_v14, %s18742_s6 }
 0x5ed   : > { %v12166_v11 = vpop.f32.mrb[135].mxu1 }
 0x5ee   : > { %v6319_v43 = vadd.f32 %v12164_v42, %v18780_v63  ;;  %v12167_v46 = vadd.f32 %v12166_v11, %v12165_v26  ;;  %v10462_v11 = vld [vmem:[%s18784_s1] ss:$0 sm:$0xff]  ;;  %s809_s1 = scalar_lea.vmem %s18810_s3, %s9722_s29 }
 0x5f0   : > { %v6322_v45 = vadd.f32 %v12167_v46, %v18781_v28  ;;  %6429 = vrot.lane.b32.xlu0 %v18782_v19, %s18742_s6  ;;  %v7180_v28 = vadd.f32 %v17307_v17, %v10462_v11 }
 0x5f2   : > { %v12168_v54 = vpop.f32.mrb[136].mxu1  ;;  %v6342_v9 = vpack.c.bf16 %v6322_v45, %v6319_v43 }
 0x5f3   : > { %v12169_v61 = vpop.f32.mrb[137].mxu1 }
 0x5f4   : > { %v12202_v30 = vpop.f32.mrb[116].mxu0  ;;  %v12170_v38 = vadd.f32 %v12169_v61, %v12168_v54  ;;  %v12171_v50 = vpop.f32.mrb[138].mxu1  ;;  %6459 = vrot.lane.b32.xlu0 %v6342_v9, %s18742_s6  ;;  %v7183_v61 = vadd.f32 %v17311_v39, %v10462_v11 }
 0x5f5   : > { %v12203_v13 = vpop.f32.mrb[117].mxu0  ;;  %v12172_v33 = vpop.f32.mrb[139].mxu1 }
 0x5f6   : > { %v12204_v44 = vadd.f32 %v12203_v13, %v12202_v30  ;;  %v12205_v40 = vpop.f32.mrb[118].mxu0  ;;  %v6327_v57 = vadd.f32 %v12170_v38, %v16945_v49  ;;  %v12173_v2 = vadd.f32 %v12172_v33, %v12171_v50 }
 0x5f7   : > { %v12206_v51 = vpop.f32.mrb[119].mxu0 }
 0x5f8   : > { %v12207_v25 = vadd.f32 %v12206_v51, %v12205_v40  ;;  %v6330_v36 = vadd.f32 %v12173_v2, %v16949_v52  ;;  %6431 = vrot.lane.b32.xlu0 %v18783_v4, %s18742_s6  ;;  %v5296_v52 = vpack.c.bf16 %v17322_v35, %v17322_v35  ;;  %v7188_v2 = vadd.f32 %v12204_v44, %v10462_v11 }
 0x5fa   : > { %v12174_v16 = vpop.f32.mrb[140].mxu1  ;;  %v6343_v48 = vpack.c.bf16 %v6330_v36, %v6327_v57 }
 0x5fb   : > { %v12175_v3 = vpop.f32.mrb[141].mxu1 }
 0x5fc   : > { %v12208_v8 = vpop.f32.mrb[120].mxu0  ;;  %v12176_v29 = vadd.f32 %v12175_v3, %v12174_v16  ;;  %v12177_v5 = vpop.f32.mrb[142].mxu1  ;;  %6461 = vrot.lane.b32.xlu0 %v6343_v48, %s18742_s6 }
 0x5fd   : > { %v12209_v0 = vpop.f32.mrb[121].mxu0  ;;  %v12178_v14 = vpop.f32.mrb[143].mxu1 }
 0x5fe   : > { %v12210_v49 = vadd.f32 %v12209_v0, %v12208_v8  ;;  %v12211_v10 = vpop.f32.mrb[122].mxu0  ;;  %v6335_v42 = vadd.f32 %v12176_v29, %v16954_v53  ;;  %v7191_v8 = vadd.f32 %v12207_v25, %v10462_v11 }
 0x5ff   : > { %v12212_v26 = vpop.f32.mrb[123].mxu0 }
 0x600   : > { %v12213_v32 = vadd.f32 %v12212_v26, %v12211_v10  ;;  %v6344_v31 = vpack.c.bf16 %v6335_v42, %v6335_v42  ;;  %6433 = vrot.lane.b32.xlu0 %v5296_v52, %s18742_s6  ;;  %v7196_v52 = vadd.f32 %v12210_v49, %v10462_v11 }
 0x602   : > { %v12242_v63 = vpop.f32.mrb[144].mxu1  ;;  %v7199_v44 = vadd.f32 %v12213_v32, %v10462_v11 }
 0x603   : > { %v12243_v46 = vpop.f32.mrb[145].mxu1 }
 0x604   : > { %v12214_v43 = vpop.f32.mrb[124].mxu0  ;;  %v12244_v45 = vadd.f32 %v12243_v46, %v12242_v63  ;;  %v12245_v19 = vpop.f32.mrb[146].mxu1  ;;  %6463 = vrot.lane.b32.xlu0 %v6344_v31, %s18742_s6 }
 0x605   : > { %v12215_v35 = vpop.f32.mrb[125].mxu0  ;;  %v12246_v9 = vpop.f32.mrb[147].mxu1 }
 0x606   : > { %v12216_v53 = vadd.f32 %v12215_v35, %v12214_v43  ;;  %v12217_v54 = vpop.f32.mrb[126].mxu0  ;;  %v17513_v30 = vadd.f32 %v12244_v45, %v7180_v28  ;;  %v12247_v38 = vadd.f32 %v12246_v9, %v12245_v19 }
 0x607   : > { %v12218_v50 = vpop.f32.mrb[127].mxu0 }
 0x608   : > { %v12219_v13 = vadd.f32 %v12218_v50, %v12217_v54  ;;  %v17515_v33 = vadd.f32 %v12247_v38, %v7183_v61  ;;  %v7204_v45 = vadd.f32 %v12216_v53, %v10462_v11 }
 0x60a   : > { %v12248_v40 = vpop.f32.mrb[148].mxu1  ;;  %v7207_v9 = vadd.f32 %v12219_v13, %v10462_v11 }
 0x60b   : > { %v12249_v17 = vpop.f32.mrb[149].mxu1 }
 0x60c   : > { %v12220_v57 = vpop.f32.mrb[128].mxu0  ;;  %v12250_v51 = vadd.f32 %v12249_v17, %v12248_v40  ;;  %v12251_v4 = vpop.f32.mrb[150].mxu1 }
 0x60d   : > { %v12221_v36 = vpop.f32.mrb[129].mxu0  ;;  %v12252_v3 = vpop.f32.mrb[151].mxu1 }
 0x60e   : > { %v12222_v16 = vadd.f32 %v12221_v36, %v12220_v57  ;;  %v12223_v48 = vpop.f32.mrb[130].mxu0  ;;  %v17517_v29 = vadd.f32 %v12250_v51, %v7188_v2  ;;  %v12253_v39 = vadd.f32 %v12252_v3, %v12251_v4  ;;  %v6441_v36 = vpop.permute.xlu1 %6440 }
 0x60f   : > { %v12224_v5 = vpop.f32.mrb[131].mxu0 }
 0x610   : > { %v17519_v0 = vadd.f32 %v12253_v39, %v7191_v8  ;;  %v7212_v32 = vadd.f32 %v12222_v16, %v10462_v11  ;;  %v18785_v8 = vpack.c.bf16 %v17328_v55, %v17325_v27  ;;  %v18786_v39 = vpack.c.bf16 %v17162_v34, %v17150_v21 }
 0x611   : > { %v18788_v55 = vpack.c.bf16 %v17336_v6, %v17333_v23  ;;  %v18795_v23 = vld [vmem:[#allocation48_spill] sm:$0xff] }
 0x612   : > { %v12254_v14 = vpop.f32.mrb[152].mxu1  ;;  %v6413_v4 = vpop.permute.xlu1 %6412  ;;  %v6588_v11 = vsel %vm6465_vm0, %v18785_v8, %v6441_v36 }
 0x613   : > { %v12255_v10 = vpop.f32.mrb[153].mxu1 }
 0x614   : > { %v12256_v42 = vadd.f32 %v12255_v10, %v12254_v14  ;;  %v12257_v26 = vpop.f32.mrb[154].mxu1  ;;  %v18787_v14 = vpack.c.bf16 %v16957_v7, %v16952_v60  ;;  %v18789_v7 = vld [vmem:[#allocation32_spill] sm:$0xff]  ;;  %v18790_v10 = vld [vmem:[#allocation17_spill] sm:$0xff] }
 0x615   : > { %v12258_v31 = vpop.f32.mrb[155].mxu1 }
 0x616   : > { %v17521_v63 = vadd.f32 %v12256_v42, %v7196_v52  ;;  %v12259_v43 = vadd.f32 %v12258_v31, %v12257_v26  ;;  %v6443_v53 = vpop.permute.xlu1 %6442  ;;  %v6552_v37 = vsel %vm6465_vm0, %v18787_v14, %v6413_v4  ;;  %v18791_v52 = vpack.c.bf16 %v18789_v7, %v18790_v10  ;;  %v18792_v26 = vld [vmem:[#allocation37_spill] sm:$0xff]  ;;  %v18793_v31 = vld [vmem:[#allocation36_spill] sm:$0xff] }
 0x617   : > { %v6592_v34 = vsel %vm6465_vm0, %v18788_v55, %v6443_v53  ;;  %v18807_v4 = vld [vmem:[#allocation41_spill] sm:$0xff] }
 0x618   : > { %v17523_v46 = vadd.f32 %v12259_v43, %v7199_v44  ;;  %v18794_v44 = vpack.c.bf16 %v18792_v26, %v18793_v31  ;;  %v5034_v53 = vpack.c.bf16 %v18807_v4, %v18807_v4 }
 0x61a   : > { %v12260_v28 = vpop.f32.mrb[156].mxu1  ;;  %v6415_v3 = vpop.permute.xlu1 %6414 }
 0x61b   : > { %v12261_v25 = vpop.f32.mrb[157].mxu1  ;;  %v6556_v1 = vsel %vm6465_vm0, %v18794_v44, %v6415_v3 }
 0x61c   : > { %v12262_v19 = vadd.f32 %v12261_v25, %v12260_v28  ;;  %v12263_v35 = vpop.f32.mrb[158].mxu1 }
 0x61d   : > { %v12264_v54 = vpop.f32.mrb[159].mxu1 }
 0x61e   : > { %v17525_v61 = vadd.f32 %v12262_v19, %v7204_v45  ;;  %v12265_v38 = vadd.f32 %v12264_v54, %v12263_v35  ;;  %v6445_v58 = vpop.permute.xlu1 %6444  ;;  %v18798_v19 = vld [vmem:[#allocation40_spill] sm:$0xff]  ;;  %v18799_v35 = vld [vmem:[#allocation19_spill] sm:$0xff] }
 0x61f   : > { %v18800_v54 = vpack.c.bf16 %v18798_v19, %v18799_v35 }
 0x620   : > { %v17527_v49 = vadd.f32 %v12265_v38, %v7207_v9  ;;  %v18801_v38 = vld [vmem:[#allocation30_spill] sm:$0xff] }
 0x622   : > { %v12266_v50 = vpop.f32.mrb[160].mxu1  ;;  %v6417_v60 = vpop.permute.xlu1 %6416 }
 0x623   : > { %v12267_v40 = vpop.f32.mrb[161].mxu1 }
 0x624   : > { %v12268_v57 = vadd.f32 %v12267_v40, %v12266_v50  ;;  %v12269_v17 = vpop.f32.mrb[162].mxu1  ;;  %v18802_v50 = vld [vmem:[#allocation31_spill] sm:$0xff] }
 0x625   : > { %v12270_v2 = vpop.f32.mrb[163].mxu1  ;;  %v18803_v40 = vpack.c.bf16 %v18801_v38, %v18802_v50  ;;  %v18805_v17 = vld [vmem:[#allocation49_spill] sm:$0xff] }
 0x626   : > { %v17529_v51 = vadd.f32 %v12268_v57, %v7212_v32  ;;  %v6447_v25 = vpop.permute.xlu1 %6446  ;;  %v18804_v57 = vld [vmem:[#allocation50_spill] sm:$0xff] }
 0x627   : > { %v6560_v15 = vsel %vm6465_vm0, %v18803_v40, %v6417_v60  ;;  %v18806_v2 = vpack.c.bf16 %v18804_v57, %v18805_v17 }
 0x629   : > { %v6600_v36 = vsel %vm6465_vm0, %v18806_v2, %v6447_v25 }
 0x656   : > { %v6456_v48 = vpop.permute.xlu0 %6455 }
 0x657   : > { %v6608_v13 = vsel %vm6465_vm0, %v6078_v20, %v6456_v48  ;;  %v18808_v48 = vld [vmem:[#allocation18_spill] sm:$0xff] }
 0x658   : > { %7393 = vmatprep.mubr.bf16.mxu1 %v6608_v13  ;;  %v4510_v3 = vpack.c.bf16 %v18808_v48, %v18808_v48 }
 0x659   : > { %7394 = vmatmul.mubr.bf16.vlgmr.msra.gmra.mrb[164].mxu1 %v6588_v11  ;;  %v5558_v11 = vpack.c.bf16 %v17357_v18, %v17357_v18 }
 0x65a   : > { %v6428_v16 = vpop.permute.xlu0 %6427 }
 0x65b   : > { %v6572_v5 = vsel %vm6465_vm0, %v18786_v39, %v6428_v16 }
 0x65c   : > { %7329 = vmatprep.mubr.bf16.mxu0 %v6572_v5 }
 0x65d   : > { %7330 = vmatmul.mubr.bf16.gmra.mrb[136].mxu0 %v6552_v37 }
 0x65e   : > { %v6458_v20 = vpop.permute.xlu0 %6457 }
 0x65f   : > { %v6612_v27 = vsel %vm6465_vm0, %v6079_v47, %v6458_v20  ;;  %v18796_v47 = vld [vmem:[#allocation46_spill] sm:$0xff] }
 0x660   : > { %7401 = vmatprep.mubr.bf16.mxu1 %v6612_v27  ;;  %v18797_v43 = vpack.c.bf16 %v18795_v23, %v18796_v47 }
 0x661   : > { %7402 = vmatmul.mubr.bf16.gmra.mrb[168].mxu1 %v6592_v34 }
 0x662   : > { %v6430_v21 = vpop.permute.xlu0 %6429  ;;  %v6596_v28 = vsel %vm6465_vm0, %v18797_v43, %v6445_v58 }
 0x663   : > { %v6576_v42 = vsel %vm6465_vm0, %v18791_v52, %v6430_v21  ;;  %v13559_v21 = vmov 0.0  }
 0x664   : > { %7337 = vmatprep.mubr.bf16.mxu0 %v6576_v42  ;;  %12580 = vmatprep.subr.bf16.mxu0 %v13559_v21 }
 0x665   : > { %7338 = vmatmul.mubr.bf16.gmra.mrb[140].mxu0 %v6556_v1  ;;  %12608 = vmatprep.subr.bf16.mxu1 %v13559_v21 }
 0x666   : > { %v6460_v56 = vpop.permute.xlu0 %6459 }
 0x667   : > { %v6616_v6 = vsel %vm6465_vm0, %v6080_v62, %v6460_v56  ;;  %v6419_v62 = vpop.permute.xlu1 %6418 }
 0x668   : > { %7409 = vmatprep.mubr.bf16.mxu1 %v6616_v6  ;;  %v6564_v24 = vsel %vm6465_vm0, %v4510_v3, %v6419_v62 }
 0x669   : > { %7410 = vmatmul.mubr.bf16.gmra.mrb[172].mxu1 %v6596_v28 }
 0x66a   : > { %v6432_v45 = vpop.permute.xlu0 %6431 }
 0x66b   : > { %v6580_v9 = vsel %vm6465_vm0, %v18800_v54, %v6432_v45 }
 0x66c   : > { %7345 = vmatprep.mubr.bf16.mxu0 %v6580_v9 }
 0x66d   : > { %7346 = vmatmul.mubr.bf16.gmra.mrb[144].mxu0 %v6560_v15 }
 0x66e   : > { %v6462_v22 = vpop.permute.xlu0 %6461 }
 0x66f   : > { %v6620_v32 = vsel %vm6465_vm0, %v6081_v12, %v6462_v22  ;;  %v6449_v12 = vpop.permute.xlu1 %6448 }
 0x670   : > { %7417 = vmatprep.mubr.bf16.mxu1 %v6620_v32  ;;  %v6604_v5 = vsel %vm6465_vm0, %v5558_v11, %v6449_v12 }
 0x671   : > { %7418 = vmatmul.mubr.bf16.gmra.mrb[176].mxu1 %v6600_v36 }
 0x672   : > { %v6434_v13 = vpop.permute.xlu0 %6433 }
 0x673   : > { %v6584_v8 = vsel %vm6465_vm0, %v5034_v53, %v6434_v13 }
 0x674   : > { %7353 = vmatprep.mubr.bf16.mxu0 %v6584_v8 }
 0x675   : > { %7354 = vmatmul.mubr.bf16.gmra.mrb[148].mxu0 %v6564_v24 }
 0x676   : > { %v6464_v16 = vpop.permute.xlu0 %6463  ;;  %12590 = vmatprep.mubr.msk.bf16.mxu0 %vm13560_vm1, %v13559_v21 }
 0x677   : > { %v6624_v39 = vsel %vm6465_vm0, %v6082_v59, %v6464_v16 }
 0x678   : > { %7425 = vmatprep.mubr.bf16.mxu1 %v6624_v39 }
 0x679   : > { %7426 = vmatmul.mubr.bf16.gmra.mrb[180].mxu1 %v6604_v5 }
 0x67a   : > { %12618 = vmatprep.mubr.msk.bf16.mxu1 %vm13560_vm1, %v13559_v21 }
 0x68c   : > { %v12288_v14 = vpop.f32.mrb[132].mxu0 }
 0x68d   : > { %v12289_v37 = vpop.f32.mrb[133].mxu0 }
 0x68e   : > { %v12290_v58 = vadd.f32 %v12289_v37, %v12288_v14  ;;  %v12291_v20 = vpop.f32.mrb[134].mxu0 }
 0x68f   : > { %v12292_v27 = vpop.f32.mrb[135].mxu0 }
 0x690   : > { %v7324_v55 = vadd.f32 %v12290_v58, %v17513_v30  ;;  %v12293_v41 = vadd.f32 %v12292_v27, %v12291_v20 }
 0x692   : > { %v7327_v34 = vadd.f32 %v12293_v41, %v17515_v33 }
 0x72c   : > { %v12334_v18 = vpop.f32.mrb[164].mxu1 }
 0x72d   : > { %v12335_v60 = vpop.f32.mrb[165].mxu1 }
 0x72e   : > { %v12336_v7 = vadd.f32 %v12335_v60, %v12334_v18  ;;  %v12337_v10 = vpop.f32.mrb[166].mxu1 }
 0x72f   : > { %v12338_v30 = vpop.f32.mrb[167].mxu1 }
 0x730   : > { %v7396_v52 = vadd.f32 %v12336_v7, %v7324_v55  ;;  %v12339_v42 = vadd.f32 %v12338_v30, %v12337_v10  ;;  %v12294_v33 = vpop.f32.mrb[136].mxu0 }
 0x731   : > { %v12295_v26 = vpop.f32.mrb[137].mxu0 }
 0x732   : > { %v7399_v31 = vadd.f32 %v12339_v42, %v7327_v34  ;;  %v12296_v44 = vadd.f32 %v12295_v26, %v12294_v33  ;;  %v12297_v1 = vpop.f32.mrb[138].mxu0  ;;  %v7433_v6 = vmax.f32 %v7396_v52, 0.0 }
 0x733   : > { %v12298_v56 = vpop.f32.mrb[139].mxu0 }
 0x734   : > { %v7434_v23 = vmax.f32 %v7399_v31, 0.0  ;;  %v7332_v47 = vadd.f32 %v12296_v44, %v17517_v29  ;;  %v12299_v43 = vadd.f32 %v12298_v56, %v12297_v1  ;;  %v12340_v28 = vpop.f32.mrb[168].mxu1 }
 0x735   : > { %v12341_v25 = vpop.f32.mrb[169].mxu1 }
 0x736   : > { %v17608_v45 = vpack.c.bf16 %v7434_v23, %v7433_v6  ;;  %v7335_v19 = vadd.f32 %v12299_v43, %v17519_v0  ;;  %v12342_v35 = vadd.f32 %v12341_v25, %v12340_v28  ;;  %v12343_v54 = vpop.f32.mrb[170].mxu1 }
 0x737   : > { %v12344_v9 = vpop.f32.mrb[171].mxu1 }
 0x738   : > { %v7404_v38 = vadd.f32 %v12342_v35, %v7332_v47  ;;  %v12345_v50 = vadd.f32 %v12344_v9, %v12343_v54  ;;  %v12300_v40 = vpop.f32.mrb[140].mxu0  ;;  %12581 = vmatpush3.bf16.msra.mxu0 %v17608_v45  ;;  %12609 = vmatpush3.bf16.msra.mxu1 %v17608_v45  ;;  %v7447_v35 = vld [vmem:[%s18809_s11] sm:$0xf]  ;;  %v10530_v54 = vld [vmem:[%s18809_s11 + $0x8] sm:$0xf] }
 0x739   : > { %v12301_v15 = vpop.f32.mrb[141].mxu0  ;;  %12582 = vmatprep.subr.bf16.mxu0 %v13559_v21  ;;  %12610 = vmatprep.subr.bf16.mxu1 %v13559_v21  ;;  %v10528_v9 = vld [vmem:[%s18809_s11 + $0x4] sm:$0xf] }
 0x73a   : > { %v7407_v29 = vadd.f32 %v12345_v50, %v7335_v19  ;;  %v12302_v22 = vadd.f32 %v12301_v15, %v12300_v40  ;;  %v12303_v62 = vpop.f32.mrb[142].mxu0  ;;  %v7435_v0 = vmax.f32 %v7404_v38, 0.0  ;;  %v10534_v38 = vld [vmem:[%s18809_s11 + $0x10] sm:$0xf]  ;;  %v10532_v50 = vld [vmem:[%s18809_s11 + $0xc] sm:$0xf] }
 0x73b   : > { %v12304_v32 = vpop.f32.mrb[143].mxu0  ;;  %v10538_v40 = vld [vmem:[%s18809_s11 + $0x18] sm:$0xf]  ;;  %v10536_v15 = vld [vmem:[%s18809_s11 + $0x14] sm:$0xf] }
 0x73c   : > { %v7436_v57 = vmax.f32 %v7407_v29, 0.0  ;;  %v7340_v17 = vadd.f32 %v12302_v22, %v17521_v63  ;;  %v12305_v2 = vadd.f32 %v12304_v32, %v12303_v62  ;;  %v12346_v36 = vpop.f32.mrb[172].mxu1  ;;  %v10542_v29 = vld [vmem:[%s18809_s11 + $0x20] sm:$0xf]  ;;  %v10540_v22 = vld [vmem:[%s18809_s11 + $0x1c] sm:$0xf] }
 0x73d   : > { %v12347_v4 = vpop.f32.mrb[173].mxu1  ;;  %v13317_v62 = vld [vmem:[%s18335_s12] sm:$0xff]   ;;  %v13318_v32 = vld [vmem:[%s18335_s12 + $0x48] sm:$0xff]   ;;  %s18811_s11 = sld [smem:[#allocation86_spill]] }
 0x73e   : > { %v17616_v53 = vpack.c.bf16 %v7436_v57, %v7435_v0  ;;  %v7343_v48 = vadd.f32 %v12305_v2, %v17523_v46  ;;  %v12348_v3 = vadd.f32 %v12347_v4, %v12346_v36  ;;  %v12349_v13 = vpop.f32.mrb[174].mxu1  ;;  %v13319_v0 = vld [vmem:[%s18335_s12 + $0x8] sm:$0xff]   ;;  %v13320_v57 = vld [vmem:[%s18335_s12 + $0x50] sm:$0xff]   ;;  %v13322_v2 = vld [vmem:[%s18335_s12 + $0x58] sm:$0xff]  }
 0x73f   : > { %v12350_v8 = vpop.f32.mrb[175].mxu1  ;;  %v13327_v36 = vld [vmem:[%s18335_s12 + $0xc0] sm:$0xff]  }
 0x740   : > { %v7412_v24 = vadd.f32 %v12348_v3, %v7340_v17  ;;  %v12351_v59 = vadd.f32 %v12350_v8, %v12349_v13  ;;  %v12306_v12 = vpop.f32.mrb[144].mxu0  ;;  %12583 = vmatpush3.bf16.msra.mxu0 %v17616_v53  ;;  %12611 = vmatpush3.bf16.msra.mxu1 %v17616_v53  ;;  %v13321_v17 = vld [vmem:[%s18335_s12 + $0x10] sm:$0xff]   ;;  %v13329_v4 = vld [vmem:[%s18335_s12 + $0x80] sm:$0xff]   ;;  %v13333_v13 = vld [vmem:[%s18335_s12 + $0x88] sm:$0xff]  }
 0x741   : > { %v12307_v11 = vpop.f32.mrb[145].mxu0  ;;  %12584 = vmatprep.subr.bf16.mxu0 %v13559_v21  ;;  %12612 = vmatprep.subr.bf16.mxu1 %v13559_v21  ;;  %v13324_v3 = vld [vmem:[%s18335_s12 + $0x60] sm:$0xff]  }
 0x742   : > { %v7415_v63 = vadd.f32 %v12351_v59, %v7343_v48  ;;  %v12308_v16 = vadd.f32 %v12307_v11, %v12306_v12  ;;  %v12309_v39 = vpop.f32.mrb[146].mxu0  ;;  %v7437_v46 = vmax.f32 %v7412_v24, 0.0  ;;  %v13323_v48 = vld [vmem:[%s18335_s12 + $0x18] sm:$0xff]   ;;  %v13325_v8 = vld [vmem:[%s18335_s12 + $0x20] sm:$0xff]   ;;  %v13326_v24 = vld [vmem:[%s18335_s12 + $0x68] sm:$0xff]  }
 0x743   : > { %v12310_v5 = vpop.f32.mrb[147].mxu0  ;;  %v13328_v59 = vld [vmem:[%s18335_s12 + $0x28] sm:$0xff]   ;;  %v13330_v12 = vld [vmem:[%s18335_s12 + $0x70] sm:$0xff]  }
 0x744   : > { %v7438_v14 = vmax.f32 %v7415_v63, 0.0  ;;  %v7348_v37 = vadd.f32 %v12308_v16, %v17525_v61  ;;  %v12311_v58 = vadd.f32 %v12310_v5, %v12309_v39  ;;  %v12352_v20 = vpop.f32.mrb[176].mxu1  ;;  %v13332_v11 = vld [vmem:[%s18335_s12 + $0x30] sm:$0xff]   ;;  %v13334_v63 = vld [vmem:[%s18335_s12 + $0x78] sm:$0xff]  }
 0x745   : > { %v12353_v27 = vpop.f32.mrb[177].mxu1  ;;  %v13335_v16 = vld [vmem:[%s18335_s12 + $0xd0] sm:$0xff]   ;;  %v13336_v5 = vld [vmem:[%s18335_s12 + $0x38] sm:$0xff]  }
 0x746   : > { %v17624_v55 = vpack.c.bf16 %v7438_v14, %v7437_v46  ;;  %v7351_v41 = vadd.f32 %v12311_v58, %v17527_v49  ;;  %v12354_v34 = vadd.f32 %v12353_v27, %v12352_v20  ;;  %v12355_v18 = vpop.f32.mrb[178].mxu1  ;;  %v13337_v39 = vld [vmem:[%s18335_s12 + $0x90] sm:$0xff]   ;;  %v13338_v46 = vld [vmem:[%s18335_s12 + $0xd8] sm:$0xff]   ;;  %v13342_v58 = vld [vmem:[%s18335_s12 + $0x140] sm:$0xff]  }
 0x747   : > { %v12356_v60 = vpop.f32.mrb[179].mxu1  ;;  %v13339_v14 = vld [vmem:[%s18335_s12 + $0x98] sm:$0xff]   ;;  %v13341_v20 = vld [vmem:[%s18335_s12 + $0xa0] sm:$0xff]   ;;  %v13343_v27 = vld [vmem:[%s18335_s12 + $0xe8] sm:$0xff]  }
 0x748   : > { %v7420_v7 = vadd.f32 %v12354_v34, %v7348_v37  ;;  %v12357_v10 = vadd.f32 %v12356_v60, %v12355_v18  ;;  %v12312_v30 = vpop.f32.mrb[148].mxu0  ;;  %12585 = vmatpush3.bf16.msra.mxu0 %v17624_v55  ;;  %12613 = vmatpush3.bf16.msra.mxu1 %v17624_v55  ;;  %v13340_v37 = vld [vmem:[%s18335_s12 + $0xe0] sm:$0xff]   ;;  %v13349_v34 = vld [vmem:[%s18335_s12 + $0xb0] sm:$0xff]   ;;  %v13351_v18 = vld [vmem:[%s18335_s12 + $0xf8] sm:$0xff]  }
 0x749   : > { %v12313_v52 = vpop.f32.mrb[149].mxu0  ;;  %12586 = vmatprep.subr.bf16.mxu0 %v13559_v21  ;;  %12614 = vmatprep.subr.bf16.mxu1 %v13559_v21  ;;  %v13353_v60 = vld [vmem:[%s18335_s12 + $0xb8] sm:$0xff]  }
 0x74a   : > { %v7423_v61 = vadd.f32 %v12357_v10, %v7351_v41  ;;  %v12314_v42 = vadd.f32 %v12313_v52, %v12312_v30  ;;  %v12315_v33 = vpop.f32.mrb[150].mxu0  ;;  %v7439_v49 = vmax.f32 %v7420_v7, 0.0  ;;  %v13347_v41 = vld [vmem:[%s18335_s12 + $0xf0] sm:$0xff]   ;;  %v13360_v7 = vld [vmem:[%s18335_s12 + $0x1c0] sm:$0xff]  }
 0x74b   : > { %v12316_v26 = vpop.f32.mrb[151].mxu0 }
 0x74c   : > { %v7440_v31 = vmax.f32 %v7423_v61, 0.0  ;;  %v7356_v44 = vadd.f32 %v12314_v42, %v17529_v51  ;;  %v12358_v1 = vpop.f32.mrb[180].mxu1 }
 0x74d   : > { %v12359_v56 = vpop.f32.mrb[181].mxu1 }
 0x74e   : > { %v17632_v6 = vpack.c.bf16 %v7440_v31, %v7439_v49  ;;  %v12360_v23 = vadd.f32 %v12359_v56, %v12358_v1  ;;  %v12361_v47 = vpop.f32.mrb[182].mxu1 }
 0x74f   : > { %v12362_v43 = vpop.f32.mrb[183].mxu1 }
 0x750   : > { %v7428_v28 = vadd.f32 %v12360_v23, %v7356_v44  ;;  %12587 = vmatpush3.bf16.msra.mxu0 %v17632_v6  ;;  %12615 = vmatpush3.bf16.msra.mxu1 %v17632_v6 }
 0x751   : > { %12588 = vmatprep.subr.bf16.mxu0 %v13559_v21  ;;  %12616 = vmatprep.subr.bf16.mxu1 %v13559_v21 }
 0x752   : > { %v7441_v25 = vmax.f32 %v7428_v28, 0.0  ;;  %v13346_v28 = vld [vmem:[%s18335_s12 + $0x148] sm:$0xff]  }
 0x754   : > { %v7446_v19 = vpack.c.bf16 %v7441_v25, %v7441_v25 }
 0x756   : > { %v17639_v51 = vsel %vm7452_vm2, %v7446_v19, 0 }
 0x757   : > { %12589 = vmatpush3.bf16.msra.mxu0 %v17639_v51  ;;  %12617 = vmatpush3.bf16.msra.mxu1 %v17639_v51 }
 0x758   : > { %12594 = vmatprep.subr.bf16.mxu0 %v13559_v21  ;;  %12636 = vmatprep.subr.bf16.mxu1 %v13559_v21 }
 0x75a   : > { %12591 = vmatmul.mubr.msk.bf16.vlgmr.msra.gmra.mrb[152].mxu0 %vm7448_vm3, %v7447_v35  ;;  %12619 = vmatmul.mubr.msk.bf16.vlgmr.msra.gmra.mrb[184].mxu1 %vm7448_vm3, %v10530_v54  ;;  %v13348_v35 = vld [vmem:[%s18335_s12 + $0x108] sm:$0xff]   ;;  %v13350_v54 = vld [vmem:[%s18335_s12 + $0x150] sm:$0xff]  }
 0x75b   : > { %12595 = vmatpush3.bf16.msra.mxu0 %v17608_v45  ;;  %12637 = vmatpush3.bf16.msra.mxu1 %v17608_v45 }
 0x75c   : > { %12596 = vmatprep.subr.bf16.mxu0 %v13559_v21  ;;  %12638 = vmatprep.subr.bf16.mxu1 %v13559_v21 }
 0x75d   : > { %12604 = vmatprep.mubr.msk.bf16.mxu0 %vm13560_vm1, %v13559_v21  ;;  %12646 = vmatprep.mubr.msk.bf16.mxu1 %vm13560_vm1, %v13559_v21 }
 0x75f   : > { %12597 = vmatpush3.bf16.msra.mxu0 %v17616_v53  ;;  %12639 = vmatpush3.bf16.msra.mxu1 %v17616_v53 }
 0x760   : > { %12598 = vmatprep.subr.bf16.mxu0 %v13559_v21  ;;  %12640 = vmatprep.subr.bf16.mxu1 %v13559_v21 }
 0x763   : > { %12599 = vmatpush3.bf16.msra.mxu0 %v17624_v55  ;;  %12641 = vmatpush3.bf16.msra.mxu1 %v17624_v55 }
 0x764   : > { %12600 = vmatprep.subr.bf16.mxu0 %v13559_v21  ;;  %12642 = vmatprep.subr.bf16.mxu1 %v13559_v21 }
 0x767   : > { %12601 = vmatpush3.bf16.msra.mxu0 %v17632_v6  ;;  %12643 = vmatpush3.bf16.msra.mxu1 %v17632_v6 }
 0x768   : > { %12602 = vmatprep.subr.bf16.mxu0 %v13559_v21  ;;  %12644 = vmatprep.subr.bf16.mxu1 %v13559_v21 }
 0x76b   : > { %12603 = vmatpush3.bf16.msra.mxu0 %v17639_v51  ;;  %12645 = vmatpush3.bf16.msra.mxu1 %v17639_v51 }
 0x76c   : > { %12622 = vmatprep.subr.bf16.mxu0 %v13559_v21  ;;  %12664 = vmatprep.subr.bf16.mxu1 %v13559_v21 }
 0x76e   : > { %12605 = vmatmul.mubr.msk.bf16.vlgmr.msra.gmra.mrb[156].mxu0 %vm7448_vm3, %v10528_v9  ;;  %12647 = vmatmul.mubr.msk.bf16.vlgmr.msra.gmra.mrb[188].mxu1 %vm7448_vm3, %v10534_v38  ;;  %v13352_v9 = vld [vmem:[%s18335_s12 + $0x110] sm:$0xff]   ;;  %v13354_v38 = vld [vmem:[%s18335_s12 + $0x158] sm:$0xff]  }
 0x76f   : > { %12623 = vmatpush3.bf16.msra.mxu0 %v17608_v45  ;;  %12665 = vmatpush3.bf16.msra.mxu1 %v17608_v45 }
 0x770   : > { %12624 = vmatprep.subr.bf16.mxu0 %v13559_v21  ;;  %12666 = vmatprep.subr.bf16.mxu1 %v13559_v21 }
 0x771   : > { %12632 = vmatprep.mubr.msk.bf16.mxu0 %vm13560_vm1, %v13559_v21  ;;  %12674 = vmatprep.mubr.msk.bf16.mxu1 %vm13560_vm1, %v13559_v21 }
 0x773   : > { %12625 = vmatpush3.bf16.msra.mxu0 %v17616_v53  ;;  %12667 = vmatpush3.bf16.msra.mxu1 %v17616_v53 }
 0x774   : > { %12626 = vmatprep.subr.bf16.mxu0 %v13559_v21  ;;  %12668 = vmatprep.subr.bf16.mxu1 %v13559_v21 }
 0x777   : > { %12627 = vmatpush3.bf16.msra.mxu0 %v17624_v55  ;;  %12669 = vmatpush3.bf16.msra.mxu1 %v17624_v55 }
 0x778   : > { %12628 = vmatprep.subr.bf16.mxu0 %v13559_v21  ;;  %12670 = vmatprep.subr.bf16.mxu1 %v13559_v21 }
 0x77b   : > { %12629 = vmatpush3.bf16.msra.mxu0 %v17632_v6  ;;  %12671 = vmatpush3.bf16.msra.mxu1 %v17632_v6 }
 0x77c   : > { %12630 = vmatprep.subr.bf16.mxu0 %v13559_v21  ;;  %12672 = vmatprep.subr.bf16.mxu1 %v13559_v21 }
 0x77f   : > { %12631 = vmatpush3.bf16.msra.mxu0 %v17639_v51  ;;  %12673 = vmatpush3.bf16.msra.mxu1 %v17639_v51 }
 0x780   : > { %12650 = vmatprep.subr.bf16.mxu0 %v13559_v21  ;;  %12692 = vmatprep.subr.bf16.mxu1 %v13559_v21 }
 0x782   : > { %12633 = vmatmul.mubr.msk.bf16.vlgmr.msra.gmra.mrb[160].mxu0 %vm7448_vm3, %v10532_v50  ;;  %12675 = vmatmul.mubr.msk.bf16.vlgmr.msra.gmra.mrb[192].mxu1 %vm7448_vm3, %v10538_v40  ;;  %v13355_v50 = vld [vmem:[%s18335_s12 + $0x118] sm:$0xff]   ;;  %v13356_v40 = vld [vmem:[%s18335_s12 + $0x160] sm:$0xff]  }
 0x783   : > { %12651 = vmatpush3.bf16.msra.mxu0 %v17608_v45  ;;  %12693 = vmatpush3.bf16.msra.mxu1 %v17608_v45 }
 0x784   : > { %12652 = vmatprep.subr.bf16.mxu0 %v13559_v21  ;;  %12694 = vmatprep.subr.bf16.mxu1 %v13559_v21 }
 0x785   : > { %12660 = vmatprep.mubr.msk.bf16.mxu0 %vm13560_vm1, %v13559_v21  ;;  %12702 = vmatprep.mubr.msk.bf16.mxu1 %vm13560_vm1, %v13559_v21 }
 0x787   : > { %12653 = vmatpush3.bf16.msra.mxu0 %v17616_v53  ;;  %12695 = vmatpush3.bf16.msra.mxu1 %v17616_v53 }
 0x788   : > { %12654 = vmatprep.subr.bf16.mxu0 %v13559_v21  ;;  %12696 = vmatprep.subr.bf16.mxu1 %v13559_v21 }
 0x78b   : > { %12655 = vmatpush3.bf16.msra.mxu0 %v17624_v55  ;;  %12697 = vmatpush3.bf16.msra.mxu1 %v17624_v55 }
 0x78c   : > { %12656 = vmatprep.subr.bf16.mxu0 %v13559_v21  ;;  %12698 = vmatprep.subr.bf16.mxu1 %v13559_v21 }
 0x78f   : > { %12657 = vmatpush3.bf16.msra.mxu0 %v17632_v6  ;;  %12699 = vmatpush3.bf16.msra.mxu1 %v17632_v6 }
 0x790   : > { %12658 = vmatprep.subr.bf16.mxu0 %v13559_v21  ;;  %12700 = vmatprep.subr.bf16.mxu1 %v13559_v21 }
 0x793   : > { %12659 = vmatpush3.bf16.msra.mxu0 %v17639_v51  ;;  %12701 = vmatpush3.bf16.msra.mxu1 %v17639_v51 }
 0x794   : > { %12678 = vmatprep.subr.bf16.mxu0 %v13559_v21  ;;  %12440 = vmatprep.subr.bf16.mxu1 %v13327_v36 }
 0x796   : > { %12661 = vmatmul.mubr.msk.bf16.vlgmr.msra.gmra.mrb[164].mxu0 %vm7448_vm3, %v10536_v15  ;;  %12703 = vmatmul.mubr.msk.bf16.vlgmr.msra.gmra.mrb[196].mxu1 %vm7448_vm3, %v10542_v29  ;;  %v13357_v15 = vld [vmem:[%s18335_s12 + $0x120] sm:$0xff]   ;;  %v13358_v29 = vld [vmem:[%s18335_s12 + $0x168] sm:$0xff]  }
 0x797   : > { %12679 = vmatpush3.bf16.msra.mxu0 %v17608_v45  ;;  %12688 = vmatprep.mubr.msk.bf16.mxu0 %vm13560_vm1, %v13559_v21  ;;  %v13316_v45 = vld [vmem:[%s18335_s12 + $0x40] sm:$0xff]  }
 0x798   : > { %12680 = vmatprep.subr.bf16.mxu0 %v13559_v21  ;;  %12441 = vmatpush3.bf16.msra.mxu1 %v13329_v4  ;;  %v13362_v4 = vld [vmem:[%s18335_s12 + $0x170] sm:$0xff]  }
 0x79b   : > { %12681 = vmatpush3.bf16.msra.mxu0 %v17616_v53  ;;  %v13331_v53 = vld [vmem:[%s18335_s12 + $0xc8] sm:$0xff]  }
 0x79c   : > { %12682 = vmatprep.subr.bf16.mxu0 %v13559_v21  ;;  %12442 = vmatprep.subr.bf16.mxu1 %v13331_v53  ;;  %v13364_v53 = vld [vmem:[%s18335_s12 + $0x1c8] sm:$0xff]  }
 0x79d   : > { %12443 = vmatpush3.bf16.msra.mxu1 %v13333_v13 }
 0x79e   : > { %12444 = vmatprep.subr.bf16.mxu1 %v13335_v16  ;;  %v13370_v16 = vld [vmem:[%s18335_s12 + $0x1d8] sm:$0xff]  }
 0x79f   : > { %12683 = vmatpush3.bf16.msra.mxu0 %v17624_v55  ;;  %v13345_v55 = vld [vmem:[%s18335_s12 + $0xa8] sm:$0xff]  }
 0x7a0   : > { %12684 = vmatprep.subr.bf16.mxu0 %v13559_v21 }
 0x7a1   : > { %12445 = vmatpush3.bf16.msra.mxu1 %v13337_v39  ;;  %v13372_v39 = vld [vmem:[%s18335_s12 + $0x198] sm:$0xff]  }
 0x7a2   : > { %12446 = vmatprep.subr.bf16.mxu1 %v13338_v46  ;;  %v13375_v46 = vld [vmem:[%s18335_s12 + $0x1a0] sm:$0xff]  }
 0x7a3   : > { %12685 = vmatpush3.bf16.msra.mxu0 %v17632_v6  ;;  %v13344_v6 = vld [vmem:[%s18335_s12 + $0x100] sm:$0xff]  }
 0x7a4   : > { %12686 = vmatprep.subr.bf16.mxu0 %v13559_v21 }
 0x7a5   : > { %12447 = vmatpush3.bf16.msra.mxu1 %v13339_v14  ;;  %v13376_v14 = vld [vmem:[%s18335_s12 + $0x1e8] sm:$0xff]  }
 0x7a6   : > { %12448 = vmatprep.subr.bf16.mxu1 %v13340_v37 }
 0x7a7   : > { %12687 = vmatpush3.bf16.msra.mxu0 %v17639_v51 }
 0x7a8   : > { %12418 = vmatprep.subr.bf16.mxu0 %v13316_v45 }
 0x7a9   : > { %12449 = vmatpush3.bf16.msra.mxu1 %v13341_v20 }
 0x7aa   : > { %12689 = vmatmul.mubr.msk.bf16.vlgmr.msra.gmra.mrb[168].mxu0 %vm7448_vm3, %v10540_v22  ;;  %12450 = vmatprep.subr.bf16.mxu1 %v13343_v27 }
 0x7ab   : > { %12419 = vmatpush3.bf16.msra.mxu0 %v13317_v62 }
 0x7ac   : > { %12420 = vmatprep.subr.bf16.mxu0 %v13318_v32 }
 0x7ad   : > { %12451 = vmatpush3.bf16.msra.mxu1 %v13345_v55 }
 0x7ae   : > { %12452 = vmatprep.subr.bf16.mxu1 %v13347_v41  ;;  %v13371_v41 = vld [vmem:[%s18335_s12 + $0x200] sm:$0xff]  }
 0x7af   : > { %12421 = vmatpush3.bf16.msra.mxu0 %v13319_v0 }
 0x7b0   : > { %12422 = vmatprep.subr.bf16.mxu0 %v13320_v57  ;;  %v13359_v57 = vld [vmem:[%s18335_s12 + $0x128] sm:$0xff]  }
 0x7b1   : > { %12453 = vmatpush3.bf16.msra.mxu1 %v13349_v34  ;;  %v13378_v34 = vld [vmem:[%s18335_s12 + $0x1a8] sm:$0xff]  }
 0x7b2   : > { %12454 = vmatprep.subr.bf16.mxu1 %v13351_v18 }
 0x7b3   : > { %12423 = vmatpush3.bf16.msra.mxu0 %v13321_v17  ;;  %v13361_v17 = vld [vmem:[%s18335_s12 + $0x180] sm:$0xff]  }
 0x7b4   : > { %12424 = vmatprep.subr.bf16.mxu0 %v13322_v2 }
 0x7b5   : > { %12455 = vmatpush3.bf16.msra.mxu1 %v13353_v60 }
 0x7b6   : > { %12484 = vmatprep.subr.bf16.mxu1 %v13360_v7  ;;  %v13379_v7 = vld [vmem:[%s18335_s12 + $0x1f0] sm:$0xff]  }
 0x7b7   : > { %12425 = vmatpush3.bf16.msra.mxu0 %v13323_v48 }
 0x7b8   : > { %12426 = vmatprep.subr.bf16.mxu0 %v13324_v3 }
 0x7bb   : > { %12427 = vmatpush3.bf16.msra.mxu0 %v13325_v8  ;;  %v13363_v8 = vld [vmem:[%s18335_s12 + $0x130] sm:$0xff]  }
 0x7bc   : > { %12428 = vmatprep.subr.bf16.mxu0 %v13326_v24  ;;  %v13365_v24 = vld [vmem:[%s18335_s12 + $0x188] sm:$0xff]  }
 0x7bf   : > { %12429 = vmatpush3.bf16.msra.mxu0 %v13328_v59  ;;  %v13366_v59 = vld [vmem:[%s18335_s12 + $0x178] sm:$0xff]  }
 0x7c0   : > { %12430 = vmatprep.subr.bf16.mxu0 %v13330_v12  ;;  %v13368_v12 = vld [vmem:[%s18335_s12 + $0x1d0] sm:$0xff]  }
 0x7c3   : > { %12431 = vmatpush3.bf16.msra.mxu0 %v13332_v11  ;;  %v13367_v11 = vld [vmem:[%s18335_s12 + $0x138] sm:$0xff]  }
 0x7c4   : > { %12432 = vmatprep.subr.bf16.mxu0 %v13334_v63  ;;  %v13369_v63 = vld [vmem:[%s18335_s12 + $0x190] sm:$0xff]  }
 0x7c7   : > { %12433 = vmatpush3.bf16.msra.mxu0 %v13336_v5  ;;  %v13373_v5 = vld [vmem:[%s18335_s12 + $0x1e0] sm:$0xff]  }
 0x7c8   : > { %12462 = vmatprep.subr.bf16.mxu0 %v13342_v58 }
 0x82d   : > { %v7490_v10 = vpop.f32.mrb[152].mxu0  ;;  %v7582_v30 = vpop.f32.mrb[184].mxu1 }
 0x82e   : > { %v12592_v52 = vpop.f32.mrb[153].mxu0  ;;  %v12620_v61 = vpop.f32.mrb[185].mxu1  ;;  %v7496_v47 = vpack.c.bf16 %v7490_v10, %v7490_v10  ;;  %v7588_v22 = vpack.c.bf16 %v7582_v30, %v7582_v30 }
 0x82f   : > { %v7493_v42 = vpop.f32.mrb[154].mxu0  ;;  %v7585_v33 = vpop.f32.mrb[186].mxu1  ;;  %v13374_v61 = vld [vmem:[%s18335_s12 + $0x208] sm:$0xff]  }
 0x830   : > { %v12593_v26 = vpop.f32.mrb[155].mxu0  ;;  %v12621_v49 = vpop.f32.mrb[187].mxu1  ;;  %v13381_v42 = vld [vmem:[%s18335_s12 + $0x1b0] sm:$0xff]   ;;  %v13382_v33 = vld [vmem:[%s18335_s12 + $0x1f8] sm:$0xff]  }
 0x831   : > { %v13377_v26 = vld [vmem:[%s18335_s12 + $0x210] sm:$0xff]   ;;  %v13384_v49 = vld [vmem:[%s18335_s12 + $0x1b8] sm:$0xff]  }
 0x841   : > { %v7536_v31 = vpop.f32.mrb[156].mxu0  ;;  %v17865_v44 = vpop.f32.mrb[188].mxu1 }
 0x842   : > { %v7542_v1 = vpack.c.bf16 %v7536_v31, %v7536_v31  ;;  %v12606_v56 = vpop.f32.mrb[157].mxu0  ;;  %v12648_v23 = vpop.f32.mrb[189].mxu1  ;;  %v7680_v58 = vpack.c.bf16 %v17865_v44, %v17865_v44  ;;  %v13380_v31 = vld [vmem:[%s18335_s12 + $0x218] sm:$0xff]   ;;  %v1551_v44 = vld [vmem:[%s809_s1] sm:$0xff] }
 0x843   : > { %v7539_v43 = vpop.f32.mrb[158].mxu0  ;;  %v7677_v25 = vpop.f32.mrb[190].mxu1  ;;  %v9853_v23 = vld [vmem:[%s18812_s9] ss:$0 sm:$0xff] }
 0x844   : > { %8480 = vmatprep.mubr.bf16.mxu0 %v7542_v1  ;;  %v12607_v19 = vpop.f32.mrb[159].mxu0  ;;  %v12649_v51 = vpop.f32.mrb[191].mxu1  ;;  %v9852_v1 = vld [vmem:[%s18811_s11] ss:$0 sm:$0xff] }
 0x845   : > { %8481 = vmatmul.mubr.bf16.vlgmr.msra.gmra.mrb[172].mxu0 %v7496_v47  ;;  %v1559_v56 = vsub.f32 %v1551_v44, %v9852_v1  ;;  %v8651_v47 = vld [vmem:[%s18337_s14] sm:$0xf] }
 0x846   : > { %12463 = vmatpush3.bf16.msra.mxu0 %v13344_v6  ;;  %v13383_v6 = vld [vmem:[%s18335_s12 + $0x220] sm:$0xff]  }
 0x847   : > { %12464 = vmatprep.subr.bf16.mxu0 %v13346_v28  ;;  %v1567_v25 = vmul.f32 %v9853_v23, %v1559_v56 }
 0x84a   : > { %12465 = vmatpush3.bf16.msra.mxu0 %v13348_v35  ;;  %v13385_v35 = vld [vmem:[%s18335_s12 + $0x228] sm:$0xff]  }
 0x84b   : > { %12466 = vmatprep.subr.bf16.mxu0 %v13350_v54 }
 0x84e   : > { %12467 = vmatpush3.bf16.msra.mxu0 %v13352_v9  ;;  %v8664_v9 = vsel %vm7452_vm2, %v8651_v47, 0 }
 0x84f   : > { %12468 = vmatprep.subr.bf16.mxu0 %v13354_v38 }
 0x852   : > { %12469 = vmatpush3.bf16.msra.mxu0 %v13355_v50  ;;  %v9854_v50 = vclamps-f32 %v1567_v25, 5.0 }
 0x853   : > { %12470 = vmatprep.subr.bf16.mxu0 %v13356_v40  ;;  %v13386_v40 = vld [vmem:[%s18335_s12 + $0x230] sm:$0xff]  }
 0x855   : > { %v7628_v45 = vpop.f32.mrb[160].mxu0  ;;  %v17897_v62 = vpop.f32.mrb[192].mxu1 }
 0x856   : > { %v7634_v32 = vpack.c.bf16 %v7628_v45, %v7628_v45  ;;  %v12634_v0 = vpop.f32.mrb[161].mxu0  ;;  %12471 = vmatpush3.bf16.msra.mxu0 %v13357_v15  ;;  %v12676_v2 = vpop.f32.mrb[193].mxu1  ;;  %v7772_v28 = vpack.c.bf16 %v17897_v62, %v17897_v62  ;;  %v8650_v15 = vpack.c.bf16 %v9854_v50, %v9854_v50  ;;  %v13390_v62 = vld [vmem:[%s18339_s16 + $0x4] ss:$16 sps:$4 sm:$0xff]  }
 0x857   : > { %v7631_v36 = vpop.f32.mrb[162].mxu0  ;;  %12472 = vmatprep.subr.bf16.mxu0 %v13358_v29  ;;  %v7769_v48 = vpop.f32.mrb[194].mxu1  ;;  %v13387_v29 = vld [vmem:[%s18335_s12 + $0x238] sm:$0xff]   ;;  %v13388_v0 = vld [vmem:[%s18339_s16] ss:$16 sps:$4 sm:$0xff]  }
 0x858   : > { %8520 = vmatprep.mubr.bf16.mxu1 %v7634_v32  ;;  %v12635_v3 = vpop.f32.mrb[163].mxu0  ;;  %v12677_v13 = vpop.f32.mrb[195].mxu1  ;;  %v13393_v32 = vld [vmem:[%s18339_s16 + $0xc] ss:$16 sps:$4 sm:$0xff]   ;;  %v13394_v2 = vld [vmem:[%s18339_s16 + $0x20] ss:$16 sps:$4 sm:$0xff]  }
 0x859   : > { %8521 = vmatmul.mubr.bf16.vlgmr.msra.gmra.mrb[200].mxu1 %v7588_v22  ;;  %v18813_v22 = vmov 0   ;;  %v13397_v36 = vld [vmem:[%s18339_s16 + $0x28] ss:$16 sps:$4 sm:$0xff]   ;;  %v13405_v48 = vld [vmem:[%s18339_s16 + $0x4c] ss:$16 sps:$4 sm:$0xff]  }
 0x85a   : > { %12473 = vmatpush3.bf16.msra.mxu0 %v13359_v57  ;;  %12485 = vmatpush3.bf16.msra.mxu1 %v13361_v17  ;;  %v13391_v57 = vld [vmem:[%s18339_s16 + $0x8] ss:$16 sps:$4 sm:$0xff]   ;;  %v13396_v17 = vld [vmem:[%s18339_s16 + $0x24] ss:$16 sps:$4 sm:$0xff]   ;;  %v13400_v3 = vld [vmem:[%s18339_s16 + $0x40] ss:$16 sps:$4 sm:$0xff]  }
 0x85b   : > { %12474 = vmatprep.subr.bf16.mxu0 %v13362_v4  ;;  %12486 = vmatprep.subr.bf16.mxu1 %v13364_v53  ;;  %v13399_v4 = vld [vmem:[%s18339_s16 + $0x2c] ss:$16 sps:$4 sm:$0xff]   ;;  %v13402_v53 = vld [vmem:[%s18339_s16 + $0x44] ss:$16 sps:$4 sm:$0xff]   ;;  %v13403_v13 = vld [vmem:[%s18339_s16 + $0x48] ss:$16 sps:$4 sm:$0xff]  }
 0x85e   : > { %12475 = vmatpush3.bf16.msra.mxu0 %v13363_v8  ;;  %12487 = vmatpush3.bf16.msra.mxu1 %v13365_v24  ;;  %v13408_v8 = vld [vmem:[%s18339_s16 + $0x64] ss:$16 sps:$4 sm:$0xff]   ;;  %v13411_v24 = vld [vmem:[%s18339_s16 + $0x6c] ss:$16 sps:$4 sm:$0xff]  }
 0x85f   : > { %12476 = vmatprep.subr.bf16.mxu0 %v13366_v59  ;;  %12488 = vmatprep.subr.bf16.mxu1 %v13368_v12  ;;  %v13406_v59 = vld [vmem:[%s18339_s16 + $0x60] ss:$16 sps:$4 sm:$0xff]   ;;  %v13409_v12 = vld [vmem:[%s18339_s16 + $0x68] ss:$16 sps:$4 sm:$0xff]  }
 0x862   : > { %12477 = vmatpush3.bf16.msra.mxu0 %v13367_v11  ;;  %12489 = vmatpush3.bf16.msra.mxu1 %v13369_v63  ;;  %v13414_v11 = vld [vmem:[%s18339_s16 + $0x84] ss:$16 sps:$4 sm:$0xff]   ;;  %v13417_v63 = vld [vmem:[%s18339_s16 + $0x8c] ss:$16 sps:$4 sm:$0xff]  }
 0x863   : > { %12706 = vmatprep.subr.bf16.mxu0 %v13559_v21  ;;  %12490 = vmatprep.subr.bf16.mxu1 %v13370_v16  ;;  %v13412_v16 = vld [vmem:[%s18339_s16 + $0x80] ss:$16 sps:$4 sm:$0xff]  }
 0x866   : > { %12491 = vmatpush3.bf16.msra.mxu1 %v13372_v39  ;;  %v13415_v39 = vld [vmem:[%s18339_s16 + $0x88] ss:$16 sps:$4 sm:$0xff]  }
 0x867   : > { %12492 = vmatprep.subr.bf16.mxu1 %v13373_v5  ;;  %v13418_v5 = vld [vmem:[%s18339_s16 + $0xa0] ss:$16 sps:$4 sm:$0xff]  }
 0x869   : > { %v7720_v37 = vpop.f32.mrb[164].mxu0  ;;  %v17948_v20 = vpop.f32.mrb[196].mxu1 }
 0x86a   : > { %v7726_v27 = vpack.c.bf16 %v7720_v37, %v7720_v37  ;;  %v12662_v55 = vpop.f32.mrb[165].mxu0  ;;  %12493 = vmatpush3.bf16.msra.mxu1 %v13375_v46  ;;  %v12704_v18 = vpop.f32.mrb[197].mxu1  ;;  %v7864_v45 = vpack.c.bf16 %v17948_v20, %v17948_v20  ;;  %v13420_v46 = vld [vmem:[%s18339_s16 + $0xa4] ss:$16 sps:$4 sm:$0xff]   ;;  %v13423_v37 = vld [vmem:[%s18339_s16 + $0xac] ss:$16 sps:$4 sm:$0xff]  }
 0x86b   : > { %v7723_v60 = vpop.f32.mrb[166].mxu0  ;;  %12494 = vmatprep.subr.bf16.mxu1 %v13376_v14  ;;  %v7861_v10 = vpop.f32.mrb[198].mxu1  ;;  %v13421_v14 = vld [vmem:[%s18339_s16 + $0xa8] ss:$16 sps:$4 sm:$0xff]   ;;  %v13429_v20 = vld [vmem:[%s18339_s16 + $0xcc] ss:$16 sps:$4 sm:$0xff]  }
 0x86c   : > { %8560 = vmatprep.mubr.bf16.mxu0 %v7726_v27  ;;  %v12663_v30 = vpop.f32.mrb[167].mxu0  ;;  %v12705_v52 = vpop.f32.mrb[199].mxu1  ;;  %v13424_v27 = vld [vmem:[%s18339_s16 + $0xc0] ss:$16 sps:$4 sm:$0xff]   ;;  %v13427_v55 = vld [vmem:[%s18339_s16 + $0xc8] ss:$16 sps:$4 sm:$0xff]  }
 0x86d   : > { %8561 = vmatmul.mubr.bf16.vlgmr.msra.gmra.mrb[176].mxu0 %v7680_v58  ;;  %v13426_v58 = vld [vmem:[%s18339_s16 + $0xc4] ss:$16 sps:$4 sm:$0xff]   ;;  %v13430_v18 = vld [vmem:[%s18339_s16 + $0xe0] ss:$16 sps:$4 sm:$0xff]   ;;  %v13433_v60 = vld [vmem:[%s18339_s16 + $0xe8] ss:$16 sps:$4 sm:$0xff]  }
 0x86e   : > { %12707 = vmatpush3.bf16.msra.mxu0 %v13371_v41  ;;  %12495 = vmatpush3.bf16.msra.mxu1 %v13378_v34  ;;  %v13432_v41 = vld [vmem:[%s18339_s16 + $0xe4] ss:$16 sps:$4 sm:$0xff]   ;;  %v13435_v34 = vld [vmem:[%s18339_s16 + $0xec] ss:$16 sps:$4 sm:$0xff]  }
 0x86f   : > { %12708 = vmatprep.subr.bf16.mxu0 %v13559_v21  ;;  %12496 = vmatprep.subr.bf16.mxu1 %v13379_v7  ;;  %v13436_v7 = vld [vmem:[%s18342_s19 + $0x40] sm:$0xff]  }
 0x870   : > { %12722 = vmatprep.mubr.msk.bf16.mxu0 %vm13560_vm1, %v13559_v21  ;;  %v13438_v10 = vld [vmem:[%s18342_s19 + $0xc0] sm:$0xff]  }
 0x872   : > { %12709 = vmatpush3.bf16.msra.mxu0 %v13374_v61  ;;  %12497 = vmatpush3.bf16.msra.mxu1 %v13381_v42 }
 0x873   : > { %12710 = vmatprep.subr.bf16.mxu0 %v13559_v21  ;;  %12498 = vmatprep.subr.bf16.mxu1 %v13382_v33 }
 0x876   : > { %12711 = vmatpush3.bf16.msra.mxu0 %v13377_v26  ;;  %12499 = vmatpush3.bf16.msra.mxu1 %v13384_v49  ;;  %v10544_v26 = vld [vmem:[%s18336_s13] ss:$0 sm:$0xff] }
 0x877   : > { %12712 = vmatprep.subr.bf16.mxu0 %v13559_v21  ;;  %12726 = vmatprep.subr.bf16.mxu1 %v13559_v21 }
 0x87a   : > { %12713 = vmatpush3.bf16.msra.mxu0 %v13380_v31 }
 0x87b   : > { %12714 = vmatprep.subr.bf16.mxu0 %v13559_v21 }
 0x87d   : > { %v7812_v43 = vpop.f32.mrb[168].mxu0 }
 0x87e   : > { %v7818_v19 = vpack.c.bf16 %v7812_v43, %v7812_v43  ;;  %12715 = vmatpush3.bf16.msra.mxu0 %v13383_v6  ;;  %v12690_v51 = vpop.f32.mrb[169].mxu0 }
 0x87f   : > { %12716 = vmatprep.subr.bf16.mxu0 %v13559_v21  ;;  %v7815_v54 = vpop.f32.mrb[170].mxu0 }
 0x880   : > { %8600 = vmatprep.mubr.bf16.mxu1 %v7818_v19  ;;  %v12691_v38 = vpop.f32.mrb[171].mxu0 }
 0x881   : > { %8601 = vmatmul.mubr.bf16.vlgmr.msra.gmra.mrb[204].mxu1 %v7772_v28 }
 0x882   : > { %12717 = vmatpush3.bf16.msra.mxu0 %v13385_v35  ;;  %12727 = vmatpush3.bf16.msra.mxu1 %v8664_v9 }
 0x883   : > { %12718 = vmatprep.subr.bf16.mxu0 %v13559_v21  ;;  %12728 = vmatprep.mubr.msk.bf16.mxu1 %vm13560_vm1, %v13559_v21 }
 0x884   : > { %8922 = vmatprep.subr.bf16.mxu1 %v13390_v62 }
 0x886   : > { %12719 = vmatpush3.bf16.msra.mxu0 %v13386_v40 }
 0x887   : > { %12720 = vmatprep.subr.bf16.mxu0 %v13559_v21 }
 0x889   : > { %12729 = vmatmul.mubr.msk.bf16.vlgmr.msra.gmra.mrb[208].mxu1 %vm8659_vm4, %v8650_v15  ;;  %v10617_v15 = vld [vmem:[%s18338_s15] ss:$0 sm:$0xff] }
 0x88a   : > { %12721 = vmatpush3.bf16.msra.mxu0 %v13387_v29  ;;  %8954 = vmatprep.mubr.bf16.mxu1 %v18813_v22 }
 0x88b   : > { %8963 = vmatprep.subr.bf16.mxu0 %v13393_v32  ;;  %8923 = vmatpush1.bf16.msra.mxu1 %v13388_v0 }
 0x88c   : > { %8924 = vmatprep.subr.bf16.mxu1 %v13396_v17  ;;  %v13437_v17 = vld [vmem:[%s18342_s19] sm:$0xff]  }
 0x88d   : > { %12723 = vmatmul.mubr.bf16.vlgmr.msra.gmra.mrb[180].mxu0 %v7864_v45 }
 0x88e   : > { %8995 = vmatprep.mubr.bf16.mxu0 %v18813_v22  ;;  %8964 = vmatpush1.bf16.msra.mxu0 %v13391_v57 }
 0x88f   : > { %8965 = vmatprep.subr.bf16.mxu0 %v13399_v4  ;;  %8925 = vmatpush1.bf16.msra.mxu1 %v13394_v2  ;;  %v13439_v2 = vld [vmem:[%s18342_s19 + $0x80] sm:$0xff]  }
 0x890   : > { %8926 = vmatprep.subr.bf16.mxu1 %v13402_v53 }
 0x892   : > { %8966 = vmatpush1.bf16.msra.mxu0 %v13397_v36 }
 0x893   : > { %8967 = vmatprep.subr.bf16.mxu0 %v13405_v48  ;;  %8927 = vmatpush1.bf16.msra.mxu1 %v13400_v3  ;;  %v13440_v48 = vld [vmem:[%s18342_s19 + $0x48] sm:$0xff]  }
 0x894   : > { %8928 = vmatprep.subr.bf16.mxu1 %v13408_v8  ;;  %v13442_v3 = vld [vmem:[%s18342_s19 + $0xc8] sm:$0xff]  }
 0x896   : > { %8968 = vmatpush1.bf16.msra.mxu0 %v13403_v13 }
 0x897   : > { %8969 = vmatprep.subr.bf16.mxu0 %v13411_v24  ;;  %8929 = vmatpush1.bf16.msra.mxu1 %v13406_v59  ;;  %v13441_v24 = vld [vmem:[%s18342_s19 + $0x8] sm:$0xff]  }
 0x898   : > { %8930 = vmatprep.subr.bf16.mxu1 %v13414_v11  ;;  %v13443_v59 = vld [vmem:[%s18342_s19 + $0x88] sm:$0xff]   ;;  %v13446_v11 = vld [vmem:[%s18342_s19 + $0xd0] sm:$0xff]  }
 0x89a   : > { %8970 = vmatpush1.bf16.msra.mxu0 %v13409_v12  ;;  %v13444_v12 = vld [vmem:[%s18342_s19 + $0x50] sm:$0xff]  }
 0x89b   : > { %8971 = vmatprep.subr.bf16.mxu0 %v13417_v63  ;;  %8931 = vmatpush1.bf16.msra.mxu1 %v13412_v16  ;;  %v13445_v63 = vld [vmem:[%s18342_s19 + $0x10] sm:$0xff]  }
 0x89c   : > { %8932 = vmatprep.subr.bf16.mxu1 %v13420_v46  ;;  %v13447_v16 = vld [vmem:[%s18342_s19 + $0x90] sm:$0xff]   ;;  %v13449_v46 = vld [vmem:[%s18342_s19 + $0x18] sm:$0xff]  }
 0x89e   : > { %8972 = vmatpush1.bf16.msra.mxu0 %v13415_v39  ;;  %v13448_v39 = vld [vmem:[%s18342_s19 + $0x58] sm:$0xff]  }
 0x89f   : > { %8973 = vmatprep.subr.bf16.mxu0 %v13423_v37  ;;  %8933 = vmatpush1.bf16.msra.mxu1 %v13418_v5  ;;  %v13450_v5 = vld [vmem:[%s18342_s19 + $0xd8] sm:$0xff]   ;;  %v13452_v37 = vld [vmem:[%s18342_s19 + $0x60] sm:$0xff]  }
 0x8a0   : > { %8934 = vmatprep.subr.bf16.mxu1 %v13426_v58  ;;  %v13454_v58 = vld [vmem:[%s18342_s19 + $0xe0] sm:$0xff]  }
 0x8a2   : > { %8974 = vmatpush1.bf16.msra.mxu0 %v13421_v14  ;;  %v13451_v14 = vld [vmem:[%s18342_s19 + $0x98] sm:$0xff]  }
 0x8a3   : > { %8975 = vmatprep.subr.bf16.mxu0 %v13429_v20  ;;  %8935 = vmatpush1.bf16.msra.mxu1 %v13424_v27  ;;  %v13453_v20 = vld [vmem:[%s18342_s19 + $0x20] sm:$0xff]  }
 0x8a4   : > { %8936 = vmatprep.subr.bf16.mxu1 %v13432_v41  ;;  %v13455_v27 = vld [vmem:[%s18342_s19 + $0xa0] sm:$0xff]   ;;  %v13458_v41 = vld [vmem:[%s18342_s19 + $0xe8] sm:$0xff]  }
 0x8a6   : > { %8976 = vmatpush1.bf16.msra.mxu0 %v13427_v55  ;;  %v13456_v55 = vld [vmem:[%s18342_s19 + $0x68] sm:$0xff]  }
 0x8a7   : > { %8977 = vmatprep.subr.bf16.mxu0 %v13435_v34  ;;  %8937 = vmatpush1.bf16.msra.mxu1 %v13430_v18  ;;  %v13457_v34 = vld [vmem:[%s18342_s19 + $0x28] sm:$0xff]  }
 0x8a8   : > { %12517 = vmatprep.subr.bf16.mxu1 %v13436_v7  ;;  %v13459_v18 = vld [vmem:[%s18342_s19 + $0xa8] sm:$0xff]   ;;  %v13461_v7 = vld [vmem:[%s18342_s19 + $0x30] sm:$0xff]  }
 0x8aa   : > { %8978 = vmatpush1.bf16.msra.mxu0 %v13433_v60  ;;  %v13460_v60 = vld [vmem:[%s18342_s19 + $0x70] sm:$0xff]  }
 0x8ab   : > { %12539 = vmatprep.subr.bf16.mxu0 %v13438_v10  ;;  %v13462_v10 = vld [vmem:[%s18342_s19 + $0xf0] sm:$0xff]  }
 0x918   : > { %v12434_v30 = vpop.f32.mrb[172].mxu0 }
 0x919   : > { %v12435_v52 = vpop.f32.mrb[173].mxu0 }
 0x91a   : > { %v12436_v61 = vadd.f32 %v12435_v52, %v12434_v30  ;;  %v12437_v42 = vpop.f32.mrb[174].mxu0  ;;  %v13463_v30 = vld [vmem:[%s18342_s19 + $0xb0] sm:$0xff]   ;;  %v13464_v52 = vld [vmem:[%s18342_s19 + $0x78] sm:$0xff]  }
 0x91b   : > { %v12438_v33 = vpop.f32.mrb[175].mxu0  ;;  %v13466_v42 = vld [vmem:[%s18342_s19 + $0xf8] sm:$0xff]  }
 0x91c   : > { %v8483_v44 = vadd.f32 %v12436_v61, %v10544_v26  ;;  %v13465_v61 = vld [vmem:[%s18342_s19 + $0x38] sm:$0xff]   ;;  %v8742_v26 = vlaneseq }
 0x91d   : > { %v13467_v33 = vld [vmem:[%s18342_s19 + $0xb8] sm:$0xff]  }
 0x92c   : > { %v12456_v49 = vpop.f32.mrb[200].mxu1 }
 0x92d   : > { %v12457_v31 = vpop.f32.mrb[201].mxu1 }
 0x92e   : > { %v12458_v1 = vadd.f32 %v12457_v31, %v12456_v49  ;;  %v12459_v56 = vpop.f32.mrb[202].mxu1  ;;  %v8743_v49 = vshrl.u32 %v8742_v26, 7 }
 0x92f   : > { %v12460_v6 = vpop.f32.mrb[203].mxu1 }
 0x930   : > { %v8523_v23 = vadd.f32 %v12458_v1, %v8483_v44  ;;  %v8744_v31 = vsub.s32 0, %v8743_v49  ;;  %v8752_v44 = vsub.s32 2, %v8743_v49  ;;  %v8740_v1 = vld [vmem:[%s18340_s17] sm:$0xf]  ;;  %v8748_v56 = vsub.s32 1, %v8743_v49 }
 0x931   : > { %v8756_v6 = vsub.s32 3, %v8743_v49  ;;  %v13480_v49 = vld [vmem:[%s18346_s23] sm:$0xff]  }
 0x940   : > { %v12478_v47 = vpop.f32.mrb[176].mxu0 }
 0x941   : > { %v12479_v43 = vpop.f32.mrb[177].mxu0 }
 0x942   : > { %v12480_v28 = vadd.f32 %v12479_v43, %v12478_v47  ;;  %v12481_v25 = vpop.f32.mrb[178].mxu0  ;;  %v8753_v47 = vrot.slane %v8740_v1, %v8752_v44  ;;  %v8749_v43 = vrot.slane %v8740_v1, %v8748_v56  ;;  %v13481_v44 = vld [vmem:[%s18346_s23 + $0x8] sm:$0xff]   ;;  %v13483_v56 = vld [vmem:[%s18346_s23 + $0x18] sm:$0xff]  }
 0x943   : > { %v12482_v19 = vpop.f32.mrb[179].mxu0 }
 0x944   : > { %v8563_v51 = vadd.f32 %v12480_v28, %v8523_v23  ;;  %v8745_v23 = vrot.slane %v8740_v1, %v8744_v31  ;;  %v8757_v28 = vrot.slane %v8740_v1, %v8756_v6  ;;  %v13482_v1 = vld [vmem:[%s18346_s23 + $0x10] sm:$0xff]   ;;  %v10692_v6 = vld [vmem:[%s18345_s22] ss:$0 sm:$0xff] }
 0x954   : > { %v12500_v35 = vpop.f32.mrb[204].mxu1 }
 0x955   : > { %v12501_v54 = vpop.f32.mrb[205].mxu1 }
 0x956   : > { %v12502_v9 = vadd.f32 %v12501_v54, %v12500_v35  ;;  %v12503_v38 = vpop.f32.mrb[206].mxu1 }
 0x957   : > { %v12504_v50 = vpop.f32.mrb[207].mxu1 }
 0x958   : > { %v8603_v40 = vadd.f32 %v12502_v9, %v8563_v51 }
 0x95c   : > { %v8700_v29 = vpop.f32.mrb[208].mxu1 }
 0x95d   : > { %v8701_v45 = vadd.f32 %v10617_v15, %v8700_v29  ;;  %v12730_v22 = vpop.f32.mrb[209].mxu1 }
 0x95e   : > { %v8703_v62 = vpop.f32.mrb[210].mxu1 }
 0x95f   : > { %v8706_v32 = vmax.f32 %v8701_v45, 0.0  ;;  %v12731_v0 = vpop.f32.mrb[211].mxu1 }
 0x960   : > { %v8642_v57 = vpop.f32.mrb[180].mxu0 }
 0x961   : > { %v8707_v36 = vpack.c.bf16 %v8706_v32, %v8706_v32  ;;  %v18142_v4 = vadd.f32 %v8642_v57, %v8603_v40  ;;  %v12724_v53 = vpop.f32.mrb[181].mxu0 }
 0x962   : > { %v8645_v13 = vpop.f32.mrb[182].mxu0 }
 0x963   : > { %8955 = vmatmul.mubr.bf16.vlgmr.msra.gmra.mrb[212].mxu1 %v8707_v36  ;;  %8996 = vmatmul.mubr.bf16.vlgmr.msra.gmra.mrb[184].mxu0 %v8707_v36  ;;  %v12725_v8 = vpop.f32.mrb[183].mxu0  ;;  %v13471_v13 = vld [vmem:[%s18341_s18 + $0x18] sm:$0xff]  }
 0x964   : > { %12518 = vmatpush3.bf16.msra.mxu1 %v13437_v17  ;;  %12540 = vmatpush3.bf16.msra.mxu0 %v13439_v2  ;;  %v13468_v2 = vld [vmem:[%s18341_s18] sm:$0xff]  }
 0x965   : > { %12519 = vmatprep.subr.bf16.mxu1 %v13440_v48  ;;  %12541 = vmatprep.subr.bf16.mxu0 %v13442_v3  ;;  %v13469_v48 = vld [vmem:[%s18341_s18 + $0x8] sm:$0xff]   ;;  %v13470_v3 = vld [vmem:[%s18341_s18 + $0x10] sm:$0xff]   ;;  %v13472_v8 = vld [vmem:[%s18341_s18 + $0x20] sm:$0xff]  }
 0x968   : > { %12520 = vmatpush3.bf16.msra.mxu1 %v13441_v24  ;;  %12542 = vmatpush3.bf16.msra.mxu0 %v13443_v59  ;;  %v13473_v24 = vld [vmem:[%s18341_s18 + $0x28] sm:$0xff]   ;;  %v13474_v59 = vld [vmem:[%s18341_s18 + $0x30] sm:$0xff]  }
 0x969   : > { %12521 = vmatprep.subr.bf16.mxu1 %v13444_v12  ;;  %12543 = vmatprep.subr.bf16.mxu0 %v13446_v11  ;;  %v13475_v12 = vld [vmem:[%s18341_s18 + $0x38] sm:$0xff]   ;;  %v8648_v11 = vmax.f32 %v18142_v4, 0.0  ;;  %v13478_v4 = vld [vmem:[%s18344_s21 + $0x10] sm:$0xff]  }
 0x96c   : > { %12522 = vmatpush3.bf16.msra.mxu1 %v13445_v63  ;;  %12544 = vmatpush3.bf16.msra.mxu0 %v13447_v16  ;;  %v8649_v63 = vpack.c.bf16 %v8648_v11, %v8648_v11  ;;  %v13476_v16 = vld [vmem:[%s18344_s21] sm:$0xff]  }
 0x96d   : > { %12523 = vmatprep.subr.bf16.mxu1 %v13448_v39  ;;  %12545 = vmatprep.subr.bf16.mxu0 %v13450_v5  ;;  %v13477_v39 = vld [vmem:[%s18344_s21 + $0x8] sm:$0xff]   ;;  %v13479_v5 = vld [vmem:[%s18344_s21 + $0x18] sm:$0xff]  }
 0x970   : > { %12524 = vmatpush3.bf16.msra.mxu1 %v13449_v46  ;;  %12546 = vmatpush3.bf16.msra.mxu0 %v13451_v14 }
 0x971   : > { %12525 = vmatprep.subr.bf16.mxu1 %v13452_v37  ;;  %12547 = vmatprep.subr.bf16.mxu0 %v13454_v58 }
 0x974   : > { %12526 = vmatpush3.bf16.msra.mxu1 %v13453_v20  ;;  %12548 = vmatpush3.bf16.msra.mxu0 %v13455_v27 }
 0x975   : > { %12527 = vmatprep.subr.bf16.mxu1 %v13456_v55  ;;  %12549 = vmatprep.subr.bf16.mxu0 %v13458_v41 }
 0x978   : > { %12528 = vmatpush3.bf16.msra.mxu1 %v13457_v34  ;;  %12550 = vmatpush3.bf16.msra.mxu0 %v13459_v18 }
 0x979   : > { %12529 = vmatprep.subr.bf16.mxu1 %v13460_v60  ;;  %12551 = vmatprep.subr.bf16.mxu0 %v13462_v10  ;;  %v10691_v10 = vld [vmem:[%s18343_s20] ss:$0 sm:$0xff] }
 0x97c   : > { %12530 = vmatpush3.bf16.msra.mxu1 %v13461_v7  ;;  %12552 = vmatpush3.bf16.msra.mxu0 %v13463_v30 }
 0x97d   : > { %12531 = vmatprep.subr.bf16.mxu1 %v13464_v52  ;;  %12553 = vmatprep.subr.bf16.mxu0 %v13466_v42 }
 0x980   : > { %12532 = vmatpush3.bf16.msra.mxu1 %v13465_v61  ;;  %12554 = vmatpush3.bf16.msra.mxu0 %v13467_v33 }
 0x981   : > { %12732 = vmatprep.subr.bf16.mxu1 %v13559_v21  ;;  %12752 = vmatprep.subr.bf16.mxu0 %v13559_v21 }
 0xa36   : > { %v8956_v25 = vpop.f32.mrb[212].mxu1  ;;  %v8997_v19 = vpop.f32.mrb[184].mxu0 }
 0xa37   : > { %v8957_v51 = vadd.f32 %v8956_v25, %v8745_v23  ;;  %v8998_v35 = vadd.f32 %v8997_v19, %v8753_v47  ;;  %v8958_v54 = vpop.f32.mrb[213].mxu1  ;;  %v8999_v9 = vpop.f32.mrb[185].mxu0 }
 0xa38   : > { %v8959_v38 = vadd.f32 %v8958_v54, %v8749_v43  ;;  %v9000_v50 = vadd.f32 %v8999_v9, %v8757_v28  ;;  %v8960_v40 = vpop.f32.mrb[214].mxu1  ;;  %v9001_v15 = vpop.f32.mrb[186].mxu0 }
 0xa39   : > { %v9004_v29 = vmax.f32 %v8957_v51, 0.0  ;;  %v9006_v45 = vmax.f32 %v8998_v35, 0.0  ;;  %v8961_v22 = vpop.f32.mrb[215].mxu1  ;;  %v9002_v62 = vpop.f32.mrb[187].mxu0 }
 0xa3a   : > { %v9005_v32 = vmax.f32 %v8959_v38, 0.0  ;;  %v9007_v0 = vmax.f32 %v9000_v50, 0.0  ;;  %v10704_v22 = vld [vmem:[#allocation2] ss:$0 sm:$0xff] }
 0xa3b   : > { %v9008_v36 = vpack.c.bf16 %v9004_v29, %v9004_v29  ;;  %v9010_v53 = vpack.c.bf16 %v9006_v45, %v9006_v45 }
 0xa3c   : > { %v9009_v57 = vpack.c.bf16 %v9005_v32, %v9005_v32  ;;  %v9011_v17 = vpack.c.bf16 %v9007_v0, %v9007_v0 }
 0xa3e   : > { %9316 = vmatprep.mubr.bf16.mxu1 %v9009_v57  ;;  %9356 = vmatprep.mubr.bf16.mxu0 %v9011_v17 }
 0xa3f   : > { %9317 = vmatmul.mubr.bf16.vlgmr.msra.gmra.mrb[216].mxu1 %v9008_v36  ;;  %9357 = vmatmul.mubr.bf16.vlgmr.msra.gmra.mrb[188].mxu0 %v9010_v53 }
 0xa40   : > { %12733 = vmatpush3.bf16.msra.mxu1 %v13468_v2  ;;  %12748 = vmatprep.mubr.msk.bf16.mxu1 %vm13560_vm1, %v13559_v21 }
 0xa41   : > { %12734 = vmatprep.subr.bf16.mxu1 %v13559_v21  ;;  %12760 = vmatprep.mubr.msk.bf16.mxu0 %vm13560_vm1, %v13559_v21 }
 0xa42   : > { %12753 = vmatpush3.bf16.msra.mxu0 %v13476_v16 }
 0xa43   : > { %12754 = vmatprep.subr.bf16.mxu0 %v13559_v21 }
 0xa44   : > { %12735 = vmatpush3.bf16.msra.mxu1 %v13469_v48 }
 0xa45   : > { %12736 = vmatprep.subr.bf16.mxu1 %v13559_v21 }
 0xa46   : > { %12755 = vmatpush3.bf16.msra.mxu0 %v13477_v39 }
 0xa47   : > { %12756 = vmatprep.subr.bf16.mxu0 %v13559_v21 }
 0xa48   : > { %12737 = vmatpush3.bf16.msra.mxu1 %v13470_v3 }
 0xa49   : > { %12738 = vmatprep.subr.bf16.mxu1 %v13559_v21 }
 0xa4a   : > { %12757 = vmatpush3.bf16.msra.mxu0 %v13478_v4 }
 0xa4b   : > { %12758 = vmatprep.subr.bf16.mxu0 %v13559_v21 }
 0xa4c   : > { %12739 = vmatpush3.bf16.msra.mxu1 %v13471_v13 }
 0xa4d   : > { %12740 = vmatprep.subr.bf16.mxu1 %v13559_v21 }
 0xa4e   : > { %12759 = vmatpush3.bf16.msra.mxu0 %v13479_v5 }
 0xa4f   : > { %12764 = vmatprep.subr.bf16.mxu0 %v13559_v21 }
 0xa50   : > { %12741 = vmatpush3.bf16.msra.mxu1 %v13472_v8 }
 0xa51   : > { %12742 = vmatprep.subr.bf16.mxu1 %v13559_v21 }
 0xa54   : > { %12743 = vmatpush3.bf16.msra.mxu1 %v13473_v24 }
 0xa55   : > { %12744 = vmatprep.subr.bf16.mxu1 %v13559_v21 }
 0xa58   : > { %12745 = vmatpush3.bf16.msra.mxu1 %v13474_v59 }
 0xa59   : > { %12746 = vmatprep.subr.bf16.mxu1 %v13559_v21 }
 0xa5c   : > { %12747 = vmatpush3.bf16.msra.mxu1 %v13475_v12 }
 0xa5f   : > { %12749 = vmatmul.mubr.bf16.vlgmr.msra.gmra.mrb[220].mxu1 %v8649_v63 }
 0xb12   : > { %v12533_v46 = vpop.f32.mrb[216].mxu1  ;;  %v12555_v14 = vpop.f32.mrb[188].mxu0 }
 0xb13   : > { %v12534_v37 = vpop.f32.mrb[217].mxu1  ;;  %v12556_v58 = vpop.f32.mrb[189].mxu0 }
 0xb14   : > { %v12535_v20 = vadd.f32 %v12534_v37, %v12533_v46  ;;  %v12557_v27 = vadd.f32 %v12556_v58, %v12555_v14  ;;  %v12536_v55 = vpop.f32.mrb[218].mxu1  ;;  %v12558_v41 = vpop.f32.mrb[190].mxu0 }
 0xb15   : > { %v12537_v34 = vpop.f32.mrb[219].mxu1  ;;  %v12559_v18 = vpop.f32.mrb[191].mxu0 }
 0xb16   : > { %v9359_v60 = vadd.f32 %v12557_v27, %v12535_v20 }
 0xb32   : > { %v9446_v7 = vpop.f32.mrb[220].mxu1 }
 0xb33   : > { %v9447_v30 = vadd.f32 %v9446_v7, %v9359_v60  ;;  %v12750_v52 = vpop.f32.mrb[221].mxu1 }
 0xb34   : > { %v9449_v61 = vpop.f32.mrb[222].mxu1 }
 0xb35   : > { %v9459_v42 = vadd.f32 %v10691_v10, %v9447_v30  ;;  %v12751_v33 = vpop.f32.mrb[223].mxu1 }
 0xb37   : > { %v9460_v26 = vmax.f32 %v9459_v42, 0.0  ;;  %9629 = vrot.lane.b32.xlu0 %v9459_v42, %s18742_s6 }
 0xb39   : > { %v9461_v31 = vpack.c.bf16 %v9460_v26, %v9460_v26 }
 0xb3b   : > { %12761 = vmatmul.mubr.msk.bf16.vlgmr.msra.gmra.mrb[192].mxu0 %vm6465_vm0, %v9461_v31 }
 0xb3c   : > { %12765 = vmatpush3.bf16.msra.mxu0 %v13480_v49  ;;  %12772 = vmatprep.mubr.msk.bf16.mxu0 %vm13560_vm1, %v13559_v21 }
 0xb3d   : > { %12766 = vmatprep.subr.bf16.mxu0 %v13559_v21 }
 0xb40   : > { %12767 = vmatpush3.bf16.msra.mxu0 %v13481_v44 }
 0xb41   : > { %12768 = vmatprep.subr.bf16.mxu0 %v13559_v21 }
 0xb44   : > { %12769 = vmatpush3.bf16.msra.mxu0 %v13482_v1 }
 0xb45   : > { %12770 = vmatprep.subr.bf16.mxu0 %v13559_v21  ;;  %v10698_v21 = vld [vmem:[%s18347_s24] ss:$0 sm:$0xff] }
 0xb48   : > { %12771 = vmatpush3.bf16.msra.mxu0 %v13483_v56 }
 0xba9   : > { %v9630_v38 = vpop.permute.xlu0 %9629 }
 0xc0e   : > { %v9538_v23 = vpop.f32.mrb[192].mxu0 }
 0xc0f   : > { %v9539_v47 = vadd.f32 %v10692_v6, %v9538_v23  ;;  %v12762_v43 = vpop.f32.mrb[193].mxu0 }
 0xc10   : > { %v9541_v28 = vpop.f32.mrb[194].mxu0 }
 0xc11   : > { %v9544_v25 = vmax.f32 %v9539_v47, 0.0  ;;  %v12763_v19 = vpop.f32.mrb[195].mxu0 }
 0xc13   : > { %v9545_v51 = vpack.c.bf16 %v9544_v25, %v9544_v25 }
 0xc15   : > { %12773 = vmatmul.mubr.msk.bf16.vlgmr.msra.gmra.mrb[196].mxu0 %vm6465_vm0, %v9545_v51 }
 0xce8   : > { %v9622_v35 = vpop.f32.mrb[196].mxu0 }
 0xce9   : > { %v9623_v54 = vadd.f32 %v10698_v21, %v9622_v35  ;;  %v12774_v9 = vpop.f32.mrb[197].mxu0 }
 0xcea   : > { %v9625_v50 = vpop.f32.mrb[198].mxu0 }
 0xceb   : > { %v9632_v40 = vsub.f32 %v9623_v54, %v9630_v38  ;;  %v12775_v15 = vpop.f32.mrb[199].mxu0 }
 0xced   : > { %v9633_v29 = vmul.f32 %v9632_v40, %v9632_v40 }
 0xcef   : > { %v9634_v45 = vsel %vm6465_vm0, %v9633_v29, 0.0 }
 0xcf0   : > { %9635 = vadd.xlane.f32.xlu1 %v9634_v45 }
 0xd7d   : > { %v9636_v62 = vpop.xlane.xlu1 %9635 }
 0xd7e   : > { %v9638_v32 = vmul.f32 0.015625, %v9636_v62 }
 0xd80   : > { %v9646_v0 = vmul.f32 %v10704_v22, %v9638_v32 }
 0xd82   : > { %9648 = vst.msk [vmem:[%s813_s10] sm:$0xff] %vm9647_vm5, %v9646_v0 }
 0xd83 PF: > { %s38_s7 = sadd.s32 1, %s13555_s7  }
 0xd84   : > { %p35_p5 = scmp.ge.s32.totalorder %s38_s7, 4  }
 0xd86   :  { %37 = sbr.rel (!%p35_p5) target bundleno = 13 (0xd), region = 180 }

</bundles_post_ra>
